<compile_context>
chip_gen: v5e
topology: v5e:2x2
jax: 0.10.0
libtpu: 0.0.40
codegen_flags: <defaults>
</compile_context>

<pallas_src>
import functools

import jax
import jax.numpy as jnp
import numpy as np
from jax.experimental import pallas as pl
from jax.experimental.pallas import tpu as pltpu


# ----------------------------------------------------------------------------
# Fused forward kernel: conv3x3(+folded 1x1) -> ReLU6/6 -> conv3x3(folded cat)
#                       -> ReLU -> 1x1 -> Sigmoid, per (batch, row-tile).
# ----------------------------------------------------------------------------
def _fused_kernel(x_ref, wA_ref, bA_ref, wB_ref, bB_ref, wC_ref, bC_ref,
                  o_ref, y_scr, a1_scr, a2_scr, *, H, W, TH, Cin, C):
    # x_ref : (1, H+4, W+2, Cin) input, zero-padded by (2, 1) in (H, W)
    # wA_ref: (9*Cin, C) bf16    split_net 3x3 with the 1x1 folded in (im2col)
    # bA_ref: (1, C) f32
    # wB_ref: (9*C, C)  bf16     select_net 3x3, concat halves pre-summed
    # bB_ref: (1, C) f32
    # wC_ref: (1, 1, C) f32      select_net 1x1 head
    # bC_ref: (1, 1) f32
    # o_ref : (1, TH, W) f32     sigmoid output tile (lane axis = W)
    # y_scr : (TH+2, W+2, C) f32 intermediate y with a zero halo ring
    # a1_scr: ((TH+2)*W, 9*Cin)  im2col slab for conv A
    # a2_scr: (TH*W, 9*C)        im2col slab for conv B
    r0 = pl.program_id(1) * TH            # first output row of this tile
    if TH % 8 == 0:
        r0 = pl.multiple_of(r0, 8)

    # ---- conv A (split_net), computed on TH+2 rows to supply conv B's halo
    M1 = (TH + 2) * W
    for k in range(9):                    # static unroll: build im2col slab
        dh, dw = divmod(k, 3)
        patch = x_ref[0, pl.ds(r0 + dh, TH + 2), dw:dw + W, :]   # (TH+2, W, Cin)
        a1_scr[:, k * Cin:(k + 1) * Cin] = patch.reshape(M1, Cin)
    actA = jnp.dot(a1_scr[...].astype(wA_ref.dtype), wA_ref[...],
                   preferred_element_type=jnp.float32) + bA_ref[...]
    y = jnp.clip(actA, 0.0, 6.0) * (1.0 / 6.0)        # ReLU6(.) / 6
    y = y.reshape(TH + 2, W, C)
    # rows outside the image act as conv B's zero padding
    t = jax.lax.broadcasted_iota(jnp.int32, (TH + 2, 1, 1), 0)
    row = r0 - 1 + t
    y = jnp.where(jnp.logical_and(row >= 0, row < H), y, 0.0)

    # stash y with a zero column halo ring (stays in VMEM, never hits HBM)
    zero_col = jnp.zeros((TH + 2, C), jnp.float32)
    y_scr[:, 0, :] = zero_col
    y_scr[:, W + 1, :] = zero_col
    y_scr[:, 1:W + 1, :] = y

    # ---- conv B (select_net 3x3 over cat(y, y), weight halves pre-summed) --
    M2 = TH * W
    for k in range(9):
        dh, dw = divmod(k, 3)
        tap = y_scr[dh:dh + TH, dw:dw + W, :]                    # (TH, W, C)
        a2_scr[:, k * C:(k + 1) * C] = tap.reshape(M2, C)
    actB = jnp.dot(a2_scr[...].astype(wB_ref.dtype), wB_ref[...],
                   preferred_element_type=jnp.float32) + bB_ref[...]
    z = jnp.maximum(actB, 0.0).reshape(TH, W, C)                 # ReLU

    # ---- 1x1 head (C -> 1) + Sigmoid, stored lane-dense as (TH, W) ---------
    logit = jnp.sum(z * wC_ref[...], axis=-1) + bC_ref[...]
    o_ref[0] = jax.nn.sigmoid(logit)


def _pick_row_tile(H, cap=64):
    """Largest row tile <= cap dividing H (multiple of 8, per layout rules)."""
    if H <= cap:
        return H
    for th in range(cap - cap % 8, 7, -8):
        if H % th == 0:
            return th
    return H


# ----------------------------------------------------------------------------
# Public wrapper: NCHW in / NCHW out, PyTorch parameter layouts.
# ----------------------------------------------------------------------------
def net_without_select_lite_forward(x_nchw, params):
    N, Cin, H, W = x_nchw.shape
    c = params["w_split_conv3"].shape[0]                    # c_split

    # --- exact folding: 1x1 conv into the 3x3; concat halves summed ---------
    w1, b1 = params["w_split_conv3"], params["b_split_conv3"]   # (c,Cin,3,3),(c,)
    w2, b2 = params["w_split_conv1"], params["b_split_conv1"]   # (c,c,1,1),(c,)
    w3, b3 = params["w_sel_conv3"], params["b_sel_conv3"]       # (c,2c,3,3),(c,)
    w4, b4 = params["w_sel_conv1"], params["b_sel_conv1"]       # (1,c,1,1),(1,)

    w2m = w2[:, :, 0, 0]                                        # (c, c)
    wA_oihw = jnp.einsum("om,mikl->oikl", w2m, w1)              # (c, Cin, 3, 3)
    bA = w2m @ b1 + b2                                          # (c,)
    wB_oihw = w3[:, :c] + w3[:, c:]                             # (c, c, 3, 3)
    bB = b3
    wC = w4[0, :, 0, 0]                                         # (c,)
    bC = b4                                                     # (1,)

    # im2col weight layout: row index = (kh*3 + kw)*Cin + ci
    wA = jnp.transpose(wA_oihw, (2, 3, 1, 0)).reshape(9 * Cin, c).astype(jnp.bfloat16)
    wB = jnp.transpose(wB_oihw, (2, 3, 1, 0)).reshape(9 * c, c).astype(jnp.bfloat16)
    bA2 = bA.reshape(1, c).astype(jnp.float32)
    bB2 = bB.reshape(1, c).astype(jnp.float32)
    wC3 = wC.reshape(1, 1, c).astype(jnp.float32)
    bC2 = bC.reshape(1, 1).astype(jnp.float32)

    # single zero-pad of the 3-channel input: 2 halo rows (two stacked 3x3
    # convs) + 1 halo column.  This is the only XLA-side pad in the network.
    x = jnp.transpose(x_nchw, (0, 2, 3, 1)).astype(jnp.float32)  # NHWC
    xpp = jnp.pad(x, ((0, 0), (2, 2), (1, 1), (0, 0)))

    TH = _pick_row_tile(H)
    grid = (N, H // TH)

    kernel = functools.partial(_fused_kernel, H=H, W=W, TH=TH, Cin=Cin, C=c)
    out = pl.pallas_call(
        kernel,
        out_shape=jax.ShapeDtypeStruct((N, H, W), jnp.float32),
        grid=grid,
        in_specs=[
            # the cheap 3-channel padded input stays resident for a whole
            # batch element (block index constant across the h axis)
            pl.BlockSpec((1, H + 4, W + 2, Cin), lambda n, h: (n, 0, 0, 0)),
            pl.BlockSpec((9 * Cin, c), lambda n, h: (0, 0)),
            pl.BlockSpec((1, c), lambda n, h: (0, 0)),
            pl.BlockSpec((9 * c, c), lambda n, h: (0, 0)),
            pl.BlockSpec((1, c), lambda n, h: (0, 0)),
            pl.BlockSpec((1, 1, c), lambda n, h: (0, 0, 0)),
            pl.BlockSpec((1, 1), lambda n, h: (0, 0)),
        ],
        out_specs=pl.BlockSpec((1, TH, W), lambda n, h: (n, h, 0)),
        scratch_shapes=[
            pltpu.VMEM((TH + 2, W + 2, c), jnp.float32),         # y + halo ring
            pltpu.VMEM(((TH + 2) * W, 9 * Cin), jnp.float32),    # im2col conv A
            pltpu.VMEM((TH * W, 9 * c), jnp.float32),            # im2col conv B
        ],
        compiler_params=pltpu.CompilerParams(
            dimension_semantics=("parallel", "parallel"),
            vmem_limit_bytes=48 * 1024 * 1024),
    )(xpp, wA, bA2, wB, bB2, wC3, bC2)

    return out[:, None, :, :]                                    # (N, 1, H, W)


# ----------------------------------------------------------------------------
# Pure-JAX reference (mirrors the PyTorch module op-for-op) for a self-check.
# ----------------------------------------------------------------------------
def _reference_forward(x_nchw, params):
    dn = ("NCHW", "OIHW", "NCHW")

    def conv(x, w, b, pad):
        y = jax.lax.conv_general_dilated(
            x, w, window_strides=(1, 1), padding=[(pad, pad), (pad, pad)],
            dimension_numbers=dn)
        return y + b.reshape(1, -1, 1, 1)

    y = conv(x_nchw, params["w_split_conv3"], params["b_split_conv3"], 1)
    y = conv(y, params["w_split_conv1"], params["b_split_conv1"], 0)
    y = jnp.clip(y, 0.0, 6.0) / 6.0                  # ReLU6 then / 6
    y = jnp.concatenate([y, y], axis=1)              # cat((x, x), dim=1)
    y = conv(y, params["w_sel_conv3"], params["b_sel_conv3"], 1)
    y = jnp.maximum(y, 0.0)
    y = conv(y, params["w_sel_conv1"], params["b_sel_conv1"], 0)
    return jax.nn.sigmoid(y)


if __name__ == "__main__":
    key = jax.random.PRNGKey(0)
    ks = jax.random.split(key, 9)
    c_split = 12

    def init(k, shape, scale=0.1):
        return scale * jax.random.normal(k, shape, jnp.float32)

    params = {
        # PyTorch layouts: Conv2d weights OIHW, biases (O,)
        "w_split_conv3": init(ks[0], (c_split, 3, 3, 3)),
        "b_split_conv3": init(ks[1], (c_split,)),
        "w_split_conv1": init(ks[2], (c_split, c_split, 1, 1)),
        "b_split_conv1": init(ks[3], (c_split,)),
        "w_sel_conv3": init(ks[4], (c_split, 2 * c_split, 3, 3)),
        "b_sel_conv3": init(ks[5], (c_split,)),
        "w_sel_conv1": init(ks[6], (1, c_split, 1, 1)),
        "b_sel_conv1": init(ks[7], (1,)),
    }
    x = jax.random.normal(ks[8], (2, 3, 16, 16), jnp.float32)

    out = net_without_select_lite_forward(x, params)
    jax.block_until_ready(out)
    assert out.shape == (2, 1, 16, 16)

    ref = _reference_forward(x, params)
    np.testing.assert_allclose(np.asarray(out), np.asarray(ref),
                               atol=2e-2, rtol=0)
    print("KERNEL_OK")
</pallas_src>

<mosaic_0001>
module attributes {stable_mosaic.version = 11 : i64} {
  func.func @_fused_kernel(%arg0: i32, %arg1: i32, %arg2: memref<1x20x18x3xf32, #tpu.memory_space<vmem>>, %arg3: memref<27x12xbf16, #tpu.memory_space<vmem>>, %arg4: memref<1x12xf32, #tpu.memory_space<vmem>>, %arg5: memref<108x12xbf16, #tpu.memory_space<vmem>>, %arg6: memref<1x12xf32, #tpu.memory_space<vmem>>, %arg7: memref<1x1x12xf32, #tpu.memory_space<vmem>>, %arg8: memref<1x1xf32, #tpu.memory_space<vmem>>, %arg9: memref<1x16x16xf32, #tpu.memory_space<vmem>>, %arg10: memref<18x18x12xf32, #tpu.memory_space<vmem>>, %arg11: memref<288x27xf32, #tpu.memory_space<vmem>>, %arg12: memref<256x108xf32, #tpu.memory_space<vmem>>) attributes {dimension_semantics = [#tpu.dimension_semantics<parallel>, #tpu.dimension_semantics<parallel>], iteration_bounds = array<i64: 2, 1>, scalar_prefetch = 0 : i64, scratch_operands = 3 : i64, tpu.core_type = #tpu.core_type<tc>, window_params = [{transform_indices = @transform_0, window_bounds = array<i64: 1, 20, 18, 3>}, {pipeline_mode = #tpu.pipeline_mode<synchronous>, transform_indices = @transform_1, window_bounds = array<i64: 27, 12>}, {pipeline_mode = #tpu.pipeline_mode<synchronous>, transform_indices = @transform_2, window_bounds = array<i64: 1, 12>}, {pipeline_mode = #tpu.pipeline_mode<synchronous>, transform_indices = @transform_3, window_bounds = array<i64: 108, 12>}, {pipeline_mode = #tpu.pipeline_mode<synchronous>, transform_indices = @transform_4, window_bounds = array<i64: 1, 12>}, {pipeline_mode = #tpu.pipeline_mode<synchronous>, transform_indices = @transform_5, window_bounds = array<i64: 1, 1, 12>}, {pipeline_mode = #tpu.pipeline_mode<synchronous>, transform_indices = @transform_6, window_bounds = array<i64: 1, 1>}, {transform_indices = @transform_7, window_bounds = array<i64: 1, 16, 16>}]} {
    %c16_i32 = arith.constant 16 : i32
    %0 = arith.muli %arg1, %c16_i32 : i32
    %1 = tpu.assume_multiple %0, 8 : i32
    %c0_i32 = arith.constant 0 : i32
    %2 = arith.addi %1, %c0_i32 : i32
    %c0 = arith.constant 0 : index
    %3 = arith.index_cast %2 : i32 to index
    %c0_0 = arith.constant 0 : index
    %c0_1 = arith.constant 0 : index
    %4 = vector.load %arg2[%c0, %3, %c0_0, %c0_1] : memref<1x20x18x3xf32, #tpu.memory_space<vmem>>, vector<1x18x16x3xf32>
    %5 = vector.shape_cast %4 : vector<1x18x16x3xf32> to vector<18x16x3xf32>
    %6 = vector.shape_cast %5 : vector<18x16x3xf32> to vector<288x3xf32>
    %c0_2 = arith.constant 0 : index
    %c0_3 = arith.constant 0 : index
    %7 = vector.load %arg11[%c0_2, %c0_3] : memref<288x27xf32, #tpu.memory_space<vmem>>, vector<288x3xf32>
    tpu.vector_store %arg11[%c0_2, %c0_3], %6 {strides = array<i32>} : memref<288x27xf32, #tpu.memory_space<vmem>>, vector<288x3xf32>,
    %c0_i32_4 = arith.constant 0 : i32
    %8 = arith.addi %1, %c0_i32_4 : i32
    %c0_5 = arith.constant 0 : index
    %9 = arith.index_cast %8 : i32 to index
    %c1 = arith.constant 1 : index
    %c0_6 = arith.constant 0 : index
    %10 = vector.load %arg2[%c0_5, %9, %c1, %c0_6] : memref<1x20x18x3xf32, #tpu.memory_space<vmem>>, vector<1x18x16x3xf32>
    %11 = vector.shape_cast %10 : vector<1x18x16x3xf32> to vector<18x16x3xf32>
    %12 = vector.shape_cast %11 : vector<18x16x3xf32> to vector<288x3xf32>
    %c0_7 = arith.constant 0 : index
    %c3 = arith.constant 3 : index
    %13 = vector.load %arg11[%c0_7, %c3] : memref<288x27xf32, #tpu.memory_space<vmem>>, vector<288x3xf32>
    tpu.vector_store %arg11[%c0_7, %c3], %12 {strides = array<i32>} : memref<288x27xf32, #tpu.memory_space<vmem>>, vector<288x3xf32>,
    %c0_i32_8 = arith.constant 0 : i32
    %14 = arith.addi %1, %c0_i32_8 : i32
    %c0_9 = arith.constant 0 : index
    %15 = arith.index_cast %14 : i32 to index
    %c2 = arith.constant 2 : index
    %c0_10 = arith.constant 0 : index
    %16 = vector.load %arg2[%c0_9, %15, %c2, %c0_10] : memref<1x20x18x3xf32, #tpu.memory_space<vmem>>, vector<1x18x16x3xf32>
    %17 = vector.shape_cast %16 : vector<1x18x16x3xf32> to vector<18x16x3xf32>
    %18 = vector.shape_cast %17 : vector<18x16x3xf32> to vector<288x3xf32>
    %c0_11 = arith.constant 0 : index
    %c6 = arith.constant 6 : index
    %19 = vector.load %arg11[%c0_11, %c6] : memref<288x27xf32, #tpu.memory_space<vmem>>, vector<288x3xf32>
    tpu.vector_store %arg11[%c0_11, %c6], %18 {strides = array<i32>} : memref<288x27xf32, #tpu.memory_space<vmem>>, vector<288x3xf32>,
    %c1_i32 = arith.constant 1 : i32
    %20 = arith.addi %1, %c1_i32 : i32
    %c0_12 = arith.constant 0 : index
    %21 = arith.index_cast %20 : i32 to index
    %c0_13 = arith.constant 0 : index
    %c0_14 = arith.constant 0 : index
    %22 = vector.load %arg2[%c0_12, %21, %c0_13, %c0_14] : memref<1x20x18x3xf32, #tpu.memory_space<vmem>>, vector<1x18x16x3xf32>
    %23 = vector.shape_cast %22 : vector<1x18x16x3xf32> to vector<18x16x3xf32>
    %24 = vector.shape_cast %23 : vector<18x16x3xf32> to vector<288x3xf32>
    %c0_15 = arith.constant 0 : index
    %c9 = arith.constant 9 : index
    %25 = vector.load %arg11[%c0_15, %c9] : memref<288x27xf32, #tpu.memory_space<vmem>>, vector<288x3xf32>
    tpu.vector_store %arg11[%c0_15, %c9], %24 {strides = array<i32>} : memref<288x27xf32, #tpu.memory_space<vmem>>, vector<288x3xf32>,
    %c1_i32_16 = arith.constant 1 : i32
    %26 = arith.addi %1, %c1_i32_16 : i32
    %c0_17 = arith.constant 0 : index
    %27 = arith.index_cast %26 : i32 to index
    %c1_18 = arith.constant 1 : index
    %c0_19 = arith.constant 0 : index
    %28 = vector.load %arg2[%c0_17, %27, %c1_18, %c0_19] : memref<1x20x18x3xf32, #tpu.memory_space<vmem>>, vector<1x18x16x3xf32>
    %29 = vector.shape_cast %28 : vector<1x18x16x3xf32> to vector<18x16x3xf32>
    %30 = vector.shape_cast %29 : vector<18x16x3xf32> to vector<288x3xf32>
    %c0_20 = arith.constant 0 : index
    %c12 = arith.constant 12 : index
    %31 = vector.load %arg11[%c0_20, %c12] : memref<288x27xf32, #tpu.memory_space<vmem>>, vector<288x3xf32>
    tpu.vector_store %arg11[%c0_20, %c12], %30 {strides = array<i32>} : memref<288x27xf32, #tpu.memory_space<vmem>>, vector<288x3xf32>,
    %c1_i32_21 = arith.constant 1 : i32
    %32 = arith.addi %1, %c1_i32_21 : i32
    %c0_22 = arith.constant 0 : index
    %33 = arith.index_cast %32 : i32 to index
    %c2_23 = arith.constant 2 : index
    %c0_24 = arith.constant 0 : index
    %34 = vector.load %arg2[%c0_22, %33, %c2_23, %c0_24] : memref<1x20x18x3xf32, #tpu.memory_space<vmem>>, vector<1x18x16x3xf32>
    %35 = vector.shape_cast %34 : vector<1x18x16x3xf32> to vector<18x16x3xf32>
    %36 = vector.shape_cast %35 : vector<18x16x3xf32> to vector<288x3xf32>
    %c0_25 = arith.constant 0 : index
    %c15 = arith.constant 15 : index
    %37 = vector.load %arg11[%c0_25, %c15] : memref<288x27xf32, #tpu.memory_space<vmem>>, vector<288x3xf32>
    tpu.vector_store %arg11[%c0_25, %c15], %36 {strides = array<i32>} : memref<288x27xf32, #tpu.memory_space<vmem>>, vector<288x3xf32>,
    %c2_i32 = arith.constant 2 : i32
    %38 = arith.addi %1, %c2_i32 : i32
    %c0_26 = arith.constant 0 : index
    %39 = arith.index_cast %38 : i32 to index
    %c0_27 = arith.constant 0 : index
    %c0_28 = arith.constant 0 : index
    %40 = vector.load %arg2[%c0_26, %39, %c0_27, %c0_28] : memref<1x20x18x3xf32, #tpu.memory_space<vmem>>, vector<1x18x16x3xf32>
    %41 = vector.shape_cast %40 : vector<1x18x16x3xf32> to vector<18x16x3xf32>
    %42 = vector.shape_cast %41 : vector<18x16x3xf32> to vector<288x3xf32>
    %c0_29 = arith.constant 0 : index
    %c18 = arith.constant 18 : index
    %43 = vector.load %arg11[%c0_29, %c18] : memref<288x27xf32, #tpu.memory_space<vmem>>, vector<288x3xf32>
    tpu.vector_store %arg11[%c0_29, %c18], %42 {strides = array<i32>} : memref<288x27xf32, #tpu.memory_space<vmem>>, vector<288x3xf32>,
    %c2_i32_30 = arith.constant 2 : i32
    %44 = arith.addi %1, %c2_i32_30 : i32
    %c0_31 = arith.constant 0 : index
    %45 = arith.index_cast %44 : i32 to index
    %c1_32 = arith.constant 1 : index
    %c0_33 = arith.constant 0 : index
    %46 = vector.load %arg2[%c0_31, %45, %c1_32, %c0_33] : memref<1x20x18x3xf32, #tpu.memory_space<vmem>>, vector<1x18x16x3xf32>
    %47 = vector.shape_cast %46 : vector<1x18x16x3xf32> to vector<18x16x3xf32>
    %48 = vector.shape_cast %47 : vector<18x16x3xf32> to vector<288x3xf32>
    %c0_34 = arith.constant 0 : index
    %c21 = arith.constant 21 : index
    %49 = vector.load %arg11[%c0_34, %c21] : memref<288x27xf32, #tpu.memory_space<vmem>>, vector<288x3xf32>
    tpu.vector_store %arg11[%c0_34, %c21], %48 {strides = array<i32>} : memref<288x27xf32, #tpu.memory_space<vmem>>, vector<288x3xf32>,
    %c2_i32_35 = arith.constant 2 : i32
    %50 = arith.addi %1, %c2_i32_35 : i32
    %c0_36 = arith.constant 0 : index
    %51 = arith.index_cast %50 : i32 to index
    %c2_37 = arith.constant 2 : index
    %c0_38 = arith.constant 0 : index
    %52 = vector.load %arg2[%c0_36, %51, %c2_37, %c0_38] : memref<1x20x18x3xf32, #tpu.memory_space<vmem>>, vector<1x18x16x3xf32>
    %53 = vector.shape_cast %52 : vector<1x18x16x3xf32> to vector<18x16x3xf32>
    %54 = vector.shape_cast %53 : vector<18x16x3xf32> to vector<288x3xf32>
    %c0_39 = arith.constant 0 : index
    %c24 = arith.constant 24 : index
    %55 = vector.load %arg11[%c0_39, %c24] : memref<288x27xf32, #tpu.memory_space<vmem>>, vector<288x3xf32>
    tpu.vector_store %arg11[%c0_39, %c24], %54 {strides = array<i32>} : memref<288x27xf32, #tpu.memory_space<vmem>>, vector<288x3xf32>,
    %c0_40 = arith.constant 0 : index
    %c0_41 = arith.constant 0 : index
    %56 = vector.load %arg11[%c0_40, %c0_41] : memref<288x27xf32, #tpu.memory_space<vmem>>, vector<288x27xf32>
    %57 = arith.truncf %56 : vector<288x27xf32> to vector<288x27xbf16>
    %c0_42 = arith.constant 0 : index
    %c0_43 = arith.constant 0 : index
    %58 = vector.load %arg3[%c0_42, %c0_43] : memref<27x12xbf16, #tpu.memory_space<vmem>>, vector<27x12xbf16>
    %cst = arith.constant dense<0.000000e+00> : vector<288x12xf32>
    %59 = tpu.matmul %57, %58, %cst {dimension_numbers = #tpu.dot_dimension_numbers<[1], [0], [0], [1], [0, 0, 1, 1], [], []>} : vector<288x27xbf16>, vector<27x12xbf16>, vector<288x12xf32> -> vector<288x12xf32>
    %c0_44 = arith.constant 0 : index
    %c0_45 = arith.constant 0 : index
    %60 = vector.load %arg4[%c0_44, %c0_45] : memref<1x12xf32, #tpu.memory_space<vmem>>, vector<1x12xf32>
    %61 = vector.broadcast %60 : vector<1x12xf32> to vector<288x12xf32>
    %62 = arith.addf %59, %61 : vector<288x12xf32>
    %cst_46 = arith.constant 0.000000e+00 : f32
    %cst_47 = arith.constant 6.000000e+00 : f32
    %63 = vector.broadcast %cst_46 : f32 to vector<288x12xf32>
    %64 = arith.maximumf %63, %62 : vector<288x12xf32>
    %65 = vector.broadcast %cst_47 : f32 to vector<288x12xf32>
    %66 = arith.minimumf %65, %64 : vector<288x12xf32>
    %cst_48 = arith.constant 0.166666672 : f32
    %67 = vector.broadcast %cst_48 : f32 to vector<288x12xf32>
    %68 = arith.mulf %66, %67 : vector<288x12xf32>
    %69 = vector.shape_cast %68 : vector<288x12xf32> to vector<18x16x12xf32>
    %70 = tpu.iota {dimensions = array<i32: 0>} : vector<18x1x1xi32>
    %c1_i32_49 = arith.constant 1 : i32
    %71 = arith.subi %1, %c1_i32_49 : i32
    %72 = vector.broadcast %71 : i32 to vector<18x1x1xi32>
    %73 = arith.addi %72, %70 : vector<18x1x1xi32>
    %c0_i32_50 = arith.constant 0 : i32
    %74 = vector.broadcast %c0_i32_50 : i32 to vector<18x1x1xi32>
    %75 = arith.cmpi sge, %73, %74 : vector<18x1x1xi32>
    %c16_i32_51 = arith.constant 16 : i32
    %76 = vector.broadcast %c16_i32_51 : i32 to vector<18x1x1xi32>
    %77 = arith.cmpi slt, %73, %76 : vector<18x1x1xi32>
    %78 = arith.andi %75, %77 : vector<18x1x1xi1>
    %cst_52 = arith.constant 0.000000e+00 : f32
    %79 = vector.shape_cast %78 : vector<18x1x1xi1> to vector<18x1x1xi1>
    %80 = vector.broadcast %79 : vector<18x1x1xi1> to vector<18x16x12xi1>
    %81 = vector.broadcast %cst_52 : f32 to vector<18x16x12xf32>
    %82 = arith.select %80, %69, %81 : vector<18x16x12xi1>, vector<18x16x12xf32>
    %cst_53 = arith.constant 0.000000e+00 : f32
    %83 = vector.broadcast %cst_53 : f32 to vector<18x12xf32>
    %c0_54 = arith.constant 0 : index
    %c0_55 = arith.constant 0 : index
    %c0_56 = arith.constant 0 : index
    %84 = vector.load %arg10[%c0_54, %c0_55, %c0_56] : memref<18x18x12xf32, #tpu.memory_space<vmem>>, vector<18x1x12xf32>
    %85 = vector.shape_cast %84 : vector<18x1x12xf32> to vector<18x12xf32>
    %86 = vector.shape_cast %83 : vector<18x12xf32> to vector<18x1x12xf32>
    tpu.vector_store %arg10[%c0_54, %c0_55, %c0_56], %86 {strides = array<i32>} : memref<18x18x12xf32, #tpu.memory_space<vmem>>, vector<18x1x12xf32>,
    %c0_57 = arith.constant 0 : index
    %c17 = arith.constant 17 : index
    %c0_58 = arith.constant 0 : index
    %87 = vector.load %arg10[%c0_57, %c17, %c0_58] : memref<18x18x12xf32, #tpu.memory_space<vmem>>, vector<18x1x12xf32>
    %88 = vector.shape_cast %87 : vector<18x1x12xf32> to vector<18x12xf32>
    %89 = vector.shape_cast %83 : vector<18x12xf32> to vector<18x1x12xf32>
    tpu.vector_store %arg10[%c0_57, %c17, %c0_58], %89 {strides = array<i32>} : memref<18x18x12xf32, #tpu.memory_space<vmem>>, vector<18x1x12xf32>,
    %c0_59 = arith.constant 0 : index
    %c1_60 = arith.constant 1 : index
    %c0_61 = arith.constant 0 : index
    %90 = vector.load %arg10[%c0_59, %c1_60, %c0_61] : memref<18x18x12xf32, #tpu.memory_space<vmem>>, vector<18x16x12xf32>
    tpu.vector_store %arg10[%c0_59, %c1_60, %c0_61], %82 {strides = array<i32>} : memref<18x18x12xf32, #tpu.memory_space<vmem>>, vector<18x16x12xf32>,
    %c0_62 = arith.constant 0 : index
    %c0_63 = arith.constant 0 : index
    %c0_64 = arith.constant 0 : index
    %91 = vector.load %arg10[%c0_62, %c0_63, %c0_64] : memref<18x18x12xf32, #tpu.memory_space<vmem>>, vector<16x16x12xf32>
    %92 = vector.shape_cast %91 : vector<16x16x12xf32> to vector<256x12xf32>
    %c0_65 = arith.constant 0 : index
    %c0_66 = arith.constant 0 : index
    %93 = vector.load %arg12[%c0_65, %c0_66] : memref<256x108xf32, #tpu.memory_space<vmem>>, vector<256x12xf32>
    tpu.vector_store %arg12[%c0_65, %c0_66], %92 {strides = array<i32>} : memref<256x108xf32, #tpu.memory_space<vmem>>, vector<256x12xf32>,
    %c0_67 = arith.constant 0 : index
    %c1_68 = arith.constant 1 : index
    %c0_69 = arith.constant 0 : index
    %94 = vector.load %arg10[%c0_67, %c1_68, %c0_69] : memref<18x18x12xf32, #tpu.memory_space<vmem>>, vector<16x16x12xf32>
    %95 = vector.shape_cast %94 : vector<16x16x12xf32> to vector<256x12xf32>
    %c0_70 = arith.constant 0 : index
    %c12_71 = arith.constant 12 : index
    %96 = vector.load %arg12[%c0_70, %c12_71] : memref<256x108xf32, #tpu.memory_space<vmem>>, vector<256x12xf32>
    tpu.vector_store %arg12[%c0_70, %c12_71], %95 {strides = array<i32>} : memref<256x108xf32, #tpu.memory_space<vmem>>, vector<256x12xf32>,
    %c0_72 = arith.constant 0 : index
    %c2_73 = arith.constant 2 : index
    %c0_74 = arith.constant 0 : index
    %97 = vector.load %arg10[%c0_72, %c2_73, %c0_74] : memref<18x18x12xf32, #tpu.memory_space<vmem>>, vector<16x16x12xf32>
    %98 = vector.shape_cast %97 : vector<16x16x12xf32> to vector<256x12xf32>
    %c0_75 = arith.constant 0 : index
    %c24_76 = arith.constant 24 : index
    %99 = vector.load %arg12[%c0_75, %c24_76] : memref<256x108xf32, #tpu.memory_space<vmem>>, vector<256x12xf32>
    tpu.vector_store %arg12[%c0_75, %c24_76], %98 {strides = array<i32>} : memref<256x108xf32, #tpu.memory_space<vmem>>, vector<256x12xf32>,
    %c1_77 = arith.constant 1 : index
    %c0_78 = arith.constant 0 : index
    %c0_79 = arith.constant 0 : index
    %100 = vector.load %arg10[%c1_77, %c0_78, %c0_79] : memref<18x18x12xf32, #tpu.memory_space<vmem>>, vector<16x16x12xf32>
    %101 = vector.shape_cast %100 : vector<16x16x12xf32> to vector<256x12xf32>
    %c0_80 = arith.constant 0 : index
    %c36 = arith.constant 36 : index
    %102 = vector.load %arg12[%c0_80, %c36] : memref<256x108xf32, #tpu.memory_space<vmem>>, vector<256x12xf32>
    tpu.vector_store %arg12[%c0_80, %c36], %101 {strides = array<i32>} : memref<256x108xf32, #tpu.memory_space<vmem>>, vector<256x12xf32>,
    %c1_81 = arith.constant 1 : index
    %c1_82 = arith.constant 1 : index
    %c0_83 = arith.constant 0 : index
    %103 = vector.load %arg10[%c1_81, %c1_82, %c0_83] : memref<18x18x12xf32, #tpu.memory_space<vmem>>, vector<16x16x12xf32>
    %104 = vector.shape_cast %103 : vector<16x16x12xf32> to vector<256x12xf32>
    %c0_84 = arith.constant 0 : index
    %c48 = arith.constant 48 : index
    %105 = vector.load %arg12[%c0_84, %c48] : memref<256x108xf32, #tpu.memory_space<vmem>>, vector<256x12xf32>
    tpu.vector_store %arg12[%c0_84, %c48], %104 {strides = array<i32>} : memref<256x108xf32, #tpu.memory_space<vmem>>, vector<256x12xf32>,
    %c1_85 = arith.constant 1 : index
    %c2_86 = arith.constant 2 : index
    %c0_87 = arith.constant 0 : index
    %106 = vector.load %arg10[%c1_85, %c2_86, %c0_87] : memref<18x18x12xf32, #tpu.memory_space<vmem>>, vector<16x16x12xf32>
    %107 = vector.shape_cast %106 : vector<16x16x12xf32> to vector<256x12xf32>
    %c0_88 = arith.constant 0 : index
    %c60 = arith.constant 60 : index
    %108 = vector.load %arg12[%c0_88, %c60] : memref<256x108xf32, #tpu.memory_space<vmem>>, vector<256x12xf32>
    tpu.vector_store %arg12[%c0_88, %c60], %107 {strides = array<i32>} : memref<256x108xf32, #tpu.memory_space<vmem>>, vector<256x12xf32>,
    %c2_89 = arith.constant 2 : index
    %c0_90 = arith.constant 0 : index
    %c0_91 = arith.constant 0 : index
    %109 = vector.load %arg10[%c2_89, %c0_90, %c0_91] : memref<18x18x12xf32, #tpu.memory_space<vmem>>, vector<16x16x12xf32>
    %110 = vector.shape_cast %109 : vector<16x16x12xf32> to vector<256x12xf32>
    %c0_92 = arith.constant 0 : index
    %c72 = arith.constant 72 : index
    %111 = vector.load %arg12[%c0_92, %c72] : memref<256x108xf32, #tpu.memory_space<vmem>>, vector<256x12xf32>
    tpu.vector_store %arg12[%c0_92, %c72], %110 {strides = array<i32>} : memref<256x108xf32, #tpu.memory_space<vmem>>, vector<256x12xf32>,
    %c2_93 = arith.constant 2 : index
    %c1_94 = arith.constant 1 : index
    %c0_95 = arith.constant 0 : index
    %112 = vector.load %arg10[%c2_93, %c1_94, %c0_95] : memref<18x18x12xf32, #tpu.memory_space<vmem>>, vector<16x16x12xf32>
    %113 = vector.shape_cast %112 : vector<16x16x12xf32> to vector<256x12xf32>
    %c0_96 = arith.constant 0 : index
    %c84 = arith.constant 84 : index
    %114 = vector.load %arg12[%c0_96, %c84] : memref<256x108xf32, #tpu.memory_space<vmem>>, vector<256x12xf32>
    tpu.vector_store %arg12[%c0_96, %c84], %113 {strides = array<i32>} : memref<256x108xf32, #tpu.memory_space<vmem>>, vector<256x12xf32>,
    %c2_97 = arith.constant 2 : index
    %c2_98 = arith.constant 2 : index
    %c0_99 = arith.constant 0 : index
    %115 = vector.load %arg10[%c2_97, %c2_98, %c0_99] : memref<18x18x12xf32, #tpu.memory_space<vmem>>, vector<16x16x12xf32>
    %116 = vector.shape_cast %115 : vector<16x16x12xf32> to vector<256x12xf32>
    %c0_100 = arith.constant 0 : index
    %c96 = arith.constant 96 : index
    %117 = vector.load %arg12[%c0_100, %c96] : memref<256x108xf32, #tpu.memory_space<vmem>>, vector<256x12xf32>
    tpu.vector_store %arg12[%c0_100, %c96], %116 {strides = array<i32>} : memref<256x108xf32, #tpu.memory_space<vmem>>, vector<256x12xf32>,
    %c0_101 = arith.constant 0 : index
    %c0_102 = arith.constant 0 : index
    %118 = vector.load %arg12[%c0_101, %c0_102] : memref<256x108xf32, #tpu.memory_space<vmem>>, vector<256x108xf32>
    %119 = arith.truncf %118 : vector<256x108xf32> to vector<256x108xbf16>
    %c0_103 = arith.constant 0 : index
    %c0_104 = arith.constant 0 : index
    %120 = vector.load %arg5[%c0_103, %c0_104] : memref<108x12xbf16, #tpu.memory_space<vmem>>, vector<108x12xbf16>
    %cst_105 = arith.constant dense<0.000000e+00> : vector<256x12xf32>
    %121 = tpu.matmul %119, %120, %cst_105 {dimension_numbers = #tpu.dot_dimension_numbers<[1], [0], [0], [1], [0, 0, 1, 1], [], []>} : vector<256x108xbf16>, vector<108x12xbf16>, vector<256x12xf32> -> vector<256x12xf32>
    %c0_106 = arith.constant 0 : index
    %c0_107 = arith.constant 0 : index
    %122 = vector.load %arg6[%c0_106, %c0_107] : memref<1x12xf32, #tpu.memory_space<vmem>>, vector<1x12xf32>
    %123 = vector.broadcast %122 : vector<1x12xf32> to vector<256x12xf32>
    %124 = arith.addf %121, %123 : vector<256x12xf32>
    %cst_108 = arith.constant 0.000000e+00 : f32
    %125 = vector.broadcast %cst_108 : f32 to vector<256x12xf32>
    %126 = arith.maximumf %124, %125 : vector<256x12xf32>
    %127 = vector.shape_cast %126 : vector<256x12xf32> to vector<16x16x12xf32>
    %c0_109 = arith.constant 0 : index
    %c0_110 = arith.constant 0 : index
    %c0_111 = arith.constant 0 : index
    %128 = vector.load %arg7[%c0_109, %c0_110, %c0_111] : memref<1x1x12xf32, #tpu.memory_space<vmem>>, vector<1x1x12xf32>
    %129 = vector.broadcast %128 : vector<1x1x12xf32> to vector<16x16x12xf32>
    %130 = arith.mulf %127, %129 : vector<16x16x12xf32>
    %cst_112 = arith.constant dense<0.000000e+00> : vector<16x16xf32>
    %131 = vector.multi_reduction <add>, %130, %cst_112 [2] : vector<16x16x12xf32> to vector<16x16xf32>
    %c0_113 = arith.constant 0 : index
    %c0_114 = arith.constant 0 : index
    %132 = vector.load %arg8[%c0_113, %c0_114] : memref<1x1xf32, #tpu.memory_space<vmem>>, vector<1x1xf32>
    %133 = vector.broadcast %132 : vector<1x1xf32> to vector<16x16xf32>
    %134 = arith.addf %131, %133 : vector<16x16xf32>
    %135 = arith.negf %134 : vector<16x16xf32>
    %136 = math.exp %135 : vector<16x16xf32>
    %cst_115 = arith.constant 1.000000e+00 : f32
    %137 = vector.broadcast %cst_115 : f32 to vector<16x16xf32>
    %138 = arith.addf %137, %136 : vector<16x16xf32>
    %139 = arith.divf %137, %138 : vector<16x16xf32>
    %c0_116 = arith.constant 0 : index
    %c0_117 = arith.constant 0 : index
    %c0_118 = arith.constant 0 : index
    %140 = vector.load %arg9[%c0_116, %c0_117, %c0_118] : memref<1x16x16xf32, #tpu.memory_space<vmem>>, vector<1x16x16xf32>
    %141 = vector.shape_cast %140 : vector<1x16x16xf32> to vector<16x16xf32>
    %142 = vector.shape_cast %139 : vector<16x16xf32> to vector<1x16x16xf32>
    tpu.vector_store %arg9[%c0_116, %c0_117, %c0_118], %142 {strides = array<i32>} : memref<1x16x16xf32, #tpu.memory_space<vmem>>, vector<1x16x16xf32>,
    return
  }
  func.func @transform_0(%arg0: i32, %arg1: i32) -> (i32, i32, i32, i32) {
    %c0_i32 = arith.constant 0 : i32
    %c0_i32_0 = arith.constant 0 : i32
    %c0_i32_1 = arith.constant 0 : i32
    %c0_i32_2 = arith.constant 0 : i32
    return %arg0, %c0_i32, %c0_i32_0, %c0_i32_1 : i32, i32, i32, i32
  }
  func.func @transform_1(%arg0: i32, %arg1: i32) -> (i32, i32) {
    %c0_i32 = arith.constant 0 : i32
    %c0_i32_0 = arith.constant 0 : i32
    %c0_i32_1 = arith.constant 0 : i32
    return %c0_i32, %c0_i32_0 : i32, i32
  }
  func.func @transform_2(%arg0: i32, %arg1: i32) -> (i32, i32) {
    %c0_i32 = arith.constant 0 : i32
    %c0_i32_0 = arith.constant 0 : i32
    %c0_i32_1 = arith.constant 0 : i32
    return %c0_i32, %c0_i32_0 : i32, i32
  }
  func.func @transform_3(%arg0: i32, %arg1: i32) -> (i32, i32) {
    %c0_i32 = arith.constant 0 : i32
    %c0_i32_0 = arith.constant 0 : i32
    %c0_i32_1 = arith.constant 0 : i32
    return %c0_i32, %c0_i32_0 : i32, i32
  }
  func.func @transform_4(%arg0: i32, %arg1: i32) -> (i32, i32) {
    %c0_i32 = arith.constant 0 : i32
    %c0_i32_0 = arith.constant 0 : i32
    %c0_i32_1 = arith.constant 0 : i32
    return %c0_i32, %c0_i32_0 : i32, i32
  }
  func.func @transform_5(%arg0: i32, %arg1: i32) -> (i32, i32, i32) {
    %c0_i32 = arith.constant 0 : i32
    %c0_i32_0 = arith.constant 0 : i32
    %c0_i32_1 = arith.constant 0 : i32
    %c0_i32_2 = arith.constant 0 : i32
    return %c0_i32, %c0_i32_0, %c0_i32_1 : i32, i32, i32
  }
  func.func @transform_6(%arg0: i32, %arg1: i32) -> (i32, i32) {
    %c0_i32 = arith.constant 0 : i32
    %c0_i32_0 = arith.constant 0 : i32
    %c0_i32_1 = arith.constant 0 : i32
    return %c0_i32, %c0_i32_0 : i32, i32
  }
  func.func @transform_7(%arg0: i32, %arg1: i32) -> (i32, i32, i32) {
    %c0_i32 = arith.constant 0 : i32
    %c0_i32_0 = arith.constant 0 : i32
    return %arg0, %arg1, %c0_i32 : i32, i32, i32
  }
}

</mosaic_0001>

<bundles_post_ra>
// kernel: tpu_custom_call.1
= control target key start
LH: loop header
LB: loop body
LE: loop exit
PB: predicated region body
PF: predicated region fallthrough
CT: control target
= control target key end

     0   :  { %s10020_s0 = inlined_call_operand.vmem [shape: f32[2,20,18,3], index: 0, kind: input, shape index: {}]   ;;  %s10021_s1 = inlined_call_operand.vmem [shape: bf16[27,12], index: 1, kind: input, shape index: {}]   ;;  %s10022_s2 = inlined_call_operand.vmem [shape: f32[1,12], index: 2, kind: input, shape index: {}]   ;;  %s10023_s3 = inlined_call_operand.vmem [shape: bf16[108,12], index: 3, kind: input, shape index: {}]   ;;  %s10024_s4 = inlined_call_operand.vmem [shape: f32[1,12], index: 4, kind: input, shape index: {}]   ;;  %s10025_s5 = inlined_call_operand.vmem [shape: f32[1,1,12], index: 5, kind: input, shape index: {}]   ;;  %s10026_s6 = inlined_call_operand.<no memory space> [shape: f32[1,1], index: 6, kind: input, shape index: {}]   ;;  %s10027_s7 = inlined_call_operand.hbm [shape: f32[2,16,16], index: 7, kind: output, shape index: {}]  }
   0x1   :  { %v12_v0 = vstv %s10026_s6 }
   0x2   :  { %13 = vst [vmem:[#allocation5] sm:$0x1] %v12_v0 }
   0x3   :  { %14 = vsyncpa [#allocation7], 0 }
   0x4   :  { %16 = vsyncpa [#allocation7 + $0x1], 0  ;;  %s6254_s26 = smov 0   ;;  %s6256_s27 = smov 0  }
   0x5   :  { %s6258_s28 = smov 0   ;;  %s6260_s29 = smov 0  }
   0x6   :  { %s6262_s30 = smov 0   ;;  %s6264_s8 = smov 0  }
   0x7 LB: > { %s5554_s6 = sadd.s32 4294967295, %s6190_s8   ;;  %s5555_s9 = sadd.s32 4294967294, %s6190_s8   ;;  %s6190_s8 = sphi %s6264_s8, %s22_s8   ;;  %s6186_s30 = sphi %s6262_s30, %s10315_s30   ;;  %s6182_s29 = sphi %s6260_s29, %s10314_s29   ;;  %s6178_s28 = sphi %s6258_s28, %s10313_s28   ;;  %s6174_s27 = sphi %s6256_s27, %s10312_s27   ;;  %s6170_s26 = sphi %s6254_s26, %s10311_s26  }
   0x8   : > { %s34_s10 = sadd.s32 1, %s6186_s30  ;;  %s195_s11 = sadd.s32 1, %s6178_s28 }
   0x9   : > { %p36_p0 = scmp.ge.s32.totalorder %s34_s10, 2  ;;  %p205_p1 = scmp.ne.s32.totalorder %s6178_s28, %s6174_s27 }
   0xa   : > { %p206_p2 = scmp.eq.s32.totalorder %s5554_s6, 1  ;;  %p211_p3 = scmp.ne.s32.totalorder %s6174_s27, %s6170_s26 }
   0xb   : > { %s10317_s10 = smov (%p36_p0, %s34_s10), 0  ;;  %p212_p5 = scmp.eq.s32.totalorder %s5555_s9, 1 }
   0xc   : > { %p6294_p4 = por %p206_p2, %p205_p1  ;;  %s190_s13 = ssub.s32 %s6186_s30, %s10317_s10 }
   0xd   : > { %p5558_p6 = scmp.ge.s32.totalorder %s6190_s8, 1  ;;  %p193_p7 = scmp.eq.s32.totalorder %s190_s13, 0 }
   0xe   : > { %p6301_p8 = por %p212_p5, %p211_p3  ;;  %p256_p9 = scmp.lt.s32.totalorder %s6190_s8, 3 }
   0xf   : > { %s6307_s15 = scalar_select %p193_p7, %s6178_s28, %s195_s11  }
  0x10   : > { %p257_p10 = pnand %p5558_p6, %p256_p9 }
  0x12   : > { %260 = sbr.rel (%p257_p10) target bundleno = 2189 (0x88d), region = 48 }
  0x17   : > { %p288_p11 = scmp.lt.s32.totalorder %s6182_s29, 1  ;;  %s6192_s21 = smov 3   ;;  %vm334_vm0 = vcmask 23552   ;;  %vm551_vm1 = vcmask 48152   ;;  %vm768_vm2 = vcmask 72752   ;;  %vm988_vm3 = vcmask 97352  }
  0x18   : > { %s6193_s22 = smov 6   ;;  %s6194_s23 = smov 9   ;;  %vm1205_vm4 = vcmask 121952   ;;  %vm1422_vm5 = vcmask 146552   ;;  %vm1642_vm6 = vcmask 171152   ;;  %vm1859_vm7 = vcmask 195752  }
  0x19   : > { %s289_s16 = scalar_select %p288_p11, %s6182_s29, 1  ;;  %vm2241_vm8 = vcmask 1044480   ;;  %vm2242_vm9 = vcmask 1045504   ;;  %vm2076_vm10 = vcmask 220352   ;;  %vm2186_vm11 = vcmask 220160  }
  0x1a   : > { %s6195_s24 = smov 12   ;;  %s6196_s25 = smov 15   ;;  %vm2637_vm12 = vcmask 97280   ;;  %vm2600_vm13 = vcmask 90112   ;;  %vm2898_vm14 = vcmask 195680   ;;  %vm3091_vm15 = vcmask 294080  }
  0x1b   : > { %s5903_s17 = smul.u32 480, %s289_s16  ;;  %s6197_s6 = smov 18  }
  0x1c   : > { %s6198_s9 = smov 21   ;;  %s6199_s11 = smov 24  }
  0x1d   : > { %s6314_s20 = scalar_lea.vmem %s10020_s0, %s5903_s17 }
  0x1e   : > { %v6317_v1 = vld [vmem:[%s6314_s20 + $0x19] sm:$0xff]  ;;  %v371_v2 = vld [vmem:[%s6314_s20 + $0x1] sm:$0xff]  ;;  %v6324_v3 = vld [vmem:[%s6314_s20 + $0x31] sm:$0xff] }
  0x1f   : > { %447 = vrot.lane.b32.xlu1 %v6317_v1, %s6192_s21  ;;  %443 = vrot.lane.b32.xlu0 %v371_v2, %s6192_s21  ;;  %v6329_v4 = vld [vmem:[%s6314_s20 + $0x21] sm:$0xff]  ;;  %v372_v5 = vld [vmem:[%s6314_s20 + $0x9] sm:$0xff] }
  0x20   : > { %451 = vrot.lane.b32.xlu2 %v6324_v3, %s6192_s21  ;;  %v6336_v6 = vld [vmem:[%s6314_s20 + $0x39] sm:$0xff]  ;;  %v6341_v7 = vld [vmem:[%s6314_s20 + $0x51] sm:$0xff]  ;;  %v6344_v8 = vld [vmem:[%s6314_s20 + $0x49] sm:$0xff] }
  0x21   : > { %v6351_v9 = vld [vmem:[%s6314_s20 + $0x61] sm:$0xff]  ;;  %v6356_v10 = vld [vmem:[%s6314_s20 + $0x79] sm:$0xff]  ;;  %v6359_v11 = vld [vmem:[%s6314_s20 + $0x69] sm:$0xff] }
  0x22   : > { %v6366_v12 = vld [vmem:[%s6314_s20 + $0x81] sm:$0xff]  ;;  %v6371_v13 = vld [vmem:[%s6314_s20 + $0x99] sm:$0xff]  ;;  %v6374_v14 = vld [vmem:[%s6314_s20 + $0x91] sm:$0xff] }
  0x23   : > { %v6381_v15 = vld [vmem:[%s6314_s20 + $0xa9] sm:$0xff]  ;;  %v6386_v16 = vld [vmem:[%s6314_s20 + $0xc1] sm:$0xff]  ;;  %v6389_v17 = vld [vmem:[%s6314_s20 + $0xb1] sm:$0xff] }
  0x24   : > { %v6396_v18 = vld [vmem:[%s6314_s20 + $0xc9] sm:$0xff]  ;;  %v6401_v19 = vld [vmem:[%s6314_s20 + $0xe1] sm:$0xff]  ;;  %v6404_v20 = vld [vmem:[%s6314_s20 + $0xd9] sm:$0xff] }
  0x25   : > { %v6411_v21 = vld [vmem:[%s6314_s20 + $0xf1] sm:$0xff]  ;;  %v6416_v22 = vld [vmem:[%s6314_s20 + $0x109] sm:$0xff]  ;;  %v6419_v23 = vld [vmem:[%s6314_s20 + $0xf9] sm:$0xff] }
  0x26   : > { %v6426_v24 = vld [vmem:[%s6314_s20 + $0x111] sm:$0xff]  ;;  %v396_v25 = vld [vmem:[%s6314_s20 + $0x129] sm:$0xff]  ;;  %v6432_v26 = vld [vmem:[%s6314_s20 + $0x121] sm:$0xff] }
  0x27   : > { %449 = vrot.lane.b32.xlu1 %v6329_v4, %s6192_s21  ;;  %445 = vrot.lane.b32.xlu0 %v372_v5, %s6192_s21  ;;  %v6438_v27 = vld [vmem:[%s6314_s20 + $0x139] sm:$0xff]  ;;  %v399_v28 = vld [vmem:[%s6314_s20 + $0x151] sm:$0xff] }
  0x28   : > { %453 = vrot.lane.b32.xlu2 %v6336_v6, %s6192_s21  ;;  %10085 = vst [vmem:[#allocation9_spill] sm:$0xff] %v6438_v27  ;;  %v6444_v29 = vld [vmem:[%s6314_s20 + $0x141] sm:$0xff]  ;;  %v6450_v30 = vld [vmem:[%s6314_s20 + $0x159] sm:$0xff]  ;;  %v402_v31 = vld [vmem:[%s6314_s20 + $0x171] sm:$0xff] }
  0x29   : > { %10086 = vst [vmem:[#allocation10_spill] sm:$0xff] %v6444_v29  ;;  %v6456_v32 = vld [vmem:[%s6314_s20 + $0x169] sm:$0xff]  ;;  %v6462_v33 = vld [vmem:[%s6314_s20 + $0x181] sm:$0xff]  ;;  %v6465_v34 = vld [vmem:[%s6314_s20 + $0x18] sm:$0xff] }
  0x2a   : > { %10087 = vst [vmem:[#allocation11_spill] sm:$0xff] %v6450_v30  ;;  %v298_v35 = vld [vmem:[%s6314_s20] sm:$0xff]  ;;  %v6475_v37 = vld [vmem:[%s6314_s20 + $0x189] sm:$0xff]  ;;  %v6518_v48 = vld [vmem:[%s6314_s20 + $0x38] sm:$0xff] }
  0x2b   : > { %10088 = vst [vmem:[#allocation12_spill] sm:$0xff] %v6456_v32  ;;  %v405_v36 = vld [vmem:[%s6314_s20 + $0x199] sm:$0xff]  ;;  %v6481_v38 = vld [vmem:[%s6314_s20 + $0x1a1] sm:$0xff]  ;;  %v6493_v41 = vld [vmem:[%s6314_s20 + $0x30] sm:$0xff] }
  0x2c   : > { %10089 = vst [vmem:[#allocation13_spill] sm:$0xff] %v6462_v33  ;;  %v6484_v39 = vld [vmem:[%s6314_s20 + $0x20] sm:$0xff]  ;;  %v299_v40 = vld [vmem:[%s6314_s20 + $0x8] sm:$0xff]  ;;  %v6506_v46 = vld [vmem:[%s6314_s20 + $0x50] sm:$0xff] }
  0x2d   : > { %337 = vst.msk [vmem:[#allocation3 + $0x10] sm:$0xff] %vm334_vm0, %v6465_v34  ;;  %v589_v42 = vld [vmem:[%s6314_s20 + $0xa] sm:$0xff]  ;;  %v588_v43 = vld [vmem:[%s6314_s20 + $0x2] sm:$0xff]  ;;  %v6503_v45 = vld [vmem:[%s6314_s20 + $0x1a] sm:$0xff] }
  0x2e   : > { %335 = vst.msk [vmem:[#allocation3] sm:$0xff] %vm334_vm0, %v298_v35  ;;  %v6509_v47 = vld [vmem:[%s6314_s20 + $0x48] sm:$0xff]  ;;  %v592_v49 = vld [vmem:[%s6314_s20 + $0x32] sm:$0xff]  ;;  %v6531_v52 = vld [vmem:[%s6314_s20 + $0x3a] sm:$0xff] }
  0x2f   : > { %457 = vrot.lane.b32.xlu1 %v6341_v7, %s6192_s21  ;;  %455 = vrot.lane.b32.xlu0 %v6344_v8, %s6192_s21  ;;  %10090 = vst [vmem:[#allocation14_spill] sm:$0xff] %v6475_v37  ;;  %v6522_v50 = vld [vmem:[%s6314_s20 + $0x22] sm:$0xff]  ;;  %v6534_v53 = vld [vmem:[%s6314_s20 + $0x78] sm:$0xff] }
  0x30   : > { %459 = vrot.lane.b32.xlu2 %v6351_v9, %s6192_s21  ;;  %10091 = vst [vmem:[#allocation15_spill] sm:$0xff] %v6481_v38  ;;  %v6537_v54 = vld [vmem:[%s6314_s20 + $0x68] sm:$0xff]  ;;  %v6546_v55 = vld [vmem:[%s6314_s20 + $0x60] sm:$0xff]  ;;  %v595_v56 = vld [vmem:[%s6314_s20 + $0x52] sm:$0xff] }
  0x31   : > { %338 = vst.msk [vmem:[#allocation3 + $0x18] sm:$0xff] %vm334_vm0, %v6484_v39  ;;  %v6550_v57 = vld [vmem:[%s6314_s20 + $0x4a] sm:$0xff]  ;;  %v6559_v59 = vld [vmem:[%s6314_s20 + $0x62] sm:$0xff]  ;;  %v6562_v62 = vld [vmem:[%s6314_s20 + $0x98] sm:$0xff] }
  0x32   : > { %336 = vst.msk [vmem:[#allocation3 + $0x8] sm:$0xff] %vm334_vm0, %v299_v40  ;;  %v6568_v63 = vld [vmem:[%s6314_s20 + $0x90] sm:$0xff]  ;;  %v6572_v0 = vld [vmem:[%s6314_s20 + $0x80] sm:$0xff] }
  0x33   : > { %339 = vst.msk [vmem:[#allocation3 + $0x20] sm:$0xff] %vm334_vm0, %v6493_v41  ;;  %v598_v2 = vld [vmem:[%s6314_s20 + $0x7a] sm:$0xff]  ;;  %v6576_v5 = vld [vmem:[%s6314_s20 + $0x6a] sm:$0xff] }
  0x34   : > { %10092 = vst [vmem:[#allocation16_spill] sm:$0xff] %v6503_v45  ;;  %v6598_v40 = vld [vmem:[%s6314_s20 + $0xb0] sm:$0xff] }
  0x35   : > { %342 = vst.msk [vmem:[#allocation3 + $0x38] sm:$0xff] %vm334_vm0, %v6506_v46 }
  0x36   : > { %341 = vst.msk [vmem:[#allocation3 + $0x30] sm:$0xff] %vm334_vm0, %v6509_v47 }
  0x37   : > { %463 = vrot.lane.b32.xlu1 %v6356_v10, %s6192_s21  ;;  %461 = vrot.lane.b32.xlu0 %v6359_v11, %s6192_s21  ;;  %10093 = vst [vmem:[#allocation17_spill] sm:$0xff] %v6522_v50 }
  0x38   : > { %465 = vrot.lane.b32.xlu2 %v6366_v12, %s6192_s21  ;;  %340 = vst.msk [vmem:[#allocation3 + $0x28] sm:$0xff] %vm334_vm0, %v6518_v48 }
  0x39   : > { %10094 = vst [vmem:[#allocation18_spill] sm:$0xff] %v6531_v52 }
  0x3a   : > { %345 = vst.msk [vmem:[#allocation3 + $0x50] sm:$0xff] %vm334_vm0, %v6534_v53 }
  0x3b   : > { %344 = vst.msk [vmem:[#allocation3 + $0x48] sm:$0xff] %vm334_vm0, %v6537_v54 }
  0x3c   : > { %10095 = vst [vmem:[#allocation19_spill] sm:$0xff] %v6550_v57 }
  0x3d   : > { %343 = vst.msk [vmem:[#allocation3 + $0x40] sm:$0xff] %vm334_vm0, %v6546_v55 }
  0x3e   : > { %10096 = vst [vmem:[#allocation20_spill] sm:$0xff] %v6559_v59 }
  0x3f   : > { %469 = vrot.lane.b32.xlu1 %v6371_v13, %s6192_s21  ;;  %467 = vrot.lane.b32.xlu0 %v6374_v14, %s6192_s21  ;;  %10097 = vst [vmem:[#allocation21_spill] sm:$0xff] %v6576_v5 }
  0x40   : > { %471 = vrot.lane.b32.xlu2 %v6381_v15, %s6192_s21  ;;  %348 = vst.msk [vmem:[#allocation3 + $0x68] sm:$0xff] %vm334_vm0, %v6562_v62 }
  0x41   : > { %347 = vst.msk [vmem:[#allocation3 + $0x60] sm:$0xff] %vm334_vm0, %v6568_v63 }
  0x42   : > { %346 = vst.msk [vmem:[#allocation3 + $0x58] sm:$0xff] %vm334_vm0, %v6572_v0 }
  0x43   : > { %350 = vst.msk [vmem:[#allocation3 + $0x78] sm:$0xff] %vm334_vm0, %v6598_v40 }
  0x47   : > { %475 = vrot.lane.b32.xlu1 %v6386_v16, %s6192_s21  ;;  %473 = vrot.lane.b32.xlu0 %v6389_v17, %s6192_s21 }
  0x48   : > { %477 = vrot.lane.b32.xlu2 %v6396_v18, %s6192_s21 }
  0x4f   : > { %481 = vrot.lane.b32.xlu1 %v6401_v19, %s6192_s21  ;;  %479 = vrot.lane.b32.xlu0 %v6404_v20, %s6192_s21 }
  0x50   : > { %483 = vrot.lane.b32.xlu2 %v6411_v21, %s6192_s21 }
  0x57   : > { %487 = vrot.lane.b32.xlu1 %v6416_v22, %s6192_s21  ;;  %485 = vrot.lane.b32.xlu0 %v6419_v23, %s6192_s21 }
  0x58   : > { %489 = vrot.lane.b32.xlu2 %v6426_v24, %s6192_s21 }
  0x5f   : > { %493 = vrot.lane.b32.xlu1 %v396_v25, %s6192_s21  ;;  %491 = vrot.lane.b32.xlu0 %v6432_v26, %s6192_s21 }
  0x60   : > { %495 = vrot.lane.b32.xlu2 %v6438_v27, %s6192_s21  ;;  %v6812_v27 = vld [vmem:[%s6314_s20 + $0x1a0] sm:$0xff] }
  0x61   : > { %370 = vst.msk [vmem:[#allocation3 + $0x118] sm:$0xff] %vm334_vm0, %v6812_v27 }
  0x67   : > { %499 = vrot.lane.b32.xlu1 %v399_v28, %s6192_s21  ;;  %497 = vrot.lane.b32.xlu0 %v6444_v29, %s6192_s21  ;;  %v6589_v28 = vld [vmem:[%s6314_s20 + $0x82] sm:$0xff]  ;;  %v6818_v29 = vld [vmem:[%s6314_s20 + $0x18a] sm:$0xff] }
  0x68   : > { %501 = vrot.lane.b32.xlu2 %v6450_v30, %s6192_s21  ;;  %10098 = vst [vmem:[#allocation22_spill] sm:$0xff] %v6589_v28  ;;  %v6781_v30 = vld [vmem:[%s6314_s20 + $0x188] sm:$0xff] }
  0x69   : > { %368 = vst.msk [vmem:[#allocation3 + $0x108] sm:$0xff] %vm334_vm0, %v6781_v30 }
  0x6f   : > { %505 = vrot.lane.b32.xlu1 %v402_v31, %s6192_s21  ;;  %503 = vrot.lane.b32.xlu0 %v6456_v32, %s6192_s21 }
  0x70   : > { %507 = vrot.lane.b32.xlu2 %v6462_v33, %s6192_s21 }
  0x77   : > { %511 = vrot.lane.b32.xlu1 %v405_v36, %s6192_s21  ;;  %509 = vrot.lane.b32.xlu0 %v6475_v37, %s6192_s21  ;;  %v6592_v36 = vld [vmem:[%s6314_s20 + $0xc0] sm:$0xff]  ;;  %v6775_v37 = vld [vmem:[%s6314_s20 + $0x198] sm:$0xff] }
  0x78   : > { %513 = vrot.lane.b32.xlu2 %v6481_v38, %s6192_s21  ;;  %351 = vst.msk [vmem:[#allocation3 + $0x80] sm:$0xff] %vm334_vm0, %v6592_v36  ;;  %v6748_v38 = vld [vmem:[%s6314_s20 + $0x168] sm:$0xff]  ;;  %s6132_s21 = scalar_lea.hbm %s10027_s7, 32 }
  0x79   : > { %365 = vst.msk [vmem:[#allocation3 + $0xf0] sm:$0xff] %vm334_vm0, %v6748_v38 }
  0x7a   : > { %v452_v44 = vpop.permute.xlu2 %451  ;;  %369 = vst.msk [vmem:[#allocation3 + $0x110] sm:$0xff] %vm334_vm0, %v6775_v37 }
  0x7b   : > { %556 = vst.msk [vmem:[#allocation3 + $0x20] sm:$0xff] %vm551_vm1, %v452_v44  ;;  %v6606_v44 = vld [vmem:[%s6314_s20 + $0x92] sm:$0xff] }
  0x7c   : > { %10099 = vst [vmem:[#allocation23_spill] sm:$0xff] %v6606_v44 }
  0x7f   : > { %662 = vrot.lane.b32.xlu1 %v589_v42, %s6193_s22  ;;  %660 = vrot.lane.b32.xlu0 %v588_v43, %s6193_s22  ;;  %v6602_v42 = vld [vmem:[%s6314_s20 + $0xa8] sm:$0xff]  ;;  %v601_v43 = vld [vmem:[%s6314_s20 + $0x9a] sm:$0xff] }
  0x80   : > { %664 = vrot.lane.b32.xlu2 %v6503_v45, %s6193_s22  ;;  %349 = vst.msk [vmem:[#allocation3 + $0x70] sm:$0xff] %vm334_vm0, %v6602_v42 }
  0x82   : > { %v454_v51 = vpop.permute.xlu2 %453 }
  0x83   : > { %557 = vst.msk [vmem:[#allocation3 + $0x28] sm:$0xff] %vm551_vm1, %v454_v51  ;;  %v6619_v51 = vld [vmem:[%s6314_s20 + $0xaa] sm:$0xff] }
  0x84   : > { %10100 = vst [vmem:[#allocation24_spill] sm:$0xff] %v6619_v51 }
  0x87   : > { %668 = vrot.lane.b32.xlu1 %v592_v49, %s6193_s22  ;;  %666 = vrot.lane.b32.xlu0 %v6522_v50, %s6193_s22  ;;  %v6742_v50 = vld [vmem:[%s6314_s20 + $0x170] sm:$0xff] }
  0x88   : > { %670 = vrot.lane.b32.xlu2 %v6531_v52, %s6193_s22  ;;  %v6712_v52 = vld [vmem:[%s6314_s20 + $0x150] sm:$0xff]  ;;  %366 = vst.msk [vmem:[#allocation3 + $0xf8] sm:$0xff] %vm334_vm0, %v6742_v50 }
  0x89   : > { %363 = vst.msk [vmem:[#allocation3 + $0xe0] sm:$0xff] %vm334_vm0, %v6712_v52 }
  0x8a   : > { %v460_v58 = vpop.permute.xlu2 %459 }
  0x8b   : > { %560 = vst.msk [vmem:[#allocation3 + $0x40] sm:$0xff] %vm551_vm1, %v460_v58 }
  0x8f   : > { %674 = vrot.lane.b32.xlu1 %v595_v56, %s6193_s22  ;;  %672 = vrot.lane.b32.xlu0 %v6550_v57, %s6193_s22  ;;  %v6718_v57 = vld [vmem:[%s6314_s20 + $0x140] sm:$0xff] }
  0x90   : > { %676 = vrot.lane.b32.xlu2 %v6559_v59, %s6193_s22  ;;  %v6688_v59 = vld [vmem:[%s6314_s20 + $0x120] sm:$0xff]  ;;  %362 = vst.msk [vmem:[#allocation3 + $0xd8] sm:$0xff] %vm334_vm0, %v6718_v57 }
  0x91   : > { %v448_v60 = vpop.permute.xlu1 %447  ;;  %v444_v61 = vpop.permute.xlu0 %443  ;;  %359 = vst.msk [vmem:[#allocation3 + $0xc0] sm:$0xff] %vm334_vm0, %v6688_v59 }
  0x92   : > { %554 = vst.msk [vmem:[#allocation3 + $0x10] sm:$0xff] %vm551_vm1, %v448_v60  ;;  %v466_v25 = vpop.permute.xlu2 %465  ;;  %v6622_v60 = vld [vmem:[%s6314_s20 + $0xe0] sm:$0xff] }
  0x93   : > { %552 = vst.msk [vmem:[#allocation3] sm:$0xff] %vm551_vm1, %v444_v61  ;;  %v6628_v61 = vld [vmem:[%s6314_s20 + $0xd8] sm:$0xff] }
  0x94   : > { %563 = vst.msk [vmem:[#allocation3 + $0x58] sm:$0xff] %vm551_vm1, %v466_v25  ;;  %v604_v25 = vld [vmem:[%s6314_s20 + $0xc2] sm:$0xff] }
  0x95   : > { %354 = vst.msk [vmem:[#allocation3 + $0x98] sm:$0xff] %vm334_vm0, %v6622_v60 }
  0x96   : > { %353 = vst.msk [vmem:[#allocation3 + $0x90] sm:$0xff] %vm334_vm0, %v6628_v61 }
  0x97   : > { %680 = vrot.lane.b32.xlu1 %v598_v2, %s6193_s22  ;;  %678 = vrot.lane.b32.xlu0 %v6576_v5, %s6193_s22  ;;  %v6632_v2 = vld [vmem:[%s6314_s20 + $0xc8] sm:$0xff] }
  0x98   : > { %682 = vrot.lane.b32.xlu2 %v6589_v28, %s6193_s22  ;;  %352 = vst.msk [vmem:[#allocation3 + $0x88] sm:$0xff] %vm334_vm0, %v6632_v2 }
  0x99   : > { %v450_v31 = vpop.permute.xlu1 %449  ;;  %v446_v35 = vpop.permute.xlu0 %445 }
  0x9a   : > { %555 = vst.msk [vmem:[#allocation3 + $0x18] sm:$0xff] %vm551_vm1, %v450_v31  ;;  %v472_v49 = vpop.permute.xlu2 %471  ;;  %v6636_v31 = vld [vmem:[%s6314_s20 + $0xb2] sm:$0xff] }
  0x9b   : > { %553 = vst.msk [vmem:[#allocation3 + $0x8] sm:$0xff] %vm551_vm1, %v446_v35 }
  0x9c   : > { %566 = vst.msk [vmem:[#allocation3 + $0x70] sm:$0xff] %vm551_vm1, %v472_v49 }
  0x9d   : > { %10101 = vst [vmem:[#allocation25_spill] sm:$0xff] %v6636_v31 }
  0x9f   : > { %686 = vrot.lane.b32.xlu1 %v601_v43, %s6193_s22  ;;  %684 = vrot.lane.b32.xlu0 %v6606_v44, %s6193_s22  ;;  %v6649_v43 = vld [vmem:[%s6314_s20 + $0xca] sm:$0xff] }
  0xa0   : > { %688 = vrot.lane.b32.xlu2 %v6619_v51, %s6193_s22  ;;  %10102 = vst [vmem:[#allocation26_spill] sm:$0xff] %v6649_v43  ;;  %v6658_v51 = vld [vmem:[%s6314_s20 + $0xf8] sm:$0xff]  ;;  %v6682_v44 = vld [vmem:[%s6314_s20 + $0x128] sm:$0xff] }
  0xa1   : > { %v458_v56 = vpop.permute.xlu1 %457  ;;  %v456_v58 = vpop.permute.xlu0 %455  ;;  %356 = vst.msk [vmem:[#allocation3 + $0xa8] sm:$0xff] %vm334_vm0, %v6658_v51 }
  0xa2   : > { %559 = vst.msk [vmem:[#allocation3 + $0x38] sm:$0xff] %vm551_vm1, %v458_v56  ;;  %v478_v35 = vpop.permute.xlu2 %477 }
  0xa3   : > { %558 = vst.msk [vmem:[#allocation3 + $0x30] sm:$0xff] %vm551_vm1, %v456_v58  ;;  %v6652_v58 = vld [vmem:[%s6314_s20 + $0x108] sm:$0xff] }
  0xa4   : > { %569 = vst.msk [vmem:[#allocation3 + $0x88] sm:$0xff] %vm551_vm1, %v478_v35  ;;  %v607_v35 = vld [vmem:[%s6314_s20 + $0xe2] sm:$0xff] }
  0xa5   : > { %357 = vst.msk [vmem:[#allocation3 + $0xb0] sm:$0xff] %vm334_vm0, %v6652_v58 }
  0xa6   : > { %360 = vst.msk [vmem:[#allocation3 + $0xc8] sm:$0xff] %vm334_vm0, %v6682_v44 }
  0xa7   : > { %692 = vrot.lane.b32.xlu1 %v604_v25, %s6193_s22  ;;  %690 = vrot.lane.b32.xlu0 %v6636_v31, %s6193_s22  ;;  %v6662_v25 = vld [vmem:[%s6314_s20 + $0xf0] sm:$0xff]  ;;  %v6666_v31 = vld [vmem:[%s6314_s20 + $0xda] sm:$0xff] }
  0xa8   : > { %694 = vrot.lane.b32.xlu2 %v6649_v43, %s6193_s22  ;;  %10103 = vst [vmem:[#allocation27_spill] sm:$0xff] %v6666_v31 }
  0xa9   : > { %v464_v49 = vpop.permute.xlu1 %463  ;;  %v462_v56 = vpop.permute.xlu0 %461  ;;  %355 = vst.msk [vmem:[#allocation3 + $0xa0] sm:$0xff] %vm334_vm0, %v6662_v25 }
  0xaa   : > { %562 = vst.msk [vmem:[#allocation3 + $0x50] sm:$0xff] %vm551_vm1, %v464_v49  ;;  %v484_v49 = vpop.permute.xlu2 %483 }
  0xab   : > { %561 = vst.msk [vmem:[#allocation3 + $0x48] sm:$0xff] %vm551_vm1, %v462_v56  ;;  %v6679_v56 = vld [vmem:[%s6314_s20 + $0xf2] sm:$0xff] }
  0xac   : > { %572 = vst.msk [vmem:[#allocation3 + $0xa0] sm:$0xff] %vm551_vm1, %v484_v49  ;;  %v610_v49 = vld [vmem:[%s6314_s20 + $0x10a] sm:$0xff] }
  0xad   : > { %10104 = vst [vmem:[#allocation28_spill] sm:$0xff] %v6679_v56 }
  0xaf   : > { %698 = vrot.lane.b32.xlu1 %v607_v35, %s6193_s22  ;;  %696 = vrot.lane.b32.xlu0 %v6666_v31, %s6193_s22  ;;  %v6692_v35 = vld [vmem:[%s6314_s20 + $0x110] sm:$0xff]  ;;  %v6696_v31 = vld [vmem:[%s6314_s20 + $0xfa] sm:$0xff] }
  0xb0   : > { %700 = vrot.lane.b32.xlu2 %v6679_v56, %s6193_s22  ;;  %10105 = vst [vmem:[#allocation29_spill] sm:$0xff] %v6696_v31 }
  0xb1   : > { %v470_v43 = vpop.permute.xlu1 %469  ;;  %v468_v28 = vpop.permute.xlu0 %467  ;;  %358 = vst.msk [vmem:[#allocation3 + $0xb8] sm:$0xff] %vm334_vm0, %v6692_v35 }
  0xb2   : > { %565 = vst.msk [vmem:[#allocation3 + $0x68] sm:$0xff] %vm551_vm1, %v470_v43  ;;  %v490_v43 = vpop.permute.xlu2 %489 }
  0xb3   : > { %564 = vst.msk [vmem:[#allocation3 + $0x60] sm:$0xff] %vm551_vm1, %v468_v28  ;;  %v6709_v28 = vld [vmem:[%s6314_s20 + $0x112] sm:$0xff] }
  0xb4   : > { %575 = vst.msk [vmem:[#allocation3 + $0xb8] sm:$0xff] %vm551_vm1, %v490_v43  ;;  %v613_v43 = vld [vmem:[%s6314_s20 + $0x12a] sm:$0xff] }
  0xb5   : > { %10106 = vst [vmem:[#allocation30_spill] sm:$0xff] %v6709_v28 }
  0xb7   : > { %704 = vrot.lane.b32.xlu1 %v610_v49, %s6193_s22  ;;  %702 = vrot.lane.b32.xlu0 %v6696_v31, %s6193_s22  ;;  %v6722_v49 = vld [vmem:[%s6314_s20 + $0x138] sm:$0xff]  ;;  %v6726_v31 = vld [vmem:[%s6314_s20 + $0x122] sm:$0xff] }
  0xb8   : > { %706 = vrot.lane.b32.xlu2 %v6709_v28, %s6193_s22  ;;  %10107 = vst [vmem:[#allocation31_spill] sm:$0xff] %v6726_v31 }
  0xb9   : > { %v476_v56 = vpop.permute.xlu1 %475  ;;  %v474_v5 = vpop.permute.xlu0 %473  ;;  %361 = vst.msk [vmem:[#allocation3 + $0xd0] sm:$0xff] %vm334_vm0, %v6722_v49 }
  0xba   : > { %568 = vst.msk [vmem:[#allocation3 + $0x80] sm:$0xff] %vm551_vm1, %v476_v56  ;;  %v496_v56 = vpop.permute.xlu2 %495 }
  0xbb   : > { %567 = vst.msk [vmem:[#allocation3 + $0x78] sm:$0xff] %vm551_vm1, %v474_v5  ;;  %v6739_v5 = vld [vmem:[%s6314_s20 + $0x13a] sm:$0xff] }
  0xbc   : > { %578 = vst.msk [vmem:[#allocation3 + $0xd0] sm:$0xff] %vm551_vm1, %v496_v56  ;;  %v6755_v56 = vld [vmem:[%s6314_s20 + $0x152] sm:$0xff] }
  0xbd   : > { %10108 = vst [vmem:[#allocation32_spill] sm:$0xff] %v6739_v5 }
  0xbe   : > { %10109 = vst [vmem:[#allocation33_spill] sm:$0xff] %v6755_v56 }
  0xbf   : > { %710 = vrot.lane.b32.xlu1 %v613_v43, %s6193_s22  ;;  %708 = vrot.lane.b32.xlu0 %v6726_v31, %s6193_s22  ;;  %v6752_v43 = vld [vmem:[%s6314_s20 + $0x158] sm:$0xff]  ;;  %v6758_v31 = vld [vmem:[%s6314_s20 + $0x142] sm:$0xff] }
  0xc0   : > { %712 = vrot.lane.b32.xlu2 %v6739_v5, %s6193_s22  ;;  %10110 = vst [vmem:[#allocation34_spill] sm:$0xff] %v6758_v31 }
  0xc1   : > { %v482_v28 = vpop.permute.xlu1 %481  ;;  %v480_v45 = vpop.permute.xlu0 %479  ;;  %364 = vst.msk [vmem:[#allocation3 + $0xe8] sm:$0xff] %vm334_vm0, %v6752_v43 }
  0xc2   : > { %571 = vst.msk [vmem:[#allocation3 + $0x98] sm:$0xff] %vm551_vm1, %v482_v28  ;;  %v502_v28 = vpop.permute.xlu2 %501 }
  0xc3   : > { %570 = vst.msk [vmem:[#allocation3 + $0x90] sm:$0xff] %vm551_vm1, %v480_v45  ;;  %v6772_v45 = vld [vmem:[%s6314_s20 + $0x15a] sm:$0xff] }
  0xc4   : > { %581 = vst.msk [vmem:[#allocation3 + $0xe8] sm:$0xff] %vm551_vm1, %v502_v28  ;;  %v6788_v28 = vld [vmem:[%s6314_s20 + $0x172] sm:$0xff] }
  0xc5   : > { %10111 = vst [vmem:[#allocation35_spill] sm:$0xff] %v6772_v45 }
  0xc6   : > { %10112 = vst [vmem:[#allocation36_spill] sm:$0xff] %v6788_v28 }
  0xc7   : > { %716 = vrot.lane.b32.xlu1 %v6755_v56, %s6193_s22  ;;  %714 = vrot.lane.b32.xlu0 %v6758_v31, %s6193_s22  ;;  %v6785_v56 = vld [vmem:[%s6314_s20 + $0x180] sm:$0xff]  ;;  %v6791_v31 = vld [vmem:[%s6314_s20 + $0x16a] sm:$0xff] }
  0xc8   : > { %718 = vrot.lane.b32.xlu2 %v6772_v45, %s6193_s22  ;;  %10113 = vst [vmem:[#allocation37_spill] sm:$0xff] %v6791_v31 }
  0xc9   : > { %v488_v5 = vpop.permute.xlu1 %487  ;;  %v486_v33 = vpop.permute.xlu0 %485  ;;  %367 = vst.msk [vmem:[#allocation3 + $0x100] sm:$0xff] %vm334_vm0, %v6785_v56  ;;  %vm3285_vm0 = vcmask 392480  }
  0xca   : > { %574 = vst.msk [vmem:[#allocation3 + $0xb0] sm:$0xff] %vm551_vm1, %v488_v5  ;;  %v508_v5 = vpop.permute.xlu2 %507 }
  0xcb   : > { %573 = vst.msk [vmem:[#allocation3 + $0xa8] sm:$0xff] %vm551_vm1, %v486_v33  ;;  %v6805_v33 = vld [vmem:[%s6314_s20 + $0x182] sm:$0xff] }
  0xcc   : > { %584 = vst.msk [vmem:[#allocation3 + $0x100] sm:$0xff] %vm551_vm1, %v508_v5 }
  0xcd   : > { %10114 = vst [vmem:[#allocation38_spill] sm:$0xff] %v6805_v33 }
  0xcf   : > { %722 = vrot.lane.b32.xlu1 %v6788_v28, %s6193_s22  ;;  %720 = vrot.lane.b32.xlu0 %v6791_v31, %s6193_s22  ;;  %v6815_v28 = vld [vmem:[%s6314_s20 + $0x19a] sm:$0xff] }
  0xd0   : > { %724 = vrot.lane.b32.xlu2 %v6805_v33, %s6193_s22  ;;  %10115 = vst [vmem:[#allocation39_spill] sm:$0xff] %v6815_v28 }
  0xd1   : > { %v494_v45 = vpop.permute.xlu1 %493  ;;  %v492_v32 = vpop.permute.xlu0 %491 }
  0xd2   : > { %577 = vst.msk [vmem:[#allocation3 + $0xc8] sm:$0xff] %vm551_vm1, %v494_v45  ;;  %v514_v31 = vpop.permute.xlu2 %513  ;;  %v6828_v45 = vld [vmem:[%s6314_s20 + $0x1a2] sm:$0xff] }
  0xd3   : > { %576 = vst.msk [vmem:[#allocation3 + $0xc0] sm:$0xff] %vm551_vm1, %v492_v32 }
  0xd4   : > { %587 = vst.msk [vmem:[#allocation3 + $0x118] sm:$0xff] %vm551_vm1, %v514_v31 }
  0xd7   : > { %728 = vrot.lane.b32.xlu1 %v6815_v28, %s6193_s22  ;;  %726 = vrot.lane.b32.xlu0 %v6818_v29, %s6193_s22 }
  0xd8   : > { %730 = vrot.lane.b32.xlu2 %v6828_v45, %s6193_s22  ;;  %s5893_s22 = sshll.u32 %s6182_s29, 4 }
  0xd9   : > { %v500_v32 = vpop.permute.xlu1 %499  ;;  %v498_v5 = vpop.permute.xlu0 %497 }
  0xda   : > { %580 = vst.msk [vmem:[#allocation3 + $0xe0] sm:$0xff] %vm551_vm1, %v500_v32  ;;  %v665_v33 = vpop.permute.xlu2 %664 }
  0xdb   : > { %579 = vst.msk [vmem:[#allocation3 + $0xd8] sm:$0xff] %vm551_vm1, %v498_v5 }
  0xdc   : > { %771 = vst.msk [vmem:[#allocation3 + $0x10] sm:$0xff] %vm768_vm2, %v665_v33 }
  0xdf   : > { %882 = vrot.lane.b32.xlu1 %v6484_v39, %s6194_s23  ;;  %880 = vrot.lane.b32.xlu0 %v6465_v34, %s6194_s23 }
  0xe0   : > { %884 = vrot.lane.b32.xlu2 %v6493_v41, %s6194_s23 }
  0xe1   : > { %v506_v31 = vpop.permute.xlu1 %505  ;;  %v504_v28 = vpop.permute.xlu0 %503 }
  0xe2   : > { %583 = vst.msk [vmem:[#allocation3 + $0xf8] sm:$0xff] %vm551_vm1, %v506_v31  ;;  %v671_v32 = vpop.permute.xlu2 %670 }
  0xe3   : > { %582 = vst.msk [vmem:[#allocation3 + $0xf0] sm:$0xff] %vm551_vm1, %v504_v28 }
  0xe4   : > { %774 = vst.msk [vmem:[#allocation3 + $0x28] sm:$0xff] %vm768_vm2, %v671_v32 }
  0xe7   : > { %888 = vrot.lane.b32.xlu1 %v6509_v47, %s6194_s23  ;;  %886 = vrot.lane.b32.xlu0 %v6518_v48, %s6194_s23 }
  0xe8   : > { %890 = vrot.lane.b32.xlu2 %v6506_v46, %s6194_s23 }
  0xe9   : > { %v512_v39 = vpop.permute.xlu1 %511  ;;  %v510_v34 = vpop.permute.xlu0 %509 }
  0xea   : > { %586 = vst.msk [vmem:[#allocation3 + $0x110] sm:$0xff] %vm551_vm1, %v512_v39  ;;  %v677_v41 = vpop.permute.xlu2 %676  ;;  %v7029_v39 = vld [vmem:[%s6314_s20 + $0x151] sm:$0xff] }
  0xeb   : > { %585 = vst.msk [vmem:[#allocation3 + $0x108] sm:$0xff] %vm551_vm1, %v510_v34  ;;  %vm3478_vm1 = vcmask 490880  }
  0xec   : > { %777 = vst.msk [vmem:[#allocation3 + $0x40] sm:$0xff] %vm768_vm2, %v677_v41 }
  0xef   : > { %894 = vrot.lane.b32.xlu1 %v6537_v54, %s6194_s23  ;;  %892 = vrot.lane.b32.xlu0 %v6546_v55, %s6194_s23 }
  0xf0   : > { %896 = vrot.lane.b32.xlu2 %v6534_v53, %s6194_s23 }
  0xf1   : > { %v663_v47 = vpop.permute.xlu1 %662  ;;  %v661_v48 = vpop.permute.xlu0 %660 }
  0xf2   : > { %770 = vst.msk [vmem:[#allocation3 + $0x8] sm:$0xff] %vm768_vm2, %v663_v47  ;;  %v683_v46 = vpop.permute.xlu2 %682 }
  0xf3   : > { %769 = vst.msk [vmem:[#allocation3] sm:$0xff] %vm768_vm2, %v661_v48  ;;  %v10118_v48 = vld [vmem:[#allocation12_spill] sm:$0xff] }
  0xf4   : > { %780 = vst.msk [vmem:[#allocation3 + $0x58] sm:$0xff] %vm768_vm2, %v683_v46  ;;  %v10119_v46 = vld [vmem:[#allocation11_spill] sm:$0xff] }
  0xf7   : > { %900 = vrot.lane.b32.xlu1 %v6568_v63, %s6194_s23  ;;  %898 = vrot.lane.b32.xlu0 %v6572_v0, %s6194_s23 }
  0xf8   : > { %902 = vrot.lane.b32.xlu2 %v6562_v62, %s6194_s23 }
  0xf9   : > { %v669_v54 = vpop.permute.xlu1 %668  ;;  %v667_v55 = vpop.permute.xlu0 %666 }
  0xfa   : > { %773 = vst.msk [vmem:[#allocation3 + $0x20] sm:$0xff] %vm768_vm2, %v669_v54  ;;  %v689_v53 = vpop.permute.xlu2 %688  ;;  %v7041_v54 = vld [vmem:[%s6314_s20 + $0x171] sm:$0xff] }
  0xfb   : > { %772 = vst.msk [vmem:[#allocation3 + $0x18] sm:$0xff] %vm768_vm2, %v667_v55 }
  0xfc   : > { %783 = vst.msk [vmem:[#allocation3 + $0x70] sm:$0xff] %vm768_vm2, %v689_v53 }
  0xff   : > { %906 = vrot.lane.b32.xlu1 %v6598_v40, %s6194_s23  ;;  %904 = vrot.lane.b32.xlu0 %v6602_v42, %s6194_s23 }
 0x100   : > { %908 = vrot.lane.b32.xlu2 %v6592_v36, %s6194_s23 }
 0x101   : > { %v675_v63 = vpop.permute.xlu1 %674  ;;  %v673_v0 = vpop.permute.xlu0 %672 }
 0x102   : > { %776 = vst.msk [vmem:[#allocation3 + $0x38] sm:$0xff] %vm768_vm2, %v675_v63  ;;  %v695_v62 = vpop.permute.xlu2 %694 }
 0x103   : > { %775 = vst.msk [vmem:[#allocation3 + $0x30] sm:$0xff] %vm768_vm2, %v673_v0  ;;  %v10120_v0 = vld [vmem:[#allocation14_spill] sm:$0xff] }
 0x104   : > { %786 = vst.msk [vmem:[#allocation3 + $0x88] sm:$0xff] %vm768_vm2, %v695_v62  ;;  %v10121_v62 = vld [vmem:[#allocation13_spill] sm:$0xff] }
 0x107   : > { %912 = vrot.lane.b32.xlu1 %v6628_v61, %s6194_s23  ;;  %910 = vrot.lane.b32.xlu0 %v6632_v2, %s6194_s23 }
 0x108   : > { %914 = vrot.lane.b32.xlu2 %v6622_v60, %s6194_s23 }
 0x109   : > { %v681_v40 = vpop.permute.xlu1 %680  ;;  %v679_v42 = vpop.permute.xlu0 %678 }
 0x10a   : > { %779 = vst.msk [vmem:[#allocation3 + $0x50] sm:$0xff] %vm768_vm2, %v681_v40  ;;  %v701_v36 = vpop.permute.xlu2 %700  ;;  %v7053_v40 = vld [vmem:[%s6314_s20 + $0x199] sm:$0xff] }
 0x10b   : > { %778 = vst.msk [vmem:[#allocation3 + $0x48] sm:$0xff] %vm768_vm2, %v679_v42 }
 0x10c   : > { %789 = vst.msk [vmem:[#allocation3 + $0xa0] sm:$0xff] %vm768_vm2, %v701_v36 }
 0x10f   : > { %918 = vrot.lane.b32.xlu1 %v6658_v51, %s6194_s23  ;;  %916 = vrot.lane.b32.xlu0 %v6662_v25, %s6194_s23 }
 0x110   : > { %920 = vrot.lane.b32.xlu2 %v6652_v58, %s6194_s23 }
 0x111   : > { %v687_v61 = vpop.permute.xlu1 %686  ;;  %v685_v2 = vpop.permute.xlu0 %684 }
 0x112   : > { %782 = vst.msk [vmem:[#allocation3 + $0x68] sm:$0xff] %vm768_vm2, %v687_v61  ;;  %v707_v60 = vpop.permute.xlu2 %706  ;;  %v7060_v61 = vld [vmem:[%s6314_s20 + $0x1b1] sm:$0xff] }
 0x113   : > { %781 = vst.msk [vmem:[#allocation3 + $0x60] sm:$0xff] %vm768_vm2, %v685_v2 }
 0x114   : > { %792 = vst.msk [vmem:[#allocation3 + $0xb8] sm:$0xff] %vm768_vm2, %v707_v60  ;;  %v10122_v60 = vld [vmem:[#allocation15_spill] sm:$0xff] }
 0x117   : > { %924 = vrot.lane.b32.xlu1 %v6688_v59, %s6194_s23  ;;  %922 = vrot.lane.b32.xlu0 %v6692_v35, %s6194_s23 }
 0x118   : > { %926 = vrot.lane.b32.xlu2 %v6682_v44, %s6194_s23 }
 0x119   : > { %v693_v51 = vpop.permute.xlu1 %692  ;;  %v691_v25 = vpop.permute.xlu0 %690 }
 0x11a   : > { %785 = vst.msk [vmem:[#allocation3 + $0x80] sm:$0xff] %vm768_vm2, %v693_v51  ;;  %v713_v58 = vpop.permute.xlu2 %712  ;;  %v7068_v51 = vld [vmem:[%s6314_s20 + $0x1b9] sm:$0xff] }
 0x11b   : > { %784 = vst.msk [vmem:[#allocation3 + $0x78] sm:$0xff] %vm768_vm2, %v691_v25 }
 0x11c   : > { %795 = vst.msk [vmem:[#allocation3 + $0xd0] sm:$0xff] %vm768_vm2, %v713_v58 }
 0x11f   : > { %930 = vrot.lane.b32.xlu1 %v6718_v57, %s6194_s23  ;;  %928 = vrot.lane.b32.xlu0 %v6722_v49, %s6194_s23 }
 0x120   : > { %932 = vrot.lane.b32.xlu2 %v6712_v52, %s6194_s23 }
 0x121   : > { %v699_v59 = vpop.permute.xlu1 %698  ;;  %v697_v35 = vpop.permute.xlu0 %696 }
 0x122   : > { %788 = vst.msk [vmem:[#allocation3 + $0x98] sm:$0xff] %vm768_vm2, %v699_v59  ;;  %v719_v44 = vpop.permute.xlu2 %718 }
 0x123   : > { %787 = vst.msk [vmem:[#allocation3 + $0x90] sm:$0xff] %vm768_vm2, %v697_v35  ;;  %v10123_v35 = vld [vmem:[#allocation17_spill] sm:$0xff] }
 0x124   : > { %798 = vst.msk [vmem:[#allocation3 + $0xe8] sm:$0xff] %vm768_vm2, %v719_v44  ;;  %v10124_v44 = vld [vmem:[#allocation16_spill] sm:$0xff] }
 0x127   : > { %936 = vrot.lane.b32.xlu1 %v6748_v38, %s6194_s23  ;;  %934 = vrot.lane.b32.xlu0 %v6752_v43, %s6194_s23 }
 0x128   : > { %938 = vrot.lane.b32.xlu2 %v6742_v50, %s6194_s23  ;;  %v6934_v50 = vld [vmem:[%s6314_s20 + $0x1b0] sm:$0xff] }
 0x129   : > { %v705_v57 = vpop.permute.xlu1 %704  ;;  %v703_v49 = vpop.permute.xlu0 %702 }
 0x12a   : > { %791 = vst.msk [vmem:[#allocation3 + $0xb0] sm:$0xff] %vm768_vm2, %v705_v57  ;;  %v725_v52 = vpop.permute.xlu2 %724  ;;  %v7080_v57 = vld [vmem:[%s6314_s20 + $0x32] sm:$0xff] }
 0x12b   : > { %790 = vst.msk [vmem:[#allocation3 + $0xa8] sm:$0xff] %vm768_vm2, %v703_v49 }
 0x12c   : > { %801 = vst.msk [vmem:[#allocation3 + $0x100] sm:$0xff] %vm768_vm2, %v725_v52 }
 0x12f   : > { %942 = vrot.lane.b32.xlu1 %v6781_v30, %s6194_s23  ;;  %940 = vrot.lane.b32.xlu0 %v6785_v56, %s6194_s23  ;;  %v6942_v30 = vld [vmem:[%s6314_s20 + $0x1b8] sm:$0xff] }
 0x130   : > { %944 = vrot.lane.b32.xlu2 %v6775_v37, %s6194_s23 }
 0x131   : > { %v711_v38 = vpop.permute.xlu1 %710  ;;  %v709_v43 = vpop.permute.xlu0 %708 }
 0x132   : > { %794 = vst.msk [vmem:[#allocation3 + $0xc8] sm:$0xff] %vm768_vm2, %v711_v38  ;;  %v731_v28 = vpop.permute.xlu2 %730 }
 0x133   : > { %793 = vst.msk [vmem:[#allocation3 + $0xc0] sm:$0xff] %vm768_vm2, %v709_v43  ;;  %v10125_v43 = vld [vmem:[#allocation19_spill] sm:$0xff] }
 0x134   : > { %804 = vst.msk [vmem:[#allocation3 + $0x118] sm:$0xff] %vm768_vm2, %v731_v28  ;;  %v10126_v28 = vld [vmem:[#allocation18_spill] sm:$0xff] }
 0x137   : > { %948 = vrot.lane.b32.xlu1 %v6934_v50, %s6194_s23  ;;  %946 = vrot.lane.b32.xlu0 %v6812_v27, %s6194_s23 }
 0x138   : > { %950 = vrot.lane.b32.xlu2 %v6942_v30, %s6194_s23  ;;  %s6202_s23 = smov 36  }
 0x139   : > { %v717_v56 = vpop.permute.xlu1 %716  ;;  %v715_v33 = vpop.permute.xlu0 %714 }
 0x13a   : > { %797 = vst.msk [vmem:[#allocation3 + $0xe0] sm:$0xff] %vm768_vm2, %v717_v56  ;;  %v885_v37 = vpop.permute.xlu2 %884  ;;  %v7092_v56 = vld [vmem:[%s6314_s20 + $0x52] sm:$0xff] }
 0x13b   : > { %796 = vst.msk [vmem:[#allocation3 + $0xd8] sm:$0xff] %vm768_vm2, %v715_v33 }
 0x13c   : > { %991 = vst.msk [vmem:[#allocation3 + $0x10] sm:$0xff] %vm988_vm3, %v885_v37 }
 0x13f   : > { %1099 = vrot.lane.b32.xlu1 %v6329_v4, %s6195_s24  ;;  %1097 = vrot.lane.b32.xlu0 %v6317_v1, %s6195_s24 }
 0x140   : > { %1101 = vrot.lane.b32.xlu2 %v6324_v3, %s6195_s24 }
 0x141   : > { %v723_v27 = vpop.permute.xlu1 %722  ;;  %v721_v5 = vpop.permute.xlu0 %720 }
 0x142   : > { %800 = vst.msk [vmem:[#allocation3 + $0xf8] sm:$0xff] %vm768_vm2, %v723_v27  ;;  %v891_v31 = vpop.permute.xlu2 %890 }
 0x143   : > { %799 = vst.msk [vmem:[#allocation3 + $0xf0] sm:$0xff] %vm768_vm2, %v721_v5  ;;  %v10127_v5 = vld [vmem:[#allocation21_spill] sm:$0xff] }
 0x144   : > { %994 = vst.msk [vmem:[#allocation3 + $0x28] sm:$0xff] %vm988_vm3, %v891_v31  ;;  %v10128_v31 = vld [vmem:[#allocation20_spill] sm:$0xff] }
 0x147   : > { %1105 = vrot.lane.b32.xlu1 %v6344_v8, %s6195_s24  ;;  %1103 = vrot.lane.b32.xlu0 %v6336_v6, %s6195_s24 }
 0x148   : > { %1107 = vrot.lane.b32.xlu2 %v6341_v7, %s6195_s24 }
 0x149   : > { %v729_v4 = vpop.permute.xlu1 %728  ;;  %v727_v1 = vpop.permute.xlu0 %726 }
 0x14a   : > { %803 = vst.msk [vmem:[#allocation3 + $0x110] sm:$0xff] %vm768_vm2, %v729_v4  ;;  %v897_v3 = vpop.permute.xlu2 %896  ;;  %v7104_v4 = vld [vmem:[%s6314_s20 + $0x7a] sm:$0xff] }
 0x14b   : > { %802 = vst.msk [vmem:[#allocation3 + $0x108] sm:$0xff] %vm768_vm2, %v727_v1  ;;  %vm3671_vm2 = vcmask 589280  }
 0x14c   : > { %997 = vst.msk [vmem:[#allocation3 + $0x40] sm:$0xff] %vm988_vm3, %v897_v3 }
 0x14f   : > { %1111 = vrot.lane.b32.xlu1 %v6359_v11, %s6195_s24  ;;  %1109 = vrot.lane.b32.xlu0 %v6351_v9, %s6195_s24 }
 0x150   : > { %1113 = vrot.lane.b32.xlu2 %v6356_v10, %s6195_s24 }
 0x151   : > { %v883_v8 = vpop.permute.xlu1 %882  ;;  %v881_v6 = vpop.permute.xlu0 %880 }
 0x152   : > { %990 = vst.msk [vmem:[#allocation3 + $0x8] sm:$0xff] %vm988_vm3, %v883_v8  ;;  %v903_v7 = vpop.permute.xlu2 %902 }
 0x153   : > { %989 = vst.msk [vmem:[#allocation3] sm:$0xff] %vm988_vm3, %v881_v6  ;;  %v10129_v6 = vld [vmem:[#allocation23_spill] sm:$0xff] }
 0x154   : > { %1000 = vst.msk [vmem:[#allocation3 + $0x58] sm:$0xff] %vm988_vm3, %v903_v7  ;;  %v10130_v7 = vld [vmem:[#allocation22_spill] sm:$0xff] }
 0x157   : > { %1117 = vrot.lane.b32.xlu1 %v6374_v14, %s6195_s24  ;;  %1115 = vrot.lane.b32.xlu0 %v6366_v12, %s6195_s24 }
 0x158   : > { %1119 = vrot.lane.b32.xlu2 %v6371_v13, %s6195_s24 }
 0x159   : > { %v889_v11 = vpop.permute.xlu1 %888  ;;  %v887_v9 = vpop.permute.xlu0 %886 }
 0x15a   : > { %993 = vst.msk [vmem:[#allocation3 + $0x20] sm:$0xff] %vm988_vm3, %v889_v11  ;;  %v909_v10 = vpop.permute.xlu2 %908  ;;  %v7116_v11 = vld [vmem:[%s6314_s20 + $0x9a] sm:$0xff] }
 0x15b   : > { %992 = vst.msk [vmem:[#allocation3 + $0x18] sm:$0xff] %vm988_vm3, %v887_v9 }
 0x15c   : > { %1003 = vst.msk [vmem:[#allocation3 + $0x70] sm:$0xff] %vm988_vm3, %v909_v10 }
 0x15f   : > { %1123 = vrot.lane.b32.xlu1 %v6389_v17, %s6195_s24  ;;  %1121 = vrot.lane.b32.xlu0 %v6381_v15, %s6195_s24 }
 0x160   : > { %1125 = vrot.lane.b32.xlu2 %v6386_v16, %s6195_s24 }
 0x161   : > { %v895_v14 = vpop.permute.xlu1 %894  ;;  %v893_v12 = vpop.permute.xlu0 %892 }
 0x162   : > { %996 = vst.msk [vmem:[#allocation3 + $0x38] sm:$0xff] %vm988_vm3, %v895_v14  ;;  %v915_v13 = vpop.permute.xlu2 %914 }
 0x163   : > { %995 = vst.msk [vmem:[#allocation3 + $0x30] sm:$0xff] %vm988_vm3, %v893_v12  ;;  %v10131_v12 = vld [vmem:[#allocation25_spill] sm:$0xff] }
 0x164   : > { %1006 = vst.msk [vmem:[#allocation3 + $0x88] sm:$0xff] %vm988_vm3, %v915_v13  ;;  %v10132_v13 = vld [vmem:[#allocation24_spill] sm:$0xff] }
 0x167   : > { %1129 = vrot.lane.b32.xlu1 %v6404_v20, %s6195_s24  ;;  %1127 = vrot.lane.b32.xlu0 %v6396_v18, %s6195_s24 }
 0x168   : > { %1131 = vrot.lane.b32.xlu2 %v6401_v19, %s6195_s24 }
 0x169   : > { %v901_v17 = vpop.permute.xlu1 %900  ;;  %v899_v15 = vpop.permute.xlu0 %898 }
 0x16a   : > { %999 = vst.msk [vmem:[#allocation3 + $0x50] sm:$0xff] %vm988_vm3, %v901_v17  ;;  %v921_v16 = vpop.permute.xlu2 %920  ;;  %v7128_v17 = vld [vmem:[%s6314_s20 + $0xc2] sm:$0xff] }
 0x16b   : > { %998 = vst.msk [vmem:[#allocation3 + $0x48] sm:$0xff] %vm988_vm3, %v899_v15 }
 0x16c   : > { %1009 = vst.msk [vmem:[#allocation3 + $0xa0] sm:$0xff] %vm988_vm3, %v921_v16 }
 0x16f   : > { %1135 = vrot.lane.b32.xlu1 %v6419_v23, %s6195_s24  ;;  %1133 = vrot.lane.b32.xlu0 %v6411_v21, %s6195_s24  ;;  %v7017_v21 = vld [vmem:[%s6314_s20 + $0x129] sm:$0xff] }
 0x170   : > { %1137 = vrot.lane.b32.xlu2 %v6416_v22, %s6195_s24 }
 0x171   : > { %v907_v18 = vpop.permute.xlu1 %906  ;;  %v905_v20 = vpop.permute.xlu0 %904 }
 0x172   : > { %1002 = vst.msk [vmem:[#allocation3 + $0x68] sm:$0xff] %vm988_vm3, %v907_v18  ;;  %v927_v19 = vpop.permute.xlu2 %926 }
 0x173   : > { %1001 = vst.msk [vmem:[#allocation3 + $0x60] sm:$0xff] %vm988_vm3, %v905_v20  ;;  %v10133_v20 = vld [vmem:[#allocation27_spill] sm:$0xff] }
 0x174   : > { %1012 = vst.msk [vmem:[#allocation3 + $0xb8] sm:$0xff] %vm988_vm3, %v927_v19  ;;  %v10134_v19 = vld [vmem:[#allocation26_spill] sm:$0xff] }
 0x177   : > { %1141 = vrot.lane.b32.xlu1 %v6432_v26, %s6195_s24  ;;  %1139 = vrot.lane.b32.xlu0 %v6426_v24, %s6195_s24  ;;  %v10116_v26 = vld [vmem:[#allocation10_spill] sm:$0xff]  ;;  %v10117_v24 = vld [vmem:[#allocation9_spill] sm:$0xff] }
 0x178   : > { %1143 = vrot.lane.b32.xlu2 %v7017_v21, %s6195_s24 }
 0x179   : > { %v913_v23 = vpop.permute.xlu1 %912  ;;  %v911_v32 = vpop.permute.xlu0 %910 }
 0x17a   : > { %1005 = vst.msk [vmem:[#allocation3 + $0x80] sm:$0xff] %vm988_vm3, %v913_v23  ;;  %v933_v22 = vpop.permute.xlu2 %932  ;;  %v7140_v23 = vld [vmem:[%s6314_s20 + $0xe2] sm:$0xff] }
 0x17b   : > { %1004 = vst.msk [vmem:[#allocation3 + $0x78] sm:$0xff] %vm988_vm3, %v911_v32 }
 0x17c   : > { %1015 = vst.msk [vmem:[#allocation3 + $0xd0] sm:$0xff] %vm988_vm3, %v933_v22 }
 0x17f   : > { %1147 = vrot.lane.b32.xlu1 %v10116_v26, %s6195_s24  ;;  %1145 = vrot.lane.b32.xlu0 %v10117_v24, %s6195_s24  ;;  %v10135_v24 = vld [vmem:[#allocation29_spill] sm:$0xff] }
 0x180   : > { %1149 = vrot.lane.b32.xlu2 %v7029_v39, %s6195_s24 }
 0x181   : > { %v919_v34 = vpop.permute.xlu1 %918  ;;  %v917_v41 = vpop.permute.xlu0 %916 }
 0x182   : > { %1008 = vst.msk [vmem:[#allocation3 + $0x98] sm:$0xff] %vm988_vm3, %v919_v34  ;;  %v939_v47 = vpop.permute.xlu2 %938  ;;  %v10136_v34 = vld [vmem:[#allocation28_spill] sm:$0xff] }
 0x183   : > { %1007 = vst.msk [vmem:[#allocation3 + $0x90] sm:$0xff] %vm988_vm3, %v917_v41  ;;  %v7152_v41 = vld [vmem:[%s6314_s20 + $0x10a] sm:$0xff] }
 0x184   : > { %1018 = vst.msk [vmem:[#allocation3 + $0xe8] sm:$0xff] %vm988_vm3, %v939_v47 }
 0x187   : > { %1153 = vrot.lane.b32.xlu1 %v10118_v48, %s6195_s24  ;;  %1151 = vrot.lane.b32.xlu0 %v10119_v46, %s6195_s24 }
 0x188   : > { %1155 = vrot.lane.b32.xlu2 %v7041_v54, %s6195_s24 }
 0x189   : > { %v925_v55 = vpop.permute.xlu1 %924  ;;  %v923_v53 = vpop.permute.xlu0 %922 }
 0x18a   : > { %1011 = vst.msk [vmem:[#allocation3 + $0xb0] sm:$0xff] %vm988_vm3, %v925_v55  ;;  %v945_v63 = vpop.permute.xlu2 %944  ;;  %v10137_v55 = vld [vmem:[#allocation31_spill] sm:$0xff] }
 0x18b   : > { %1010 = vst.msk [vmem:[#allocation3 + $0xa8] sm:$0xff] %vm988_vm3, %v923_v53  ;;  %v10138_v53 = vld [vmem:[#allocation30_spill] sm:$0xff] }
 0x18c   : > { %1021 = vst.msk [vmem:[#allocation3 + $0x100] sm:$0xff] %vm988_vm3, %v945_v63  ;;  %v7164_v63 = vld [vmem:[%s6314_s20 + $0x12a] sm:$0xff] }
 0x18f   : > { %1159 = vrot.lane.b32.xlu1 %v10120_v0, %s6195_s24  ;;  %1157 = vrot.lane.b32.xlu0 %v10121_v62, %s6195_s24 }
 0x190   : > { %1161 = vrot.lane.b32.xlu2 %v7053_v40, %s6195_s24 }
 0x191   : > { %v931_v42 = vpop.permute.xlu1 %930  ;;  %v929_v36 = vpop.permute.xlu0 %928 }
 0x192   : > { %1014 = vst.msk [vmem:[#allocation3 + $0xc8] sm:$0xff] %vm988_vm3, %v931_v42  ;;  %v951_v2 = vpop.permute.xlu2 %950 }
 0x193   : > { %1013 = vst.msk [vmem:[#allocation3 + $0xc0] sm:$0xff] %vm988_vm3, %v929_v36  ;;  %v10139_v36 = vld [vmem:[#allocation34_spill] sm:$0xff] }
 0x194   : > { %1024 = vst.msk [vmem:[#allocation3 + $0x118] sm:$0xff] %vm988_vm3, %v951_v2  ;;  %v10140_v2 = vld [vmem:[#allocation32_spill] sm:$0xff] }
 0x197   : > { %1165 = vrot.lane.b32.xlu1 %v7060_v61, %s6195_s24  ;;  %1163 = vrot.lane.b32.xlu0 %v10122_v60, %s6195_s24 }
 0x198   : > { %1167 = vrot.lane.b32.xlu2 %v7068_v51, %s6195_s24 }
 0x199   : > { %v937_v25 = vpop.permute.xlu1 %936  ;;  %v935_v58 = vpop.permute.xlu0 %934 }
 0x19a   : > { %1017 = vst.msk [vmem:[#allocation3 + $0xe0] sm:$0xff] %vm988_vm3, %v937_v25  ;;  %v1102_v59 = vpop.permute.xlu2 %1101 }
 0x19b   : > { %1016 = vst.msk [vmem:[#allocation3 + $0xd8] sm:$0xff] %vm988_vm3, %v935_v58  ;;  %v10141_v58 = vld [vmem:[#allocation33_spill] sm:$0xff] }
 0x19c   : > { %1208 = vst.msk [vmem:[#allocation3 + $0x10] sm:$0xff] %vm1205_vm4, %v1102_v59 }
 0x19f   : > { %1316 = vrot.lane.b32.xlu1 %v10123_v35, %s6196_s25  ;;  %1314 = vrot.lane.b32.xlu0 %v10124_v44, %s6196_s25  ;;  %v10142_v35 = vld [vmem:[#allocation37_spill] sm:$0xff]  ;;  %v10143_v44 = vld [vmem:[#allocation35_spill] sm:$0xff] }
 0x1a0   : > { %1318 = vrot.lane.b32.xlu2 %v7080_v57, %s6196_s25 }
 0x1a1   : > { %v943_v49 = vpop.permute.xlu1 %942  ;;  %v941_v52 = vpop.permute.xlu0 %940 }
 0x1a2   : > { %1020 = vst.msk [vmem:[#allocation3 + $0xf8] sm:$0xff] %vm988_vm3, %v943_v49  ;;  %v1108_v38 = vpop.permute.xlu2 %1107 }
 0x1a3   : > { %1019 = vst.msk [vmem:[#allocation3 + $0xf0] sm:$0xff] %vm988_vm3, %v941_v52 }
 0x1a4   : > { %1211 = vst.msk [vmem:[#allocation3 + $0x28] sm:$0xff] %vm1205_vm4, %v1108_v38  ;;  %v10144_v38 = vld [vmem:[#allocation36_spill] sm:$0xff] }
 0x1a7   : > { %1322 = vrot.lane.b32.xlu1 %v10125_v43, %s6196_s25  ;;  %1320 = vrot.lane.b32.xlu0 %v10126_v28, %s6196_s25  ;;  %v10145_v28 = vld [vmem:[#allocation38_spill] sm:$0xff] }
 0x1a8   : > { %1324 = vrot.lane.b32.xlu2 %v7092_v56, %s6196_s25 }
 0x1a9   : > { %v949_v33 = vpop.permute.xlu1 %948  ;;  %v947_v37 = vpop.permute.xlu0 %946 }
 0x1aa   : > { %1023 = vst.msk [vmem:[#allocation3 + $0x110] sm:$0xff] %vm988_vm3, %v949_v33  ;;  %v1114_v27 = vpop.permute.xlu2 %1113 }
 0x1ab   : > { %1022 = vst.msk [vmem:[#allocation3 + $0x108] sm:$0xff] %vm988_vm3, %v947_v37  ;;  %vm3865_vm3 = vcmask 687680  }
 0x1ac   : > { %1214 = vst.msk [vmem:[#allocation3 + $0x40] sm:$0xff] %vm1205_vm4, %v1114_v27  ;;  %v10146_v27 = vld [vmem:[#allocation39_spill] sm:$0xff] }
 0x1af   : > { %1328 = vrot.lane.b32.xlu1 %v10127_v5, %s6196_s25  ;;  %1326 = vrot.lane.b32.xlu0 %v10128_v31, %s6196_s25  ;;  %v5667_v5 = vld [vmem:[%s6314_s20 + $0x1b2] sm:$0xff] }
 0x1b0   : > { %1330 = vrot.lane.b32.xlu2 %v7104_v4, %s6196_s25 }
 0x1b1   : > { %v1100_v1 = vpop.permute.xlu1 %1099  ;;  %v1098_v3 = vpop.permute.xlu0 %1097 }
 0x1b2   : > { %1207 = vst.msk [vmem:[#allocation3 + $0x8] sm:$0xff] %vm1205_vm4, %v1100_v1  ;;  %v1120_v8 = vpop.permute.xlu2 %1119 }
 0x1b3   : > { %1206 = vst.msk [vmem:[#allocation3] sm:$0xff] %vm1205_vm4, %v1098_v3 }
 0x1b4   : > { %1217 = vst.msk [vmem:[#allocation3 + $0x58] sm:$0xff] %vm1205_vm4, %v1120_v8  ;;  %v5670_v8 = vld [vmem:[%s6314_s20 + $0x38] sm:$0xff] }
 0x1b7   : > { %1334 = vrot.lane.b32.xlu1 %v10129_v6, %s6196_s25  ;;  %1332 = vrot.lane.b32.xlu0 %v10130_v7, %s6196_s25  ;;  %v5669_v6 = vld [vmem:[%s6314_s20 + $0x30] sm:$0xff] }
 0x1b8   : > { %1336 = vrot.lane.b32.xlu2 %v7116_v11, %s6196_s25 }
 0x1b9   : > { %v1106_v9 = vpop.permute.xlu1 %1105  ;;  %v1104_v10 = vpop.permute.xlu0 %1103 }
 0x1ba   : > { %1210 = vst.msk [vmem:[#allocation3 + $0x20] sm:$0xff] %vm1205_vm4, %v1106_v9  ;;  %v1126_v14 = vpop.permute.xlu2 %1125 }
 0x1bb   : > { %1209 = vst.msk [vmem:[#allocation3 + $0x18] sm:$0xff] %vm1205_vm4, %v1104_v10 }
 0x1bc   : > { %1220 = vst.msk [vmem:[#allocation3 + $0x70] sm:$0xff] %vm1205_vm4, %v1126_v14  ;;  %v5673_v14 = vld [vmem:[%s6314_s20 + $0x60] sm:$0xff] }
 0x1bf   : > { %1340 = vrot.lane.b32.xlu1 %v10131_v12, %s6196_s25  ;;  %1338 = vrot.lane.b32.xlu0 %v10132_v13, %s6196_s25  ;;  %v5672_v12 = vld [vmem:[%s6314_s20 + $0x50] sm:$0xff] }
 0x1c0   : > { %1342 = vrot.lane.b32.xlu2 %v7128_v17, %s6196_s25 }
 0x1c1   : > { %v1112_v15 = vpop.permute.xlu1 %1111  ;;  %v1110_v16 = vpop.permute.xlu0 %1109 }
 0x1c2   : > { %1213 = vst.msk [vmem:[#allocation3 + $0x38] sm:$0xff] %vm1205_vm4, %v1112_v15  ;;  %v1132_v18 = vpop.permute.xlu2 %1131  ;;  %v5674_v15 = vld [vmem:[%s6314_s20 + $0x68] sm:$0xff] }
 0x1c3   : > { %1212 = vst.msk [vmem:[#allocation3 + $0x30] sm:$0xff] %vm1205_vm4, %v1110_v16 }
 0x1c4   : > { %1223 = vst.msk [vmem:[#allocation3 + $0x88] sm:$0xff] %vm1205_vm4, %v1132_v18 }
 0x1c7   : > { %1346 = vrot.lane.b32.xlu1 %v10133_v20, %s6196_s25  ;;  %1344 = vrot.lane.b32.xlu0 %v10134_v19, %s6196_s25  ;;  %v5676_v20 = vld [vmem:[%s6314_s20 + $0x80] sm:$0xff]  ;;  %v5675_v19 = vld [vmem:[%s6314_s20 + $0x78] sm:$0xff] }
 0x1c8   : > { %1348 = vrot.lane.b32.xlu2 %v7140_v23, %s6196_s25 }
 0x1c9   : > { %v1118_v32 = vpop.permute.xlu1 %1117  ;;  %v1116_v22 = vpop.permute.xlu0 %1115 }
 0x1ca   : > { %1216 = vst.msk [vmem:[#allocation3 + $0x50] sm:$0xff] %vm1205_vm4, %v1118_v32  ;;  %v1138_v26 = vpop.permute.xlu2 %1137 }
 0x1cb   : > { %1215 = vst.msk [vmem:[#allocation3 + $0x48] sm:$0xff] %vm1205_vm4, %v1116_v22  ;;  %v5677_v22 = vld [vmem:[%s6314_s20 + $0x90] sm:$0xff] }
 0x1cc   : > { %1226 = vst.msk [vmem:[#allocation3 + $0xa0] sm:$0xff] %vm1205_vm4, %v1138_v26 }
 0x1cf   : > { %1352 = vrot.lane.b32.xlu1 %v10135_v24, %s6196_s25  ;;  %1350 = vrot.lane.b32.xlu0 %v10136_v34, %s6196_s25  ;;  %v5679_v34 = vld [vmem:[%s6314_s20 + $0xa8] sm:$0xff] }
 0x1d0   : > { %1354 = vrot.lane.b32.xlu2 %v7152_v41, %s6196_s25 }
 0x1d1   : > { %v1124_v47 = vpop.permute.xlu1 %1123  ;;  %v1122_v48 = vpop.permute.xlu0 %1121 }
 0x1d2   : > { %1219 = vst.msk [vmem:[#allocation3 + $0x68] sm:$0xff] %vm1205_vm4, %v1124_v47  ;;  %v1144_v46 = vpop.permute.xlu2 %1143  ;;  %v5678_v47 = vld [vmem:[%s6314_s20 + $0x98] sm:$0xff] }
 0x1d3   : > { %1218 = vst.msk [vmem:[#allocation3 + $0x60] sm:$0xff] %vm1205_vm4, %v1122_v48 }
 0x1d4   : > { %1229 = vst.msk [vmem:[#allocation3 + $0xb8] sm:$0xff] %vm1205_vm4, %v1144_v46  ;;  %v5680_v46 = vld [vmem:[%s6314_s20 + $0xb0] sm:$0xff] }
 0x1d7   : > { %1358 = vrot.lane.b32.xlu1 %v10137_v55, %s6196_s25  ;;  %1356 = vrot.lane.b32.xlu0 %v10138_v53, %s6196_s25 }
 0x1d8   : > { %1360 = vrot.lane.b32.xlu2 %v7164_v63, %s6196_s25 }
 0x1d9   : > { %v1130_v0 = vpop.permute.xlu1 %1129  ;;  %v1128_v62 = vpop.permute.xlu0 %1127 }
 0x1da   : > { %1222 = vst.msk [vmem:[#allocation3 + $0x80] sm:$0xff] %vm1205_vm4, %v1130_v0  ;;  %v1150_v42 = vpop.permute.xlu2 %1149  ;;  %v5682_v0 = vld [vmem:[%s6314_s20 + $0xc8] sm:$0xff] }
 0x1db   : > { %1221 = vst.msk [vmem:[#allocation3 + $0x78] sm:$0xff] %vm1205_vm4, %v1128_v62  ;;  %v5681_v62 = vld [vmem:[%s6314_s20 + $0xc0] sm:$0xff] }
 0x1dc   : > { %1232 = vst.msk [vmem:[#allocation3 + $0xd0] sm:$0xff] %vm1205_vm4, %v1150_v42 }
 0x1df   : > { %1364 = vrot.lane.b32.xlu1 %v10139_v36, %s6196_s25  ;;  %1362 = vrot.lane.b32.xlu0 %v10140_v2, %s6196_s25  ;;  %v5683_v36 = vld [vmem:[%s6314_s20 + $0xd8] sm:$0xff] }
 0x1e0   : > { %1366 = vrot.lane.b32.xlu2 %v10141_v58, %s6196_s25  ;;  %v5684_v58 = vld [vmem:[%s6314_s20 + $0xe0] sm:$0xff] }
 0x1e1   : > { %v1136_v60 = vpop.permute.xlu1 %1135  ;;  %v1134_v25 = vpop.permute.xlu0 %1133 }
 0x1e2   : > { %1225 = vst.msk [vmem:[#allocation3 + $0x98] sm:$0xff] %vm1205_vm4, %v1136_v60  ;;  %v1156_v59 = vpop.permute.xlu2 %1155 }
 0x1e3   : > { %1224 = vst.msk [vmem:[#allocation3 + $0x90] sm:$0xff] %vm1205_vm4, %v1134_v25  ;;  %v5685_v25 = vld [vmem:[%s6314_s20 + $0xf0] sm:$0xff] }
 0x1e4   : > { %1235 = vst.msk [vmem:[#allocation3 + $0xe8] sm:$0xff] %vm1205_vm4, %v1156_v59 }
 0x1e7   : > { %1370 = vrot.lane.b32.xlu1 %v10142_v35, %s6196_s25  ;;  %1368 = vrot.lane.b32.xlu0 %v10143_v44, %s6196_s25  ;;  %v5686_v35 = vld [vmem:[%s6314_s20 + $0xf8] sm:$0xff] }
 0x1e8   : > { %1372 = vrot.lane.b32.xlu2 %v10144_v38, %s6196_s25  ;;  %v5687_v38 = vld [vmem:[%s6314_s20 + $0x108] sm:$0xff] }
 0x1e9   : > { %v1142_v49 = vpop.permute.xlu1 %1141  ;;  %v1140_v52 = vpop.permute.xlu0 %1139 }
 0x1ea   : > { %1228 = vst.msk [vmem:[#allocation3 + $0xb0] sm:$0xff] %vm1205_vm4, %v1142_v49  ;;  %v1162_v43 = vpop.permute.xlu2 %1161 }
 0x1eb   : > { %1227 = vst.msk [vmem:[#allocation3 + $0xa8] sm:$0xff] %vm1205_vm4, %v1140_v52  ;;  %v5688_v52 = vld [vmem:[%s6314_s20 + $0x110] sm:$0xff] }
 0x1ec   : > { %1238 = vst.msk [vmem:[#allocation3 + $0x100] sm:$0xff] %vm1205_vm4, %v1162_v43 }
 0x1ef   : > { %1376 = vrot.lane.b32.xlu1 %v6818_v29, %s6196_s25  ;;  %1374 = vrot.lane.b32.xlu0 %v10145_v28, %s6196_s25  ;;  %v5668_v29 = vld [vmem:[%s6314_s20 + $0x1ba] sm:$0xff] }
 0x1f0   : > { %1378 = vrot.lane.b32.xlu2 %v10146_v27, %s6196_s25  ;;  %v5689_v28 = vld [vmem:[%s6314_s20 + $0x120] sm:$0xff]  ;;  %v5691_v27 = vld [vmem:[%s6314_s20 + $0x138] sm:$0xff] }
 0x1f1   : > { %v1148_v33 = vpop.permute.xlu1 %1147  ;;  %v1146_v37 = vpop.permute.xlu0 %1145 }
 0x1f2   : > { %1231 = vst.msk [vmem:[#allocation3 + $0xc8] sm:$0xff] %vm1205_vm4, %v1148_v33  ;;  %v1168_v31 = vpop.permute.xlu2 %1167 }
 0x1f3   : > { %1230 = vst.msk [vmem:[#allocation3 + $0xc0] sm:$0xff] %vm1205_vm4, %v1146_v37 }
 0x1f4   : > { %1241 = vst.msk [vmem:[#allocation3 + $0x118] sm:$0xff] %vm1205_vm4, %v1168_v31 }
 0x1f7   : > { %1382 = vrot.lane.b32.xlu1 %v5667_v5, %s6196_s25  ;;  %1380 = vrot.lane.b32.xlu0 %v6828_v45, %s6196_s25  ;;  %v5671_v45 = vld [vmem:[%s6314_s20 + $0x48] sm:$0xff] }
 0x1f8   : > { %1384 = vrot.lane.b32.xlu2 %v5668_v29, %s6196_s25  ;;  %v5690_v5 = vld [vmem:[%s6314_s20 + $0x128] sm:$0xff]  ;;  %v5692_v29 = vld [vmem:[%s6314_s20 + $0x140] sm:$0xff]  ;;  %s6204_s25 = smov 60  }
 0x1f9   : > { %v1154_v1 = vpop.permute.xlu1 %1153  ;;  %v1152_v3 = vpop.permute.xlu0 %1151 }
 0x1fa   : > { %1234 = vst.msk [vmem:[#allocation3 + $0xe0] sm:$0xff] %vm1205_vm4, %v1154_v1  ;;  %v1319_v7 = vpop.permute.xlu2 %1318 }
 0x1fb   : > { %1233 = vst.msk [vmem:[#allocation3 + $0xd8] sm:$0xff] %vm1205_vm4, %v1152_v3 }
 0x1fc   : > { %1425 = vst.msk [vmem:[#allocation3 + $0x10] sm:$0xff] %vm1422_vm5, %v1319_v7 }
 0x1ff   : > { %1536 = vrot.lane.b32.xlu1 %v5670_v8, %s6197_s6  ;;  %1534 = vrot.lane.b32.xlu0 %v5669_v6, %s6197_s6  ;;  %v5694_v8 = vld [vmem:[%s6314_s20 + $0x158] sm:$0xff]  ;;  %v5693_v6 = vld [vmem:[%s6314_s20 + $0x150] sm:$0xff] }
 0x200   : > { %1538 = vrot.lane.b32.xlu2 %v5671_v45, %s6197_s6  ;;  %v5695_v45 = vld [vmem:[%s6314_s20 + $0x168] sm:$0xff] }
 0x201   : > { %v1160_v9 = vpop.permute.xlu1 %1159  ;;  %v1158_v10 = vpop.permute.xlu0 %1157 }
 0x202   : > { %1237 = vst.msk [vmem:[#allocation3 + $0xf8] sm:$0xff] %vm1205_vm4, %v1160_v9  ;;  %v1325_v13 = vpop.permute.xlu2 %1324 }
 0x203   : > { %1236 = vst.msk [vmem:[#allocation3 + $0xf0] sm:$0xff] %vm1205_vm4, %v1158_v10 }
 0x204   : > { %1428 = vst.msk [vmem:[#allocation3 + $0x28] sm:$0xff] %vm1422_vm5, %v1325_v13 }
 0x207   : > { %1542 = vrot.lane.b32.xlu1 %v5673_v14, %s6197_s6  ;;  %1540 = vrot.lane.b32.xlu0 %v5672_v12, %s6197_s6  ;;  %v5697_v14 = vld [vmem:[%s6314_s20 + $0x180] sm:$0xff]  ;;  %v5696_v12 = vld [vmem:[%s6314_s20 + $0x170] sm:$0xff] }
 0x208   : > { %1544 = vrot.lane.b32.xlu2 %v5674_v15, %s6197_s6  ;;  %v5698_v15 = vld [vmem:[%s6314_s20 + $0x188] sm:$0xff] }
 0x209   : > { %v1166_v16 = vpop.permute.xlu1 %1165  ;;  %v1164_v18 = vpop.permute.xlu0 %1163 }
 0x20a   : > { %1240 = vst.msk [vmem:[#allocation3 + $0x110] sm:$0xff] %vm1205_vm4, %v1166_v16  ;;  %v1331_v32 = vpop.permute.xlu2 %1330 }
 0x20b   : > { %1239 = vst.msk [vmem:[#allocation3 + $0x108] sm:$0xff] %vm1205_vm4, %v1164_v18  ;;  %vm4058_vm4 = vcmask 786080  }
 0x20c   : > { %1431 = vst.msk [vmem:[#allocation3 + $0x40] sm:$0xff] %vm1422_vm5, %v1331_v32 }
 0x20f   : > { %1548 = vrot.lane.b32.xlu1 %v5676_v20, %s6197_s6  ;;  %1546 = vrot.lane.b32.xlu0 %v5675_v19, %s6197_s6  ;;  %v5700_v20 = vld [vmem:[%s6314_s20 + $0x1a0] sm:$0xff]  ;;  %v5699_v19 = vld [vmem:[%s6314_s20 + $0x198] sm:$0xff] }
 0x210   : > { %1550 = vrot.lane.b32.xlu2 %v5677_v22, %s6197_s6 }
 0x211   : > { %v1317_v26 = vpop.permute.xlu1 %1316  ;;  %v1315_v24 = vpop.permute.xlu0 %1314 }
 0x212   : > { %1424 = vst.msk [vmem:[#allocation3 + $0x8] sm:$0xff] %vm1422_vm5, %v1317_v26  ;;  %v1337_v48 = vpop.permute.xlu2 %1336 }
 0x213   : > { %1423 = vst.msk [vmem:[#allocation3] sm:$0xff] %vm1422_vm5, %v1315_v24  ;;  %v5703_v24 = vld [vmem:[%s6314_s20 + $0x1c8] sm:$0xff] }
 0x214   : > { %1434 = vst.msk [vmem:[#allocation3 + $0x58] sm:$0xff] %vm1422_vm5, %v1337_v48 }
 0x217   : > { %1554 = vrot.lane.b32.xlu1 %v5679_v34, %s6197_s6  ;;  %1552 = vrot.lane.b32.xlu0 %v5678_v47, %s6197_s6  ;;  %v5704_v47 = vld [vmem:[%s6314_s20 + $0x1d0] sm:$0xff] }
 0x218   : > { %1556 = vrot.lane.b32.xlu2 %v5680_v46, %s6197_s6 }
 0x219   : > { %v1323_v55 = vpop.permute.xlu1 %1322  ;;  %v1321_v53 = vpop.permute.xlu0 %1320 }
 0x21a   : > { %1427 = vst.msk [vmem:[#allocation3 + $0x20] sm:$0xff] %vm1422_vm5, %v1323_v55  ;;  %v1343_v42 = vpop.permute.xlu2 %1342  ;;  %v5705_v55 = vld [vmem:[%s6314_s20 + $0x31] sm:$0xff] }
 0x21b   : > { %1426 = vst.msk [vmem:[#allocation3 + $0x18] sm:$0xff] %vm1422_vm5, %v1321_v53 }
 0x21c   : > { %1437 = vst.msk [vmem:[#allocation3 + $0x70] sm:$0xff] %vm1422_vm5, %v1343_v42  ;;  %v5709_v42 = vld [vmem:[%s6314_s20 + $0x61] sm:$0xff] }
 0x21f   : > { %1560 = vrot.lane.b32.xlu1 %v5682_v0, %s6197_s6  ;;  %1558 = vrot.lane.b32.xlu0 %v5681_v62, %s6197_s6 }
 0x220   : > { %1562 = vrot.lane.b32.xlu2 %v5683_v36, %s6197_s6  ;;  %v5708_v36 = vld [vmem:[%s6314_s20 + $0x51] sm:$0xff] }
 0x221   : > { %v1329_v2 = vpop.permute.xlu1 %1328  ;;  %v1327_v60 = vpop.permute.xlu0 %1326 }
 0x222   : > { %1430 = vst.msk [vmem:[#allocation3 + $0x38] sm:$0xff] %vm1422_vm5, %v1329_v2  ;;  %v1349_v59 = vpop.permute.xlu2 %1348 }
 0x223   : > { %1429 = vst.msk [vmem:[#allocation3 + $0x30] sm:$0xff] %vm1422_vm5, %v1327_v60  ;;  %v5710_v60 = vld [vmem:[%s6314_s20 + $0x69] sm:$0xff] }
 0x224   : > { %1440 = vst.msk [vmem:[#allocation3 + $0x88] sm:$0xff] %vm1422_vm5, %v1349_v59  ;;  %v5712_v59 = vld [vmem:[%s6314_s20 + $0x81] sm:$0xff] }
 0x227   : > { %1566 = vrot.lane.b32.xlu1 %v5685_v25, %s6197_s6  ;;  %1564 = vrot.lane.b32.xlu0 %v5684_v58, %s6197_s6 }
 0x228   : > { %1568 = vrot.lane.b32.xlu2 %v5686_v35, %s6197_s6  ;;  %v5711_v35 = vld [vmem:[%s6314_s20 + $0x79] sm:$0xff] }
 0x229   : > { %v1335_v44 = vpop.permute.xlu1 %1334  ;;  %v1333_v49 = vpop.permute.xlu0 %1332 }
 0x22a   : > { %1433 = vst.msk [vmem:[#allocation3 + $0x50] sm:$0xff] %vm1422_vm5, %v1335_v44  ;;  %v1355_v43 = vpop.permute.xlu2 %1354 }
 0x22b   : > { %1432 = vst.msk [vmem:[#allocation3 + $0x48] sm:$0xff] %vm1422_vm5, %v1333_v49  ;;  %v5713_v49 = vld [vmem:[%s6314_s20 + $0x91] sm:$0xff] }
 0x22c   : > { %1443 = vst.msk [vmem:[#allocation3 + $0xa0] sm:$0xff] %vm1422_vm5, %v1355_v43  ;;  %v5715_v43 = vld [vmem:[%s6314_s20 + $0xa9] sm:$0xff] }
 0x22f   : > { %1572 = vrot.lane.b32.xlu1 %v5688_v52, %s6197_s6  ;;  %1570 = vrot.lane.b32.xlu0 %v5687_v38, %s6197_s6 }
 0x230   : > { %1574 = vrot.lane.b32.xlu2 %v5689_v28, %s6197_s6  ;;  %v5714_v28 = vld [vmem:[%s6314_s20 + $0x99] sm:$0xff] }
 0x231   : > { %v1341_v33 = vpop.permute.xlu1 %1340  ;;  %v1339_v37 = vpop.permute.xlu0 %1338 }
 0x232   : > { %1436 = vst.msk [vmem:[#allocation3 + $0x68] sm:$0xff] %vm1422_vm5, %v1341_v33  ;;  %v1361_v31 = vpop.permute.xlu2 %1360 }
 0x233   : > { %1435 = vst.msk [vmem:[#allocation3 + $0x60] sm:$0xff] %vm1422_vm5, %v1339_v37  ;;  %v5716_v37 = vld [vmem:[%s6314_s20 + $0xb1] sm:$0xff] }
 0x234   : > { %1446 = vst.msk [vmem:[#allocation3 + $0xb8] sm:$0xff] %vm1422_vm5, %v1361_v31  ;;  %v5718_v31 = vld [vmem:[%s6314_s20 + $0xc9] sm:$0xff] }
 0x237   : > { %1578 = vrot.lane.b32.xlu1 %v5691_v27, %s6197_s6  ;;  %1576 = vrot.lane.b32.xlu0 %v5690_v5, %s6197_s6 }
 0x238   : > { %1580 = vrot.lane.b32.xlu2 %v5692_v29, %s6197_s6  ;;  %v5717_v29 = vld [vmem:[%s6314_s20 + $0xc1] sm:$0xff] }
 0x239   : > { %v1347_v1 = vpop.permute.xlu1 %1346  ;;  %v1345_v3 = vpop.permute.xlu0 %1344 }
 0x23a   : > { %1439 = vst.msk [vmem:[#allocation3 + $0x80] sm:$0xff] %vm1422_vm5, %v1347_v1  ;;  %v1367_v7 = vpop.permute.xlu2 %1366 }
 0x23b   : > { %1438 = vst.msk [vmem:[#allocation3 + $0x78] sm:$0xff] %vm1422_vm5, %v1345_v3  ;;  %v5719_v3 = vld [vmem:[%s6314_s20 + $0xd9] sm:$0xff] }
 0x23c   : > { %1449 = vst.msk [vmem:[#allocation3 + $0xd0] sm:$0xff] %vm1422_vm5, %v1367_v7  ;;  %v5721_v7 = vld [vmem:[%s6314_s20 + $0xf1] sm:$0xff] }
 0x23f   : > { %1584 = vrot.lane.b32.xlu1 %v5694_v8, %s6197_s6  ;;  %1582 = vrot.lane.b32.xlu0 %v5693_v6, %s6197_s6 }
 0x240   : > { %1586 = vrot.lane.b32.xlu2 %v5695_v45, %s6197_s6  ;;  %v5720_v45 = vld [vmem:[%s6314_s20 + $0xe1] sm:$0xff] }
 0x241   : > { %v1353_v9 = vpop.permute.xlu1 %1352  ;;  %v1351_v10 = vpop.permute.xlu0 %1350 }
 0x242   : > { %1442 = vst.msk [vmem:[#allocation3 + $0x98] sm:$0xff] %vm1422_vm5, %v1353_v9  ;;  %v1373_v13 = vpop.permute.xlu2 %1372 }
 0x243   : > { %1441 = vst.msk [vmem:[#allocation3 + $0x90] sm:$0xff] %vm1422_vm5, %v1351_v10  ;;  %v5722_v10 = vld [vmem:[%s6314_s20 + $0xf9] sm:$0xff] }
 0x244   : > { %1452 = vst.msk [vmem:[#allocation3 + $0xe8] sm:$0xff] %vm1422_vm5, %v1373_v13  ;;  %v5724_v13 = vld [vmem:[%s6314_s20 + $0x111] sm:$0xff] }
 0x247   : > { %1590 = vrot.lane.b32.xlu1 %v5697_v14, %s6197_s6  ;;  %1588 = vrot.lane.b32.xlu0 %v5696_v12, %s6197_s6 }
 0x248   : > { %1592 = vrot.lane.b32.xlu2 %v5698_v15, %s6197_s6  ;;  %v5723_v15 = vld [vmem:[%s6314_s20 + $0x109] sm:$0xff] }
 0x249   : > { %v1359_v16 = vpop.permute.xlu1 %1358  ;;  %v1357_v18 = vpop.permute.xlu0 %1356 }
 0x24a   : > { %1445 = vst.msk [vmem:[#allocation3 + $0xb0] sm:$0xff] %vm1422_vm5, %v1359_v16  ;;  %v1379_v32 = vpop.permute.xlu2 %1378 }
 0x24b   : > { %1444 = vst.msk [vmem:[#allocation3 + $0xa8] sm:$0xff] %vm1422_vm5, %v1357_v18  ;;  %v5725_v18 = vld [vmem:[%s6314_s20 + $0x121] sm:$0xff] }
 0x24c   : > { %1455 = vst.msk [vmem:[#allocation3 + $0x100] sm:$0xff] %vm1422_vm5, %v1379_v32  ;;  %v5727_v32 = vld [vmem:[%s6314_s20 + $0x139] sm:$0xff] }
 0x24f   : > { %1596 = vrot.lane.b32.xlu1 %v5700_v20, %s6197_s6  ;;  %1594 = vrot.lane.b32.xlu0 %v5699_v19, %s6197_s6 }
 0x250   : > { %1598 = vrot.lane.b32.xlu2 %v6934_v50, %s6197_s6  ;;  %v5706_v50 = vld [vmem:[%s6314_s20 + $0x39] sm:$0xff] }
 0x251   : > { %v1365_v22 = vpop.permute.xlu1 %1364  ;;  %v1363_v26 = vpop.permute.xlu0 %1362 }
 0x252   : > { %1448 = vst.msk [vmem:[#allocation3 + $0xc8] sm:$0xff] %vm1422_vm5, %v1365_v22  ;;  %v1385_v34 = vpop.permute.xlu2 %1384 }
 0x253   : > { %1447 = vst.msk [vmem:[#allocation3 + $0xc0] sm:$0xff] %vm1422_vm5, %v1363_v26  ;;  %v5728_v26 = vld [vmem:[%s6314_s20 + $0x141] sm:$0xff] }
 0x254   : > { %1458 = vst.msk [vmem:[#allocation3 + $0x118] sm:$0xff] %vm1422_vm5, %v1385_v34 }
 0x257   : > { %1602 = vrot.lane.b32.xlu1 %v5703_v24, %s6197_s6  ;;  %1600 = vrot.lane.b32.xlu0 %v6942_v30, %s6197_s6  ;;  %v5707_v30 = vld [vmem:[%s6314_s20 + $0x49] sm:$0xff] }
 0x258   : > { %1604 = vrot.lane.b32.xlu2 %v5704_v47, %s6197_s6  ;;  %v5730_v47 = vld [vmem:[%s6314_s20 + $0x159] sm:$0xff]  ;;  %s6205_s6 = smov 72  }
 0x259   : > { %v1371_v48 = vpop.permute.xlu1 %1370  ;;  %v1369_v46 = vpop.permute.xlu0 %1368 }
 0x25a   : > { %1451 = vst.msk [vmem:[#allocation3 + $0xe0] sm:$0xff] %vm1422_vm5, %v1371_v48  ;;  %v1539_v53 = vpop.permute.xlu2 %1538 }
 0x25b   : > { %1450 = vst.msk [vmem:[#allocation3 + $0xd8] sm:$0xff] %vm1422_vm5, %v1369_v46 }
 0x25c   : > { %1645 = vst.msk [vmem:[#allocation3 + $0x10] sm:$0xff] %vm1642_vm6, %v1539_v53 }
 0x25f   : > { %1753 = vrot.lane.b32.xlu1 %v5706_v50, %s6198_s9  ;;  %1751 = vrot.lane.b32.xlu0 %v5705_v55, %s6198_s9  ;;  %v5733_v55 = vld [vmem:[%s6314_s20 + $0x181] sm:$0xff] }
 0x260   : > { %1755 = vrot.lane.b32.xlu2 %v5707_v30, %s6198_s9 }
 0x261   : > { %v1377_v0 = vpop.permute.xlu1 %1376  ;;  %v1375_v62 = vpop.permute.xlu0 %1374 }
 0x262   : > { %1454 = vst.msk [vmem:[#allocation3 + $0xf8] sm:$0xff] %vm1422_vm5, %v1377_v0  ;;  %v1545_v2 = vpop.permute.xlu2 %1544 }
 0x263   : > { %1453 = vst.msk [vmem:[#allocation3 + $0xf0] sm:$0xff] %vm1422_vm5, %v1375_v62  ;;  %v5736_v62 = vld [vmem:[%s6314_s20 + $0x1a1] sm:$0xff] }
 0x264   : > { %1648 = vst.msk [vmem:[#allocation3 + $0x28] sm:$0xff] %vm1642_vm6, %v1545_v2  ;;  %v5739_v2 = vld [vmem:[%s6314_s20 + $0x1c9] sm:$0xff] }
 0x267   : > { %1759 = vrot.lane.b32.xlu1 %v5709_v42, %s6198_s9  ;;  %1757 = vrot.lane.b32.xlu0 %v5708_v36, %s6198_s9 }
 0x268   : > { %1761 = vrot.lane.b32.xlu2 %v5710_v60, %s6198_s9 }
 0x269   : > { %v1383_v25 = vpop.permute.xlu1 %1382  ;;  %v1381_v58 = vpop.permute.xlu0 %1380 }
 0x26a   : > { %1457 = vst.msk [vmem:[#allocation3 + $0x110] sm:$0xff] %vm1422_vm5, %v1383_v25  ;;  %v1551_v44 = vpop.permute.xlu2 %1550 }
 0x26b   : > { %1456 = vst.msk [vmem:[#allocation3 + $0x108] sm:$0xff] %vm1422_vm5, %v1381_v58  ;;  %vm4251_vm5 = vcmask 884480  }
 0x26c   : > { %1651 = vst.msk [vmem:[#allocation3 + $0x40] sm:$0xff] %vm1642_vm6, %v1551_v44 }
 0x26f   : > { %1765 = vrot.lane.b32.xlu1 %v5712_v59, %s6198_s9  ;;  %1763 = vrot.lane.b32.xlu0 %v5711_v35, %s6198_s9 }
 0x270   : > { %1767 = vrot.lane.b32.xlu2 %v5713_v49, %s6198_s9  ;;  %v5745_v49 = vld [vmem:[%s6314_s20 + $0x62] sm:$0xff] }
 0x271   : > { %v1537_v52 = vpop.permute.xlu1 %1536  ;;  %v1535_v38 = vpop.permute.xlu0 %1534 }
 0x272   : > { %1644 = vst.msk [vmem:[#allocation3 + $0x8] sm:$0xff] %vm1642_vm6, %v1537_v52  ;;  %v1557_v33 = vpop.permute.xlu2 %1556 }
 0x273   : > { %1643 = vst.msk [vmem:[#allocation3] sm:$0xff] %vm1642_vm6, %v1535_v38 }
 0x274   : > { %1654 = vst.msk [vmem:[#allocation3 + $0x58] sm:$0xff] %vm1642_vm6, %v1557_v33 }
 0x277   : > { %1771 = vrot.lane.b32.xlu1 %v5715_v43, %s6198_s9  ;;  %1769 = vrot.lane.b32.xlu0 %v5714_v28, %s6198_s9  ;;  %v5748_v28 = vld [vmem:[%s6314_s20 + $0x82] sm:$0xff] }
 0x278   : > { %1773 = vrot.lane.b32.xlu2 %v5716_v37, %s6198_s9 }
 0x279   : > { %v1543_v27 = vpop.permute.xlu1 %1542  ;;  %v1541_v5 = vpop.permute.xlu0 %1540 }
 0x27a   : > { %1647 = vst.msk [vmem:[#allocation3 + $0x20] sm:$0xff] %vm1642_vm6, %v1543_v27  ;;  %v1563_v1 = vpop.permute.xlu2 %1562 }
 0x27b   : > { %1646 = vst.msk [vmem:[#allocation3 + $0x18] sm:$0xff] %vm1642_vm6, %v1541_v5  ;;  %v5751_v5 = vld [vmem:[%s6314_s20 + $0xaa] sm:$0xff] }
 0x27c   : > { %1657 = vst.msk [vmem:[#allocation3 + $0x70] sm:$0xff] %vm1642_vm6, %v1563_v1 }
 0x27f   : > { %1777 = vrot.lane.b32.xlu1 %v5718_v31, %s6198_s9  ;;  %1775 = vrot.lane.b32.xlu0 %v5717_v29, %s6198_s9 }
 0x280   : > { %1779 = vrot.lane.b32.xlu2 %v5719_v3, %s6198_s9  ;;  %v5754_v3 = vld [vmem:[%s6314_s20 + $0xca] sm:$0xff] }
 0x281   : > { %v1549_v8 = vpop.permute.xlu1 %1548  ;;  %v1547_v6 = vpop.permute.xlu0 %1546 }
 0x282   : > { %1650 = vst.msk [vmem:[#allocation3 + $0x38] sm:$0xff] %vm1642_vm6, %v1549_v8  ;;  %v1569_v9 = vpop.permute.xlu2 %1568 }
 0x283   : > { %1649 = vst.msk [vmem:[#allocation3 + $0x30] sm:$0xff] %vm1642_vm6, %v1547_v6 }
 0x284   : > { %1660 = vst.msk [vmem:[#allocation3 + $0x88] sm:$0xff] %vm1642_vm6, %v1569_v9 }
 0x287   : > { %1783 = vrot.lane.b32.xlu1 %v5721_v7, %s6198_s9  ;;  %1781 = vrot.lane.b32.xlu0 %v5720_v45, %s6198_s9  ;;  %v5757_v45 = vld [vmem:[%s6314_s20 + $0xf2] sm:$0xff] }
 0x288   : > { %1785 = vrot.lane.b32.xlu2 %v5722_v10, %s6198_s9 }
 0x289   : > { %v1555_v14 = vpop.permute.xlu1 %1554  ;;  %v1553_v12 = vpop.permute.xlu0 %1552 }
 0x28a   : > { %1653 = vst.msk [vmem:[#allocation3 + $0x50] sm:$0xff] %vm1642_vm6, %v1555_v14  ;;  %v1575_v16 = vpop.permute.xlu2 %1574 }
 0x28b   : > { %1652 = vst.msk [vmem:[#allocation3 + $0x48] sm:$0xff] %vm1642_vm6, %v1553_v12  ;;  %v5760_v12 = vld [vmem:[%s6314_s20 + $0x112] sm:$0xff] }
 0x28c   : > { %1663 = vst.msk [vmem:[#allocation3 + $0xa0] sm:$0xff] %vm1642_vm6, %v1575_v16  ;;  %v5761_v16 = vld [vmem:[%s6314_s20 + $0x122] sm:$0xff] }
 0x28f   : > { %1789 = vrot.lane.b32.xlu1 %v5724_v13, %s6198_s9  ;;  %1787 = vrot.lane.b32.xlu0 %v5723_v15, %s6198_s9 }
 0x290   : > { %1791 = vrot.lane.b32.xlu2 %v5725_v18, %s6198_s9  ;;  %v5763_v18 = vld [vmem:[%s6314_s20 + $0x13a] sm:$0xff] }
 0x291   : > { %v1561_v20 = vpop.permute.xlu1 %1560  ;;  %v1559_v19 = vpop.permute.xlu0 %1558 }
 0x292   : > { %1656 = vst.msk [vmem:[#allocation3 + $0x68] sm:$0xff] %vm1642_vm6, %v1561_v20  ;;  %v1581_v22 = vpop.permute.xlu2 %1580 }
 0x293   : > { %1655 = vst.msk [vmem:[#allocation3 + $0x60] sm:$0xff] %vm1642_vm6, %v1559_v19 }
 0x294   : > { %1666 = vst.msk [vmem:[#allocation3 + $0xb8] sm:$0xff] %vm1642_vm6, %v1581_v22  ;;  %v5766_v22 = vld [vmem:[%s6314_s20 + $0x15a] sm:$0xff] }
 0x297   : > { %1795 = vrot.lane.b32.xlu1 %v5727_v32, %s6198_s9  ;;  %1793 = vrot.lane.b32.xlu0 %v7017_v21, %s6198_s9  ;;  %v5731_v21 = vld [vmem:[%s6314_s20 + $0x169] sm:$0xff] }
 0x298   : > { %1797 = vrot.lane.b32.xlu2 %v5728_v26, %s6198_s9 }
 0x299   : > { %v1567_v24 = vpop.permute.xlu1 %1566  ;;  %v1565_v34 = vpop.permute.xlu0 %1564 }
 0x29a   : > { %1659 = vst.msk [vmem:[#allocation3 + $0x80] sm:$0xff] %vm1642_vm6, %v1567_v24  ;;  %v1587_v48 = vpop.permute.xlu2 %1586 }
 0x29b   : > { %1658 = vst.msk [vmem:[#allocation3 + $0x78] sm:$0xff] %vm1642_vm6, %v1565_v34  ;;  %v5765_v34 = vld [vmem:[%s6314_s20 + $0x152] sm:$0xff] }
 0x29c   : > { %1669 = vst.msk [vmem:[#allocation3 + $0xd0] sm:$0xff] %vm1642_vm6, %v1587_v48 }
 0x29f   : > { %1801 = vrot.lane.b32.xlu1 %v5730_v47, %s6198_s9  ;;  %1799 = vrot.lane.b32.xlu0 %v7029_v39, %s6198_s9  ;;  %v5734_v39 = vld [vmem:[%s6314_s20 + $0x189] sm:$0xff] }
 0x2a0   : > { %1803 = vrot.lane.b32.xlu2 %v5731_v21, %s6198_s9 }
 0x2a1   : > { %v1573_v46 = vpop.permute.xlu1 %1572  ;;  %v1571_v50 = vpop.permute.xlu0 %1570 }
 0x2a2   : > { %1662 = vst.msk [vmem:[#allocation3 + $0x98] sm:$0xff] %vm1642_vm6, %v1573_v46  ;;  %v1593_v53 = vpop.permute.xlu2 %1592 }
 0x2a3   : > { %1661 = vst.msk [vmem:[#allocation3 + $0x90] sm:$0xff] %vm1642_vm6, %v1571_v50 }
 0x2a4   : > { %1672 = vst.msk [vmem:[#allocation3 + $0xe8] sm:$0xff] %vm1642_vm6, %v1593_v53  ;;  %v5768_v53 = vld [vmem:[%s6314_s20 + $0x172] sm:$0xff] }
 0x2a7   : > { %1807 = vrot.lane.b32.xlu1 %v5733_v55, %s6198_s9  ;;  %1805 = vrot.lane.b32.xlu0 %v7041_v54, %s6198_s9 }
 0x2a8   : > { %1809 = vrot.lane.b32.xlu2 %v5734_v39, %s6198_s9  ;;  %v5783_v39 = vld [vmem:[%s10021_s1 + $0x8] sm:$0xf] }
 0x2a9   : > { %v1579_v30 = vpop.permute.xlu1 %1578  ;;  %v1577_v0 = vpop.permute.xlu0 %1576 }
 0x2aa   : > { %1665 = vst.msk [vmem:[#allocation3 + $0xb0] sm:$0xff] %vm1642_vm6, %v1579_v30  ;;  %v1599_v42 = vpop.permute.xlu2 %1598  ;;  %v5885_v30 = vld [vmem:[%s10021_s1 + $0x8] sm:$0x30] }
 0x2ab   : > { %1664 = vst.msk [vmem:[#allocation3 + $0xa8] sm:$0xff] %vm1642_vm6, %v1577_v0  ;;  %v5784_v0 = vor.u32 %v5885_v30, %v5783_v39 }
 0x2ac   : > { %1675 = vst.msk [vmem:[#allocation3 + $0x100] sm:$0xff] %vm1642_vm6, %v1599_v42 }
 0x2af   : > { %1813 = vrot.lane.b32.xlu1 %v5736_v62, %s6198_s9  ;;  %1811 = vrot.lane.b32.xlu0 %v7053_v40, %s6198_s9  ;;  %v5740_v40 = vld [vmem:[%s6314_s20 + $0x1d1] sm:$0xff]  ;;  %v6200_v62 = vmov 65535  }
 0x2b0   : > { %1815 = vrot.lane.b32.xlu2 %v7060_v61, %s6198_s9  ;;  %v5742_v61 = vld [vmem:[%s6314_s20 + $0x3a] sm:$0xff]  ;;  %v2243_v42 = vsel %vm2241_vm8, 4294967295, %v6200_v62 }
 0x2b1   : > { %v1585_v54 = vpop.permute.xlu1 %1584  ;;  %v1583_v36 = vpop.permute.xlu0 %1582 }
 0x2b2   : > { %1668 = vst.msk [vmem:[#allocation3 + $0xc8] sm:$0xff] %vm1642_vm6, %v1585_v54  ;;  %v1605_v60 = vpop.permute.xlu2 %1604 }
 0x2b3   : > { %1667 = vst.msk [vmem:[#allocation3 + $0xc0] sm:$0xff] %vm1642_vm6, %v1583_v36  ;;  %v2244_v36 = vsel %vm2242_vm9, %v2243_v42, 0 }
 0x2b4   : > { %1678 = vst.msk [vmem:[#allocation3 + $0x118] sm:$0xff] %vm1642_vm6, %v1605_v60  ;;  %v5884_v60 = vld [vmem:[%s10021_s1] sm:$0xff] }
 0x2b7   : > { %1819 = vrot.lane.b32.xlu1 %v5739_v2, %s6198_s9  ;;  %1817 = vrot.lane.b32.xlu0 %v7068_v51, %s6198_s9  ;;  %v5743_v51 = vld [vmem:[%s6314_s20 + $0x4a] sm:$0xff]  ;;  %v2246_v2 = vand.u32 %v5784_v0, %v2244_v36 }
 0x2b8   : > { %1821 = vrot.lane.b32.xlu2 %v5740_v40, %s6198_s9  ;;  %s6206_s9 = smov 84  }
 0x2b9   : > { %v1591_v25 = vpop.permute.xlu1 %1590  ;;  %v1589_v58 = vpop.permute.xlu0 %1588  ;;  %2254 = vmatpush.bf16.msra.mxu0 %v2246_v2  ;;  %5894 = vmatpush.bf16.msra.mxu2 %v2246_v2 }
 0x2ba   : > { %1671 = vst.msk [vmem:[#allocation3 + $0xe0] sm:$0xff] %vm1642_vm6, %v1591_v25  ;;  %v1756_v59 = vpop.permute.xlu2 %1755 }
 0x2bb   : > { %1670 = vst.msk [vmem:[#allocation3 + $0xd8] sm:$0xff] %vm1642_vm6, %v1589_v58 }
 0x2bc   : > { %1862 = vst.msk [vmem:[#allocation3 + $0x10] sm:$0xff] %vm1859_vm7, %v1756_v59 }
 0x2bd   : > { %2255 = vmatpush.bf16.msra.mxu0 %v5884_v60  ;;  %5895 = vmatpush.bf16.msra.mxu2 %v5884_v60 }
 0x2bf   : > { %1970 = vrot.lane.b32.xlu1 %v5742_v61, %s6199_s11  ;;  %1968 = vrot.lane.b32.xlu0 %v7080_v57, %s6199_s11  ;;  %v5746_v57 = vld [vmem:[%s6314_s20 + $0x6a] sm:$0xff]  ;;  %v5769_v61 = vld [vmem:[%s6314_s20 + $0x182] sm:$0xff] }
 0x2c0   : > { %1972 = vrot.lane.b32.xlu2 %v5743_v51, %s6199_s11 }
 0x2c1   : > { %v1597_v35 = vpop.permute.xlu1 %1596  ;;  %v1595_v44 = vpop.permute.xlu0 %1594 }
 0x2c2   : > { %1674 = vst.msk [vmem:[#allocation3 + $0xf8] sm:$0xff] %vm1642_vm6, %v1597_v35  ;;  %v1762_v52 = vpop.permute.xlu2 %1761  ;;  %v5767_v35 = vld [vmem:[%s6314_s20 + $0x16a] sm:$0xff] }
 0x2c3   : > { %1673 = vst.msk [vmem:[#allocation3 + $0xf0] sm:$0xff] %vm1642_vm6, %v1595_v44 }
 0x2c4   : > { %1865 = vst.msk [vmem:[#allocation3 + $0x28] sm:$0xff] %vm1859_vm7, %v1762_v52 }
 0x2c7   : > { %1976 = vrot.lane.b32.xlu1 %v5745_v49, %s6199_s11  ;;  %1974 = vrot.lane.b32.xlu0 %v7092_v56, %s6199_s11  ;;  %v5749_v56 = vld [vmem:[%s6314_s20 + $0x92] sm:$0xff] }
 0x2c8   : > { %1978 = vrot.lane.b32.xlu2 %v5746_v57, %s6199_s11 }
 0x2c9   : > { %v1603_v38 = vpop.permute.xlu1 %1602  ;;  %v1601_v43 = vpop.permute.xlu0 %1600 }
 0x2ca   : > { %1677 = vst.msk [vmem:[#allocation3 + $0x110] sm:$0xff] %vm1642_vm6, %v1603_v38  ;;  %v1768_v33 = vpop.permute.xlu2 %1767  ;;  %v5772_v38 = vld [vmem:[%s6314_s20 + $0x1a2] sm:$0xff] }
 0x2cb   : > { %1676 = vst.msk [vmem:[#allocation3 + $0x108] sm:$0xff] %vm1642_vm6, %v1601_v43  ;;  %v5771_v43 = vld [vmem:[%s6314_s20 + $0x19a] sm:$0xff]  ;;  %vm4391_vm6 = vcmask 883712  }
 0x2cc   : > { %1868 = vst.msk [vmem:[#allocation3 + $0x40] sm:$0xff] %vm1859_vm7, %v1768_v33 }
 0x2cf   : > { %1982 = vrot.lane.b32.xlu1 %v5748_v28, %s6199_s11  ;;  %1980 = vrot.lane.b32.xlu0 %v7104_v4, %s6199_s11  ;;  %v5752_v4 = vld [vmem:[%s6314_s20 + $0xb2] sm:$0xff] }
 0x2d0   : > { %1984 = vrot.lane.b32.xlu2 %v5749_v56, %s6199_s11  ;;  %v5770_v56 = vld [vmem:[%s6314_s20 + $0x18a] sm:$0xff] }
 0x2d1   : > { %v1754_v37 = vpop.permute.xlu1 %1753  ;;  %v1752_v27 = vpop.permute.xlu0 %1751 }
 0x2d2   : > { %1861 = vst.msk [vmem:[#allocation3 + $0x8] sm:$0xff] %vm1859_vm7, %v1754_v37  ;;  %v1774_v31 = vpop.permute.xlu2 %1773 }
 0x2d3   : > { %1860 = vst.msk [vmem:[#allocation3] sm:$0xff] %vm1859_vm7, %v1752_v27 }
 0x2d4   : > { %1871 = vst.msk [vmem:[#allocation3 + $0x58] sm:$0xff] %vm1859_vm7, %v1774_v31 }
 0x2d7   : > { %1988 = vrot.lane.b32.xlu1 %v5751_v5, %s6199_s11  ;;  %1986 = vrot.lane.b32.xlu0 %v7116_v11, %s6199_s11  ;;  %v5755_v11 = vld [vmem:[%s6314_s20 + $0xda] sm:$0xff] }
 0x2d8   : > { %1990 = vrot.lane.b32.xlu2 %v5752_v4, %s6199_s11 }
 0x2d9   : > { %v1760_v29 = vpop.permute.xlu1 %1759  ;;  %v1758_v1 = vpop.permute.xlu0 %1757 }
 0x2da   : > { %1864 = vst.msk [vmem:[#allocation3 + $0x20] sm:$0xff] %vm1859_vm7, %v1760_v29  ;;  %v1780_v8 = vpop.permute.xlu2 %1779 }
 0x2db   : > { %1863 = vst.msk [vmem:[#allocation3 + $0x18] sm:$0xff] %vm1859_vm7, %v1758_v1 }
 0x2dc   : > { %1874 = vst.msk [vmem:[#allocation3 + $0x70] sm:$0xff] %vm1859_vm7, %v1780_v8 }
 0x2df   : > { %1994 = vrot.lane.b32.xlu1 %v5754_v3, %s6199_s11  ;;  %1992 = vrot.lane.b32.xlu0 %v7128_v17, %s6199_s11  ;;  %v5758_v17 = vld [vmem:[%s6314_s20 + $0xfa] sm:$0xff] }
 0x2e0   : > { %1996 = vrot.lane.b32.xlu2 %v5755_v11, %s6199_s11 }
 0x2e1   : > { %v1766_v6 = vpop.permute.xlu1 %1765  ;;  %v1764_v7 = vpop.permute.xlu0 %1763 }
 0x2e2   : > { %1867 = vst.msk [vmem:[#allocation3 + $0x38] sm:$0xff] %vm1859_vm7, %v1766_v6  ;;  %v1786_v9 = vpop.permute.xlu2 %1785 }
 0x2e3   : > { %1866 = vst.msk [vmem:[#allocation3 + $0x30] sm:$0xff] %vm1859_vm7, %v1764_v7 }
 0x2e4   : > { %1877 = vst.msk [vmem:[#allocation3 + $0x88] sm:$0xff] %vm1859_vm7, %v1786_v9 }
 0x2e7   : > { %2000 = vrot.lane.b32.xlu1 %v5757_v45, %s6199_s11  ;;  %1998 = vrot.lane.b32.xlu0 %v7140_v23, %s6199_s11 }
 0x2e8   : > { %2002 = vrot.lane.b32.xlu2 %v5758_v17, %s6199_s11 }
 0x2e9   : > { %v1772_v10 = vpop.permute.xlu1 %1771  ;;  %v1770_v14 = vpop.permute.xlu0 %1769 }
 0x2ea   : > { %1870 = vst.msk [vmem:[#allocation3 + $0x50] sm:$0xff] %vm1859_vm7, %v1772_v10  ;;  %v1792_v13 = vpop.permute.xlu2 %1791 }
 0x2eb   : > { %1869 = vst.msk [vmem:[#allocation3 + $0x48] sm:$0xff] %vm1859_vm7, %v1770_v14 }
 0x2ec   : > { %1880 = vst.msk [vmem:[#allocation3 + $0xa0] sm:$0xff] %vm1859_vm7, %v1792_v13 }
 0x2ef   : > { %2006 = vrot.lane.b32.xlu1 %v5760_v12, %s6199_s11  ;;  %2004 = vrot.lane.b32.xlu0 %v7152_v41, %s6199_s11 }
 0x2f0   : > { %2008 = vrot.lane.b32.xlu2 %v5761_v16, %s6199_s11 }
 0x2f1   : > { %v1778_v23 = vpop.permute.xlu1 %1777  ;;  %v1776_v15 = vpop.permute.xlu0 %1775 }
 0x2f2   : > { %1873 = vst.msk [vmem:[#allocation3 + $0x68] sm:$0xff] %vm1859_vm7, %v1778_v23  ;;  %v1798_v20 = vpop.permute.xlu2 %1797 }
 0x2f3   : > { %1872 = vst.msk [vmem:[#allocation3 + $0x60] sm:$0xff] %vm1859_vm7, %v1776_v15 }
 0x2f4   : > { %1883 = vst.msk [vmem:[#allocation3 + $0xb8] sm:$0xff] %vm1859_vm7, %v1798_v20 }
 0x2f7   : > { %2010 = vrot.lane.b32.xlu0 %v7164_v63, %s6199_s11  ;;  %2012 = vrot.lane.b32.xlu1 %v5763_v18, %s6199_s11  ;;  %v5764_v63 = vld [vmem:[%s6314_s20 + $0x142] sm:$0xff] }
 0x2f8   : > { %2014 = vrot.lane.b32.xlu2 %v5764_v63, %s6199_s11 }
 0x2f9   : > { %v1784_v41 = vpop.permute.xlu1 %1783  ;;  %v1782_v19 = vpop.permute.xlu0 %1781 }
 0x2fa   : > { %1876 = vst.msk [vmem:[#allocation3 + $0x80] sm:$0xff] %vm1859_vm7, %v1784_v41  ;;  %v1804_v32 = vpop.permute.xlu2 %1803 }
 0x2fb   : > { %1875 = vst.msk [vmem:[#allocation3 + $0x78] sm:$0xff] %vm1859_vm7, %v1782_v19 }
 0x2fc   : > { %1886 = vst.msk [vmem:[#allocation3 + $0xd0] sm:$0xff] %vm1859_vm7, %v1804_v32 }
 0x2ff   : > { %2018 = vrot.lane.b32.xlu1 %v5766_v22, %s6199_s11  ;;  %2016 = vrot.lane.b32.xlu0 %v5765_v34, %s6199_s11 }
 0x300   : > { %2020 = vrot.lane.b32.xlu2 %v5767_v35, %s6199_s11 }
 0x301   : > { %v1790_v26 = vpop.permute.xlu1 %1789  ;;  %v1788_v24 = vpop.permute.xlu0 %1787 }
 0x302   : > { %1879 = vst.msk [vmem:[#allocation3 + $0x98] sm:$0xff] %vm1859_vm7, %v1790_v26  ;;  %v1810_v47 = vpop.permute.xlu2 %1809 }
 0x303   : > { %1878 = vst.msk [vmem:[#allocation3 + $0x90] sm:$0xff] %vm1859_vm7, %v1788_v24 }
 0x304   : > { %1889 = vst.msk [vmem:[#allocation3 + $0xe8] sm:$0xff] %vm1859_vm7, %v1810_v47 }
 0x307   : > { %2022 = vrot.lane.b32.xlu0 %v5768_v53, %s6199_s11  ;;  %2024 = vrot.lane.b32.xlu1 %v5769_v61, %s6199_s11 }
 0x308   : > { %2026 = vrot.lane.b32.xlu2 %v5770_v56, %s6199_s11 }
 0x309   : > { %v1796_v48 = vpop.permute.xlu1 %1795  ;;  %v1794_v21 = vpop.permute.xlu0 %1793 }
 0x30a   : > { %1882 = vst.msk [vmem:[#allocation3 + $0xb0] sm:$0xff] %vm1859_vm7, %v1796_v48  ;;  %v1816_v46 = vpop.permute.xlu2 %1815 }
 0x30b   : > { %1881 = vst.msk [vmem:[#allocation3 + $0xa8] sm:$0xff] %vm1859_vm7, %v1794_v21 }
 0x30c   : > { %1892 = vst.msk [vmem:[#allocation3 + $0x100] sm:$0xff] %vm1859_vm7, %v1816_v46 }
 0x30f   : > { %2030 = vrot.lane.b32.xlu1 %v5772_v38, %s6199_s11  ;;  %2028 = vrot.lane.b32.xlu0 %v5771_v43, %s6199_s11 }
 0x311   : > { %v1802_v50 = vpop.permute.xlu1 %1801  ;;  %v1800_v55 = vpop.permute.xlu0 %1799 }
 0x312   : > { %1885 = vst.msk [vmem:[#allocation3 + $0xc8] sm:$0xff] %vm1859_vm7, %v1802_v50  ;;  %v1822_v54 = vpop.permute.xlu2 %1821 }
 0x313   : > { %1884 = vst.msk [vmem:[#allocation3 + $0xc0] sm:$0xff] %vm1859_vm7, %v1800_v55 }
 0x314   : > { %1895 = vst.msk [vmem:[#allocation3 + $0x118] sm:$0xff] %vm1859_vm7, %v1822_v54 }
 0x319   : > { %v1808_v40 = vpop.permute.xlu1 %1807  ;;  %v1806_v25 = vpop.permute.xlu0 %1805 }
 0x31a   : > { %1888 = vst.msk [vmem:[#allocation3 + $0xe0] sm:$0xff] %vm1859_vm7, %v1808_v40  ;;  %v1973_v58 = vpop.permute.xlu2 %1972 }
 0x31b   : > { %1887 = vst.msk [vmem:[#allocation3 + $0xd8] sm:$0xff] %vm1859_vm7, %v1806_v25 }
 0x31c   : > { %2079 = vst.msk [vmem:[#allocation3 + $0x10] sm:$0xff] %vm2076_vm10, %v1973_v58 }
 0x321   : > { %v1814_v59 = vpop.permute.xlu1 %1813  ;;  %v1812_v51 = vpop.permute.xlu0 %1811 }
 0x322   : > { %1891 = vst.msk [vmem:[#allocation3 + $0xf8] sm:$0xff] %vm1859_vm7, %v1814_v59  ;;  %v1979_v44 = vpop.permute.xlu2 %1978 }
 0x323   : > { %1890 = vst.msk [vmem:[#allocation3 + $0xf0] sm:$0xff] %vm1859_vm7, %v1812_v51  ;;  %v2115_v6 = vld [vmem:[#allocation3 + $0x10] sm:$0xff] }
 0x324   : > { %2082 = vst.msk [vmem:[#allocation3 + $0x28] sm:$0xff] %vm2076_vm10, %v1979_v44 }
 0x329   : > { %v1820_v49 = vpop.permute.xlu1 %1819  ;;  %v1818_v52 = vpop.permute.xlu0 %1817 }
 0x32a   : > { %1894 = vst.msk [vmem:[#allocation3 + $0x110] sm:$0xff] %vm1859_vm7, %v1820_v49  ;;  %v1985_v57 = vpop.permute.xlu2 %1984 }
 0x32b   : > { %1893 = vst.msk [vmem:[#allocation3 + $0x108] sm:$0xff] %vm1859_vm7, %v1818_v52  ;;  %v2118_v23 = vld [vmem:[#allocation3 + $0x28] sm:$0xff] }
 0x32c   : > { %2085 = vst.msk [vmem:[#allocation3 + $0x40] sm:$0xff] %vm2076_vm10, %v1985_v57 }
 0x331   : > { %v1971_v28 = vpop.permute.xlu1 %1970  ;;  %v1969_v33 = vpop.permute.xlu0 %1968 }
 0x332   : > { %2078 = vst.msk [vmem:[#allocation3 + $0x8] sm:$0xff] %vm2076_vm10, %v1971_v28  ;;  %v1991_v37 = vpop.permute.xlu2 %1990 }
 0x333   : > { %2077 = vst.msk [vmem:[#allocation3] sm:$0xff] %vm2076_vm10, %v1969_v33  ;;  %v2121_v53 = vld [vmem:[#allocation3 + $0x40] sm:$0xff] }
 0x334   : > { %2088 = vst.msk [vmem:[#allocation3 + $0x58] sm:$0xff] %vm2076_vm10, %v1991_v37 }
 0x339   : > { %v1977_v27 = vpop.permute.xlu1 %1976  ;;  %v1975_v5 = vpop.permute.xlu0 %1974  ;;  %v2114_v31 = vld [vmem:[#allocation3 + $0x8] sm:$0xff] }
 0x33a   : > { %2081 = vst.msk [vmem:[#allocation3 + $0x20] sm:$0xff] %vm2076_vm10, %v1977_v27  ;;  %v2113_v4 = vld [vmem:[#allocation3] sm:$0xff]  ;;  %v1997_v1 = vpop.permute.xlu2 %1996 }
 0x33b   : > { %2080 = vst.msk [vmem:[#allocation3 + $0x18] sm:$0xff] %vm2076_vm10, %v1975_v5  ;;  %v2149_v29 = vpack.c.bf16 %v2114_v31, %v2113_v4  ;;  %v2124_v60 = vld [vmem:[#allocation3 + $0x58] sm:$0xff]  ;;  %v5773_v27 = vld [vmem:[%s6314_s20 + $0x1b2] sm:$0xff]  ;;  %v5774_v4 = vld [vmem:[%s6314_s20 + $0x1ba] sm:$0xff] }
 0x33c   : > { %2091 = vst.msk [vmem:[#allocation3 + $0x70] sm:$0xff] %vm2076_vm10, %v1997_v1  ;;  %2032 = vrot.lane.b32.xlu2 %v5773_v27, %s6199_s11  ;;  %v5776_v31 = vld [vmem:[%s6314_s20 + $0x1d2] sm:$0xff]  ;;  %2034 = vrot.lane.b32.xlu0 %v5774_v4, %s6199_s11 }
 0x33d   : > { %5785 = vmatmul.msk.bf16.vlgmr.msra.gmra.mxu0 %vm2186_vm11, %v2149_v29  ;;  %v6201_v29 = vmov 0.0  }
 0x33e   : > { %2638 = vst.msk [vmem:[#allocation2 + $0x1] sm:$0xff] %vm2637_vm12, %v6201_v29 }
 0x33f   : > { %2639 = vst.msk [vmem:[#allocation2 + $0x9] sm:$0xff] %vm2637_vm12, %v6201_v29 }
 0x340   : > { %2672 = vst.msk [vmem:[#allocation2 + $0x199] sm:$0xff] %vm2637_vm12, %v6201_v29 }
 0x341   : > { %v1983_v3 = vpop.permute.xlu1 %1982  ;;  %v1981_v8 = vpop.permute.xlu0 %1980  ;;  %v2117_v13 = vld [vmem:[#allocation3 + $0x20] sm:$0xff]  ;;  %2673 = vst.msk [vmem:[#allocation2 + $0x1a1] sm:$0xff] %vm2637_vm12, %v6201_v29 }
 0x342   : > { %2084 = vst.msk [vmem:[#allocation3 + $0x38] sm:$0xff] %vm2076_vm10, %v1983_v3  ;;  %v2003_v11 = vpop.permute.xlu2 %2002  ;;  %v2116_v7 = vld [vmem:[#allocation3 + $0x18] sm:$0xff]  ;;  %v2151_v18 = vpack.c.bf16 %v2118_v23, %v2117_v13  ;;  %v7636_v23 = vld [vmem:[%s10022_s2] ss:$0 sm:$0xff] }
 0x343   : > { %2083 = vst.msk [vmem:[#allocation3 + $0x30] sm:$0xff] %vm2076_vm10, %v1981_v8  ;;  %v2150_v17 = vpack.c.bf16 %v2116_v7, %v2115_v6  ;;  %v2127_v33 = vld [vmem:[#allocation3 + $0x70] sm:$0xff] }
 0x344   : > { %2094 = vst.msk [vmem:[#allocation3 + $0x88] sm:$0xff] %vm2076_vm10, %v2003_v11  ;;  %2038 = vrot.lane.b32.xlu2 %v5776_v31, %s6199_s11 }
 0x345   : > { %2602 = vst.msk [vmem:[#allocation2 + $0x18] sm:$0x1] %vm2600_vm13, %v6201_v29 }
 0x346   : > { %2601 = vst.msk [vmem:[#allocation2] sm:$0x1] %vm2600_vm13, %v6201_v29 }
 0x347   : > { %2603 = vst.msk [vmem:[#allocation2 + $0x30] sm:$0x1] %vm2600_vm13, %v6201_v29 }
 0x348   : > { %2604 = vst.msk [vmem:[#allocation2 + $0x48] sm:$0x1] %vm2600_vm13, %v6201_v29 }
 0x349   : > { %v1989_v45 = vpop.permute.xlu1 %1988  ;;  %v1987_v9 = vpop.permute.xlu0 %1986  ;;  %v2120_v22 = vld [vmem:[#allocation3 + $0x38] sm:$0xff]  ;;  %2605 = vst.msk [vmem:[#allocation2 + $0x60] sm:$0x1] %vm2600_vm13, %v6201_v29 }
 0x34a   : > { %2087 = vst.msk [vmem:[#allocation3 + $0x50] sm:$0xff] %vm2076_vm10, %v1989_v45  ;;  %v2009_v10 = vpop.permute.xlu2 %2008  ;;  %v2119_v32 = vld [vmem:[#allocation3 + $0x30] sm:$0xff]  ;;  %v5775_v45 = vld [vmem:[%s6314_s20 + $0x1ca] sm:$0xff]  ;;  %s285_s20 = sand.u32 1, %s6174_s27  }
 0x34b   : > { %2086 = vst.msk [vmem:[#allocation3 + $0x48] sm:$0xff] %vm2076_vm10, %v1987_v9  ;;  %v2152_v47 = vpack.c.bf16 %v2120_v22, %v2119_v32  ;;  %v2130_v11 = vld [vmem:[#allocation3 + $0x88] sm:$0xff]  ;;  %v2738_v9 = vld [vmem:[#allocation2 + $0x1] sm:$0xff]  ;;  %2036 = vrot.lane.b32.xlu1 %v5775_v45, %s6199_s11  ;;  %s5454_s18 = scalar_lea.sflag [#allocation7], %s285_s20 }
 0x34c   : > { %2097 = vst.msk [vmem:[#allocation3 + $0xa0] sm:$0xff] %vm2076_vm10, %v2009_v10  ;;  %2802 = vrot.lane.b32.xlu0 %v2738_v9, %s6195_s24 }
 0x34d   : > { %5786 = vmatmul.msk.bf16.gmra.mxu0 %vm2186_vm11, %v2150_v17  ;;  %2606 = vst.msk [vmem:[#allocation2 + $0x78] sm:$0x1] %vm2600_vm13, %v6201_v29 }
 0x34e   : > { %2607 = vst.msk [vmem:[#allocation2 + $0x90] sm:$0x1] %vm2600_vm13, %v6201_v29 }
 0x34f   : > { %2608 = vst.msk [vmem:[#allocation2 + $0xa8] sm:$0x1] %vm2600_vm13, %v6201_v29 }
 0x350   : > { %2609 = vst.msk [vmem:[#allocation2 + $0xc0] sm:$0x1] %vm2600_vm13, %v6201_v29 }
 0x351   : > { %v1995_v14 = vpop.permute.xlu1 %1994  ;;  %v1993_v12 = vpop.permute.xlu0 %1992  ;;  %v2123_v2 = vld [vmem:[#allocation3 + $0x50] sm:$0xff]  ;;  %2610 = vst.msk [vmem:[#allocation2 + $0xd8] sm:$0x1] %vm2600_vm13, %v6201_v29 }
 0x352   : > { %2090 = vst.msk [vmem:[#allocation3 + $0x68] sm:$0xff] %vm2076_vm10, %v1995_v14  ;;  %v2015_v20 = vpop.permute.xlu2 %2014  ;;  %v2122_v39 = vld [vmem:[#allocation3 + $0x48] sm:$0xff]  ;;  %v2154_v25 = vpack.c.bf16 %v2124_v60, %v2123_v2  ;;  %v2739_v14 = vld [vmem:[#allocation2 + $0x9] sm:$0xff] }
 0x353   : > { %2089 = vst.msk [vmem:[#allocation3 + $0x60] sm:$0xff] %vm2076_vm10, %v1993_v12  ;;  %v2133_v50 = vld [vmem:[#allocation3 + $0xa0] sm:$0xff]  ;;  %v2153_v0 = vpack.c.bf16 %v2122_v39, %v2121_v53  ;;  %2804 = vrot.lane.b32.xlu1 %v2739_v14, %s6195_s24 }
 0x354   : > { %2100 = vst.msk [vmem:[#allocation3 + $0xb8] sm:$0xff] %vm2076_vm10, %v2015_v20 }
 0x355   : > { %2611 = vst.msk [vmem:[#allocation2 + $0xf0] sm:$0x1] %vm2600_vm13, %v6201_v29 }
 0x356   : > { %2612 = vst.msk [vmem:[#allocation2 + $0x108] sm:$0x1] %vm2600_vm13, %v6201_v29 }
 0x357   : > { %2613 = vst.msk [vmem:[#allocation2 + $0x120] sm:$0x1] %vm2600_vm13, %v6201_v29 }
 0x358   : > { %2614 = vst.msk [vmem:[#allocation2 + $0x138] sm:$0x1] %vm2600_vm13, %v6201_v29 }
 0x359   : > { %v2001_v15 = vpop.permute.xlu1 %2000  ;;  %v1999_v16 = vpop.permute.xlu0 %1998  ;;  %v2126_v44 = vld [vmem:[#allocation3 + $0x68] sm:$0xff]  ;;  %2615 = vst.msk [vmem:[#allocation2 + $0x150] sm:$0x1] %vm2600_vm13, %v6201_v29 }
 0x35a   : > { %2093 = vst.msk [vmem:[#allocation3 + $0x80] sm:$0xff] %vm2076_vm10, %v2001_v15  ;;  %v2021_v62 = vpop.permute.xlu2 %2020  ;;  %v2125_v35 = vld [vmem:[#allocation3 + $0x60] sm:$0xff] }
 0x35b   : > { %2092 = vst.msk [vmem:[#allocation3 + $0x78] sm:$0xff] %vm2076_vm10, %v1999_v16  ;;  %v2136_v36 = vld [vmem:[#allocation3 + $0xb8] sm:$0xff]  ;;  %v2155_v52 = vpack.c.bf16 %v2126_v44, %v2125_v35 }
 0x35c   : > { %2103 = vst.msk [vmem:[#allocation3 + $0xd0] sm:$0xff] %vm2076_vm10, %v2021_v62 }
 0x35d   : > { %5787 = vmatmul.msk.bf16.gmra.mxu0 %vm2186_vm11, %v2151_v18  ;;  %2616 = vst.msk [vmem:[#allocation2 + $0x168] sm:$0x1] %vm2600_vm13, %v6201_v29 }
 0x35e   : > { %2617 = vst.msk [vmem:[#allocation2 + $0x180] sm:$0x1] %vm2600_vm13, %v6201_v29 }
 0x35f   : > { %2618 = vst.msk [vmem:[#allocation2 + $0x198] sm:$0x1] %vm2600_vm13, %v6201_v29 }
 0x360   : > { %2619 = vst.msk [vmem:[#allocation2 + $0x11] sm:$0x1] %vm2600_vm13, %v6201_v29 }
 0x361   : > { %v2007_v41 = vpop.permute.xlu1 %2006  ;;  %v2005_v19 = vpop.permute.xlu0 %2004  ;;  %v2129_v8 = vld [vmem:[#allocation3 + $0x80] sm:$0xff]  ;;  %2620 = vst.msk [vmem:[#allocation2 + $0x29] sm:$0x1] %vm2600_vm13, %v6201_v29 }
 0x362   : > { %2096 = vst.msk [vmem:[#allocation3 + $0x98] sm:$0xff] %vm2076_vm10, %v2007_v41  ;;  %v2027_v58 = vpop.permute.xlu2 %2026  ;;  %v2128_v56 = vld [vmem:[#allocation3 + $0x78] sm:$0xff]  ;;  %v2157_v17 = vpack.c.bf16 %v2130_v11, %v2129_v8 }
 0x363   : > { %2095 = vst.msk [vmem:[#allocation3 + $0x90] sm:$0xff] %vm2076_vm10, %v2005_v19  ;;  %v2139_v43 = vld [vmem:[#allocation3 + $0xd0] sm:$0xff]  ;;  %v2156_v5 = vpack.c.bf16 %v2128_v56, %v2127_v33 }
 0x364   : > { %2106 = vst.msk [vmem:[#allocation3 + $0xe8] sm:$0xff] %vm2076_vm10, %v2027_v58 }
 0x365   : > { %2621 = vst.msk [vmem:[#allocation2 + $0x41] sm:$0x1] %vm2600_vm13, %v6201_v29 }
 0x366   : > { %2622 = vst.msk [vmem:[#allocation2 + $0x59] sm:$0x1] %vm2600_vm13, %v6201_v29 }
 0x367   : > { %2623 = vst.msk [vmem:[#allocation2 + $0x71] sm:$0x1] %vm2600_vm13, %v6201_v29 }
 0x368   : > { %2624 = vst.msk [vmem:[#allocation2 + $0x89] sm:$0x1] %vm2600_vm13, %v6201_v29 }
 0x369   : > { %v2132_v26 = vld [vmem:[#allocation3 + $0x98] sm:$0xff]  ;;  %v2011_v24 = vpop.permute.xlu0 %2010  ;;  %v2013_v34 = vpop.permute.xlu1 %2012  ;;  %2625 = vst.msk [vmem:[#allocation2 + $0xa1] sm:$0x1] %vm2600_vm13, %v6201_v29 }
 0x36a   : > { %v2131_v63 = vld [vmem:[#allocation3 + $0x90] sm:$0xff]  ;;  %2098 = vst.msk [vmem:[#allocation3 + $0xa8] sm:$0xff] %vm2076_vm10, %v2011_v24 }
 0x36b   : > { %v2158_v48 = vpack.c.bf16 %v2132_v26, %v2131_v63  ;;  %2099 = vst.msk [vmem:[#allocation3 + $0xb0] sm:$0xff] %vm2076_vm10, %v2013_v34  ;;  %v2142_v3 = vld [vmem:[#allocation3 + $0xe8] sm:$0xff] }
 0x36c   : > { %2626 = vst.msk [vmem:[#allocation2 + $0xb9] sm:$0x1] %vm2600_vm13, %v6201_v29 }
 0x36d   : > { %5788 = vmatmul.msk.bf16.gmra.mxu0 %vm2186_vm11, %v2152_v47  ;;  %5794 = vmatmul.msk.bf16.vlgmr.msra.gmra.mxu2 %vm2186_vm11, %v2158_v48  ;;  %2627 = vst.msk [vmem:[#allocation2 + $0xd1] sm:$0x1] %vm2600_vm13, %v6201_v29 }
 0x36e   : > { %2628 = vst.msk [vmem:[#allocation2 + $0xe9] sm:$0x1] %vm2600_vm13, %v6201_v29 }
 0x36f   : > { %2629 = vst.msk [vmem:[#allocation2 + $0x101] sm:$0x1] %vm2600_vm13, %v6201_v29 }
 0x370   : > { %2630 = vst.msk [vmem:[#allocation2 + $0x119] sm:$0x1] %vm2600_vm13, %v6201_v29 }
 0x371   : > { %v2019_v21 = vpop.permute.xlu1 %2018  ;;  %v2017_v46 = vpop.permute.xlu0 %2016  ;;  %v2134_v55 = vld [vmem:[#allocation3 + $0xa8] sm:$0xff]  ;;  %2631 = vst.msk [vmem:[#allocation2 + $0x131] sm:$0x1] %vm2600_vm13, %v6201_v29 }
 0x372   : > { %2102 = vst.msk [vmem:[#allocation3 + $0xc8] sm:$0xff] %vm2076_vm10, %v2019_v21  ;;  %v2159_v30 = vpack.c.bf16 %v2134_v55, %v2133_v50  ;;  %v2135_v54 = vld [vmem:[#allocation3 + $0xb0] sm:$0xff] }
 0x373   : > { %2101 = vst.msk [vmem:[#allocation3 + $0xc0] sm:$0xff] %vm2076_vm10, %v2017_v46  ;;  %v2160_v40 = vpack.c.bf16 %v2136_v36, %v2135_v54 }
 0x374   : > { %2632 = vst.msk [vmem:[#allocation2 + $0x149] sm:$0x1] %vm2600_vm13, %v6201_v29 }
 0x375   : > { %2633 = vst.msk [vmem:[#allocation2 + $0x161] sm:$0x1] %vm2600_vm13, %v6201_v29 }
 0x376   : > { %2634 = vst.msk [vmem:[#allocation2 + $0x179] sm:$0x1] %vm2600_vm13, %v6201_v29 }
 0x377   : > { %2635 = vst.msk [vmem:[#allocation2 + $0x191] sm:$0x1] %vm2600_vm13, %v6201_v29 }
 0x378   : > { %2636 = vst.msk [vmem:[#allocation2 + $0x1a9] sm:$0x1] %vm2600_vm13, %v6201_v29 }
 0x379   : > { %v2023_v42 = vpop.permute.xlu0 %2022  ;;  %v2025_v61 = vpop.permute.xlu1 %2024  ;;  %v2138_v51 = vld [vmem:[#allocation3 + $0xc8] sm:$0xff] }
 0x37a   : > { %2104 = vst.msk [vmem:[#allocation3 + $0xd8] sm:$0xff] %vm2076_vm10, %v2023_v42  ;;  %v2137_v59 = vld [vmem:[#allocation3 + $0xc0] sm:$0xff] }
 0x37b   : > { %2105 = vst.msk [vmem:[#allocation3 + $0xe0] sm:$0xff] %vm2076_vm10, %v2025_v61  ;;  %v2161_v49 = vpack.c.bf16 %v2138_v51, %v2137_v59 }
 0x37d   : > { %5789 = vmatmul.msk.bf16.gmra.mxu0 %vm2186_vm11, %v2153_v0  ;;  %5795 = vmatmul.msk.bf16.gmra.mxu2 %vm2186_vm11, %v2159_v30 }
 0x381   : > { %v2031_v57 = vpop.permute.xlu1 %2030  ;;  %v2029_v38 = vpop.permute.xlu0 %2028  ;;  %v2140_v28 = vld [vmem:[#allocation3 + $0xd8] sm:$0xff] }
 0x382   : > { %2108 = vst.msk [vmem:[#allocation3 + $0xf8] sm:$0xff] %vm2076_vm10, %v2031_v57  ;;  %v2162_v37 = vpack.c.bf16 %v2140_v28, %v2139_v43  ;;  %v2141_v1 = vld [vmem:[#allocation3 + $0xe0] sm:$0xff] }
 0x383   : > { %2107 = vst.msk [vmem:[#allocation3 + $0xf0] sm:$0xff] %vm2076_vm10, %v2029_v38  ;;  %v2163_v6 = vpack.c.bf16 %v2142_v3, %v2141_v1 }
 0x389   : > { %v2144_v13 = vld [vmem:[#allocation3 + $0xf8] sm:$0xff] }
 0x38a   : > { %v2143_v12 = vld [vmem:[#allocation3 + $0xf0] sm:$0xff] }
 0x38b   : > { %v2164_v15 = vpack.c.bf16 %v2144_v13, %v2143_v12 }
 0x38d   : > { %5790 = vmatmul.msk.bf16.gmra.mxu0 %vm2186_vm11, %v2154_v25  ;;  %5796 = vmatmul.msk.bf16.gmra.mxu2 %vm2186_vm11, %v2160_v40 }
 0x39d   : > { %5791 = vmatmul.msk.bf16.gmra.mxu0 %vm2186_vm11, %v2155_v52  ;;  %5797 = vmatmul.msk.bf16.gmra.mxu2 %vm2186_vm11, %v2161_v49 }
 0x3ad   : > { %5792 = vmatmul.msk.bf16.gmra.mxu0 %vm2186_vm11, %v2156_v5  ;;  %5798 = vmatmul.msk.bf16.gmra.mxu2 %vm2186_vm11, %v2162_v37 }
 0x3ba   : > { %v2257_v7 = vpop.f32.mrf.mxu0 }
 0x3bd   : > { %5793 = vmatmul.msk.bf16.gmra.mxu0 %vm2186_vm11, %v2157_v17  ;;  %5799 = vmatmul.msk.bf16.gmra.mxu2 %vm2186_vm11, %v2163_v6 }
 0x3c2   : > { %v2259_v10 = vpop.f32.mrf.mxu0 }
 0x3ca   : > { %v2262_v16 = vpop.f32.mrf.mxu0 }
 0x3cb   : > { %v2263_v18 = vadd.f32 %v7636_v23, %v2262_v16 }
 0x3cd   : > { %v2349_v20 = vmax.f32 %v2263_v18, 0.0  ;;  %5800 = vmatmul.msk.bf16.gmra.mxu2 %vm2186_vm11, %v2164_v15 }
 0x3cf   : > { %v2385_v41 = vmin.f32 %v2349_v20, 6.0  ;;  %v2033_v20 = vpop.permute.xlu2 %2032 }
 0x3d0   : > { %2109 = vst.msk [vmem:[#allocation3 + $0x100] sm:$0xff] %vm2076_vm10, %v2033_v20 }
 0x3d1   : > { %v2421_v19 = vmul.f32 0.16666667, %v2385_v41 }
 0x3d2   : > { %v2264_v32 = vpop.f32.mrf.mxu0 }
 0x3d3   : > { %2640 = vst.msk [vmem:[#allocation2 + $0x19] sm:$0xff] %vm2637_vm12, %v2421_v19  ;;  %v2265_v22 = vadd.f32 %v7636_v23, %v2264_v32 }
 0x3d5   : > { %v2350_v26 = vmax.f32 %v2265_v22, 0.0 }
 0x3d7   : > { %v2386_v24 = vmin.f32 %v2350_v26, 6.0 }
 0x3d9   : > { %v2422_v34 = vmul.f32 0.16666667, %v2386_v24 }
 0x3da   : > { %v2267_v63 = vpop.f32.mrf.mxu0  ;;  %v2740_v47 = vld [vmem:[#allocation2 + $0x19] sm:$0xff] }
 0x3db   : > { %v7678_v48 = vld [vmem:[#allocation2 + $0x18] sm:$0xff]  ;;  %2641 = vst.msk [vmem:[#allocation2 + $0x21] sm:$0xff] %vm2637_vm12, %v2422_v34  ;;  %v2268_v21 = vadd.f32 %v7636_v23, %v2267_v63  ;;  %2806 = vrot.lane.b32.xlu2 %v2740_v47, %s6195_s24 }
 0x3dc   : > { %2708 = vst.msk [vmem:[#allocation4 + $0x10] sm:$0xff] %vm2637_vm12, %v7678_v48 }
 0x3dd   : > { %v2351_v46 = vmax.f32 %v2268_v21, 0.0 }
 0x3df   : > { %v2387_v50 = vmin.f32 %v2351_v46, 6.0 }
 0x3e1   : > { %v2423_v55 = vmul.f32 0.16666667, %v2387_v50 }
 0x3e2   : > { %v2269_v53 = vpop.f32.mrf.mxu0  ;;  %v2741_v39 = vld [vmem:[#allocation2 + $0x21] sm:$0xff] }
 0x3e3   : > { %v7689_v30 = vld [vmem:[#allocation2 + $0x20] sm:$0xff]  ;;  %2642 = vst.msk [vmem:[#allocation2 + $0x31] sm:$0xff] %vm2637_vm12, %v2423_v55  ;;  %v2270_v0 = vadd.f32 %v7636_v23, %v2269_v53  ;;  %2808 = vrot.lane.b32.xlu0 %v2741_v39, %s6195_s24  ;;  %v2039_v53 = vpop.permute.xlu2 %2038 }
 0x3e4   : > { %2709 = vst.msk [vmem:[#allocation4 + $0x18] sm:$0xff] %vm2637_vm12, %v7689_v30 }
 0x3e5   : > { %v2352_v62 = vmax.f32 %v2270_v0, 0.0  ;;  %2112 = vst.msk [vmem:[#allocation3 + $0x118] sm:$0xff] %vm2076_vm10, %v2039_v53  ;;  %v2037_v53 = vpop.permute.xlu1 %2036 }
 0x3e6   : > { %2111 = vst.msk [vmem:[#allocation3 + $0x110] sm:$0xff] %vm2076_vm10, %v2037_v53 }
 0x3e7   : > { %v2388_v42 = vmin.f32 %v2352_v62, 6.0 }
 0x3e9   : > { %v2424_v54 = vmul.f32 0.16666667, %v2388_v42 }
 0x3ea   : > { %v2272_v36 = vpop.f32.mrf.mxu0  ;;  %v2742_v2 = vld [vmem:[#allocation2 + $0x31] sm:$0xff] }
 0x3eb   : > { %v7696_v60 = vld [vmem:[#allocation2 + $0x30] sm:$0xff]  ;;  %2643 = vst.msk [vmem:[#allocation2 + $0x39] sm:$0xff] %vm2637_vm12, %v2424_v54  ;;  %v2273_v40 = vadd.f32 %v7636_v23, %v2272_v36  ;;  %2810 = vrot.lane.b32.xlu1 %v2742_v2, %s6195_s24 }
 0x3ec   : > { %2710 = vst.msk [vmem:[#allocation4 + $0x20] sm:$0xff] %vm2637_vm12, %v7696_v60 }
 0x3ed   : > { %v2353_v25 = vmax.f32 %v2273_v40, 0.0 }
 0x3ef   : > { %v2389_v58 = vmin.f32 %v2353_v25, 6.0 }
 0x3f0   : > { %v2302_v61 = vpop.f32.mrf.mxu2 }
 0x3f1   : > { %v2425_v59 = vmul.f32 0.16666667, %v2389_v58  ;;  %v2303_v51 = vadd.f32 %v7636_v23, %v2302_v61 }
 0x3f2   : > { %v2274_v35 = vpop.f32.mrf.mxu0  ;;  %v2743_v44 = vld [vmem:[#allocation2 + $0x39] sm:$0xff] }
 0x3f3   : > { %v7704_v49 = vld [vmem:[#allocation2 + $0x38] sm:$0xff]  ;;  %2644 = vst.msk [vmem:[#allocation2 + $0x49] sm:$0xff] %vm2637_vm12, %v2425_v59  ;;  %v2275_v52 = vadd.f32 %v7636_v23, %v2274_v35  ;;  %v2365_v57 = vmax.f32 %v2303_v51, 0.0  ;;  %2812 = vrot.lane.b32.xlu2 %v2743_v44, %s6195_s24 }
 0x3f4   : > { %2711 = vst.msk [vmem:[#allocation4 + $0x28] sm:$0xff] %vm2637_vm12, %v7704_v49 }
 0x3f5   : > { %v2354_v38 = vmax.f32 %v2275_v52, 0.0  ;;  %v2401_v43 = vmin.f32 %v2365_v57, 6.0 }
 0x3f7   : > { %v2390_v28 = vmin.f32 %v2354_v38, 6.0  ;;  %v2437_v33 = vmul.f32 0.16666667, %v2401_v43 }
 0x3f8   : > { %v2304_v56 = vpop.f32.mrf.mxu2 }
 0x3f9   : > { %v2426_v37 = vmul.f32 0.16666667, %v2390_v28  ;;  %2656 = vst.msk [vmem:[#allocation2 + $0xd9] sm:$0xff] %vm2637_vm12, %v2437_v33  ;;  %v2305_v27 = vadd.f32 %v7636_v23, %v2304_v56 }
 0x3fa   : > { %v2277_v5 = vpop.f32.mrf.mxu0  ;;  %v2744_v31 = vld [vmem:[#allocation2 + $0x49] sm:$0xff] }
 0x3fb   : > { %v7713_v4 = vld [vmem:[#allocation2 + $0x48] sm:$0xff]  ;;  %2645 = vst.msk [vmem:[#allocation2 + $0x51] sm:$0xff] %vm2637_vm12, %v2426_v37  ;;  %v2278_v29 = vadd.f32 %v7636_v23, %v2277_v5  ;;  %v2366_v1 = vmax.f32 %v2305_v27, 0.0  ;;  %2814 = vrot.lane.b32.xlu0 %v2744_v31, %s6195_s24 }
 0x3fc   : > { %2712 = vst.msk [vmem:[#allocation4 + $0x30] sm:$0xff] %vm2637_vm12, %v7713_v4 }
 0x3fd   : > { %v2355_v3 = vmax.f32 %v2278_v29, 0.0  ;;  %v2402_v8 = vmin.f32 %v2366_v1, 6.0 }
 0x3ff   : > { %v2391_v11 = vmin.f32 %v2355_v3, 6.0  ;;  %v2438_v6 = vmul.f32 0.16666667, %v2402_v8 }
 0x400   : > { %v2307_v7 = vpop.f32.mrf.mxu2  ;;  %v7720_v45 = vld [vmem:[#allocation2 + $0xd8] sm:$0xff] }
 0x401   : > { %v2427_v9 = vmul.f32 0.16666667, %v2391_v11  ;;  %2657 = vst.msk [vmem:[#allocation2 + $0xe1] sm:$0xff] %vm2637_vm12, %v2438_v6  ;;  %v2308_v17 = vadd.f32 %v7636_v23, %v2307_v7 }
 0x402   : > { %v2279_v10 = vpop.f32.mrf.mxu0  ;;  %v2745_v14 = vld [vmem:[#allocation2 + $0x51] sm:$0xff]  ;;  %2724 = vst.msk [vmem:[#allocation4 + $0x90] sm:$0xff] %vm2637_vm12, %v7720_v45 }
 0x403   : > { %v7724_v12 = vld [vmem:[#allocation2 + $0x50] sm:$0xff]  ;;  %2646 = vst.msk [vmem:[#allocation2 + $0x61] sm:$0xff] %vm2637_vm12, %v2427_v9  ;;  %v2280_v13 = vadd.f32 %v7636_v23, %v2279_v10  ;;  %v2367_v15 = vmax.f32 %v2308_v17, 0.0  ;;  %2816 = vrot.lane.b32.xlu1 %v2745_v14, %s6195_s24 }
 0x404   : > { %2713 = vst.msk [vmem:[#allocation4 + $0x38] sm:$0xff] %vm2637_vm12, %v7724_v12 }
 0x405   : > { %v2356_v16 = vmax.f32 %v2280_v13, 0.0  ;;  %v2403_v18 = vmin.f32 %v2367_v15, 6.0 }
 0x407   : > { %v2392_v41 = vmin.f32 %v2356_v16, 6.0  ;;  %v2439_v19 = vmul.f32 0.16666667, %v2403_v18  ;;  %v2035_v16 = vpop.permute.xlu0 %2034 }
 0x408   : > { %v2309_v32 = vpop.f32.mrf.mxu2  ;;  %v7736_v24 = vld [vmem:[#allocation2 + $0xe0] sm:$0xff]  ;;  %2110 = vst.msk [vmem:[#allocation3 + $0x108] sm:$0xff] %vm2076_vm10, %v2035_v16 }
 0x409   : > { %v2428_v22 = vmul.f32 0.16666667, %v2392_v41  ;;  %2658 = vst.msk [vmem:[#allocation2 + $0xf1] sm:$0xff] %vm2637_vm12, %v2439_v19  ;;  %v2310_v26 = vadd.f32 %v7636_v23, %v2309_v32 }
 0x40a   : > { %v2282_v34 = vpop.f32.mrf.mxu0  ;;  %v2746_v63 = vld [vmem:[#allocation2 + $0x61] sm:$0xff]  ;;  %2725 = vst.msk [vmem:[#allocation4 + $0x98] sm:$0xff] %vm2637_vm12, %v7736_v24 }
 0x40b   : > { %v7738_v47 = vld [vmem:[#allocation2 + $0x60] sm:$0xff]  ;;  %2647 = vst.msk [vmem:[#allocation2 + $0x69] sm:$0xff] %vm2637_vm12, %v2428_v22  ;;  %v2283_v21 = vadd.f32 %v7636_v23, %v2282_v34  ;;  %v2368_v46 = vmax.f32 %v2310_v26, 0.0  ;;  %2818 = vrot.lane.b32.xlu2 %v2746_v63, %s6195_s24 }
 0x40c   : > { %2714 = vst.msk [vmem:[#allocation4 + $0x40] sm:$0xff] %vm2637_vm12, %v7738_v47 }
 0x40d   : > { %v2357_v50 = vmax.f32 %v2283_v21, 0.0  ;;  %v2404_v55 = vmin.f32 %v2368_v46, 6.0 }
 0x40f   : > { %v2393_v39 = vmin.f32 %v2357_v50, 6.0  ;;  %v2440_v0 = vmul.f32 0.16666667, %v2404_v55 }
 0x410   : > { %v2312_v62 = vpop.f32.mrf.mxu2  ;;  %v7748_v42 = vld [vmem:[#allocation2 + $0xf0] sm:$0xff] }
 0x411   : > { %v2429_v54 = vmul.f32 0.16666667, %v2393_v39  ;;  %2659 = vst.msk [vmem:[#allocation2 + $0xf9] sm:$0xff] %vm2637_vm12, %v2440_v0  ;;  %v2313_v36 = vadd.f32 %v7636_v23, %v2312_v62 }
 0x412   : > { %v2284_v2 = vpop.f32.mrf.mxu0  ;;  %v2747_v40 = vld [vmem:[#allocation2 + $0x69] sm:$0xff]  ;;  %2726 = vst.msk [vmem:[#allocation4 + $0xa0] sm:$0xff] %vm2637_vm12, %v7748_v42 }
 0x413   : > { %v7752_v25 = vld [vmem:[#allocation2 + $0x68] sm:$0xff]  ;;  %2648 = vst.msk [vmem:[#allocation2 + $0x79] sm:$0xff] %vm2637_vm12, %v2429_v54  ;;  %v2285_v58 = vadd.f32 %v7636_v23, %v2284_v2  ;;  %v2369_v61 = vmax.f32 %v2313_v36, 0.0  ;;  %2820 = vrot.lane.b32.xlu0 %v2747_v40, %s6195_s24  ;;  %v2674_v2 = vld [vmem:[#allocation2] sm:$0xff] }
 0x414   : > { %2715 = vst.msk [vmem:[#allocation4 + $0x48] sm:$0xff] %vm2637_vm12, %v7752_v25 }
 0x415   : > { %v2358_v59 = vmax.f32 %v2285_v58, 0.0  ;;  %v2405_v51 = vmin.f32 %v2369_v61, 6.0  ;;  %2706 = vst.msk [vmem:[#allocation4] sm:$0xff] %vm2637_vm12, %v2674_v2 }
 0x417   : > { %v2394_v35 = vmin.f32 %v2358_v59, 6.0  ;;  %v2441_v44 = vmul.f32 0.16666667, %v2405_v51  ;;  %v2803_v51 = vpop.permute.xlu0 %2802 }
 0x418   : > { %v2314_v52 = vpop.f32.mrf.mxu2  ;;  %v7763_v43 = vld [vmem:[#allocation2 + $0xf8] sm:$0xff]  ;;  %2899 = vst.msk [vmem:[#allocation4] sm:$0xff] %vm2898_vm14, %v2803_v51 }
 0x419   : > { %v2430_v57 = vmul.f32 0.16666667, %v2394_v35  ;;  %2660 = vst.msk [vmem:[#allocation2 + $0x109] sm:$0xff] %vm2637_vm12, %v2441_v44  ;;  %v2315_v38 = vadd.f32 %v7636_v23, %v2314_v52 }
 0x41a   : > { %v2287_v28 = vpop.f32.mrf.mxu0  ;;  %v2748_v33 = vld [vmem:[#allocation2 + $0x79] sm:$0xff]  ;;  %2727 = vst.msk [vmem:[#allocation4 + $0xa8] sm:$0xff] %vm2637_vm12, %v7763_v43 }
 0x41b   : > { %v7765_v56 = vld [vmem:[#allocation2 + $0x78] sm:$0xff]  ;;  %2649 = vst.msk [vmem:[#allocation2 + $0x81] sm:$0xff] %vm2637_vm12, %v2430_v57  ;;  %v2288_v37 = vadd.f32 %v7636_v23, %v2287_v28  ;;  %v2370_v27 = vmax.f32 %v2315_v38, 0.0  ;;  %2822 = vrot.lane.b32.xlu1 %v2748_v33, %s6195_s24 }
 0x41c   : > { %2716 = vst.msk [vmem:[#allocation4 + $0x50] sm:$0xff] %vm2637_vm12, %v7765_v56 }
 0x41d   : > { %v2359_v5 = vmax.f32 %v2288_v37, 0.0  ;;  %v2406_v31 = vmin.f32 %v2370_v27, 6.0 }
 0x41f   : > { %v2395_v29 = vmin.f32 %v2359_v5, 6.0  ;;  %v2442_v1 = vmul.f32 0.16666667, %v2406_v31  ;;  %v2675_v31 = vld [vmem:[#allocation2 + $0x8] sm:$0xff] }
 0x420   : > { %v2317_v3 = vpop.f32.mrf.mxu2  ;;  %v7774_v8 = vld [vmem:[#allocation2 + $0x108] sm:$0xff]  ;;  %2707 = vst.msk [vmem:[#allocation4 + $0x8] sm:$0xff] %vm2637_vm12, %v2675_v31 }
 0x421   : > { %v2431_v11 = vmul.f32 0.16666667, %v2395_v29  ;;  %2661 = vst.msk [vmem:[#allocation2 + $0x111] sm:$0xff] %vm2637_vm12, %v2442_v1  ;;  %v2318_v6 = vadd.f32 %v7636_v23, %v2317_v3 }
 0x422   : > { %v2289_v7 = vpop.f32.mrf.mxu0  ;;  %v7778_v9 = vld [vmem:[#allocation2 + $0x81] sm:$0xff]  ;;  %2728 = vst.msk [vmem:[#allocation4 + $0xb0] sm:$0xff] %vm2637_vm12, %v7774_v8 }
 0x423   : > { %v7780_v17 = vld [vmem:[#allocation2 + $0x80] sm:$0xff]  ;;  %2650 = vst.msk [vmem:[#allocation2 + $0x91] sm:$0xff] %vm2637_vm12, %v2431_v11  ;;  %v2290_v10 = vadd.f32 %v7636_v23, %v2289_v7  ;;  %v2371_v14 = vmax.f32 %v2318_v6, 0.0  ;;  %2824 = vrot.lane.b32.xlu2 %v7778_v9, %s6195_s24  ;;  %v2805_v7 = vpop.permute.xlu1 %2804 }
 0x424   : > { %2717 = vst.msk [vmem:[#allocation4 + $0x58] sm:$0xff] %vm2637_vm12, %v7780_v17 }
 0x425   : > { %v2360_v13 = vmax.f32 %v2290_v10, 0.0  ;;  %v2407_v15 = vmin.f32 %v2371_v14, 6.0  ;;  %2900 = vst.msk [vmem:[#allocation4 + $0x8] sm:$0xff] %vm2898_vm14, %v2805_v7 }
 0x427   : > { %v2396_v18 = vmin.f32 %v2360_v13, 6.0  ;;  %v2443_v20 = vmul.f32 0.16666667, %v2407_v15 }
 0x428   : > { %v2319_v41 = vpop.f32.mrf.mxu2  ;;  %v7793_v22 = vld [vmem:[#allocation2 + $0x110] sm:$0xff] }
 0x429   : > { %v2432_v19 = vmul.f32 0.16666667, %v2396_v18  ;;  %2662 = vst.msk [vmem:[#allocation2 + $0x121] sm:$0xff] %vm2637_vm12, %v2443_v20  ;;  %v2320_v32 = vadd.f32 %v7636_v23, %v2319_v41 }
 0x42a   : > { %v2292_v26 = vpop.f32.mrf.mxu0  ;;  %v7795_v34 = vld [vmem:[#allocation2 + $0x91] sm:$0xff]  ;;  %2729 = vst.msk [vmem:[#allocation4 + $0xb8] sm:$0xff] %vm2637_vm12, %v7793_v22 }
 0x42b   : > { %v7797_v63 = vld [vmem:[#allocation2 + $0x90] sm:$0xff]  ;;  %2651 = vst.msk [vmem:[#allocation2 + $0x99] sm:$0xff] %vm2637_vm12, %v2432_v19  ;;  %v2293_v21 = vadd.f32 %v7636_v23, %v2292_v26  ;;  %v2372_v46 = vmax.f32 %v2320_v32, 0.0  ;;  %2826 = vrot.lane.b32.xlu0 %v7795_v34, %s6195_s24 }
 0x42c   : > { %2718 = vst.msk [vmem:[#allocation4 + $0x60] sm:$0xff] %vm2637_vm12, %v7797_v63 }
 0x42d   : > { %v2361_v50 = vmax.f32 %v2293_v21, 0.0  ;;  %v2408_v55 = vmin.f32 %v2372_v46, 6.0 }
 0x42f   : > { %v2397_v39 = vmin.f32 %v2361_v50, 6.0  ;;  %v2444_v0 = vmul.f32 0.16666667, %v2408_v55 }
 0x430   : > { %v2322_v62 = vpop.f32.mrf.mxu2  ;;  %v7820_v44 = vld [vmem:[#allocation2 + $0x120] sm:$0xff] }
 0x431   : > { %v2433_v54 = vmul.f32 0.16666667, %v2397_v39  ;;  %2663 = vst.msk [vmem:[#allocation2 + $0x129] sm:$0xff] %vm2637_vm12, %v2444_v0  ;;  %v2323_v36 = vadd.f32 %v7636_v23, %v2322_v62 }
 0x432   : > { %v2294_v40 = vpop.f32.mrf.mxu0  ;;  %v7810_v58 = vld [vmem:[#allocation2 + $0x99] sm:$0xff]  ;;  %2730 = vst.msk [vmem:[#allocation4 + $0xc0] sm:$0xff] %vm2637_vm12, %v7820_v44 }
 0x433   : > { %2652 = vst.msk [vmem:[#allocation2 + $0xa9] sm:$0xff] %vm2637_vm12, %v2433_v54  ;;  %v2295_v61 = vadd.f32 %v7636_v23, %v2294_v40  ;;  %v2373_v59 = vmax.f32 %v2323_v36, 0.0  ;;  %2828 = vrot.lane.b32.xlu1 %v7810_v58, %s6195_s24  ;;  %v7817_v35 = vld [vmem:[#allocation2 + $0x98] sm:$0xff] }
 0x434   : > { %2719 = vst.msk [vmem:[#allocation4 + $0x68] sm:$0xff] %vm2637_vm12, %v7817_v35 }
 0x435   : > { %v2362_v52 = vmax.f32 %v2295_v61, 0.0  ;;  %v2409_v57 = vmin.f32 %v2373_v59, 6.0  ;;  %v2807_v38 = vpop.permute.xlu2 %2806  ;;  %v7867_v61 = vld [vmem:[#allocation2 + $0xd9] sm:$0xff] }
 0x436   : > { %2901 = vst.msk [vmem:[#allocation4 + $0x10] sm:$0xff] %vm2898_vm14, %v2807_v38 }
 0x437   : > { %v2398_v28 = vmin.f32 %v2362_v52, 6.0  ;;  %v2445_v33 = vmul.f32 0.16666667, %v2409_v57 }
 0x438   : > { %v2324_v37 = vpop.f32.mrf.mxu2  ;;  %v7838_v10 = vld [vmem:[#allocation2 + $0x128] sm:$0xff] }
 0x439   : > { %v2434_v27 = vmul.f32 0.16666667, %v2398_v28  ;;  %2664 = vst.msk [vmem:[#allocation2 + $0x139] sm:$0xff] %vm2637_vm12, %v2445_v33  ;;  %v2325_v5 = vadd.f32 %v7636_v23, %v2324_v37 }
 0x43a   : > { %v2297_v29 = vpop.f32.mrf.mxu0  ;;  %v7829_v1 = vld [vmem:[#allocation2 + $0xa9] sm:$0xff]  ;;  %2731 = vst.msk [vmem:[#allocation4 + $0xc8] sm:$0xff] %vm2637_vm12, %v7838_v10 }
 0x43b   : > { %v7832_v3 = vld [vmem:[#allocation2 + $0xa8] sm:$0xff]  ;;  %2653 = vst.msk [vmem:[#allocation2 + $0xb1] sm:$0xff] %vm2637_vm12, %v2434_v27  ;;  %v2298_v11 = vadd.f32 %v7636_v23, %v2297_v29  ;;  %v2374_v6 = vmax.f32 %v2325_v5, 0.0  ;;  %2830 = vrot.lane.b32.xlu2 %v7829_v1, %s6195_s24  ;;  %v7887_v5 = vld [vmem:[#allocation2 + $0xf9] sm:$0xff] }
 0x43c   : > { %2720 = vst.msk [vmem:[#allocation4 + $0x70] sm:$0xff] %vm2637_vm12, %v7832_v3  ;;  %v7885_v27 = vld [vmem:[#allocation2 + $0xe1] sm:$0xff] }
 0x43d   : > { %v2363_v14 = vmax.f32 %v2298_v11, 0.0  ;;  %v2410_v13 = vmin.f32 %v2374_v6, 6.0 }
 0x43f   : > { %v2399_v15 = vmin.f32 %v2363_v14, 6.0  ;;  %v2446_v16 = vmul.f32 0.16666667, %v2410_v13 }
 0x440   : > { %v2327_v18 = vpop.f32.mrf.mxu2  ;;  %v7845_v20 = vld [vmem:[#allocation2 + $0x138] sm:$0xff] }
 0x441   : > { %v2435_v41 = vmul.f32 0.16666667, %v2399_v15  ;;  %2665 = vst.msk [vmem:[#allocation2 + $0x141] sm:$0xff] %vm2637_vm12, %v2446_v16  ;;  %v2328_v19 = vadd.f32 %v7636_v23, %v2327_v18  ;;  %v7908_v18 = vld [vmem:[#allocation2 + $0x109] sm:$0xff] }
 0x442   : > { %v2299_v32 = vpop.f32.mrf.mxu0  ;;  %v7849_v26 = vld [vmem:[#allocation2 + $0xb1] sm:$0xff]  ;;  %2732 = vst.msk [vmem:[#allocation4 + $0xd0] sm:$0xff] %vm2637_vm12, %v7845_v20 }
 0x443   : > { %2654 = vst.msk [vmem:[#allocation2 + $0xc1] sm:$0xff] %vm2637_vm12, %v2435_v41  ;;  %v2300_v21 = vadd.f32 %v7636_v23, %v2299_v32  ;;  %v2375_v46 = vmax.f32 %v2328_v19, 0.0  ;;  %2832 = vrot.lane.b32.xlu0 %v7849_v26, %s6195_s24  ;;  %v7857_v50 = vld [vmem:[#allocation2 + $0xb0] sm:$0xff]  ;;  %v7910_v41 = vld [vmem:[#allocation2 + $0x121] sm:$0xff] }
 0x444   : > { %2721 = vst.msk [vmem:[#allocation4 + $0x78] sm:$0xff] %vm2637_vm12, %v7857_v50  ;;  %v7918_v32 = vld [vmem:[#allocation2 + $0xf1] sm:$0xff] }
 0x445   : > { %v2364_v55 = vmax.f32 %v2300_v21, 0.0  ;;  %v2411_v53 = vmin.f32 %v2375_v46, 6.0 }
 0x447   : > { %v2400_v39 = vmin.f32 %v2364_v55, 6.0  ;;  %v2447_v0 = vmul.f32 0.16666667, %v2411_v53  ;;  %v2145_v55 = vld [vmem:[#allocation3 + $0x100] sm:$0xff]  ;;  %v2146_v53 = vld [vmem:[#allocation3 + $0x108] sm:$0xff] }
 0x448   : > { %v2329_v62 = vpop.f32.mrf.mxu2  ;;  %v7863_v2 = vld [vmem:[#allocation2 + $0x140] sm:$0xff] }
 0x449   : > { %v2436_v54 = vmul.f32 0.16666667, %v2400_v39  ;;  %2666 = vst.msk [vmem:[#allocation2 + $0x151] sm:$0xff] %vm2637_vm12, %v2447_v0  ;;  %v2330_v36 = vadd.f32 %v7636_v23, %v2329_v62  ;;  %v2165_v39 = vpack.c.bf16 %v2146_v53, %v2145_v55  ;;  %v7970_v55 = vld [vmem:[#allocation2 + $0x32] sm:$0xff]  ;;  %v7972_v53 = vld [vmem:[#allocation2 + $0x1a] sm:$0xff] }
 0x44a   : > { %v7865_v40 = vld [vmem:[#allocation2 + $0xc1] sm:$0xff]  ;;  %2733 = vst.msk [vmem:[#allocation4 + $0xd8] sm:$0xff] %vm2637_vm12, %v7863_v2 }
 0x44b   : > { %v7869_v59 = vld [vmem:[#allocation2 + $0xc0] sm:$0xff]  ;;  %2655 = vst.msk [vmem:[#allocation2 + $0xc9] sm:$0xff] %vm2637_vm12, %v2436_v54  ;;  %v2376_v51 = vmax.f32 %v2330_v36, 0.0  ;;  %2834 = vrot.lane.b32.xlu1 %v7865_v40, %s6195_s24  ;;  %2838 = vrot.lane.b32.xlu0 %v7867_v61, %s6195_s24  ;;  %v7927_v54 = vld [vmem:[#allocation2 + $0x129] sm:$0xff] }
 0x44c   : > { %2722 = vst.msk [vmem:[#allocation4 + $0x80] sm:$0xff] %vm2637_vm12, %v7869_v59  ;;  %5801 = vmatmul.msk.bf16.gmra.mxu2 %vm2186_vm11, %v2165_v39  ;;  %v7929_v36 = vld [vmem:[#allocation2 + $0x141] sm:$0xff] }
 0x44d   : > { %v2412_v52 = vmin.f32 %v2376_v51, 6.0  ;;  %v2813_v57 = vpop.permute.xlu2 %2812  ;;  %v7937_v51 = vld [vmem:[#allocation2 + $0x111] sm:$0xff] }
 0x44e   : > { %2904 = vst.msk [vmem:[#allocation4 + $0x28] sm:$0xff] %vm2898_vm14, %v2813_v57 }
 0x44f   : > { %v2448_v38 = vmul.f32 0.16666667, %v2412_v52 }
 0x450   : > { %v2332_v28 = vpop.f32.mrf.mxu2  ;;  %v7881_v33 = vld [vmem:[#allocation2 + $0x150] sm:$0xff] }
 0x451   : > { %2667 = vst.msk [vmem:[#allocation2 + $0x159] sm:$0xff] %vm2637_vm12, %v2448_v38  ;;  %v2333_v37 = vadd.f32 %v7636_v23, %v2332_v28  ;;  %v7946_v28 = vld [vmem:[#allocation2 + $0x151] sm:$0xff] }
 0x452   : > { %v7889_v31 = vld [vmem:[#allocation2 + $0xc9] sm:$0xff]  ;;  %2734 = vst.msk [vmem:[#allocation4 + $0xe0] sm:$0xff] %vm2637_vm12, %v7881_v33 }
 0x453   : > { %v2377_v29 = vmax.f32 %v2333_v37, 0.0  ;;  %2840 = vrot.lane.b32.xlu1 %v7885_v27, %s6195_s24  ;;  %2844 = vrot.lane.b32.xlu0 %v7887_v5, %s6195_s24  ;;  %v7897_v11 = vld [vmem:[#allocation2 + $0xc8] sm:$0xff]  ;;  %v7954_v37 = vld [vmem:[#allocation2 + $0x139] sm:$0xff] }
 0x454   : > { %2836 = vrot.lane.b32.xlu2 %v7889_v31, %s6195_s24  ;;  %2723 = vst.msk [vmem:[#allocation4 + $0x88] sm:$0xff] %vm2637_vm12, %v7897_v11 }
 0x455   : > { %v2413_v6 = vmin.f32 %v2377_v29, 6.0  ;;  %v2809_v7 = vpop.permute.xlu0 %2808 }
 0x456   : > { %2902 = vst.msk [vmem:[#allocation4 + $0x18] sm:$0xff] %vm2898_vm14, %v2809_v7  ;;  %v2148_v7 = vld [vmem:[#allocation3 + $0x118] sm:$0xff] }
 0x457   : > { %v2449_v14 = vmul.f32 0.16666667, %v2413_v6  ;;  %v2147_v6 = vld [vmem:[#allocation3 + $0x110] sm:$0xff] }
 0x458   : > { %v2334_v13 = vpop.f32.mrf.mxu2  ;;  %v7906_v16 = vld [vmem:[#allocation2 + $0x158] sm:$0xff] }
 0x459   : > { %2668 = vst.msk [vmem:[#allocation2 + $0x169] sm:$0xff] %vm2637_vm12, %v2449_v14  ;;  %v2335_v15 = vadd.f32 %v7636_v23, %v2334_v13  ;;  %v2166_v14 = vpack.c.bf16 %v2148_v7, %v2147_v6  ;;  %v2932_v13 = vld [vmem:[#allocation2 + $0xa] sm:$0xff]  ;;  %v7993_v7 = vld [vmem:[#allocation2 + $0x7a] sm:$0xff] }
 0x45a   : > { %2735 = vst.msk [vmem:[#allocation4 + $0xe8] sm:$0xff] %vm2637_vm12, %v7906_v16 }
 0x45b   : > { %v2378_v19 = vmax.f32 %v2335_v15, 0.0  ;;  %2846 = vrot.lane.b32.xlu1 %v7908_v18, %s6195_s24  ;;  %2850 = vrot.lane.b32.xlu0 %v7910_v41, %s6195_s24  ;;  %10149 = vst [vmem:[#allocation12_spill] sm:$0xff] %v7993_v7 }
 0x45c   : > { %2842 = vrot.lane.b32.xlu2 %v7918_v32, %s6195_s24  ;;  %5802 = vmatmul.msk.bf16.gmra.mxu2 %vm2186_vm11, %v2166_v14  ;;  %v7995_v14 = vld [vmem:[#allocation2 + $0x62] sm:$0xff] }
 0x45d   : > { %v2414_v21 = vmin.f32 %v2378_v19, 6.0  ;;  %v2811_v46 = vpop.permute.xlu1 %2810  ;;  %v7965_v19 = vld [vmem:[#allocation2 + $0x159] sm:$0xff]  ;;  %10150 = vst [vmem:[#allocation11_spill] sm:$0xff] %v7995_v14 }
 0x45e   : > { %2903 = vst.msk [vmem:[#allocation4 + $0x20] sm:$0xff] %vm2898_vm14, %v2811_v46  ;;  %v2931_v46 = vld [vmem:[#allocation2 + $0x2] sm:$0xff] }
 0x45f   : > { %v2450_v0 = vmul.f32 0.16666667, %v2414_v21 }
 0x460   : > { %v7924_v62 = vld [vmem:[#allocation2 + $0x168] sm:$0xff] }
 0x461   : > { %2669 = vst.msk [vmem:[#allocation2 + $0x171] sm:$0xff] %vm2637_vm12, %v2450_v0  ;;  %v7942_v57 = vld [vmem:[#allocation2 + $0x169] sm:$0xff]  ;;  %v7980_v0 = vld [vmem:[#allocation2 + $0x52] sm:$0xff] }
 0x462   : > { %2736 = vst.msk [vmem:[#allocation4 + $0xf0] sm:$0xff] %vm2637_vm12, %v7924_v62 }
 0x463   : > { %2852 = vrot.lane.b32.xlu1 %v7927_v54, %s6195_s24  ;;  %2856 = vrot.lane.b32.xlu0 %v7929_v36, %s6195_s24  ;;  %10147 = vst [vmem:[#allocation10_spill] sm:$0xff] %v7980_v0 }
 0x464   : > { %2848 = vrot.lane.b32.xlu2 %v7937_v51, %s6195_s24 }
 0x465   : > { %v2819_v52 = vpop.permute.xlu2 %2818 }
 0x466   : > { %2907 = vst.msk [vmem:[#allocation4 + $0x40] sm:$0xff] %vm2898_vm14, %v2819_v52  ;;  %v7982_v52 = vld [vmem:[#allocation2 + $0x3a] sm:$0xff] }
 0x467   : > { %10148 = vst [vmem:[#allocation9_spill] sm:$0xff] %v7982_v52 }
 0x468   : > { %v7944_v38 = vld [vmem:[#allocation2 + $0x170] sm:$0xff] }
 0x469   : > { %2737 = vst.msk [vmem:[#allocation4 + $0xf8] sm:$0xff] %vm2637_vm12, %v7944_v38  ;;  %v7960_v15 = vld [vmem:[#allocation2 + $0x171] sm:$0xff] }
 0x46b   : > { %2858 = vrot.lane.b32.xlu1 %v7946_v28, %s6195_s24  ;;  %2862 = vrot.lane.b32.xlu0 %v7942_v57, %s6195_s24 }
 0x46c   : > { %2854 = vrot.lane.b32.xlu2 %v7954_v37, %s6195_s24 }
 0x46d   : > { %v2815_v29 = vpop.permute.xlu0 %2814 }
 0x46e   : > { %2905 = vst.msk [vmem:[#allocation4 + $0x30] sm:$0xff] %vm2898_vm14, %v2815_v29  ;;  %v7988_v29 = vld [vmem:[#allocation2 + $0x22] sm:$0xff] }
 0x473   : > { %2864 = vrot.lane.b32.xlu1 %v7960_v15, %s6195_s24  ;;  %2997 = vrot.lane.b32.xlu0 %v2932_v13, %s6199_s11  ;;  %v8001_v13 = vld [vmem:[#allocation2 + $0x4a] sm:$0xff] }
 0x474   : > { %2860 = vrot.lane.b32.xlu2 %v7965_v19, %s6195_s24  ;;  %s6203_s24 = smov 48  }
 0x475   : > { %v2817_v21 = vpop.permute.xlu1 %2816 }
 0x476   : > { %2906 = vst.msk [vmem:[#allocation4 + $0x38] sm:$0xff] %vm2898_vm14, %v2817_v21 }
 0x47b   : > { %3003 = vrot.lane.b32.xlu0 %v7970_v55, %s6199_s11  ;;  %2999 = vrot.lane.b32.xlu1 %v7972_v53, %s6199_s11 }
 0x47c   : > { %2995 = vrot.lane.b32.xlu2 %v2931_v46, %s6199_s11  ;;  %v8006_v46 = vld [vmem:[#allocation2 + $0x9a] sm:$0xff] }
 0x47d   : > { %v2825_v39 = vpop.permute.xlu2 %2824  ;;  %10151 = vst [vmem:[#allocation14_spill] sm:$0xff] %v8006_v46 }
 0x47e   : > { %2910 = vst.msk [vmem:[#allocation4 + $0x58] sm:$0xff] %vm2898_vm14, %v2825_v39  ;;  %v8008_v39 = vld [vmem:[#allocation2 + $0x82] sm:$0xff] }
 0x47f   : > { %10152 = vst [vmem:[#allocation13_spill] sm:$0xff] %v8008_v39 }
 0x483   : > { %3009 = vrot.lane.b32.xlu0 %v7980_v0, %s6199_s11  ;;  %3005 = vrot.lane.b32.xlu1 %v7982_v52, %s6199_s11  ;;  %v8032_v52 = vld [vmem:[#allocation2 + $0xe2] sm:$0xff]  ;;  %v8074_v0 = vld [vmem:[#allocation2 + $0x13a] sm:$0xff] }
 0x484   : > { %3001 = vrot.lane.b32.xlu2 %v7988_v29, %s6199_s11  ;;  %10156 = vst [vmem:[#allocation19_spill] sm:$0xff] %v8032_v52 }
 0x485   : > { %v2821_v6 = vpop.permute.xlu0 %2820  ;;  %10166 = vst [vmem:[#allocation29_spill] sm:$0xff] %v8074_v0 }
 0x486   : > { %2908 = vst.msk [vmem:[#allocation4 + $0x48] sm:$0xff] %vm2898_vm14, %v2821_v6  ;;  %v8014_v6 = vld [vmem:[#allocation2 + $0x6a] sm:$0xff] }
 0x48b   : > { %3015 = vrot.lane.b32.xlu0 %v7993_v7, %s6199_s11  ;;  %3011 = vrot.lane.b32.xlu1 %v7995_v14, %s6199_s11  ;;  %v8019_v7 = vld [vmem:[#allocation2 + $0xc2] sm:$0xff] }
 0x48c   : > { %3007 = vrot.lane.b32.xlu2 %v8001_v13, %s6199_s11  ;;  %10153 = vst [vmem:[#allocation15_spill] sm:$0xff] %v8019_v7 }
 0x48d   : > { %v2823_v21 = vpop.permute.xlu1 %2822 }
 0x48e   : > { %2909 = vst.msk [vmem:[#allocation4 + $0x50] sm:$0xff] %vm2898_vm14, %v2823_v21  ;;  %v8021_v21 = vld [vmem:[#allocation2 + $0xaa] sm:$0xff] }
 0x48f   : > { %10154 = vst [vmem:[#allocation17_spill] sm:$0xff] %v8021_v21 }
 0x493   : > { %3021 = vrot.lane.b32.xlu0 %v8006_v46, %s6199_s11  ;;  %3017 = vrot.lane.b32.xlu1 %v8008_v39, %s6199_s11  ;;  %v8027_v46 = vld [vmem:[#allocation2 + $0x92] sm:$0xff] }
 0x494   : > { %3013 = vrot.lane.b32.xlu2 %v8014_v6, %s6199_s11  ;;  %10155 = vst [vmem:[#allocation16_spill] sm:$0xff] %v8027_v46 }
 0x495   : > { %v2831_v14 = vpop.permute.xlu2 %2830 }
 0x496   : > { %2913 = vst.msk [vmem:[#allocation4 + $0x70] sm:$0xff] %vm2898_vm14, %v2831_v14  ;;  %v8034_v14 = vld [vmem:[#allocation2 + $0xca] sm:$0xff] }
 0x497   : > { %10157 = vst [vmem:[#allocation18_spill] sm:$0xff] %v8034_v14 }
 0x49b   : > { %3027 = vrot.lane.b32.xlu0 %v8019_v7, %s6199_s11  ;;  %3023 = vrot.lane.b32.xlu1 %v8021_v21, %s6199_s11  ;;  %v8040_v7 = vld [vmem:[#allocation2 + $0xb2] sm:$0xff] }
 0x49c   : > { %3019 = vrot.lane.b32.xlu2 %v8027_v46, %s6199_s11  ;;  %10158 = vst [vmem:[#allocation21_spill] sm:$0xff] %v8040_v7  ;;  %v8045_v46 = vld [vmem:[#allocation2 + $0x10a] sm:$0xff] }
 0x49d   : > { %v2827_v39 = vpop.permute.xlu0 %2826  ;;  %10159 = vst [vmem:[#allocation20_spill] sm:$0xff] %v8045_v46 }
 0x49e   : > { %2911 = vst.msk [vmem:[#allocation4 + $0x60] sm:$0xff] %vm2898_vm14, %v2827_v39  ;;  %v8047_v39 = vld [vmem:[#allocation2 + $0xf2] sm:$0xff] }
 0x49f   : > { %10160 = vst [vmem:[#allocation23_spill] sm:$0xff] %v8047_v39 }
 0x4a3   : > { %3033 = vrot.lane.b32.xlu0 %v8032_v52, %s6199_s11  ;;  %3029 = vrot.lane.b32.xlu1 %v8034_v14, %s6199_s11  ;;  %v8053_v52 = vld [vmem:[#allocation2 + $0xda] sm:$0xff] }
 0x4a4   : > { %3025 = vrot.lane.b32.xlu2 %v8040_v7, %s6199_s11  ;;  %10161 = vst [vmem:[#allocation22_spill] sm:$0xff] %v8053_v52  ;;  %v8058_v7 = vld [vmem:[#allocation2 + $0x12a] sm:$0xff] }
 0x4a5   : > { %v2829_v21 = vpop.permute.xlu1 %2828  ;;  %10162 = vst [vmem:[#allocation25_spill] sm:$0xff] %v8058_v7 }
 0x4a6   : > { %2912 = vst.msk [vmem:[#allocation4 + $0x68] sm:$0xff] %vm2898_vm14, %v2829_v21  ;;  %v8060_v21 = vld [vmem:[#allocation2 + $0x112] sm:$0xff] }
 0x4a7   : > { %10163 = vst [vmem:[#allocation24_spill] sm:$0xff] %v8060_v21 }
 0x4ab   : > { %3039 = vrot.lane.b32.xlu0 %v8045_v46, %s6199_s11  ;;  %3035 = vrot.lane.b32.xlu1 %v8047_v39, %s6199_s11  ;;  %v8066_v46 = vld [vmem:[#allocation2 + $0xfa] sm:$0xff] }
 0x4ac   : > { %3031 = vrot.lane.b32.xlu2 %v8053_v52, %s6199_s11  ;;  %10164 = vst [vmem:[#allocation27_spill] sm:$0xff] %v8066_v46 }
 0x4ae   : > { %v2837_v14 = vpop.permute.xlu2 %2836 }
 0x4af   : > { %2916 = vst.msk [vmem:[#allocation4 + $0x88] sm:$0xff] %vm2898_vm14, %v2837_v14  ;;  %v8072_v14 = vld [vmem:[#allocation2 + $0x152] sm:$0xff] }
 0x4b0   : > { %10165 = vst [vmem:[#allocation26_spill] sm:$0xff] %v8072_v14 }
 0x4b3   : > { %3045 = vrot.lane.b32.xlu0 %v8058_v7, %s6199_s11  ;;  %3041 = vrot.lane.b32.xlu1 %v8060_v21, %s6199_s11  ;;  %v8080_v21 = vld [vmem:[#allocation2 + $0x122] sm:$0xff] }
 0x4b4   : > { %3037 = vrot.lane.b32.xlu2 %v8066_v46, %s6199_s11  ;;  %10167 = vst [vmem:[#allocation28_spill] sm:$0xff] %v8080_v21  ;;  %v8087_v46 = vld [vmem:[#allocation2 + $0x172] sm:$0xff] }
 0x4b5   : > { %v2833_v39 = vpop.permute.xlu0 %2832  ;;  %10168 = vst [vmem:[#allocation31_spill] sm:$0xff] %v8087_v46 }
 0x4b6   : > { %2914 = vst.msk [vmem:[#allocation4 + $0x78] sm:$0xff] %vm2898_vm14, %v2833_v39  ;;  %v2843_v52 = vpop.permute.xlu2 %2842 }
 0x4b7   : > { %2919 = vst.msk [vmem:[#allocation4 + $0xa0] sm:$0xff] %vm2898_vm14, %v2843_v52 }
 0x4bb   : > { %3051 = vrot.lane.b32.xlu0 %v8072_v14, %s6199_s11  ;;  %3047 = vrot.lane.b32.xlu1 %v8074_v0, %s6199_s11  ;;  %v8089_v14 = vld [vmem:[#allocation2 + $0x15a] sm:$0xff]  ;;  %v8095_v0 = vld [vmem:[#allocation2 + $0x142] sm:$0xff] }
 0x4bc   : > { %3043 = vrot.lane.b32.xlu2 %v8080_v21, %s6199_s11  ;;  %10169 = vst [vmem:[#allocation30_spill] sm:$0xff] %v8089_v14 }
 0x4bd   : > { %v2835_v7 = vpop.permute.xlu1 %2834  ;;  %v2839_v39 = vpop.permute.xlu0 %2838 }
 0x4be   : > { %2915 = vst.msk [vmem:[#allocation4 + $0x80] sm:$0xff] %vm2898_vm14, %v2835_v7  ;;  %v2849_v52 = vpop.permute.xlu2 %2848 }
 0x4bf   : > { %2917 = vst.msk [vmem:[#allocation4 + $0x90] sm:$0xff] %vm2898_vm14, %v2839_v39 }
 0x4c0   : > { %2922 = vst.msk [vmem:[#allocation4 + $0xb8] sm:$0xff] %vm2898_vm14, %v2849_v52  ;;  %v8106_v52 = vld [vmem:[#allocation2 + $0x16a] sm:$0xff] }
 0x4c3   : > { %3057 = vrot.lane.b32.xlu0 %v8087_v46, %s6199_s11  ;;  %3053 = vrot.lane.b32.xlu1 %v8089_v14, %s6199_s11 }
 0x4c4   : > { %3049 = vrot.lane.b32.xlu2 %v8095_v0, %s6199_s11 }
 0x4c5   : > { %v2841_v7 = vpop.permute.xlu1 %2840  ;;  %v2845_v21 = vpop.permute.xlu0 %2844 }
 0x4c6   : > { %2918 = vst.msk [vmem:[#allocation4 + $0x98] sm:$0xff] %vm2898_vm14, %v2841_v7  ;;  %v2855_v39 = vpop.permute.xlu2 %2854 }
 0x4c7   : > { %2920 = vst.msk [vmem:[#allocation4 + $0xa8] sm:$0xff] %vm2898_vm14, %v2845_v21 }
 0x4c8   : > { %2925 = vst.msk [vmem:[#allocation4 + $0xd0] sm:$0xff] %vm2898_vm14, %v2855_v39 }
 0x4cb   : > { %3193 = vrot.lane.b32.xlu0 %v7696_v60, %s6202_s23  ;;  %3189 = vrot.lane.b32.xlu1 %v7678_v48, %s6202_s23 }
 0x4cc   : > { %3055 = vrot.lane.b32.xlu2 %v8106_v52, %s6199_s11  ;;  %s6207_s11 = smov 96  }
 0x4cd   : > { %v2847_v14 = vpop.permute.xlu1 %2846  ;;  %v2851_v46 = vpop.permute.xlu0 %2850 }
 0x4ce   : > { %2921 = vst.msk [vmem:[#allocation4 + $0xb0] sm:$0xff] %vm2898_vm14, %v2847_v14  ;;  %v2861_v7 = vpop.permute.xlu2 %2860 }
 0x4cf   : > { %2923 = vst.msk [vmem:[#allocation4 + $0xc0] sm:$0xff] %vm2898_vm14, %v2851_v46 }
 0x4d0   : > { %2928 = vst.msk [vmem:[#allocation4 + $0xe8] sm:$0xff] %vm2898_vm14, %v2861_v7 }
 0x4d3   : > { %3199 = vrot.lane.b32.xlu0 %v7724_v12, %s6202_s23  ;;  %3195 = vrot.lane.b32.xlu1 %v7704_v49, %s6202_s23 }
 0x4d4   : > { %3191 = vrot.lane.b32.xlu2 %v7689_v30, %s6202_s23 }
 0x4d5   : > { %v2853_v48 = vpop.permute.xlu1 %2852  ;;  %v2857_v60 = vpop.permute.xlu0 %2856 }
 0x4d6   : > { %2924 = vst.msk [vmem:[#allocation4 + $0xc8] sm:$0xff] %vm2898_vm14, %v2853_v48  ;;  %v2996_v21 = vpop.permute.xlu2 %2995 }
 0x4d7   : > { %2926 = vst.msk [vmem:[#allocation4 + $0xd8] sm:$0xff] %vm2898_vm14, %v2857_v60 }
 0x4d8   : > { %3092 = vst.msk [vmem:[#allocation4] sm:$0xff] %vm3091_vm15, %v2996_v21 }
 0x4db   : > { %3205 = vrot.lane.b32.xlu0 %v7765_v56, %s6202_s23  ;;  %3201 = vrot.lane.b32.xlu1 %v7738_v47, %s6202_s23  ;;  %v2337_v56 = vpop.f32.mrf.mxu2 }
 0x4dc   : > { %3197 = vrot.lane.b32.xlu2 %v7713_v4, %s6202_s23  ;;  %v2338_v4 = vadd.f32 %v7636_v23, %v2337_v56 }
 0x4dd   : > { %v2859_v30 = vpop.permute.xlu1 %2858  ;;  %v2863_v49 = vpop.permute.xlu0 %2862 }
 0x4de   : > { %2927 = vst.msk [vmem:[#allocation4 + $0xe0] sm:$0xff] %vm2898_vm14, %v2859_v30  ;;  %v3002_v12 = vpop.permute.xlu2 %3001  ;;  %v2379_v39 = vmax.f32 %v2338_v4, 0.0 }
 0x4df   : > { %2929 = vst.msk [vmem:[#allocation4 + $0xf0] sm:$0xff] %vm2898_vm14, %v2863_v49 }
 0x4e0   : > { %3095 = vst.msk [vmem:[#allocation4 + $0x18] sm:$0xff] %vm3091_vm15, %v3002_v12 }
 0x4e3   : > { %3211 = vrot.lane.b32.xlu0 %v7817_v35, %s6202_s23  ;;  %3207 = vrot.lane.b32.xlu1 %v7780_v17, %s6202_s23  ;;  %v2415_v35 = vmin.f32 %v2379_v39, 6.0 }
 0x4e4   : > { %3203 = vrot.lane.b32.xlu2 %v7752_v25, %s6202_s23  ;;  %v2339_v25 = vpop.f32.mrf.mxu2 }
 0x4e5   : > { %v2865_v47 = vpop.permute.xlu1 %2864  ;;  %v2998_v46 = vpop.permute.xlu0 %2997  ;;  %v2451_v7 = vmul.f32 0.16666667, %v2415_v35  ;;  %v2340_v17 = vadd.f32 %v7636_v23, %v2339_v25  ;;  %v3318_v35 = vld [vmem:[#allocation2 + $0x19] sm:$0xff]  ;;  %v3319_v25 = vld [vmem:[#allocation2 + $0x21] sm:$0xff] }
 0x4e6   : > { %2930 = vst.msk [vmem:[#allocation4 + $0xf8] sm:$0xff] %vm2898_vm14, %v2865_v47  ;;  %v3008_v14 = vpop.permute.xlu2 %3007 }
 0x4e7   : > { %3093 = vst.msk [vmem:[#allocation4 + $0x8] sm:$0xff] %vm3091_vm15, %v2998_v46  ;;  %v2380_v30 = vmax.f32 %v2340_v17, 0.0 }
 0x4e8   : > { %3098 = vst.msk [vmem:[#allocation4 + $0x30] sm:$0xff] %vm3091_vm15, %v3008_v14 }
 0x4e9   : > { %2670 = vst.msk [vmem:[#allocation2 + $0x181] sm:$0xff] %vm2637_vm12, %v2451_v7  ;;  %v8205_v7 = vld [vmem:[#allocation2 + $0x39] sm:$0xff] }
 0x4eb   : > { %3217 = vrot.lane.b32.xlu0 %v7869_v59, %s6202_s23  ;;  %3213 = vrot.lane.b32.xlu1 %v7832_v3, %s6202_s23  ;;  %v2416_v59 = vmin.f32 %v2380_v30, 6.0  ;;  %v8216_v30 = vld [vmem:[#allocation2 + $0x49] sm:$0xff] }
 0x4ec   : > { %3209 = vrot.lane.b32.xlu2 %v7797_v63, %s6202_s23  ;;  %v2342_v23 = vpop.f32.mrf.mxu2 }
 0x4ed   : > { %v3004_v48 = vpop.permute.xlu0 %3003  ;;  %v3000_v60 = vpop.permute.xlu1 %2999  ;;  %v2452_v3 = vmul.f32 0.16666667, %v2416_v59  ;;  %v8222_v59 = vld [vmem:[#allocation2 + $0x31] sm:$0xff] }
 0x4ee   : > { %3096 = vst.msk [vmem:[#allocation4 + $0x20] sm:$0xff] %vm3091_vm15, %v3004_v48  ;;  %v3014_v21 = vpop.permute.xlu2 %3013 }
 0x4ef   : > { %3094 = vst.msk [vmem:[#allocation4 + $0x10] sm:$0xff] %vm3091_vm15, %v3000_v60 }
 0x4f0   : > { %3101 = vst.msk [vmem:[#allocation4 + $0x48] sm:$0xff] %vm3091_vm15, %v3014_v21  ;;  %v3155_v39 = vld [vmem:[#allocation2 + $0x180] sm:$0xff] }
 0x4f1   : > { %2671 = vst.msk [vmem:[#allocation2 + $0x189] sm:$0xff] %vm2637_vm12, %v2452_v3  ;;  %v8214_v21 = vld [vmem:[#allocation2 + $0x61] sm:$0xff] }
 0x4f3   : > { %3223 = vrot.lane.b32.xlu0 %v7736_v24, %s6202_s23  ;;  %3219 = vrot.lane.b32.xlu1 %v7897_v11, %s6202_s23 }
 0x4f4   : > { %3215 = vrot.lane.b32.xlu2 %v7857_v50, %s6202_s23  ;;  %v2344_v24 = vpop.f32.mrf.mxu2 }
 0x4f5   : > { %v3010_v63 = vpop.permute.xlu0 %3009  ;;  %v3006_v49 = vpop.permute.xlu1 %3005 }
 0x4f6   : > { %3099 = vst.msk [vmem:[#allocation4 + $0x38] sm:$0xff] %vm3091_vm15, %v3010_v63  ;;  %v3020_v12 = vpop.permute.xlu2 %3019 }
 0x4f7   : > { %3097 = vst.msk [vmem:[#allocation4 + $0x28] sm:$0xff] %vm3091_vm15, %v3006_v49  ;;  %v8229_v49 = vld [vmem:[#allocation2 + $0x69] sm:$0xff] }
 0x4f8   : > { %3104 = vst.msk [vmem:[#allocation4 + $0x60] sm:$0xff] %vm3091_vm15, %v3020_v12  ;;  %v3156_v17 = vld [vmem:[#allocation2 + $0x188] sm:$0xff]  ;;  %v8235_v12 = vld [vmem:[#allocation2 + $0x51] sm:$0xff] }
 0x4fb   : > { %3229 = vrot.lane.b32.xlu0 %v7774_v8, %s6202_s23  ;;  %3225 = vrot.lane.b32.xlu1 %v7748_v42, %s6202_s23 }
 0x4fc   : > { %3221 = vrot.lane.b32.xlu2 %v7720_v45, %s6202_s23 }
 0x4fd   : > { %v3016_v50 = vpop.permute.xlu0 %3015  ;;  %v3012_v11 = vpop.permute.xlu1 %3011 }
 0x4fe   : > { %3102 = vst.msk [vmem:[#allocation4 + $0x50] sm:$0xff] %vm3091_vm15, %v3016_v50  ;;  %v3026_v56 = vpop.permute.xlu2 %3025 }
 0x4ff   : > { %3100 = vst.msk [vmem:[#allocation4 + $0x40] sm:$0xff] %vm3091_vm15, %v3012_v11 }
 0x500   : > { %3107 = vst.msk [vmem:[#allocation4 + $0x78] sm:$0xff] %vm3091_vm15, %v3026_v56 }
 0x503   : > { %3235 = vrot.lane.b32.xlu0 %v7838_v10, %s6202_s23  ;;  %3231 = vrot.lane.b32.xlu1 %v7793_v22, %s6202_s23 }
 0x504   : > { %3227 = vrot.lane.b32.xlu2 %v7763_v43, %s6202_s23 }
 0x505   : > { %v3022_v45 = vpop.permute.xlu0 %3021  ;;  %v3018_v4 = vpop.permute.xlu1 %3017 }
 0x506   : > { %3105 = vst.msk [vmem:[#allocation4 + $0x68] sm:$0xff] %vm3091_vm15, %v3022_v45  ;;  %v3032_v47 = vpop.permute.xlu2 %3031 }
 0x507   : > { %3103 = vst.msk [vmem:[#allocation4 + $0x58] sm:$0xff] %vm3091_vm15, %v3018_v4 }
 0x508   : > { %3110 = vst.msk [vmem:[#allocation4 + $0x90] sm:$0xff] %vm3091_vm15, %v3032_v47 }
 0x50b   : > { %3241 = vrot.lane.b32.xlu0 %v7881_v33, %s6202_s23  ;;  %3237 = vrot.lane.b32.xlu1 %v7845_v20, %s6202_s23 }
 0x50c   : > { %3233 = vrot.lane.b32.xlu2 %v7820_v44, %s6202_s23 }
 0x50d   : > { %v3028_v22 = vpop.permute.xlu0 %3027  ;;  %v3024_v46 = vpop.permute.xlu1 %3023 }
 0x50e   : > { %3108 = vst.msk [vmem:[#allocation4 + $0x80] sm:$0xff] %vm3091_vm15, %v3028_v22  ;;  %v3038_v14 = vpop.permute.xlu2 %3037  ;;  %v8298_v22 = vld [vmem:[#allocation2 + $0x181] sm:$0xff] }
 0x50f   : > { %3106 = vst.msk [vmem:[#allocation4 + $0x70] sm:$0xff] %vm3091_vm15, %v3024_v46  ;;  %v8309_v46 = vld [vmem:[#allocation2 + $0x189] sm:$0xff] }
 0x510   : > { %3113 = vst.msk [vmem:[#allocation4 + $0xa8] sm:$0xff] %vm3091_vm15, %v3038_v14 }
 0x513   : > { %3247 = vrot.lane.b32.xlu0 %v7944_v38, %s6202_s23  ;;  %3243 = vrot.lane.b32.xlu1 %v7906_v16, %s6202_s23 }
 0x514   : > { %3239 = vrot.lane.b32.xlu2 %v7863_v2, %s6202_s23 }
 0x515   : > { %v3034_v20 = vpop.permute.xlu0 %3033  ;;  %v3030_v44 = vpop.permute.xlu1 %3029 }
 0x516   : > { %3111 = vst.msk [vmem:[#allocation4 + $0x98] sm:$0xff] %vm3091_vm15, %v3034_v20  ;;  %v3044_v33 = vpop.permute.xlu2 %3043 }
 0x517   : > { %3109 = vst.msk [vmem:[#allocation4 + $0x88] sm:$0xff] %vm3091_vm15, %v3030_v44 }
 0x518   : > { %3116 = vst.msk [vmem:[#allocation4 + $0xc0] sm:$0xff] %vm3091_vm15, %v3044_v33 }
 0x51b   : > { %3382 = vrot.lane.b32.xlu0 %v3318_v35, %s6203_s24  ;;  %3249 = vrot.lane.b32.xlu1 %v3155_v39, %s6202_s23  ;;  %v10172_v39 = vld [vmem:[#allocation16_spill] sm:$0xff]  ;;  %v10174_v35 = vld [vmem:[#allocation11_spill] sm:$0xff] }
 0x51c   : > { %3245 = vrot.lane.b32.xlu2 %v7924_v62, %s6202_s23 }
 0x51d   : > { %v3040_v2 = vpop.permute.xlu0 %3039  ;;  %v3036_v16 = vpop.permute.xlu1 %3035 }
 0x51e   : > { %3114 = vst.msk [vmem:[#allocation4 + $0xb0] sm:$0xff] %vm3091_vm15, %v3040_v2  ;;  %v3050_v38 = vpop.permute.xlu2 %3049 }
 0x51f   : > { %3112 = vst.msk [vmem:[#allocation4 + $0xa0] sm:$0xff] %vm3091_vm15, %v3036_v16 }
 0x520   : > { %3119 = vst.msk [vmem:[#allocation4 + $0xd8] sm:$0xff] %vm3091_vm15, %v3050_v38 }
 0x523   : > { %3388 = vrot.lane.b32.xlu0 %v8205_v7, %s6203_s24  ;;  %3384 = vrot.lane.b32.xlu1 %v3319_v25, %s6203_s24  ;;  %v10175_v25 = vld [vmem:[#allocation21_spill] sm:$0xff] }
 0x524   : > { %3251 = vrot.lane.b32.xlu2 %v3156_v17, %s6202_s23  ;;  %v10176_v17 = vld [vmem:[#allocation14_spill] sm:$0xff]  ;;  %s5559_s23 = sshll.u32 %s285_s20, 4 }
 0x525   : > { %v3046_v62 = vpop.permute.xlu0 %3045  ;;  %v3042_v48 = vpop.permute.xlu1 %3041  ;;  %s287_s13 = scalar_lea.vmem [#allocation6], %s5559_s23 }
 0x526   : > { %3117 = vst.msk [vmem:[#allocation4 + $0xc8] sm:$0xff] %vm3091_vm15, %v3046_v62  ;;  %v3056_v60 = vpop.permute.xlu2 %3055  ;;  %v10177_v62 = vld [vmem:[#allocation13_spill] sm:$0xff]  ;;  %s5468_s16 = sshll.u32 %s287_s13, 4  ;;  %s5469_s16 = int_to_ptr.vmem [resolvable:$true] %s5468_s16 }
 0x527   : > { %3115 = vst.msk [vmem:[#allocation4 + $0xb8] sm:$0xff] %vm3091_vm15, %v3042_v48 }
 0x528   : > { %3122 = vst.msk [vmem:[#allocation4 + $0xf0] sm:$0xff] %vm3091_vm15, %v3056_v60 }
 0x52b   : > { %3394 = vrot.lane.b32.xlu0 %v8214_v21, %s6203_s24  ;;  %3390 = vrot.lane.b32.xlu1 %v8216_v30, %s6203_s24 }
 0x52c   : > { %3386 = vrot.lane.b32.xlu2 %v8222_v59, %s6203_s24 }
 0x52d   : > { %v3052_v3 = vpop.permute.xlu0 %3051  ;;  %v3048_v23 = vpop.permute.xlu1 %3047 }
 0x52e   : > { %3120 = vst.msk [vmem:[#allocation4 + $0xe0] sm:$0xff] %vm3091_vm15, %v3052_v3  ;;  %v3192_v63 = vpop.permute.xlu2 %3191 }
 0x52f   : > { %3118 = vst.msk [vmem:[#allocation4 + $0xd0] sm:$0xff] %vm3091_vm15, %v3048_v23  ;;  %v10178_v23 = vld [vmem:[#allocation22_spill] sm:$0xff] }
 0x530   : > { %3287 = vst.msk [vmem:[#allocation4 + $0x8] sm:$0xff] %vm3285_vm0, %v3192_v63  ;;  %v10179_v63 = vld [vmem:[#allocation15_spill] sm:$0xff] }
 0x533   : > { %3400 = vrot.lane.b32.xlu0 %v7778_v9, %s6203_s24  ;;  %3396 = vrot.lane.b32.xlu1 %v8229_v49, %s6203_s24  ;;  %v8246_v9 = vld [vmem:[#allocation2 + $0x79] sm:$0xff] }
 0x534   : > { %3392 = vrot.lane.b32.xlu2 %v8235_v12, %s6203_s24 }
 0x535   : > { %v3058_v24 = vpop.permute.xlu0 %3057  ;;  %v3054_v50 = vpop.permute.xlu1 %3053 }
 0x536   : > { %3123 = vst.msk [vmem:[#allocation4 + $0xf8] sm:$0xff] %vm3091_vm15, %v3058_v24  ;;  %v3198_v11 = vpop.permute.xlu2 %3197  ;;  %v10180_v24 = vld [vmem:[#allocation17_spill] sm:$0xff] }
 0x537   : > { %3121 = vst.msk [vmem:[#allocation4 + $0xe8] sm:$0xff] %vm3091_vm15, %v3054_v50 }
 0x538   : > { %3290 = vst.msk [vmem:[#allocation4 + $0x20] sm:$0xff] %vm3285_vm0, %v3198_v11 }
 0x53b   : > { %3406 = vrot.lane.b32.xlu0 %v7829_v1, %s6203_s24  ;;  %3402 = vrot.lane.b32.xlu1 %v7795_v34, %s6203_s24 }
 0x53c   : > { %3398 = vrot.lane.b32.xlu2 %v8246_v9, %s6203_s24 }
 0x53d   : > { %v3194_v56 = vpop.permute.xlu0 %3193  ;;  %v3190_v45 = vpop.permute.xlu1 %3189 }
 0x53e   : > { %3288 = vst.msk [vmem:[#allocation4 + $0x10] sm:$0xff] %vm3285_vm0, %v3194_v56  ;;  %v3204_v4 = vpop.permute.xlu2 %3203 }
 0x53f   : > { %3286 = vst.msk [vmem:[#allocation4] sm:$0xff] %vm3285_vm0, %v3190_v45  ;;  %v10181_v45 = vld [vmem:[#allocation27_spill] sm:$0xff] }
 0x540   : > { %3293 = vst.msk [vmem:[#allocation4 + $0x38] sm:$0xff] %vm3285_vm0, %v3204_v4  ;;  %v10182_v4 = vld [vmem:[#allocation19_spill] sm:$0xff] }
 0x543   : > { %3412 = vrot.lane.b32.xlu0 %v7889_v31, %s6203_s24  ;;  %3408 = vrot.lane.b32.xlu1 %v7849_v26, %s6203_s24 }
 0x544   : > { %3404 = vrot.lane.b32.xlu2 %v7810_v58, %s6203_s24 }
 0x545   : > { %v3200_v34 = vpop.permute.xlu0 %3199  ;;  %v3196_v1 = vpop.permute.xlu1 %3195 }
 0x546   : > { %3291 = vst.msk [vmem:[#allocation4 + $0x28] sm:$0xff] %vm3285_vm0, %v3200_v34  ;;  %v3210_v47 = vpop.permute.xlu2 %3209  ;;  %v10183_v34 = vld [vmem:[#allocation18_spill] sm:$0xff] }
 0x547   : > { %3289 = vst.msk [vmem:[#allocation4 + $0x18] sm:$0xff] %vm3285_vm0, %v3196_v1 }
 0x548   : > { %3296 = vst.msk [vmem:[#allocation4 + $0x50] sm:$0xff] %vm3285_vm0, %v3210_v47 }
 0x54b   : > { %3418 = vrot.lane.b32.xlu0 %v7918_v32, %s6203_s24  ;;  %3414 = vrot.lane.b32.xlu1 %v7867_v61, %s6203_s24 }
 0x54c   : > { %3410 = vrot.lane.b32.xlu2 %v7865_v40, %s6203_s24 }
 0x54d   : > { %v3206_v26 = vpop.permute.xlu0 %3205  ;;  %v3202_v58 = vpop.permute.xlu1 %3201 }
 0x54e   : > { %3294 = vst.msk [vmem:[#allocation4 + $0x40] sm:$0xff] %vm3285_vm0, %v3206_v26  ;;  %v3216_v31 = vpop.permute.xlu2 %3215 }
 0x54f   : > { %3292 = vst.msk [vmem:[#allocation4 + $0x30] sm:$0xff] %vm3285_vm0, %v3202_v58  ;;  %v10184_v58 = vld [vmem:[#allocation28_spill] sm:$0xff] }
 0x550   : > { %3299 = vst.msk [vmem:[#allocation4 + $0x68] sm:$0xff] %vm3285_vm0, %v3216_v31  ;;  %v10185_v31 = vld [vmem:[#allocation20_spill] sm:$0xff] }
 0x553   : > { %3424 = vrot.lane.b32.xlu0 %v7937_v51, %s6203_s24  ;;  %3420 = vrot.lane.b32.xlu1 %v7887_v5, %s6203_s24 }
 0x554   : > { %3416 = vrot.lane.b32.xlu2 %v7885_v27, %s6203_s24 }
 0x555   : > { %v3212_v61 = vpop.permute.xlu0 %3211  ;;  %v3208_v40 = vpop.permute.xlu1 %3207 }
 0x556   : > { %3297 = vst.msk [vmem:[#allocation4 + $0x58] sm:$0xff] %vm3285_vm0, %v3212_v61  ;;  %v3222_v32 = vpop.permute.xlu2 %3221  ;;  %v10186_v61 = vld [vmem:[#allocation23_spill] sm:$0xff] }
 0x557   : > { %3295 = vst.msk [vmem:[#allocation4 + $0x48] sm:$0xff] %vm3285_vm0, %v3208_v40 }
 0x558   : > { %3302 = vst.msk [vmem:[#allocation4 + $0x80] sm:$0xff] %vm3285_vm0, %v3222_v32 }
 0x55b   : > { %3430 = vrot.lane.b32.xlu0 %v7954_v37, %s6203_s24  ;;  %3426 = vrot.lane.b32.xlu1 %v7910_v41, %s6203_s24 }
 0x55c   : > { %3422 = vrot.lane.b32.xlu2 %v7908_v18, %s6203_s24 }
 0x55d   : > { %v3218_v5 = vpop.permute.xlu0 %3217  ;;  %v3214_v27 = vpop.permute.xlu1 %3213 }
 0x55e   : > { %3300 = vst.msk [vmem:[#allocation4 + $0x70] sm:$0xff] %vm3285_vm0, %v3218_v5  ;;  %v3228_v51 = vpop.permute.xlu2 %3227 }
 0x55f   : > { %3298 = vst.msk [vmem:[#allocation4 + $0x60] sm:$0xff] %vm3285_vm0, %v3214_v27  ;;  %v10187_v27 = vld [vmem:[#allocation25_spill] sm:$0xff] }
 0x560   : > { %3305 = vst.msk [vmem:[#allocation4 + $0x98] sm:$0xff] %vm3285_vm0, %v3228_v51  ;;  %v10188_v51 = vld [vmem:[#allocation24_spill] sm:$0xff] }
 0x563   : > { %3436 = vrot.lane.b32.xlu0 %v7965_v19, %s6203_s24  ;;  %3432 = vrot.lane.b32.xlu1 %v7929_v36, %s6203_s24 }
 0x564   : > { %3428 = vrot.lane.b32.xlu2 %v7927_v54, %s6203_s24 }
 0x565   : > { %v3224_v41 = vpop.permute.xlu0 %3223  ;;  %v3220_v18 = vpop.permute.xlu1 %3219 }
 0x566   : > { %3303 = vst.msk [vmem:[#allocation4 + $0x88] sm:$0xff] %vm3285_vm0, %v3224_v41  ;;  %v3234_v37 = vpop.permute.xlu2 %3233 }
 0x567   : > { %3301 = vst.msk [vmem:[#allocation4 + $0x78] sm:$0xff] %vm3285_vm0, %v3220_v18 }
 0x568   : > { %3308 = vst.msk [vmem:[#allocation4 + $0xb0] sm:$0xff] %vm3285_vm0, %v3234_v37 }
 0x56b   : > { %3442 = vrot.lane.b32.xlu0 %v8298_v22, %s6203_s24  ;;  %3438 = vrot.lane.b32.xlu1 %v7942_v57, %s6203_s24 }
 0x56c   : > { %3434 = vrot.lane.b32.xlu2 %v7946_v28, %s6203_s24 }
 0x56d   : > { %v3230_v54 = vpop.permute.xlu0 %3229  ;;  %v3226_v36 = vpop.permute.xlu1 %3225 }
 0x56e   : > { %3306 = vst.msk [vmem:[#allocation4 + $0xa0] sm:$0xff] %vm3285_vm0, %v3230_v54  ;;  %v3240_v19 = vpop.permute.xlu2 %3239  ;;  %v10190_v54 = vld [vmem:[#allocation29_spill] sm:$0xff] }
 0x56f   : > { %3304 = vst.msk [vmem:[#allocation4 + $0x90] sm:$0xff] %vm3285_vm0, %v3226_v36 }
 0x570   : > { %3311 = vst.msk [vmem:[#allocation4 + $0xc8] sm:$0xff] %vm3285_vm0, %v3240_v19 }
 0x573   : > { %3577 = vrot.lane.b32.xlu0 %v7988_v29, %s6204_s25  ;;  %3444 = vrot.lane.b32.xlu1 %v8309_v46, %s6203_s24 }
 0x574   : > { %3440 = vrot.lane.b32.xlu2 %v7960_v15, %s6203_s24 }
 0x575   : > { %v3236_v57 = vpop.permute.xlu0 %3235  ;;  %v3232_v28 = vpop.permute.xlu1 %3231 }
 0x576   : > { %3309 = vst.msk [vmem:[#allocation4 + $0xb8] sm:$0xff] %vm3285_vm0, %v3236_v57  ;;  %v3246_v14 = vpop.permute.xlu2 %3245 }
 0x577   : > { %3307 = vst.msk [vmem:[#allocation4 + $0xa8] sm:$0xff] %vm3285_vm0, %v3232_v28  ;;  %v8401_v28 = vld [vmem:[#allocation2 + $0x18a] sm:$0xff] }
 0x578   : > { %3314 = vst.msk [vmem:[#allocation4 + $0xe0] sm:$0xff] %vm3285_vm0, %v3246_v14  ;;  %v10192_v14 = vld [vmem:[#allocation30_spill] sm:$0xff] }
 0x57b   : > { %3583 = vrot.lane.b32.xlu0 %v8001_v13, %s6204_s25  ;;  %3579 = vrot.lane.b32.xlu1 %v7970_v55, %s6204_s25  ;;  %v10170_v13 = vld [vmem:[#allocation10_spill] sm:$0xff]  ;;  %v10171_v55 = vld [vmem:[#allocation9_spill] sm:$0xff] }
 0x57c   : > { %3575 = vrot.lane.b32.xlu2 %v7972_v53, %s6204_s25 }
 0x57d   : > { %v3242_v29 = vpop.permute.xlu0 %3241  ;;  %v3238_v15 = vpop.permute.xlu1 %3237 }
 0x57e   : > { %3312 = vst.msk [vmem:[#allocation4 + $0xd0] sm:$0xff] %vm3285_vm0, %v3242_v29  ;;  %v3252_v20 = vpop.permute.xlu2 %3251 }
 0x57f   : > { %3310 = vst.msk [vmem:[#allocation4 + $0xc0] sm:$0xff] %vm3285_vm0, %v3238_v15 }
 0x580   : > { %3317 = vst.msk [vmem:[#allocation4 + $0xf8] sm:$0xff] %vm3285_vm0, %v3252_v20 }
 0x583   : > { %3589 = vrot.lane.b32.xlu0 %v8014_v6, %s6204_s25  ;;  %3585 = vrot.lane.b32.xlu1 %v10170_v13, %s6204_s25  ;;  %v10173_v6 = vld [vmem:[#allocation12_spill] sm:$0xff] }
 0x584   : > { %3581 = vrot.lane.b32.xlu2 %v10171_v55, %s6204_s25  ;;  %v3707_v13 = vld [vmem:[#allocation2 + $0x48] sm:$0xff]  ;;  %v3705_v55 = vld [vmem:[#allocation2 + $0x30] sm:$0xff] }
 0x585   : > { %v3248_v44 = vpop.permute.xlu0 %3247  ;;  %v3244_v53 = vpop.permute.xlu1 %3243 }
 0x586   : > { %3315 = vst.msk [vmem:[#allocation4 + $0xe8] sm:$0xff] %vm3285_vm0, %v3248_v44  ;;  %v3387_v33 = vpop.permute.xlu2 %3386  ;;  %v8414_v44 = vld [vmem:[#allocation2 + $0x182] sm:$0xff] }
 0x587   : > { %3313 = vst.msk [vmem:[#allocation4 + $0xd8] sm:$0xff] %vm3285_vm0, %v3244_v53 }
 0x588   : > { %3481 = vst.msk [vmem:[#allocation4 + $0x10] sm:$0xff] %vm3478_vm1, %v3387_v33 }
 0x58b   : > { %3595 = vrot.lane.b32.xlu0 %v10172_v39, %s6204_s25  ;;  %3591 = vrot.lane.b32.xlu1 %v10173_v6, %s6204_s25  ;;  %v3710_v6 = vld [vmem:[#allocation2 + $0x68] sm:$0xff] }
 0x58c   : > { %3587 = vrot.lane.b32.xlu2 %v10174_v35, %s6204_s25  ;;  %v3708_v35 = vld [vmem:[#allocation2 + $0x50] sm:$0xff] }
 0x58d   : > { %v3383_v2 = vpop.permute.xlu0 %3382  ;;  %v3250_v16 = vpop.permute.xlu1 %3249 }
 0x58e   : > { %3479 = vst.msk [vmem:[#allocation4] sm:$0xff] %vm3478_vm1, %v3383_v2  ;;  %v3393_v38 = vpop.permute.xlu2 %3392  ;;  %v3706_v2 = vld [vmem:[#allocation2 + $0x38] sm:$0xff] }
 0x58f   : > { %3316 = vst.msk [vmem:[#allocation4 + $0xf0] sm:$0xff] %vm3285_vm0, %v3250_v16 }
 0x590   : > { %3484 = vst.msk [vmem:[#allocation4 + $0x28] sm:$0xff] %vm3478_vm1, %v3393_v38 }
 0x593   : > { %3601 = vrot.lane.b32.xlu0 %v10175_v25, %s6204_s25  ;;  %3597 = vrot.lane.b32.xlu1 %v10176_v17, %s6204_s25  ;;  %v3711_v17 = vld [vmem:[#allocation2 + $0x78] sm:$0xff] }
 0x594   : > { %3593 = vrot.lane.b32.xlu2 %v10177_v62, %s6204_s25  ;;  %v3709_v62 = vld [vmem:[#allocation2 + $0x60] sm:$0xff] }
 0x595   : > { %v3389_v48 = vpop.permute.xlu0 %3388  ;;  %v3385_v60 = vpop.permute.xlu1 %3384 }
 0x596   : > { %3482 = vst.msk [vmem:[#allocation4 + $0x18] sm:$0xff] %vm3478_vm1, %v3389_v48  ;;  %v3399_v3 = vpop.permute.xlu2 %3398 }
 0x597   : > { %3480 = vst.msk [vmem:[#allocation4 + $0x8] sm:$0xff] %vm3478_vm1, %v3385_v60 }
 0x598   : > { %3487 = vst.msk [vmem:[#allocation4 + $0x40] sm:$0xff] %vm3478_vm1, %v3399_v3 }
 0x59b   : > { %3607 = vrot.lane.b32.xlu0 %v10178_v23, %s6204_s25  ;;  %3603 = vrot.lane.b32.xlu1 %v10179_v63, %s6204_s25  ;;  %v3915_v23 = vld [vmem:[#allocation2 + $0xf9] sm:$0xff] }
 0x59c   : > { %3599 = vrot.lane.b32.xlu2 %v10180_v24, %s6204_s25 }
 0x59d   : > { %v3395_v50 = vpop.permute.xlu0 %3394  ;;  %v3391_v11 = vpop.permute.xlu1 %3390 }
 0x59e   : > { %3485 = vst.msk [vmem:[#allocation4 + $0x30] sm:$0xff] %vm3478_vm1, %v3395_v50  ;;  %v3405_v56 = vpop.permute.xlu2 %3404 }
 0x59f   : > { %3483 = vst.msk [vmem:[#allocation4 + $0x20] sm:$0xff] %vm3478_vm1, %v3391_v11  ;;  %v4107_v11 = vld [vmem:[#allocation2 + $0xf2] sm:$0xff] }
 0x5a0   : > { %3490 = vst.msk [vmem:[#allocation4 + $0x58] sm:$0xff] %vm3478_vm1, %v3405_v56 }
 0x5a3   : > { %3613 = vrot.lane.b32.xlu0 %v10181_v45, %s6204_s25  ;;  %3609 = vrot.lane.b32.xlu1 %v10182_v4, %s6204_s25 }
 0x5a4   : > { %3605 = vrot.lane.b32.xlu2 %v10183_v34, %s6204_s25  ;;  %v4092_v34 = vld [vmem:[#allocation2 + $0x3a] sm:$0xff] }
 0x5a5   : > { %v3401_v1 = vpop.permute.xlu0 %3400  ;;  %v3397_v47 = vpop.permute.xlu1 %3396 }
 0x5a6   : > { %3488 = vst.msk [vmem:[#allocation4 + $0x48] sm:$0xff] %vm3478_vm1, %v3401_v1  ;;  %v3411_v26 = vpop.permute.xlu2 %3410 }
 0x5a7   : > { %3486 = vst.msk [vmem:[#allocation4 + $0x38] sm:$0xff] %vm3478_vm1, %v3397_v47 }
 0x5a8   : > { %3493 = vst.msk [vmem:[#allocation4 + $0x70] sm:$0xff] %vm3478_vm1, %v3411_v26 }
 0x5ab   : > { %3619 = vrot.lane.b32.xlu0 %v10184_v58, %s6204_s25  ;;  %3615 = vrot.lane.b32.xlu1 %v10185_v31, %s6204_s25  ;;  %v3916_v58 = vld [vmem:[#allocation2 + $0x109] sm:$0xff]  ;;  %v4091_v31 = vld [vmem:[#allocation2 + $0x32] sm:$0xff] }
 0x5ac   : > { %3611 = vrot.lane.b32.xlu2 %v10186_v61, %s6204_s25 }
 0x5ad   : > { %v3407_v40 = vpop.permute.xlu0 %3406  ;;  %v3403_v32 = vpop.permute.xlu1 %3402 }
 0x5ae   : > { %3491 = vst.msk [vmem:[#allocation4 + $0x60] sm:$0xff] %vm3478_vm1, %v3407_v40  ;;  %v3417_v5 = vpop.permute.xlu2 %3416 }
 0x5af   : > { %3489 = vst.msk [vmem:[#allocation4 + $0x50] sm:$0xff] %vm3478_vm1, %v3403_v32  ;;  %v4110_v32 = vld [vmem:[#allocation2 + $0x112] sm:$0xff] }
 0x5b0   : > { %3496 = vst.msk [vmem:[#allocation4 + $0x88] sm:$0xff] %vm3478_vm1, %v3417_v5  ;;  %v3917_v5 = vld [vmem:[#allocation2 + $0x111] sm:$0xff] }
 0x5b3   : > { %3625 = vrot.lane.b32.xlu0 %v8095_v0, %s6204_s25  ;;  %3621 = vrot.lane.b32.xlu1 %v10187_v27, %s6204_s25  ;;  %v10189_v0 = vld [vmem:[#allocation26_spill] sm:$0xff]  ;;  %v3724_v27 = vld [vmem:[#allocation2 + $0x110] sm:$0xff] }
 0x5b4   : > { %3617 = vrot.lane.b32.xlu2 %v10188_v51, %s6204_s25 }
 0x5b5   : > { %v3413_v41 = vpop.permute.xlu0 %3412  ;;  %v3409_v18 = vpop.permute.xlu1 %3408 }
 0x5b6   : > { %3494 = vst.msk [vmem:[#allocation4 + $0x78] sm:$0xff] %vm3478_vm1, %v3413_v41  ;;  %v3423_v37 = vpop.permute.xlu2 %3422 }
 0x5b7   : > { %3492 = vst.msk [vmem:[#allocation4 + $0x68] sm:$0xff] %vm3478_vm1, %v3409_v18  ;;  %v4093_v18 = vld [vmem:[#allocation2 + $0x4a] sm:$0xff] }
 0x5b8   : > { %3499 = vst.msk [vmem:[#allocation4 + $0xa0] sm:$0xff] %vm3478_vm1, %v3423_v37  ;;  %v4109_v37 = vld [vmem:[#allocation2 + $0x10a] sm:$0xff] }
 0x5bb   : > { %3631 = vrot.lane.b32.xlu0 %v8106_v52, %s6204_s25  ;;  %3627 = vrot.lane.b32.xlu1 %v10189_v0, %s6204_s25  ;;  %v10191_v52 = vld [vmem:[#allocation31_spill] sm:$0xff] }
 0x5bc   : > { %3623 = vrot.lane.b32.xlu2 %v10190_v54, %s6204_s25 }
 0x5bd   : > { %v3419_v36 = vpop.permute.xlu0 %3418  ;;  %v3415_v19 = vpop.permute.xlu1 %3414 }
 0x5be   : > { %3497 = vst.msk [vmem:[#allocation4 + $0x90] sm:$0xff] %vm3478_vm1, %v3419_v36  ;;  %v3429_v57 = vpop.permute.xlu2 %3428 }
 0x5bf   : > { %3495 = vst.msk [vmem:[#allocation4 + $0x80] sm:$0xff] %vm3478_vm1, %v3415_v19  ;;  %v4094_v19 = vld [vmem:[#allocation2 + $0x52] sm:$0xff] }
 0x5c0   : > { %3502 = vst.msk [vmem:[#allocation4 + $0xb8] sm:$0xff] %vm3478_vm1, %v3429_v57 }
 0x5c3   : > { %3637 = vrot.lane.b32.xlu0 %v8401_v28, %s6204_s25  ;;  %3633 = vrot.lane.b32.xlu1 %v10191_v52, %s6204_s25 }
 0x5c4   : > { %3629 = vrot.lane.b32.xlu2 %v10192_v14, %s6204_s25  ;;  %v4111_v14 = vld [vmem:[#allocation2 + $0x122] sm:$0xff] }
 0x5c5   : > { %v3425_v29 = vpop.permute.xlu0 %3424  ;;  %v3421_v15 = vpop.permute.xlu1 %3420 }
 0x5c6   : > { %3500 = vst.msk [vmem:[#allocation4 + $0xa8] sm:$0xff] %vm3478_vm1, %v3425_v29  ;;  %v3435_v20 = vpop.permute.xlu2 %3434  ;;  %v3918_v29 = vld [vmem:[#allocation2 + $0x121] sm:$0xff] }
 0x5c7   : > { %3498 = vst.msk [vmem:[#allocation4 + $0x98] sm:$0xff] %vm3478_vm1, %v3421_v15 }
 0x5c8   : > { %3505 = vst.msk [vmem:[#allocation4 + $0xd0] sm:$0xff] %vm3478_vm1, %v3435_v20 }
 0x5cb   : > { %3773 = vrot.lane.b32.xlu0 %v3707_v13, %s6205_s6  ;;  %3769 = vrot.lane.b32.xlu1 %v3705_v55, %s6205_s6  ;;  %v4112_v13 = vld [vmem:[#allocation2 + $0x12a] sm:$0xff] }
 0x5cc   : > { %3635 = vrot.lane.b32.xlu2 %v8414_v44, %s6204_s25  ;;  %v3919_v55 = vld [vmem:[#allocation2 + $0x129] sm:$0xff]  ;;  %s5467_s25 = scalar_lea.hbm %s10027_s7, %s5893_s22 }
 0x5cd   : > { %v3431_v53 = vpop.permute.xlu0 %3430  ;;  %v3427_v33 = vpop.permute.xlu1 %3426  ;;  %s5470_s17 = sshll.u32 %s5467_s25, 4  ;;  %s5471_s17 = int_to_ptr.hbm [resolvable:$true] %s5470_s17 }
 0x5ce   : > { %3503 = vst.msk [vmem:[#allocation4 + $0xc0] sm:$0xff] %vm3478_vm1, %v3431_v53  ;;  %v3441_v39 = vpop.permute.xlu2 %3440  ;;  %s6126_s19 = sshra.s32 %s5471_s17, 4  ;;  %s6127_s19 = int_to_ptr.hbm [resolvable:$true] %s6126_s19 }
 0x5cf   : > { %3501 = vst.msk [vmem:[#allocation4 + $0xb0] sm:$0xff] %vm3478_vm1, %v3427_v33  ;;  %p6133_p1 = scmp.lt.s32.totalorder %s6127_s19, %s10027_s7 }
 0x5d0   : > { %3508 = vst.msk [vmem:[#allocation4 + $0xe8] sm:$0xff] %vm3478_vm1, %v3441_v39 }
 0x5d3   : > { %3779 = vrot.lane.b32.xlu0 %v3710_v6, %s6205_s6  ;;  %3775 = vrot.lane.b32.xlu1 %v3708_v35, %s6205_s6  ;;  %v3727_v6 = vld [vmem:[#allocation2 + $0x138] sm:$0xff]  ;;  %v4095_v35 = vld [vmem:[#allocation2 + $0x62] sm:$0xff] }
 0x5d4   : > { %3771 = vrot.lane.b32.xlu2 %v3706_v2, %s6205_s6  ;;  %v5892_v2 = vld [vmem:[%s10023_s3 + $0x30] sm:$0x30] }
 0x5d5   : > { %v3437_v16 = vpop.permute.xlu0 %3436  ;;  %v3433_v38 = vpop.permute.xlu1 %3432 }
 0x5d6   : > { %3506 = vst.msk [vmem:[#allocation4 + $0xd8] sm:$0xff] %vm3478_vm1, %v3437_v16  ;;  %v3576_v25 = vpop.permute.xlu2 %3575 }
 0x5d7   : > { %3504 = vst.msk [vmem:[#allocation4 + $0xc8] sm:$0xff] %vm3478_vm1, %v3433_v38 }
 0x5d8   : > { %3672 = vst.msk [vmem:[#allocation4] sm:$0xff] %vm3671_vm2, %v3576_v25 }
 0x5db   : > { %3801 = vrot.lane.b32.xlu0 %v7748_v42, %s6205_s6  ;;  %3781 = vrot.lane.b32.xlu1 %v3711_v17, %s6205_s6  ;;  %v3712_v42 = vld [vmem:[#allocation2 + $0x80] sm:$0xff] }
 0x5dc   : > { %3777 = vrot.lane.b32.xlu2 %v3709_v62, %s6205_s6 }
 0x5dd   : > { %v3443_v48 = vpop.permute.xlu0 %3442  ;;  %v3439_v60 = vpop.permute.xlu1 %3438 }
 0x5de   : > { %3509 = vst.msk [vmem:[#allocation4 + $0xf0] sm:$0xff] %vm3478_vm1, %v3443_v48  ;;  %v3582_v3 = vpop.permute.xlu2 %3581  ;;  %v3921_v48 = vld [vmem:[#allocation2 + $0x141] sm:$0xff] }
 0x5df   : > { %3507 = vst.msk [vmem:[#allocation4 + $0xe0] sm:$0xff] %vm3478_vm1, %v3439_v60  ;;  %v3728_v60 = vld [vmem:[#allocation2 + $0x140] sm:$0xff] }
 0x5e0   : > { %3675 = vst.msk [vmem:[#allocation4 + $0x18] sm:$0xff] %vm3671_vm2, %v3582_v3  ;;  %v4096_v3 = vld [vmem:[#allocation2 + $0x6a] sm:$0xff] }
 0x5e3   : > { %3996 = vrot.lane.b32.xlu0 %v3915_v23, %s6206_s9  ;;  %3803 = vrot.lane.b32.xlu1 %v7763_v43, %s6205_s6  ;;  %v3914_v43 = vld [vmem:[#allocation2 + $0xf1] sm:$0xff]  ;;  %v5890_v23 = vld [vmem:[%s10023_s3 + $0x20] sm:$0xff] }
 0x5e4   : > { %3783 = vrot.lane.b32.xlu2 %v3712_v42, %s6205_s6 }
 0x5e5   : > { %v3578_v63 = vpop.permute.xlu0 %3577  ;;  %v3445_v24 = vpop.permute.xlu1 %3444 }
 0x5e6   : > { %3673 = vst.msk [vmem:[#allocation4 + $0x8] sm:$0xff] %vm3671_vm2, %v3578_v63  ;;  %v3588_v50 = vpop.permute.xlu2 %3587 }
 0x5e7   : > { %3510 = vst.msk [vmem:[#allocation4 + $0xf8] sm:$0xff] %vm3478_vm1, %v3445_v24 }
 0x5e8   : > { %3678 = vst.msk [vmem:[#allocation4 + $0x30] sm:$0xff] %vm3671_vm2, %v3588_v50  ;;  %v5889_v50 = vld [vmem:[%s10023_s3 + $0x18] sm:$0xff] }
 0x5eb   : > { %3962 = vrot.lane.b32.xlu0 %v8222_v59, %s6206_s9  ;;  %4187 = vrot.lane.b32.xlu1 %v4107_v11, %s6207_s11  ;;  %v4108_v59 = vld [vmem:[#allocation2 + $0xfa] sm:$0xff] }
 0x5ec   : > { %3994 = vrot.lane.b32.xlu2 %v3914_v43, %s6206_s9  ;;  %v4113_v11 = vld [vmem:[#allocation2 + $0x13a] sm:$0xff] }
 0x5ed   : > { %v3584_v56 = vpop.permute.xlu0 %3583  ;;  %v3580_v45 = vpop.permute.xlu1 %3579  ;;  %v3920_v43 = vld [vmem:[#allocation2 + $0x139] sm:$0xff] }
 0x5ee   : > { %3676 = vst.msk [vmem:[#allocation4 + $0x20] sm:$0xff] %vm3671_vm2, %v3584_v56  ;;  %v3594_v4 = vpop.permute.xlu2 %3593  ;;  %v5888_v56 = vld [vmem:[%s10023_s3 + $0x10] sm:$0xff] }
 0x5ef   : > { %3674 = vst.msk [vmem:[#allocation4 + $0x10] sm:$0xff] %vm3671_vm2, %v3580_v45 }
 0x5f0   : > { %3681 = vst.msk [vmem:[#allocation4 + $0x48] sm:$0xff] %vm3671_vm2, %v3594_v4 }
 0x5f3   : > { %4157 = vrot.lane.b32.xlu0 %v4092_v34, %s6207_s11  ;;  %3964 = vrot.lane.b32.xlu1 %v8205_v7, %s6206_s9 }
 0x5f4   : > { %4189 = vrot.lane.b32.xlu2 %v4108_v59, %s6207_s11  ;;  %v4098_v59 = vld [vmem:[#allocation2 + $0x82] sm:$0xff] }
 0x5f5   : > { %v3590_v1 = vpop.permute.xlu0 %3589  ;;  %v3586_v47 = vpop.permute.xlu1 %3585 }
 0x5f6   : > { %3679 = vst.msk [vmem:[#allocation4 + $0x38] sm:$0xff] %vm3671_vm2, %v3590_v1  ;;  %v3600_v26 = vpop.permute.xlu2 %3599  ;;  %v3905_v1 = vld [vmem:[#allocation2 + $0x81] sm:$0xff] }
 0x5f7   : > { %3677 = vst.msk [vmem:[#allocation4 + $0x28] sm:$0xff] %vm3671_vm2, %v3586_v47  ;;  %v4114_v47 = vld [vmem:[#allocation2 + $0x142] sm:$0xff] }
 0x5f8   : > { %3684 = vst.msk [vmem:[#allocation4 + $0x60] sm:$0xff] %vm3671_vm2, %v3600_v26  ;;  %v5886_v26 = vld [vmem:[%s10023_s3] sm:$0xff] }
 0x5fb   : > { %3998 = vrot.lane.b32.xlu0 %v3916_v58, %s6206_s9  ;;  %3805 = vrot.lane.b32.xlu1 %v7774_v8, %s6205_s6 }
 0x5fc   : > { %4155 = vrot.lane.b32.xlu2 %v4091_v31, %s6207_s11 }
 0x5fd   : > { %v3596_v7 = vpop.permute.xlu0 %3595  ;;  %v3592_v61 = vpop.permute.xlu1 %3591 }
 0x5fe   : > { %3682 = vst.msk [vmem:[#allocation4 + $0x50] sm:$0xff] %vm3671_vm2, %v3596_v7  ;;  %v3606_v40 = vpop.permute.xlu2 %3605 }
 0x5ff   : > { %3680 = vst.msk [vmem:[#allocation4 + $0x40] sm:$0xff] %vm3671_vm2, %v3592_v61  ;;  %v3922_v61 = vld [vmem:[#allocation2 + $0x151] sm:$0xff] }
 0x600   : > { %3687 = vst.msk [vmem:[#allocation4 + $0x78] sm:$0xff] %vm3671_vm2, %v3606_v40  ;;  %v3729_v40 = vld [vmem:[#allocation2 + $0x150] sm:$0xff] }
 0x603   : > { %4193 = vrot.lane.b32.xlu0 %v4110_v32, %s6207_s11  ;;  %4000 = vrot.lane.b32.xlu1 %v3917_v5, %s6206_s9  ;;  %v4097_v32 = vld [vmem:[#allocation2 + $0x7a] sm:$0xff] }
 0x604   : > { %3807 = vrot.lane.b32.xlu2 %v3724_v27, %s6205_s6 }
 0x605   : > { %v3602_v8 = vpop.permute.xlu0 %3601  ;;  %v3598_v51 = vpop.permute.xlu1 %3597 }
 0x606   : > { %3685 = vst.msk [vmem:[#allocation4 + $0x68] sm:$0xff] %vm3671_vm2, %v3602_v8  ;;  %v3612_v41 = vpop.permute.xlu2 %3611 }
 0x607   : > { %3683 = vst.msk [vmem:[#allocation4 + $0x58] sm:$0xff] %vm3671_vm2, %v3598_v51  ;;  %v4116_v51 = vld [vmem:[#allocation2 + $0x15a] sm:$0xff] }
 0x608   : > { %3690 = vst.msk [vmem:[#allocation4 + $0x90] sm:$0xff] %vm3671_vm2, %v3612_v41  ;;  %v3923_v41 = vld [vmem:[#allocation2 + $0x159] sm:$0xff] }
 0x60b   : > { %4159 = vrot.lane.b32.xlu0 %v4093_v18, %s6207_s11  ;;  %3966 = vrot.lane.b32.xlu1 %v8216_v30, %s6206_s9  ;;  %v3730_v18 = vld [vmem:[#allocation2 + $0x158] sm:$0xff] }
 0x60c   : > { %4191 = vrot.lane.b32.xlu2 %v4109_v37, %s6207_s11 }
 0x60d   : > { %v3608_v0 = vpop.permute.xlu0 %3607  ;;  %v3604_v54 = vpop.permute.xlu1 %3603 }
 0x60e   : > { %3688 = vst.msk [vmem:[#allocation4 + $0x80] sm:$0xff] %vm3671_vm2, %v3608_v0  ;;  %v3618_v36 = vpop.permute.xlu2 %3617 }
 0x60f   : > { %3686 = vst.msk [vmem:[#allocation4 + $0x70] sm:$0xff] %vm3671_vm2, %v3604_v54 }
 0x610   : > { %3693 = vst.msk [vmem:[#allocation4 + $0xa8] sm:$0xff] %vm3671_vm2, %v3618_v36  ;;  %v3906_v36 = vld [vmem:[#allocation2 + $0x91] sm:$0xff] }
 0x613   : > { %3811 = vrot.lane.b32.xlu0 %v7838_v10, %s6205_s6  ;;  %4161 = vrot.lane.b32.xlu1 %v4094_v19, %s6207_s11  ;;  %v3725_v10 = vld [vmem:[#allocation2 + $0x120] sm:$0xff]  ;;  %v3713_v19 = vld [vmem:[#allocation2 + $0x90] sm:$0xff] }
 0x614   : > { %3968 = vrot.lane.b32.xlu2 %v8235_v12, %s6206_s9 }
 0x615   : > { %v3614_v30 = vpop.permute.xlu0 %3613  ;;  %v3610_v57 = vpop.permute.xlu1 %3609 }
 0x616   : > { %3691 = vst.msk [vmem:[#allocation4 + $0x98] sm:$0xff] %vm3671_vm2, %v3614_v30  ;;  %v3624_v52 = vpop.permute.xlu2 %3623  ;;  %v4115_v30 = vld [vmem:[#allocation2 + $0x152] sm:$0xff] }
 0x617   : > { %3689 = vst.msk [vmem:[#allocation4 + $0x88] sm:$0xff] %vm3671_vm2, %v3610_v57 }
 0x618   : > { %3696 = vst.msk [vmem:[#allocation4 + $0xc0] sm:$0xff] %vm3671_vm2, %v3624_v52 }
 0x61b   : > { %4195 = vrot.lane.b32.xlu0 %v4111_v14, %s6207_s11  ;;  %4002 = vrot.lane.b32.xlu1 %v3918_v29, %s6206_s9  ;;  %v4100_v29 = vld [vmem:[#allocation2 + $0x9a] sm:$0xff] }
 0x61c   : > { %3809 = vrot.lane.b32.xlu2 %v3725_v10, %s6205_s6  ;;  %v3907_v10 = vld [vmem:[#allocation2 + $0x99] sm:$0xff] }
 0x61d   : > { %v3620_v15 = vpop.permute.xlu0 %3619  ;;  %v3616_v12 = vpop.permute.xlu1 %3615 }
 0x61e   : > { %3694 = vst.msk [vmem:[#allocation4 + $0xb0] sm:$0xff] %vm3671_vm2, %v3620_v15  ;;  %v3630_v20 = vpop.permute.xlu2 %3629  ;;  %v3714_v15 = vld [vmem:[#allocation2 + $0x98] sm:$0xff] }
 0x61f   : > { %3692 = vst.msk [vmem:[#allocation4 + $0xa0] sm:$0xff] %vm3671_vm2, %v3616_v12 }
 0x620   : > { %3699 = vst.msk [vmem:[#allocation4 + $0xd8] sm:$0xff] %vm3671_vm2, %v3630_v20 }
 0x623   : > { %3972 = vrot.lane.b32.xlu0 %v8229_v49, %s6206_s9  ;;  %4197 = vrot.lane.b32.xlu1 %v4112_v13, %s6207_s11  ;;  %v5829_v49 = vld [vmem:[%s10023_s3 + $0x30] sm:$0xf] }
 0x624   : > { %4004 = vrot.lane.b32.xlu2 %v3919_v55, %s6206_s9  ;;  %v5830_v25 = vor.u32 %v5892_v2, %v5829_v49 }
 0x625   : > { %v3626_v53 = vpop.permute.xlu0 %3625  ;;  %v3622_v33 = vpop.permute.xlu1 %3621 }
 0x626   : > { %3697 = vst.msk [vmem:[#allocation4 + $0xc8] sm:$0xff] %vm3671_vm2, %v3626_v53  ;;  %v3636_v39 = vpop.permute.xlu2 %3635  ;;  %v4441_v62 = vsel %vm2242_vm9, %v5830_v25, 0 }
 0x627   : > { %3695 = vst.msk [vmem:[#allocation4 + $0xb8] sm:$0xff] %vm3671_vm2, %v3622_v33  ;;  %5896 = vmatpush.bf16.msra.mxu3 %v4441_v62  ;;  %4444 = vmatpush.bf16.msra.mxu1 %v4441_v62  ;;  %v4118_v62 = vld [vmem:[#allocation2 + $0x172] sm:$0xff] }
 0x628   : > { %3702 = vst.msk [vmem:[#allocation4 + $0xf0] sm:$0xff] %vm3671_vm2, %v3636_v39  ;;  %v3924_v39 = vld [vmem:[#allocation2 + $0x169] sm:$0xff] }
 0x62b   : > { %3813 = vrot.lane.b32.xlu0 %v3727_v6, %s6205_s6  ;;  %4163 = vrot.lane.b32.xlu1 %v4095_v35, %s6207_s11  ;;  %v3731_v6 = vld [vmem:[#allocation2 + $0x168] sm:$0xff]  ;;  %v4099_v35 = vld [vmem:[#allocation2 + $0x92] sm:$0xff] }
 0x62c   : > { %3970 = vrot.lane.b32.xlu2 %v8214_v21, %s6206_s9  ;;  %v5891_v21 = vld [vmem:[%s10023_s3 + $0x28] sm:$0xff] }
 0x62d   : > { %v3632_v16 = vpop.permute.xlu0 %3631  ;;  %v3628_v38 = vpop.permute.xlu1 %3627  ;;  %5897 = vmatpush.bf16.msra.mxu3 %v5891_v21  ;;  %4445 = vmatpush.bf16.msra.mxu1 %v5891_v21  ;;  %v3925_v21 = vld [vmem:[#allocation2 + $0x171] sm:$0xff] }
 0x62e   : > { %3700 = vst.msk [vmem:[#allocation4 + $0xe0] sm:$0xff] %vm3671_vm2, %v3632_v16  ;;  %v3772_v17 = vpop.permute.xlu2 %3771 }
 0x62f   : > { %3698 = vst.msk [vmem:[#allocation4 + $0xd0] sm:$0xff] %vm3671_vm2, %v3628_v38 }
 0x630   : > { %3867 = vst.msk [vmem:[#allocation4 + $0x8] sm:$0xff] %vm3865_vm3, %v3772_v17 }
 0x631   : > { %5898 = vmatpush.bf16.msra.mxu3 %v5890_v23  ;;  %4446 = vmatpush.bf16.msra.mxu1 %v5890_v23 }
 0x633   : > { %4008 = vrot.lane.b32.xlu0 %v3921_v48, %s6206_s9  ;;  %3815 = vrot.lane.b32.xlu1 %v3728_v60, %s6205_s6  ;;  %v3732_v48 = vld [vmem:[#allocation2 + $0x170] sm:$0xff] }
 0x634   : > { %4165 = vrot.lane.b32.xlu2 %v4096_v3, %s6207_s11 }
 0x635   : > { %v3638_v42 = vpop.permute.xlu0 %3637  ;;  %v3634_v63 = vpop.permute.xlu1 %3633  ;;  %5899 = vmatpush.bf16.msra.mxu3 %v5889_v50  ;;  %4447 = vmatpush.bf16.msra.mxu1 %v5889_v50 }
 0x636   : > { %3703 = vst.msk [vmem:[#allocation4 + $0xf8] sm:$0xff] %vm3671_vm2, %v3638_v42  ;;  %v3778_v24 = vpop.permute.xlu2 %3777  ;;  %v3908_v42 = vld [vmem:[#allocation2 + $0xa9] sm:$0xff] }
 0x637   : > { %3701 = vst.msk [vmem:[#allocation4 + $0xe8] sm:$0xff] %vm3671_vm2, %v3634_v63  ;;  %v3715_v63 = vld [vmem:[#allocation2 + $0xa8] sm:$0xff] }
 0x638   : > { %3870 = vst.msk [vmem:[#allocation4 + $0x20] sm:$0xff] %vm3865_vm3, %v3778_v24  ;;  %v4117_v24 = vld [vmem:[#allocation2 + $0x16a] sm:$0xff] }
 0x639   : > { %5900 = vmatpush.bf16.msra.mxu3 %v5888_v56  ;;  %4448 = vmatpush.bf16.msra.mxu1 %v5888_v56 }
 0x63b   : > { %3974 = vrot.lane.b32.xlu0 %v8246_v9, %s6206_s9  ;;  %4199 = vrot.lane.b32.xlu1 %v4113_v11, %s6207_s11  ;;  %v5887_v9 = vld [vmem:[%s10023_s3 + $0x8] sm:$0xff] }
 0x63c   : > { %4006 = vrot.lane.b32.xlu2 %v3920_v43, %s6206_s9 }
 0x63d   : > { %v3774_v45 = vpop.permute.xlu0 %3773  ;;  %v3770_v4 = vpop.permute.xlu1 %3769  ;;  %5901 = vmatpush.bf16.msra.mxu3 %v5887_v9  ;;  %4449 = vmatpush.bf16.msra.mxu1 %v5887_v9  ;;  %v3909_v9 = vld [vmem:[#allocation2 + $0xb1] sm:$0xff] }
 0x63e   : > { %3868 = vst.msk [vmem:[#allocation4 + $0x10] sm:$0xff] %vm3865_vm3, %v3774_v45  ;;  %v3784_v34 = vpop.permute.xlu2 %3783 }
 0x63f   : > { %3866 = vst.msk [vmem:[#allocation4] sm:$0xff] %vm3865_vm3, %v3770_v4 }
 0x640   : > { %3873 = vst.msk [vmem:[#allocation4 + $0x38] sm:$0xff] %vm3865_vm3, %v3784_v34  ;;  %v4102_v34 = vld [vmem:[#allocation2 + $0xb2] sm:$0xff] }
 0x641   : > { %5902 = vmatpush.bf16.msra.mxu3 %v5886_v26  ;;  %4450 = vmatpush.bf16.msra.mxu1 %v5886_v26 }
 0x643   : > { %4169 = vrot.lane.b32.xlu0 %v4098_v59, %s6207_s11  ;;  %3976 = vrot.lane.b32.xlu1 %v3905_v1, %s6206_s9  ;;  %v3716_v59 = vld [vmem:[#allocation2 + $0xb0] sm:$0xff] }
 0x644   : > { %4201 = vrot.lane.b32.xlu2 %v4114_v47, %s6207_s11 }
 0x645   : > { %v3780_v58 = vpop.permute.xlu0 %3779  ;;  %v3776_v31 = vpop.permute.xlu1 %3775 }
 0x646   : > { %3871 = vst.msk [vmem:[#allocation4 + $0x28] sm:$0xff] %vm3865_vm3, %v3780_v58  ;;  %v3995_v7 = vpop.permute.xlu2 %3994  ;;  %v3733_v58 = vld [vmem:[#allocation2 + $0x180] sm:$0xff] }
 0x647   : > { %3869 = vst.msk [vmem:[#allocation4 + $0x18] sm:$0xff] %vm3865_vm3, %v3776_v31  ;;  %v4101_v31 = vld [vmem:[#allocation2 + $0xaa] sm:$0xff] }
 0x64b   : > { %4010 = vrot.lane.b32.xlu0 %v3922_v61, %s6206_s9  ;;  %3817 = vrot.lane.b32.xlu1 %v3729_v40, %s6205_s6 }
 0x64c   : > { %4167 = vrot.lane.b32.xlu2 %v4097_v32, %s6207_s11 }
 0x64d   : > { %v3802_v5 = vpop.permute.xlu0 %3801  ;;  %v3782_v27 = vpop.permute.xlu1 %3781 }
 0x64e   : > { %3882 = vst.msk [vmem:[#allocation4 + $0x80] sm:$0xff] %vm3865_vm3, %v3802_v5  ;;  %v4190_v8 = vpop.permute.xlu2 %4189 }
 0x64f   : > { %3872 = vst.msk [vmem:[#allocation4 + $0x30] sm:$0xff] %vm3865_vm3, %v3782_v27 }
 0x650   : > { %4075 = vst.msk [vmem:[#allocation4 + $0x80] sm:$0xff] %vm4058_vm4, %v3995_v7 }
 0x653   : > { %4205 = vrot.lane.b32.xlu0 %v4116_v51, %s6207_s11  ;;  %4012 = vrot.lane.b32.xlu1 %v3923_v41, %s6206_s9 }
 0x654   : > { %3819 = vrot.lane.b32.xlu2 %v3730_v18, %s6205_s6  ;;  %v3910_v18 = vld [vmem:[#allocation2 + $0xc1] sm:$0xff] }
 0x655   : > { %v3997_v37 = vpop.permute.xlu0 %3996  ;;  %v3804_v0 = vpop.permute.xlu1 %3803 }
 0x656   : > { %3883 = vst.msk [vmem:[#allocation4 + $0x88] sm:$0xff] %vm3865_vm3, %v3804_v0  ;;  %v4156_v54 = vpop.permute.xlu2 %4155 }
 0x657   : > { %4076 = vst.msk [vmem:[#allocation4 + $0x88] sm:$0xff] %vm4058_vm4, %v3997_v37  ;;  %v3717_v37 = vld [vmem:[#allocation2 + $0xc0] sm:$0xff] }
 0x658   : > { %4269 = vst.msk [vmem:[#allocation4 + $0x88] sm:$0xff] %vm4251_vm5, %v4190_v8 }
 0x65b   : > { %3978 = vrot.lane.b32.xlu0 %v3906_v36, %s6206_s9  ;;  %3785 = vrot.lane.b32.xlu1 %v3713_v19, %s6205_s6 }
 0x65c   : > { %4203 = vrot.lane.b32.xlu2 %v4115_v30, %s6207_s11  ;;  %v4104_v30 = vld [vmem:[#allocation2 + $0xca] sm:$0xff] }
 0x65d   : > { %v3963_v57 = vpop.permute.xlu0 %3962  ;;  %v4188_v52 = vpop.permute.xlu1 %4187 }
 0x65e   : > { %4059 = vst.msk [vmem:[#allocation4] sm:$0xff] %vm4058_vm4, %v3963_v57  ;;  %v3808_v14 = vpop.permute.xlu2 %3807  ;;  %v3911_v57 = vld [vmem:[#allocation2 + $0xc9] sm:$0xff] }
 0x65f   : > { %4252 = vst.msk [vmem:[#allocation4] sm:$0xff] %vm4251_vm5, %v4156_v54  ;;  %v4301_v53 = vld [vmem:[#allocation4 + $0x88] sm:$0xff] }
 0x660   : > { %4268 = vst.msk [vmem:[#allocation4 + $0x80] sm:$0xff] %vm4251_vm5, %v4188_v52 }
 0x661   : > { %3885 = vst.msk [vmem:[#allocation4 + $0x98] sm:$0xff] %vm3865_vm3, %v3808_v14 }
 0x663   : > { %4173 = vrot.lane.b32.xlu0 %v4100_v29, %s6207_s11  ;;  %3980 = vrot.lane.b32.xlu1 %v3907_v10, %s6206_s9 }
 0x664   : > { %3787 = vrot.lane.b32.xlu2 %v3714_v15, %s6205_s6 }
 0x665   : > { %v4158_v12 = vpop.permute.xlu0 %4157  ;;  %v3965_v20 = vpop.permute.xlu1 %3964 }
 0x666   : > { %4060 = vst.msk [vmem:[#allocation4 + $0x8] sm:$0xff] %vm4058_vm4, %v3965_v20  ;;  %v4192_v13 = vpop.permute.xlu2 %4191  ;;  %v4284_v38 = vld [vmem:[#allocation4] sm:$0xff]  ;;  %v3928_v20 = vld [vmem:[#allocation2 + $0x199] sm:$0xff] }
 0x667   : > { %4253 = vst.msk [vmem:[#allocation4 + $0x8] sm:$0xff] %vm4251_vm5, %v4158_v12  ;;  %v4300_v55 = vld [vmem:[#allocation4 + $0x80] sm:$0xff] }
 0x668   : > { %v4324_v33 = vpack.c.bf16 %v4301_v53, %v4300_v55  ;;  %v4103_v55 = vld [vmem:[#allocation2 + $0xc2] sm:$0xff] }
 0x66a   : > { %5839 = vmatmul.msk.bf16.vlgmr.msra.gmra.mxu3 %vm4391_vm6, %v4324_v33 }
 0x66b   : > { %4014 = vrot.lane.b32.xlu0 %v3924_v39, %s6206_s9  ;;  %3821 = vrot.lane.b32.xlu1 %v3731_v6, %s6205_s6  ;;  %v4122_v6 = vld [vmem:[#allocation2 + $0x1a2] sm:$0xff] }
 0x66c   : > { %4171 = vrot.lane.b32.xlu2 %v4099_v35, %s6207_s11  ;;  %v3929_v35 = vld [vmem:[#allocation2 + $0x1a1] sm:$0xff] }
 0x66d   : > { %v3999_v49 = vpop.permute.xlu0 %3998  ;;  %v3806_v2 = vpop.permute.xlu1 %3805 }
 0x66e   : > { %3884 = vst.msk [vmem:[#allocation4 + $0x90] sm:$0xff] %vm3865_vm3, %v3806_v2  ;;  %v3969_v16 = vpop.permute.xlu2 %3968  ;;  %v4285_v25 = vld [vmem:[#allocation4 + $0x8] sm:$0xff] }
 0x66f   : > { %4077 = vst.msk [vmem:[#allocation4 + $0x90] sm:$0xff] %vm4058_vm4, %v3999_v49  ;;  %v4316_v17 = vpack.c.bf16 %v4285_v25, %v4284_v38  ;;  %v3736_v49 = vld [vmem:[#allocation2 + $0x1a0] sm:$0xff] }
 0x670   : > { %4270 = vst.msk [vmem:[#allocation4 + $0x90] sm:$0xff] %vm4251_vm5, %v4192_v13  ;;  %v3735_v13 = vld [vmem:[#allocation2 + $0x198] sm:$0xff] }
 0x671   : > { %4062 = vst.msk [vmem:[#allocation4 + $0x18] sm:$0xff] %vm4058_vm4, %v3969_v16  ;;  %5831 = vmatmul.msk.bf16.vlgmr.msra.gmra.mxu1 %vm4391_vm6, %v4316_v17 }
 0x673   : > { %4209 = vrot.lane.b32.xlu0 %v4118_v62, %s6207_s11  ;;  %4016 = vrot.lane.b32.xlu1 %v3925_v21, %s6206_s9  ;;  %v4121_v21 = vld [vmem:[#allocation2 + $0x19a] sm:$0xff] }
 0x674   : > { %3823 = vrot.lane.b32.xlu2 %v3732_v48, %s6205_s6  ;;  %v3912_v48 = vld [vmem:[#allocation2 + $0xd9] sm:$0xff] }
 0x675   : > { %v4194_v60 = vpop.permute.xlu0 %4193  ;;  %v4001_v3 = vpop.permute.xlu1 %4000 }
 0x676   : > { %4078 = vst.msk [vmem:[#allocation4 + $0x98] sm:$0xff] %vm4058_vm4, %v4001_v3  ;;  %v3810_v23 = vpop.permute.xlu2 %3809 }
 0x677   : > { %4271 = vst.msk [vmem:[#allocation4 + $0x98] sm:$0xff] %vm4251_vm5, %v4194_v60  ;;  %v4302_v56 = vld [vmem:[#allocation4 + $0x90] sm:$0xff]  ;;  %v3719_v60 = vld [vmem:[#allocation2 + $0xd8] sm:$0xff] }
 0x678   : > { %3886 = vst.msk [vmem:[#allocation4 + $0xa0] sm:$0xff] %vm3865_vm3, %v3810_v23 }
 0x67b   : > { %3982 = vrot.lane.b32.xlu0 %v3908_v42, %s6206_s9  ;;  %3789 = vrot.lane.b32.xlu1 %v3715_v63, %s6205_s6 }
 0x67c   : > { %4207 = vrot.lane.b32.xlu2 %v4117_v24, %s6207_s11 }
 0x67d   : > { %v4160_v50 = vpop.permute.xlu0 %4159  ;;  %v3967_v11 = vpop.permute.xlu1 %3966 }
 0x67e   : > { %4061 = vst.msk [vmem:[#allocation4 + $0x10] sm:$0xff] %vm4058_vm4, %v3967_v11  ;;  %v4005_v43 = vpop.permute.xlu2 %4004  ;;  %v4303_v45 = vld [vmem:[#allocation4 + $0x98] sm:$0xff] }
 0x67f   : > { %4254 = vst.msk [vmem:[#allocation4 + $0x10] sm:$0xff] %vm4251_vm5, %v4160_v50  ;;  %v4325_v4 = vpack.c.bf16 %v4303_v45, %v4302_v56  ;;  %v4106_v11 = vld [vmem:[#allocation2 + $0xe2] sm:$0xff] }
 0x680   : > { %v3720_v56 = vld [vmem:[#allocation2 + $0xe0] sm:$0xff] }
 0x681   : > { %5840 = vmatmul.msk.bf16.gmra.mxu3 %vm4391_vm6, %v4325_v4 }
 0x683   : > { %4177 = vrot.lane.b32.xlu0 %v4102_v34, %s6207_s11  ;;  %3984 = vrot.lane.b32.xlu1 %v3909_v9, %s6206_s9  ;;  %v4105_v9 = vld [vmem:[#allocation2 + $0xda] sm:$0xff] }
 0x684   : > { %3791 = vrot.lane.b32.xlu2 %v3716_v59, %s6205_s6 }
 0x685   : > { %v3812_v1 = vpop.permute.xlu0 %3811  ;;  %v4162_v47 = vpop.permute.xlu1 %4161 }
 0x686   : > { %3887 = vst.msk [vmem:[#allocation4 + $0xa8] sm:$0xff] %vm3865_vm3, %v3812_v1  ;;  %v3971_v26 = vpop.permute.xlu2 %3970  ;;  %v4286_v32 = vld [vmem:[#allocation4 + $0x10] sm:$0xff] }
 0x687   : > { %4080 = vst.msk [vmem:[#allocation4 + $0xa8] sm:$0xff] %vm4058_vm4, %v4005_v43  ;;  %v3913_v43 = vld [vmem:[#allocation2 + $0xe1] sm:$0xff] }
 0x688   : > { %4255 = vst.msk [vmem:[#allocation4 + $0x18] sm:$0xff] %vm4251_vm5, %v4162_v47 }
 0x689   : > { %4063 = vst.msk [vmem:[#allocation4 + $0x20] sm:$0xff] %vm4058_vm4, %v3971_v26 }
 0x68b   : > { %4018 = vrot.lane.b32.xlu0 %v8298_v22, %s6206_s9  ;;  %3825 = vrot.lane.b32.xlu1 %v3733_v58, %s6205_s6  ;;  %v3734_v22 = vld [vmem:[#allocation2 + $0x188] sm:$0xff] }
 0x68c   : > { %4175 = vrot.lane.b32.xlu2 %v4101_v31, %s6207_s11 }
 0x68d   : > { %v4196_v7 = vpop.permute.xlu0 %4195  ;;  %v4003_v61 = vpop.permute.xlu1 %4002 }
 0x68e   : > { %4079 = vst.msk [vmem:[#allocation4 + $0xa0] sm:$0xff] %vm4058_vm4, %v4003_v61  ;;  %v4166_v40 = vpop.permute.xlu2 %4165 }
 0x68f   : > { %4272 = vst.msk [vmem:[#allocation4 + $0xa0] sm:$0xff] %vm4251_vm5, %v4196_v7  ;;  %v4287_v5 = vld [vmem:[#allocation4 + $0x18] sm:$0xff] }
 0x690   : > { %v4317_v27 = vpack.c.bf16 %v4287_v5, %v4286_v32 }
 0x692   : > { %5832 = vmatmul.msk.bf16.gmra.mxu1 %vm4391_vm6, %v4317_v27 }
 0x693   : > { %4213 = vrot.lane.b32.xlu0 %v8401_v28, %s6207_s11  ;;  %4020 = vrot.lane.b32.xlu1 %v8309_v46, %s6206_s9 }
 0x694   : > { %3827 = vrot.lane.b32.xlu2 %v3734_v22, %s6205_s6 }
 0x695   : > { %v3973_v8 = vpop.permute.xlu0 %3972  ;;  %v4198_v51 = vpop.permute.xlu1 %4197 }
 0x696   : > { %4064 = vst.msk [vmem:[#allocation4 + $0x28] sm:$0xff] %vm4058_vm4, %v3973_v8  ;;  %v4007_v41 = vpop.permute.xlu2 %4006  ;;  %v4304_v54 = vld [vmem:[#allocation4 + $0xa0] sm:$0xff] }
 0x697   : > { %4257 = vst.msk [vmem:[#allocation4 + $0x28] sm:$0xff] %vm4251_vm5, %v4166_v40 }
 0x698   : > { %4273 = vst.msk [vmem:[#allocation4 + $0xa8] sm:$0xff] %vm4251_vm5, %v4198_v51 }
 0x69b   : > { %3986 = vrot.lane.b32.xlu0 %v3910_v18, %s6206_s9  ;;  %3793 = vrot.lane.b32.xlu1 %v3717_v37, %s6205_s6 }
 0x69c   : > { %4211 = vrot.lane.b32.xlu2 %v8414_v44, %s6207_s11  ;;  %v3718_v44 = vld [vmem:[#allocation2 + $0xc8] sm:$0xff] }
 0x69d   : > { %v3814_v46 = vpop.permute.xlu0 %3813  ;;  %v4164_v28 = vpop.permute.xlu1 %4163 }
 0x69e   : > { %3888 = vst.msk [vmem:[#allocation4 + $0xb0] sm:$0xff] %vm3865_vm3, %v3814_v46  ;;  %v4202_v0 = vpop.permute.xlu2 %4201  ;;  %v4289_v15 = vld [vmem:[#allocation4 + $0x28] sm:$0xff] }
 0x69f   : > { %4081 = vst.msk [vmem:[#allocation4 + $0xb0] sm:$0xff] %vm4058_vm4, %v4007_v41  ;;  %v4305_v36 = vld [vmem:[#allocation4 + $0xa8] sm:$0xff] }
 0x6a0   : > { %4256 = vst.msk [vmem:[#allocation4 + $0x20] sm:$0xff] %vm4251_vm5, %v4164_v28  ;;  %v4326_v19 = vpack.c.bf16 %v4305_v36, %v4304_v54  ;;  %v8672_v28 = vld [vmem:[%s10024_s4] ss:$0 sm:$0xff] }
 0x6a2   : > { %5841 = vmatmul.msk.bf16.gmra.mxu3 %vm4391_vm6, %v4326_v19 }
 0x6a3   : > { %4181 = vrot.lane.b32.xlu0 %v4104_v30, %s6207_s11  ;;  %3988 = vrot.lane.b32.xlu1 %v3911_v57, %s6206_s9 }
 0x6a4   : > { %3795 = vrot.lane.b32.xlu2 %v3718_v44, %s6205_s6 }
 0x6a5   : > { %v4009_v52 = vpop.permute.xlu0 %4008  ;;  %v3816_v14 = vpop.permute.xlu1 %3815 }
 0x6a6   : > { %3889 = vst.msk [vmem:[#allocation4 + $0xb8] sm:$0xff] %vm3865_vm3, %v3816_v14  ;;  %v4168_v29 = vpop.permute.xlu2 %4167 }
 0x6a7   : > { %4082 = vst.msk [vmem:[#allocation4 + $0xb8] sm:$0xff] %vm4058_vm4, %v4009_v52  ;;  %v4288_v10 = vld [vmem:[#allocation4 + $0x20] sm:$0xff]  ;;  %v8682_v52 = vld [vmem:[%s10025_s5] ss:$0 sm:$0xff] }
 0x6a8   : > { %4275 = vst.msk [vmem:[#allocation4 + $0xb8] sm:$0xff] %vm4251_vm5, %v4202_v0  ;;  %v4318_v12 = vpack.c.bf16 %v4289_v15, %v4288_v10 }
 0x6aa   : > { %5833 = vmatmul.msk.bf16.gmra.mxu1 %vm4391_vm6, %v4318_v12 }
 0x6ab   : > { %4022 = vrot.lane.b32.xlu0 %v3928_v20, %s6206_s9  ;;  %3829 = vrot.lane.b32.xlu1 %v3735_v13, %s6205_s6 }
 0x6ac   : > { %4179 = vrot.lane.b32.xlu2 %v4103_v55, %s6207_s11 }
 0x6ad   : > { %v3975_v53 = vpop.permute.xlu0 %3974  ;;  %v4200_v33 = vpop.permute.xlu1 %4199 }
 0x6ae   : > { %4065 = vst.msk [vmem:[#allocation4 + $0x30] sm:$0xff] %vm4058_vm4, %v3975_v53  ;;  %v3820_v39 = vpop.permute.xlu2 %3819 }
 0x6af   : > { %4258 = vst.msk [vmem:[#allocation4 + $0x30] sm:$0xff] %vm4251_vm5, %v4168_v29  ;;  %v4307_v17 = vld [vmem:[#allocation4 + $0xb8] sm:$0xff] }
 0x6b0   : > { %4274 = vst.msk [vmem:[#allocation4 + $0xb0] sm:$0xff] %vm4251_vm5, %v4200_v33 }
 0x6b1   : > { %3891 = vst.msk [vmem:[#allocation4 + $0xc8] sm:$0xff] %vm3865_vm3, %v3820_v39 }
 0x6b3   : > { %4217 = vrot.lane.b32.xlu0 %v4122_v6, %s6207_s11  ;;  %4024 = vrot.lane.b32.xlu1 %v3929_v35, %s6206_s9 }
 0x6b4   : > { %3831 = vrot.lane.b32.xlu2 %v3736_v49, %s6205_s6 }
 0x6b5   : > { %v4170_v2 = vpop.permute.xlu0 %4169  ;;  %v3977_v16 = vpop.permute.xlu1 %3976 }
 0x6b6   : > { %4066 = vst.msk [vmem:[#allocation4 + $0x38] sm:$0xff] %vm4058_vm4, %v3977_v16  ;;  %v4204_v38 = vpop.permute.xlu2 %4203  ;;  %v4290_v63 = vld [vmem:[#allocation4 + $0x30] sm:$0xff] }
 0x6b7   : > { %4259 = vst.msk [vmem:[#allocation4 + $0x38] sm:$0xff] %vm4251_vm5, %v4170_v2  ;;  %v4306_v25 = vld [vmem:[#allocation4 + $0xb0] sm:$0xff] }
 0x6b8   : > { %v4327_v62 = vpack.c.bf16 %v4307_v17, %v4306_v25 }
 0x6ba   : > { %5842 = vmatmul.msk.bf16.gmra.mxu3 %vm4391_vm6, %v4327_v62 }
 0x6bb   : > { %3990 = vrot.lane.b32.xlu0 %v3912_v48, %s6206_s9  ;;  %3797 = vrot.lane.b32.xlu1 %v3719_v60, %s6205_s6 }
 0x6bc   : > { %4215 = vrot.lane.b32.xlu2 %v4121_v21, %s6207_s11 }
 0x6bd   : > { %v4011_v3 = vpop.permute.xlu0 %4010  ;;  %v3818_v23 = vpop.permute.xlu1 %3817 }
 0x6be   : > { %3890 = vst.msk [vmem:[#allocation4 + $0xc0] sm:$0xff] %vm3865_vm3, %v3818_v23  ;;  %v3788_v42 = vpop.permute.xlu2 %3787  ;;  %v4291_v24 = vld [vmem:[#allocation4 + $0x38] sm:$0xff] }
 0x6bf   : > { %4083 = vst.msk [vmem:[#allocation4 + $0xc0] sm:$0xff] %vm4058_vm4, %v4011_v3  ;;  %v4319_v50 = vpack.c.bf16 %v4291_v24, %v4290_v63 }
 0x6c0   : > { %4276 = vst.msk [vmem:[#allocation4 + $0xc0] sm:$0xff] %vm4251_vm5, %v4204_v38 }
 0x6c1   : > { %3875 = vst.msk [vmem:[#allocation4 + $0x48] sm:$0xff] %vm3865_vm3, %v3788_v42  ;;  %5834 = vmatmul.msk.bf16.gmra.mxu1 %vm4391_vm6, %v4319_v50 }
 0x6c3   : > { %4185 = vrot.lane.b32.xlu0 %v4106_v11, %s6207_s11  ;;  %3992 = vrot.lane.b32.xlu1 %v3913_v43, %s6206_s9 }
 0x6c4   : > { %3799 = vrot.lane.b32.xlu2 %v3720_v56, %s6205_s6  ;;  %s6128_s6 = scalar_lea.hbm %s6127_s19, 16 }
 0x6c5   : > { %v4206_v45 = vpop.permute.xlu0 %4205  ;;  %v4013_v4 = vpop.permute.xlu1 %4012  ;;  %p6129_p12 = scmp.ne.s32.totalorder %s6127_s19, %s6128_s6  ;;  %p6134_p2 = scmp.lt.s32.totalorder %s6132_s21, %s6128_s6 }
 0x6c6   : > { %4084 = vst.msk [vmem:[#allocation4 + $0xc8] sm:$0xff] %vm4058_vm4, %v4013_v4  ;;  %v4172_v34 = vpop.permute.xlu2 %4171 }
 0x6c7   : > { %4277 = vst.msk [vmem:[#allocation4 + $0xc8] sm:$0xff] %vm4251_vm5, %v4206_v45  ;;  %v4308_v26 = vld [vmem:[#allocation4 + $0xc0] sm:$0xff]  ;;  %p6130_p13 = pnand %p6129_p12, %p6294_p4  ;;  %p6135_p3 = por %p6134_p2, %p6133_p1 }
 0x6c9   : > { %p6131_p0 = pneg %p6130_p13 }
 0x6cb   : > { %p6136_p5 = pnand %p6135_p3, %p6131_p0 }
 0x6cc   : > { %4183 = vrot.lane.b32.xlu2 %v4105_v9, %s6207_s11 }
 0x6cd   : > { %v3979_v59 = vpop.permute.xlu0 %3978  ;;  %v3786_v1 = vpop.permute.xlu1 %3785 }
 0x6ce   : > { %3874 = vst.msk [vmem:[#allocation4 + $0x40] sm:$0xff] %vm3865_vm3, %v3786_v1  ;;  %v3824_v47 = vpop.permute.xlu2 %3823  ;;  %v4309_v58 = vld [vmem:[#allocation4 + $0xc8] sm:$0xff] }
 0x6cf   : > { %4067 = vst.msk [vmem:[#allocation4 + $0x40] sm:$0xff] %vm4058_vm4, %v3979_v59  ;;  %v4328_v31 = vpack.c.bf16 %v4309_v58, %v4308_v26 }
 0x6d0   : > { %4260 = vst.msk [vmem:[#allocation4 + $0x40] sm:$0xff] %vm4251_vm5, %v4172_v34 }
 0x6d1   : > { %3893 = vst.msk [vmem:[#allocation4 + $0xd8] sm:$0xff] %vm3865_vm3, %v3824_v47  ;;  %5843 = vmatmul.msk.bf16.gmra.mxu3 %vm4391_vm6, %v4328_v31 }
 0x6d5   : > { %v4174_v7 = vpop.permute.xlu0 %4173  ;;  %v3981_v61 = vpop.permute.xlu1 %3980 }
 0x6d6   : > { %4068 = vst.msk [vmem:[#allocation4 + $0x48] sm:$0xff] %vm4058_vm4, %v3981_v61  ;;  %v4208_v40 = vpop.permute.xlu2 %4207 }
 0x6d7   : > { %4261 = vst.msk [vmem:[#allocation4 + $0x48] sm:$0xff] %vm4251_vm5, %v4174_v7  ;;  %v4292_v22 = vld [vmem:[#allocation4 + $0x40] sm:$0xff] }
 0x6dd   : > { %v4015_v32 = vpop.permute.xlu0 %4014  ;;  %v3822_v5 = vpop.permute.xlu1 %3821 }
 0x6de   : > { %3892 = vst.msk [vmem:[#allocation4 + $0xd0] sm:$0xff] %vm3865_vm3, %v3822_v5  ;;  %v3792_v27 = vpop.permute.xlu2 %3791  ;;  %v4293_v8 = vld [vmem:[#allocation4 + $0x48] sm:$0xff] }
 0x6df   : > { %4085 = vst.msk [vmem:[#allocation4 + $0xd0] sm:$0xff] %vm4058_vm4, %v4015_v32  ;;  %v4320_v51 = vpack.c.bf16 %v4293_v8, %v4292_v22 }
 0x6e0   : > { %4278 = vst.msk [vmem:[#allocation4 + $0xd0] sm:$0xff] %vm4251_vm5, %v4208_v40 }
 0x6e1   : > { %3877 = vst.msk [vmem:[#allocation4 + $0x58] sm:$0xff] %vm3865_vm3, %v3792_v27  ;;  %5835 = vmatmul.msk.bf16.gmra.mxu1 %vm4391_vm6, %v4320_v51 }
 0x6e5   : > { %v4210_v41 = vpop.permute.xlu0 %4209  ;;  %v4017_v18 = vpop.permute.xlu1 %4016 }
 0x6e6   : > { %4086 = vst.msk [vmem:[#allocation4 + $0xd8] sm:$0xff] %vm4058_vm4, %v4017_v18  ;;  %v4176_v37 = vpop.permute.xlu2 %4175 }
 0x6e7   : > { %4279 = vst.msk [vmem:[#allocation4 + $0xd8] sm:$0xff] %vm4251_vm5, %v4210_v41  ;;  %v4310_v36 = vld [vmem:[#allocation4 + $0xd0] sm:$0xff] }
 0x6ed   : > { %v3983_v46 = vpop.permute.xlu0 %3982  ;;  %v3790_v0 = vpop.permute.xlu1 %3789 }
 0x6ee   : > { %v3828_v54 = vpop.permute.xlu2 %3827  ;;  %v4311_v19 = vld [vmem:[#allocation4 + $0xd8] sm:$0xff]  ;;  %3876 = vst.msk [vmem:[#allocation4 + $0x50] sm:$0xff] %vm3865_vm3, %v3790_v0  ;;  %v4452_v30 = vpop.f32.mrf.mxu1 }
 0x6ef   : > { %v4329_v57 = vpack.c.bf16 %v4311_v19, %v4310_v36  ;;  %4069 = vst.msk [vmem:[#allocation4 + $0x50] sm:$0xff] %vm4058_vm4, %v3983_v46  ;;  %v4453_v44 = vadd.f32 %v8672_v28, %v4452_v30  ;;  %v4492_v32 = vpop.f32.mrf.mxu3 }
 0x6f0   : > { %4262 = vst.msk [vmem:[#allocation4 + $0x50] sm:$0xff] %vm4251_vm5, %v4176_v37 }
 0x6f1   : > { %5844 = vmatmul.msk.bf16.gmra.mxu3 %vm4391_vm6, %v4329_v57  ;;  %3895 = vst.msk [vmem:[#allocation4 + $0xe8] sm:$0xff] %vm3865_vm3, %v3828_v54  ;;  %v4532_v14 = vmax.f32 %v4453_v44, 0.0 }
 0x6f3   : > { %v4568_v29 = vmul.f32 %v8682_v52, %v4532_v14 }
 0x6f5   : > { %v4178_v10 = vpop.permute.xlu0 %4177  ;;  %v3985_v15 = vpop.permute.xlu1 %3984  ;;  %v4600_v20 = vsel %vm2637_vm12, %v4568_v29, 0.0 }
 0x6f6   : > { %v4212_v12 = vpop.permute.xlu2 %4211  ;;  %4070 = vst.msk [vmem:[#allocation4 + $0x58] sm:$0xff] %vm4058_vm4, %v3985_v15  ;;  %v4454_v13 = vpop.f32.mrf.mxu1  ;;  %4601 = vadd.xlane.f32.xlu1 %v4600_v20 }
 0x6f7   : > { %4263 = vst.msk [vmem:[#allocation4 + $0x58] sm:$0xff] %vm4251_vm5, %v4178_v10  ;;  %v4455_v55 = vadd.f32 %v8672_v28, %v4454_v13  ;;  %v4294_v2 = vld [vmem:[#allocation4 + $0x50] sm:$0xff]  ;;  %v4494_v41 = vpop.f32.mrf.mxu3 }
 0x6f9   : > { %v4533_v53 = vmax.f32 %v4455_v55, 0.0 }
 0x6fb   : > { %v4569_v33 = vmul.f32 %v8682_v52, %v4533_v53 }
 0x6fd   : > { %v4019_v39 = vpop.permute.xlu0 %4018  ;;  %v3826_v6 = vpop.permute.xlu1 %3825  ;;  %v4603_v49 = vsel %vm2637_vm12, %v4569_v33, 0.0 }
 0x6fe   : > { %v3796_v35 = vpop.permute.xlu2 %3795  ;;  %3894 = vst.msk [vmem:[#allocation4 + $0xe0] sm:$0xff] %vm3865_vm3, %v3826_v6  ;;  %4604 = vadd.xlane.f32.xlu2 %v4603_v49  ;;  %v4295_v16 = vld [vmem:[#allocation4 + $0x58] sm:$0xff] }
 0x6ff   : > { %4087 = vst.msk [vmem:[#allocation4 + $0xe0] sm:$0xff] %vm4058_vm4, %v4019_v39  ;;  %v4321_v38 = vpack.c.bf16 %v4295_v16, %v4294_v2 }
 0x700   : > { %4280 = vst.msk [vmem:[#allocation4 + $0xe0] sm:$0xff] %vm4251_vm5, %v4212_v12 }
 0x701   : > { %3879 = vst.msk [vmem:[#allocation4 + $0x68] sm:$0xff] %vm3865_vm3, %v3796_v35  ;;  %5836 = vmatmul.msk.bf16.gmra.mxu1 %vm4391_vm6, %v4321_v38 }
 0x704   : > { %v4497_v29 = vpop.f32.mrf.mxu3 }
 0x705   : > { %v4214_v25 = vpop.permute.xlu0 %4213  ;;  %v4021_v17 = vpop.permute.xlu1 %4020 }
 0x706   : > { %v4180_v62 = vpop.permute.xlu2 %4179  ;;  %4088 = vst.msk [vmem:[#allocation4 + $0xe8] sm:$0xff] %vm4058_vm4, %v4021_v17  ;;  %v4493_v17 = vadd.f32 %v8672_v28, %v4492_v32 }
 0x707   : > { %4281 = vst.msk [vmem:[#allocation4 + $0xe8] sm:$0xff] %vm4251_vm5, %v4214_v25  ;;  %v4312_v23 = vld [vmem:[#allocation4 + $0xe0] sm:$0xff] }
 0x70c   : > { %v4499_v13 = vpop.f32.mrf.mxu3 }
 0x70d   : > { %v3987_v21 = vpop.permute.xlu0 %3986  ;;  %v3794_v48 = vpop.permute.xlu1 %3793 }
 0x70e   : > { %v3832_v60 = vpop.permute.xlu2 %3831  ;;  %3878 = vst.msk [vmem:[#allocation4 + $0x60] sm:$0xff] %vm3865_vm3, %v3794_v48  ;;  %v4313_v42 = vld [vmem:[#allocation4 + $0xe8] sm:$0xff]  ;;  %v4548_v48 = vmax.f32 %v4493_v17, 0.0 }
 0x70f   : > { %v4457_v3 = vpop.f32.mrf.mxu1  ;;  %4071 = vst.msk [vmem:[#allocation4 + $0x60] sm:$0xff] %vm4058_vm4, %v3987_v21  ;;  %v4330_v24 = vpack.c.bf16 %v4313_v42, %v4312_v23  ;;  %v4500_v42 = vadd.f32 %v8672_v28, %v4499_v13 }
 0x710   : > { %v4458_v63 = vadd.f32 %v8672_v28, %v4457_v3  ;;  %4264 = vst.msk [vmem:[#allocation4 + $0x60] sm:$0xff] %vm4251_vm5, %v4180_v62  ;;  %v4584_v23 = vmul.f32 %v8682_v52, %v4548_v48 }
 0x711   : > { %3897 = vst.msk [vmem:[#allocation4 + $0xf8] sm:$0xff] %vm3865_vm3, %v3832_v60  ;;  %5845 = vmatmul.msk.bf16.gmra.mxu3 %vm4391_vm6, %v4330_v24 }
 0x712   : > { %v4534_v50 = vmax.f32 %v4458_v63, 0.0  ;;  %v4551_v63 = vmax.f32 %v4500_v42, 0.0  ;;  %v4648_v24 = vsel %vm2637_vm12, %v4584_v23, 0.0 }
 0x714   : > { %v4570_v11 = vmul.f32 %v8682_v52, %v4534_v50 }
 0x715   : > { %v4182_v43 = vpop.permute.xlu0 %4181  ;;  %v3989_v56 = vpop.permute.xlu1 %3988 }
 0x716   : > { %v4216_v45 = vpop.permute.xlu2 %4215  ;;  %v4606_v4 = vsel %vm2637_vm12, %v4570_v11, 0.0  ;;  %4072 = vst.msk [vmem:[#allocation4 + $0x68] sm:$0xff] %vm4058_vm4, %v3989_v56  ;;  %v4587_v11 = vmul.f32 %v8682_v52, %v4551_v63 }
 0x717   : > { %v4459_v34 = vpop.f32.mrf.mxu1  ;;  %4607 = vadd.xlane.f32.xlu0 %v4606_v4  ;;  %4265 = vst.msk [vmem:[#allocation4 + $0x68] sm:$0xff] %vm4251_vm5, %v4182_v43  ;;  %v4296_v7 = vld [vmem:[#allocation4 + $0x60] sm:$0xff]  ;;  %v6208_v43 = vmov 0  }
 0x718   : > { %v4460_v9 = vadd.f32 %v8672_v28, %v4459_v34  ;;  %5978 = vset.pattern.permute.xlu1 %v6208_v43  ;;  %5979 = vset.pattern.permute.xlu0 %v6208_v43  ;;  %v4657_v56 = vsel %vm2637_vm12, %v4587_v11, 0.0  ;;  %v4495_v34 = vadd.f32 %v8672_v28, %v4494_v41 }
 0x71a   : > { %v4535_v59 = vmax.f32 %v4460_v9, 0.0 }
 0x71c   : > { %v4571_v1 = vmul.f32 %v8682_v52, %v4535_v59 }
 0x71d   : > { %v4023_v47 = vpop.permute.xlu0 %4022  ;;  %v3830_v26 = vpop.permute.xlu1 %3829 }
 0x71e   : > { %v4609_v58 = vsel %vm2637_vm12, %v4571_v1, 0.0  ;;  %3896 = vst.msk [vmem:[#allocation4 + $0xf0] sm:$0xff] %vm3865_vm3, %v3830_v26  ;;  %v3800_v31 = vpop.permute.xlu2 %3799  ;;  %v4297_v61 = vld [vmem:[#allocation4 + $0x68] sm:$0xff] }
 0x71f   : > { %4610 = vadd.xlane.f32.xlu2 %v4609_v58  ;;  %4089 = vst.msk [vmem:[#allocation4 + $0xf0] sm:$0xff] %vm4058_vm4, %v4023_v47  ;;  %v4322_v40 = vpack.c.bf16 %v4297_v61, %v4296_v7  ;;  %v4549_v47 = vmax.f32 %v4495_v34, 0.0  ;;  %v4498_v61 = vadd.f32 %v8672_v28, %v4497_v29 }
 0x720   : > { %4282 = vst.msk [vmem:[#allocation4 + $0xf0] sm:$0xff] %vm4251_vm5, %v4216_v45 }
 0x721   : > { %3881 = vst.msk [vmem:[#allocation4 + $0x78] sm:$0xff] %vm3865_vm3, %v3800_v31  ;;  %5837 = vmatmul.msk.bf16.gmra.mxu1 %vm4391_vm6, %v4322_v40  ;;  %v4585_v7 = vmul.f32 %v8682_v52, %v4549_v47 }
 0x725   : > { %v4218_v5 = vpop.permute.xlu0 %4217  ;;  %v4025_v27 = vpop.permute.xlu1 %4024 }
 0x726   : > { %4090 = vst.msk [vmem:[#allocation4 + $0xf8] sm:$0xff] %vm4058_vm4, %v4025_v27  ;;  %v4184_v30 = vpop.permute.xlu2 %4183  ;;  %v4502_v16 = vpop.f32.mrf.mxu3 }
 0x727   : > { %v4462_v22 = vpop.f32.mrf.mxu1  ;;  %4283 = vst.msk [vmem:[#allocation4 + $0xf8] sm:$0xff] %vm4251_vm5, %v4218_v5  ;;  %v4314_v46 = vld [vmem:[#allocation4 + $0xf0] sm:$0xff]  ;;  %v4503_v40 = vadd.f32 %v8672_v28, %v4502_v16 }
 0x728   : > { %v4463_v8 = vadd.f32 %v8672_v28, %v4462_v22  ;;  %v4550_v22 = vmax.f32 %v4498_v61, 0.0 }
 0x72a   : > { %v4536_v51 = vmax.f32 %v4463_v8, 0.0  ;;  %v4552_v8 = vmax.f32 %v4503_v40, 0.0 }
 0x72c   : > { %v4572_v18 = vmul.f32 %v8682_v52, %v4536_v51  ;;  %v4651_v51 = vsel %vm2637_vm12, %v4585_v7, 0.0 }
 0x72d   : > { %v3991_v37 = vpop.permute.xlu0 %3990  ;;  %v3798_v0 = vpop.permute.xlu1 %3797 }
 0x72e   : > { %v4612_v54 = vsel %vm2637_vm12, %v4572_v18, 0.0  ;;  %3880 = vst.msk [vmem:[#allocation4 + $0x70] sm:$0xff] %vm3865_vm3, %v3798_v0  ;;  %v4315_v19 = vld [vmem:[#allocation4 + $0xf8] sm:$0xff]  ;;  %v4504_v3 = vpop.f32.mrf.mxu3  ;;  %v4586_v18 = vmul.f32 %v8682_v52, %v4550_v22 }
 0x72f   : > { %v4464_v36 = vpop.f32.mrf.mxu1  ;;  %4613 = vadd.xlane.f32.xlu1 %v4612_v54  ;;  %4073 = vst.msk [vmem:[#allocation4 + $0x70] sm:$0xff] %vm4058_vm4, %v3991_v37  ;;  %v4331_v44 = vpack.c.bf16 %v4315_v19, %v4314_v46  ;;  %v4588_v37 = vmul.f32 %v8682_v52, %v4552_v8  ;;  %v4505_v46 = vadd.f32 %v8672_v28, %v4504_v3  ;;  %v5983_v54 = vld [vmem:[#allocation5] ss:$0 sm:$0xff] }
 0x730   : > { %v4465_v57 = vadd.f32 %v8672_v28, %v4464_v36  ;;  %4266 = vst.msk [vmem:[#allocation4 + $0x70] sm:$0xff] %vm4251_vm5, %v4184_v30 }
 0x731   : > { %5846 = vmatmul.msk.bf16.gmra.mxu3 %vm4391_vm6, %v4331_v44  ;;  %v4553_v19 = vmax.f32 %v4505_v46, 0.0  ;;  %v4654_v44 = vsel %vm2637_vm12, %v4586_v18, 0.0 }
 0x732   : > { %v4537_v14 = vmax.f32 %v4465_v57, 0.0  ;;  %v4660_v57 = vsel %vm2637_vm12, %v4588_v37, 0.0 }
 0x734   : > { %v4573_v10 = vmul.f32 %v8682_v52, %v4537_v14  ;;  %v4589_v14 = vmul.f32 %v8682_v52, %v4553_v19 }
 0x735   : > { %v4186_v15 = vpop.permute.xlu0 %4185  ;;  %v3993_v12 = vpop.permute.xlu1 %3992 }
 0x736   : > { %v4615_v20 = vsel %vm2637_vm12, %v4573_v10, 0.0  ;;  %4074 = vst.msk [vmem:[#allocation4 + $0x78] sm:$0xff] %vm4058_vm4, %v3993_v12 }
 0x737   : > { %4616 = vadd.xlane.f32.xlu2 %v4615_v20  ;;  %4267 = vst.msk [vmem:[#allocation4 + $0x78] sm:$0xff] %vm4251_vm5, %v4186_v15  ;;  %v4298_v33 = vld [vmem:[#allocation4 + $0x70] sm:$0xff] }
 0x73d   : > { %v4507_v50 = vpop.f32.mrf.mxu3 }
 0x73e   : > { %v4467_v55 = vpop.f32.mrf.mxu1  ;;  %v4299_v39 = vld [vmem:[#allocation4 + $0x78] sm:$0xff]  ;;  %v4508_v0 = vadd.f32 %v8672_v28, %v4507_v50 }
 0x73f   : > { %v4468_v53 = vadd.f32 %v8672_v28, %v4467_v55  ;;  %v4323_v6 = vpack.c.bf16 %v4299_v39, %v4298_v33 }
 0x740   : > { %v4554_v30 = vmax.f32 %v4508_v0, 0.0 }
 0x741   : > { %v4538_v35 = vmax.f32 %v4468_v53, 0.0  ;;  %5838 = vmatmul.msk.bf16.gmra.mxu1 %vm4391_vm6, %v4323_v6  ;;  %v4663_v53 = vsel %vm2637_vm12, %v4589_v14, 0.0 }
 0x742   : > { %v4590_v29 = vmul.f32 %v8682_v52, %v4554_v30 }
 0x743   : > { %v4574_v49 = vmul.f32 %v8682_v52, %v4538_v35 }
 0x744   : > { %v4666_v55 = vsel %vm2637_vm12, %v4590_v29, 0.0 }
 0x745   : > { %v4618_v2 = vsel %vm2637_vm12, %v4574_v49, 0.0  ;;  %v4509_v59 = vpop.f32.mrf.mxu3 }
 0x746   : > { %v4469_v38 = vpop.f32.mrf.mxu1  ;;  %4619 = vadd.xlane.f32.xlu0 %v4618_v2  ;;  %v4510_v10 = vadd.f32 %v8672_v28, %v4509_v59 }
 0x747   : > { %v4470_v25 = vadd.f32 %v8672_v28, %v4469_v38 }
 0x748   : > { %v4555_v20 = vmax.f32 %v4510_v10, 0.0 }
 0x749   : > { %v4539_v62 = vmax.f32 %v4470_v25, 0.0 }
 0x74a   : > { %v4591_v39 = vmul.f32 %v8682_v52, %v4555_v20 }
 0x74b   : > { %v4575_v21 = vmul.f32 %v8682_v52, %v4539_v62 }
 0x74c   : > { %v4669_v25 = vsel %vm2637_vm12, %v4591_v39, 0.0 }
 0x74d   : > { %v4621_v60 = vsel %vm2637_vm12, %v4575_v21, 0.0 }
 0x74e   : > { %4622 = vadd.xlane.f32.xlu1 %v4621_v60 }
 0x754   : > { %v4512_v5 = vpop.f32.mrf.mxu3 }
 0x755   : > { %v4513_v15 = vadd.f32 %v8672_v28, %v4512_v5 }
 0x756   : > { %4649 = vadd.xlane.f32.xlu1 %v4648_v24 }
 0x757   : > { %v4556_v13 = vmax.f32 %v4513_v15, 0.0 }
 0x759   : > { %v4592_v6 = vmul.f32 %v8682_v52, %v4556_v13 }
 0x75b   : > { %v4672_v38 = vsel %vm2637_vm12, %v4592_v6, 0.0 }
 0x75c   : > { %v4514_v36 = vpop.f32.mrf.mxu3 }
 0x75d   : > { %v4515_v35 = vadd.f32 %v8672_v28, %v4514_v36 }
 0x75e   : > { %v4472_v45 = vpop.f32.mrf.mxu1  ;;  %4658 = vadd.xlane.f32.xlu1 %v4657_v56 }
 0x75f   : > { %v4473_v4 = vadd.f32 %v8672_v28, %v4472_v45  ;;  %v4557_v2 = vmax.f32 %v4515_v35, 0.0 }
 0x761   : > { %v4540_v9 = vmax.f32 %v4473_v4, 0.0  ;;  %v4593_v21 = vmul.f32 %v8682_v52, %v4557_v2 }
 0x763   : > { %v4576_v1 = vmul.f32 %v8682_v52, %v4540_v9  ;;  %v4675_v24 = vsel %vm2637_vm12, %v4593_v21, 0.0 }
 0x765   : > { %v4624_v26 = vsel %vm2637_vm12, %v4576_v1, 0.0 }
 0x766   : > { %v4474_v58 = vpop.f32.mrf.mxu1  ;;  %4625 = vadd.xlane.f32.xlu2 %v4624_v26 }
 0x767   : > { %v4475_v31 = vadd.f32 %v8672_v28, %v4474_v58 }
 0x769   : > { %v4541_v32 = vmax.f32 %v4475_v31, 0.0 }
 0x76b   : > { %v4577_v27 = vmul.f32 %v8682_v52, %v4541_v32 }
 0x76d   : > { %v4627_v41 = vsel %vm2637_vm12, %v4577_v27, 0.0 }
 0x76e   : > { %4652 = vadd.xlane.f32.xlu2 %v4651_v51  ;;  %4628 = vadd.xlane.f32.xlu0 %v4627_v41 }
 0x774   : > { %v4517_v12 = vpop.f32.mrf.mxu3 }
 0x775   : > { %v4518_v43 = vadd.f32 %v8672_v28, %v4517_v12 }
 0x776   : > { %4661 = vadd.xlane.f32.xlu2 %v4660_v57  ;;  %4655 = vadd.xlane.f32.xlu0 %v4654_v44  ;;  %v8801_v57 = vpop.xlane.xlu2 %4604 }
 0x777   : > { %4700 = vperm.xlu1 %5978, %v5983_v54   ;;  %v4558_v4 = vmax.f32 %v4518_v43, 0.0  ;;  %v8798_v54 = vpop.xlane.xlu1 %4601 }
 0x779   : > { %v4594_v34 = vmul.f32 %v8682_v52, %v4558_v4 }
 0x77b   : > { %v4678_v47 = vsel %vm2637_vm12, %v4594_v34, 0.0 }
 0x77c   : > { %v4519_v17 = vpop.f32.mrf.mxu3 }
 0x77d   : > { %v4520_v48 = vadd.f32 %v8672_v28, %v4519_v17 }
 0x77e   : > { %4667 = vadd.xlane.f32.xlu2 %v4666_v55  ;;  %4664 = vadd.xlane.f32.xlu0 %v4663_v53  ;;  %v4477_v33 = vpop.f32.mrf.mxu1 }
 0x77f   : > { %v4478_v49 = vadd.f32 %v8672_v28, %v4477_v33  ;;  %v4559_v23 = vmax.f32 %v4520_v48, 0.0 }
 0x781   : > { %v4542_v16 = vmax.f32 %v4478_v49, 0.0  ;;  %v4595_v50 = vmul.f32 %v8682_v52, %v4559_v23 }
 0x783   : > { %v4578_v60 = vmul.f32 %v8682_v52, %v4542_v16  ;;  %v4681_v56 = vsel %vm2637_vm12, %v4595_v50, 0.0 }
 0x785   : > { %v4630_v63 = vsel %vm2637_vm12, %v4578_v60, 0.0 }
 0x786   : > { %4673 = vadd.xlane.f32.xlu2 %v4672_v38  ;;  %4670 = vadd.xlane.f32.xlu0 %v4669_v25  ;;  %v4479_v62 = vpop.f32.mrf.mxu1 }
 0x787   : > { %v4480_v3 = vadd.f32 %v8672_v28, %v4479_v62 }
 0x789   : > { %v4543_v42 = vmax.f32 %v4480_v3, 0.0 }
 0x78a   : > { %v4608_v25 = vpop.xlane.xlu0 %4607 }
 0x78b   : > { %v4579_v11 = vmul.f32 %v8682_v52, %v4543_v42 }
 0x78d   : > { %v4633_v45 = vsel %vm2637_vm12, %v4579_v11, 0.0 }
 0x78e   : > { %4631 = vadd.xlane.f32.xlu2 %v4630_v63  ;;  %4676 = vadd.xlane.f32.xlu0 %v4675_v24 }
 0x792   : > { %v8809_v53 = vpop.xlane.xlu2 %4610 }
 0x794   : > { %v4522_v9 = vpop.f32.mrf.mxu3 }
 0x795   : > { %v4523_v26 = vadd.f32 %v8672_v28, %v4522_v9 }
 0x796   : > { %4682 = vadd.xlane.f32.xlu2 %v4681_v56  ;;  %4634 = vadd.xlane.f32.xlu0 %v4633_v45 }
 0x797   : > { %v4560_v7 = vmax.f32 %v4523_v26, 0.0 }
 0x799   : > { %v4596_v27 = vmul.f32 %v8682_v52, %v4560_v7 }
 0x79b   : > { %v4684_v37 = vsel %vm2637_vm12, %v4596_v27, 0.0 }
 0x79c   : > { %v4524_v40 = vpop.f32.mrf.mxu3 }
 0x79d   : > { %v4525_v22 = vadd.f32 %v8672_v28, %v4524_v40 }
 0x79e   : > { %v4482_v59 = vpop.f32.mrf.mxu1 }
 0x79f   : > { %v4483_v1 = vadd.f32 %v8672_v28, %v4482_v59  ;;  %v4561_v41 = vmax.f32 %v4525_v22, 0.0 }
 0x7a1   : > { %4679 = vadd.xlane.f32.xlu1 %v4678_v47  ;;  %v4544_v58 = vmax.f32 %v4483_v1, 0.0  ;;  %v4597_v46 = vmul.f32 %v8682_v52, %v4561_v41 }
 0x7a2   : > { %v8804_v29 = vpop.xlane.xlu1 %4613 }
 0x7a3   : > { %v4580_v31 = vmul.f32 %v8682_v52, %v4544_v58  ;;  %v4687_v0 = vsel %vm2637_vm12, %v4597_v46, 0.0 }
 0x7a5   : > { %v4636_v61 = vsel %vm2637_vm12, %v4580_v31, 0.0 }
 0x7a6   : > { %v4484_v32 = vpop.f32.mrf.mxu1  ;;  %4637 = vadd.xlane.f32.xlu0 %v4636_v61 }
 0x7a7   : > { %v4485_v5 = vadd.f32 %v8672_v28, %v4484_v32 }
 0x7a9   : > { %v4545_v8 = vmax.f32 %v4485_v5, 0.0 }
 0x7aa   : > { %v8818_v17 = vpop.xlane.xlu2 %4616 }
 0x7ab   : > { %v4581_v51 = vmul.f32 %v8682_v52, %v4545_v8 }
 0x7ad   : > { %v4639_v18 = vsel %vm2637_vm12, %v4581_v51, 0.0  ;;  %v5375_v51 = vlaneseq }
 0x7ae   : > { %4640 = vadd.xlane.f32.xlu2 %v4639_v18  ;;  %4685 = vadd.xlane.f32.xlu0 %v4684_v37 }
 0x7b4   : > { %v4527_v36 = vpop.f32.mrf.mxu3 }
 0x7b5   : > { %v4528_v44 = vadd.f32 %v8672_v28, %v4527_v36 }
 0x7b6   : > { %4688 = vadd.xlane.f32.xlu2 %v4687_v0 }
 0x7b7   : > { %v4562_v15 = vmax.f32 %v4528_v44, 0.0  ;;  %v8854_v44 = vand.u32 127, %v5375_v51 }
 0x7b9   : > { %v4598_v33 = vmul.f32 %v8682_v52, %v4562_v15  ;;  %v8822_v48 = vpop.xlane.xlu0 %4619 }
 0x7bb   : > { %v4690_v38 = vsel %vm2637_vm12, %v4598_v33, 0.0 }
 0x7bc   : > { %v4529_v20 = vpop.f32.mrf.mxu3 }
 0x7bd   : > { %v4530_v39 = vadd.f32 %v8672_v28, %v4529_v20 }
 0x7be   : > { %v4487_v19 = vpop.f32.mrf.mxu1 }
 0x7bf   : > { %v4488_v30 = vadd.f32 %v8672_v28, %v4487_v19  ;;  %v4563_v2 = vmax.f32 %v4530_v39, 0.0  ;;  %v8874_v39 = vadd.s32 4294967288, %v8854_v44 }
 0x7c1   : > { %v4546_v14 = vmax.f32 %v4488_v30, 0.0  ;;  %v8813_v35 = vpop.xlane.xlu1 %4622  ;;  %v4599_v62 = vmul.f32 %v8682_v52, %v4563_v2 }
 0x7c3   : > { %v4582_v10 = vmul.f32 %v8682_v52, %v4546_v14 }
 0x7c5   : > { %v4642_v12 = vsel %vm2637_vm12, %v4582_v10, 0.0 }
 0x7c6   : > { %v4489_v13 = vpop.f32.mrf.mxu1  ;;  %4643 = vadd.xlane.f32.xlu0 %v4642_v12 }
 0x7c7   : > { %v4490_v55 = vadd.f32 %v8672_v28, %v4489_v13  ;;  %v4693_v28 = vsel %vm2637_vm12, %v4599_v62, 0.0 }
 0x7c9   : > { %v4547_v6 = vmax.f32 %v4490_v55, 0.0  ;;  %v4650_v21 = vpop.xlane.xlu1 %4649 }
 0x7cb   : > { %v4583_v49 = vmul.f32 %v8682_v52, %v4547_v6 }
 0x7cd   : > { %v4645_v16 = vsel %vm2637_vm12, %v4583_v49, 0.0 }
 0x7ce   : > { %4646 = vadd.xlane.f32.xlu2 %v4645_v16  ;;  %4691 = vadd.xlane.f32.xlu0 %v4690_v38 }
 0x7d1   : > { %v4659_v3 = vpop.xlane.xlu1 %4658 }
 0x7d6   : > { %4694 = vadd.xlane.f32.xlu2 %v4693_v28 }
 0x7d9   : > { %v8824_v60 = vpop.xlane.xlu2 %4625 }
 0x7e1   : > { %v4653_v23 = vpop.xlane.xlu2 %4652  ;;  %v8826_v42 = vpop.xlane.xlu0 %4628 }
 0x7e9   : > { %v8828_v63 = vpop.permute.xlu1 %4700  ;;  %v4662_v24 = vpop.xlane.xlu2 %4661 }
 0x7ea   : > { %v4723_v50 = vadd.f32 %v8828_v63, %v4662_v24  ;;  %v4719_v11 = vadd.f32 %v8828_v63, %v4650_v21  ;;  %v4720_v52 = vadd.f32 %v8828_v63, %v4653_v23  ;;  %v4722_v43 = vadd.f32 %v8828_v63, %v4659_v3  ;;  %v4656_v56 = vpop.xlane.xlu0 %4655 }
 0x7eb   : > { %v4721_v9 = vadd.f32 %v8828_v63, %v4656_v56  ;;  %v4703_v36 = vadd.f32 %v8828_v63, %v8798_v54  ;;  %v4704_v30 = vadd.f32 %v8828_v63, %v8801_v57  ;;  %v4705_v10 = vadd.f32 %v8828_v63, %v4608_v25 }
 0x7ec   : > { %v5867_v45 = vmul.f32 -1.442695, %v4723_v50  ;;  %v5863_v4 = vmul.f32 -1.442695, %v4719_v11  ;;  %v5864_v34 = vmul.f32 -1.442695, %v4720_v52  ;;  %v4706_v57 = vadd.f32 %v8828_v63, %v8809_v53 }
 0x7ed   : > { %v5866_v59 = vmul.f32 -1.442695, %v4722_v43  ;;  %v5865_v1 = vmul.f32 -1.442695, %v4721_v9  ;;  %v5847_v12 = vmul.f32 -1.442695, %v4703_v36  ;;  %v8878_v6 = vadd.f32 %v8828_v63, %v8804_v29 }
 0x7ee   : > { %5984 = vpow2.f32 %v5867_v45  ;;  %v5848_v13 = vmul.f32 -1.442695, %v4704_v30  ;;  %v5849_v49 = vmul.f32 -1.442695, %v4705_v10  ;;  %v8884_v53 = vadd.f32 %v8828_v63, %v8818_v17 }
 0x7ef   : > { %5986 = vpow2.f32 %v5863_v4  ;;  %v8888_v16 = vadd.f32 %v8828_v63, %v8822_v48  ;;  %v8897_v29 = vadd.f32 %v8828_v63, %v8813_v35  ;;  %v8901_v17 = vadd.f32 %v8828_v63, %v8824_v60 }
 0x7f0   : > { %5988 = vpow2.f32 %v5864_v34  ;;  %v8906_v3 = vadd.f32 %v8828_v63, %v8826_v42  ;;  %v8908_v23 = vmul.f32 -1.442695, %v4706_v57 }
 0x7f1   : > { %5990 = vpow2.f32 %v5866_v59  ;;  %v4668_v47 = vpop.xlane.xlu2 %4667 }
 0x7f2   : > { %v4725_v26 = vadd.f32 %v8828_v63, %v4668_v47  ;;  %v4665_v58 = vpop.xlane.xlu0 %4664  ;;  %5992 = vpow2.f32 %v5865_v1 }
 0x7f3   : > { %v4724_v5 = vadd.f32 %v8828_v63, %v4665_v58 }
 0x7f4   : > { %v5985_v31 = vpop.eup %5984  ;;  %v5869_v7 = vmul.f32 -1.442695, %v4725_v26 }
 0x7f5   : > { %v5987_v61 = vpop.eup %5986  ;;  %v8844_v41 = vadd.f32 1.0, %v5985_v31  ;;  %v5868_v37 = vmul.f32 -1.442695, %v4724_v5 }
 0x7f6   : > { %v5989_v40 = vpop.eup %5988  ;;  %v8836_v32 = vadd.f32 1.0, %v5987_v61  ;;  %5994 = vpow2.f32 %v5869_v7 }
 0x7f7   : > { %v5991_v27 = vpop.eup %5990  ;;  %v8839_v22 = vadd.f32 1.0, %v5989_v40  ;;  %v5174_v21 = vand.u32 2147483648, %v8844_v41  ;;  %v5172_v11 = vand.u32 2147483647, %v8844_v41  ;;  %vm5168_vm1 = vweird.f32 %v8844_v41 }
 0x7f8   : > { %v8841_v8 = vadd.f32 1.0, %v5991_v27  ;;  %5996 = vrcp.f32 %v8836_v32  ;;  %v5993_v18 = vpop.eup %5992  ;;  %v5114_v50 = vand.u32 2147483648, %v8836_v32  ;;  %vm5108_vm7 = vweird.f32 %v8836_v32 }
 0x7f9   : > { %5998 = vrcp.f32 %v8839_v22  ;;  %v4674_v46 = vpop.xlane.xlu2 %4673  ;;  %v8857_v14 = vadd.f32 1.0, %v5993_v18  ;;  %v5129_v43 = vand.u32 2147483648, %v8839_v22  ;;  %v8926_v59 = vor.u32 1.1754944e-38, %v5174_v21 }
 0x7fa   : > { %v8847_v0 = vpop.xlane.xlu0 %4670  ;;  %6000 = vrcp.f32 %v8841_v8  ;;  %v4727_v60 = vadd.f32 %v8828_v63, %v4674_v46  ;;  %v5159_v4 = vand.u32 2147483648, %v8841_v8  ;;  %v5112_v1 = vand.u32 2147483647, %v8836_v32 }
 0x7fb   : > { %6002 = vrcp.f32 %v8844_v41  ;;  %vm5123_vm8 = vweird.f32 %v8839_v22  ;;  %v5127_v47 = vand.u32 2147483647, %v8839_v22  ;;  %v8934_v31 = vor.u32 1.1754944e-38, %v5114_v50 }
 0x7fc   : > { %v5995_v19 = vpop.eup %5994  ;;  %6004 = vpow2.f32 %v5868_v37  ;;  %vm5153_vm9 = vweird.f32 %v8841_v8  ;;  %v5871_v7 = vmul.f32 -1.442695, %v4727_v60  ;;  %v8940_v5 = vor.u32 1.1754944e-38, %v5129_v43 }
 0x7fd   : > { %6006 = vrcp.f32 %v8857_v14  ;;  %v8863_v54 = vadd.f32 1.0, %v5995_v19  ;;  %v5157_v27 = vand.u32 2147483647, %v8841_v8  ;;  %v8946_v36 = vor.u32 1.1754944e-38, %v5159_v4 }
 0x7fe   : > { %v8860_v15 = vpop.eup %5996  ;;  %6008 = vpow2.f32 %v5847_v12  ;;  %vm5138_vm11 = vweird.f32 %v8857_v14  ;;  %v5142_v19 = vand.u32 2147483647, %v8857_v14  ;;  %vm8956_vm13 = vcmp.eq.f32.partialorder %v5112_v1, 8.507059e+37 }
 0x7ff   : > { %v8865_v20 = vpop.eup %5998  ;;  %v5104_v33 = vmul.f32 %v8860_v15, %v8836_v32  ;;  %6010 = vrcp.f32 %v8863_v54  ;;  %vm5109_vm10 = vweird.f32 %v8860_v15  ;;  %vm8961_vm15 = vcmp.eq.f32.partialorder %v5127_v47, 8.507059e+37 }
 0x800   : > { %v8869_v55 = vpop.eup %6000  ;;  %v5119_v2 = vmul.f32 %v8865_v20, %v8839_v22  ;;  %6012 = vpow2.f32 %v5848_v13  ;;  %vm5124_vm14 = vweird.f32 %v8865_v20  ;;  %v5144_v13 = vand.u32 2147483648, %v8857_v14  ;;  %vm8984_vm3 = vmor %vm5108_vm7, %vm5109_vm10 }
 0x801   : > { %v8890_v38 = vpop.eup %6002  ;;  %v5149_v25 = vmul.f32 %v8869_v55, %v8841_v8  ;;  %v4632_v28 = vpop.xlane.xlu2 %4631  ;;  %v5105_v35 = vsub.f32 1.0, %v5104_v33  ;;  %6014 = vpow2.f32 %v5849_v49  ;;  %vm8967_vm0 = vcmp.eq.f32.partialorder %v5157_v27, 8.507059e+37  ;;  %vm8998_vm5 = vmor %vm5123_vm8, %vm5124_vm14 }
 0x802   : > { %v6005_v62 = vpop.eup %6004  ;;  %v4677_v48 = vpop.xlane.xlu0 %4676  ;;  %v5120_v52 = vsub.f32 1.0, %v5119_v2  ;;  %v5164_v56 = vmul.f32 %v8890_v38, %v8844_v41  ;;  %vm5169_vm12 = vweird.f32 %v8890_v38  ;;  %vm5154_vm2 = vweird.f32 %v8869_v55 }
 0x803   : > { %v8910_v24 = vpop.eup %6006  ;;  %v5150_v45 = vsub.f32 1.0, %v5149_v25  ;;  %v8922_v34 = vadd.f32 1.0, %v6005_v62  ;;  %v5106_v58 = vmul.f32 %v8860_v15, %v5105_v35  ;;  %v4726_v25 = vadd.f32 %v8828_v63, %v8847_v0  ;;  %vm9009_vm6 = vmor %vm5153_vm9, %vm5154_vm2 }
 0x804   : > { %v5134_v42 = vmul.f32 %v8910_v24, %v8857_v14  ;;  %v8924_v9 = vpop.eup %6008  ;;  %v5121_v40 = vmul.f32 %v8865_v20, %v5120_v52  ;;  %v5165_v37 = vsub.f32 1.0, %v5164_v56  ;;  %v4713_v62 = vadd.f32 %v8828_v63, %v4632_v28 }
 0x805   : > { %v8931_v26 = vpop.eup %6010  ;;  %v5151_v46 = vmul.f32 %v8869_v55, %v5150_v45  ;;  %6016 = vrcp.f32 %v8922_v34  ;;  %v5107_v10 = vadd.f32 %v8860_v15, %v5106_v58  ;;  %v4728_v52 = vadd.f32 %v8828_v63, %v4677_v48 }
 0x806   : > { %v8937_v61 = vpop.eup %6012  ;;  %v5135_v51 = vsub.f32 1.0, %v5134_v42  ;;  %v5194_v30 = vmul.f32 %v8931_v26, %v8863_v54  ;;  %6018 = vpow2.f32 %v5871_v7  ;;  %v5122_v33 = vadd.f32 %v8865_v20, %v5121_v40 }
 0x807   : > { %v8943_v18 = vpop.eup %6014  ;;  %v5166_v50 = vmul.f32 %v8890_v38, %v5165_v37  ;;  %v5152_v60 = vadd.f32 %v8869_v55, %v5151_v46  ;;  %vm5139_vm4 = vweird.f32 %v8910_v24  ;;  %v5870_v43 = vmul.f32 -1.442695, %v4726_v25 }
 0x808   : > { %v5136_v2 = vmul.f32 %v8910_v24, %v5135_v51  ;;  %v5195_v28 = vsub.f32 1.0, %v5194_v30  ;;  %v5857_v42 = vmul.f32 -1.442695, %v4713_v62  ;;  %v5111_v45 = vsel %vm8984_vm3, %v8860_v15, %v5107_v10  ;;  %vm9033_vm9 = vmor %vm5138_vm11, %vm5139_vm4 }
 0x809   : > { %v4683_v21 = vpop.xlane.xlu2 %4682  ;;  %v5872_v48 = vmul.f32 -1.442695, %v4728_v52  ;;  %v5126_v47 = vsel %vm8998_vm5, %v8865_v20, %v5122_v33  ;;  %6020 = vpow2.f32 %v5870_v43  ;;  %v5156_v40 = vsel %vm9009_vm6, %v8869_v55, %v5152_v60  ;;  %vm9057_vm11 = vmor %vm5168_vm1, %vm5169_vm12 }
 0x80a   : > { %v4635_v35 = vpop.xlane.xlu0 %4634  ;;  %v4730_v4 = vadd.f32 %v8828_v63, %v4683_v21  ;;  %v5137_v22 = vadd.f32 %v8910_v24, %v5136_v2  ;;  %vm5380_vm7 = vcmask 130112   ;;  %6022 = vpow2.f32 %v5857_v42 }
 0x80b   : > { %v8989_v56 = vpop.eup %6016  ;;  %v4714_v1 = vadd.f32 %v8828_v63, %v4635_v35  ;;  %v5196_v8 = vmul.f32 %v8931_v26, %v5195_v28  ;;  %6024 = vpow2.f32 %v5872_v48  ;;  %v5167_v30 = vadd.f32 %v8890_v38, %v5166_v50 }
 0x80c   : > { %v5179_v58 = vmul.f32 %v8989_v56, %v8922_v34  ;;  %v6019_v7 = vpop.eup %6018  ;;  %v5874_v20 = vmul.f32 -1.442695, %v4730_v4  ;;  %vm9025_vm8 = vcmp.eq.f32.partialorder %v5172_v11, 8.507059e+37  ;;  %v5145_v33 = vor.u32 1.1754944e-38, %v5144_v13 }
 0x80d   : > { %v5858_v27 = vmul.f32 -1.442695, %v4714_v1  ;;  %v9020_v37 = vadd.f32 1.0, %v6019_v7  ;;  %vm5198_vm10 = vweird.f32 %v8863_v54  ;;  %v5116_v2 = vsel %vm8956_vm13, %v8934_v31, %v5111_v45 }
 0x80e   : > { %v5180_v51 = vsub.f32 1.0, %v5179_v58  ;;  %6026 = vpow2.f32 %v5874_v20  ;;  %v5131_v11 = vsel %vm8961_vm15, %v8940_v5, %v5126_v47  ;;  %v5141_v25 = vsel %vm9033_vm9, %v8910_v24, %v5137_v22 }
 0x80f   : > { %6028 = vrcp.f32 %v9020_v37  ;;  %v5161_v13 = vsel %vm8967_vm0, %v8946_v36, %v5156_v40  ;;  %v6021_v31 = vpop.eup %6020  ;;  %vm10082_vm13 = vcmask 1041409   ;;  %vm5143_vm14 = vcmp.eq.f32.partialorder %v5142_v19, 8.507059e+37 }
 0x810   : > { %v5181_v62 = vmul.f32 %v8989_v56, %v5180_v51  ;;  %6030 = vpow2.f32 %v5858_v27  ;;  %v5197_v24 = vadd.f32 %v8931_v26, %v5196_v8  ;;  %vm5199_vm15 = vweird.f32 %v8931_v26  ;;  %v6023_v57 = vpop.eup %6022 }
 0x811   : > { %v5202_v36 = vand.u32 2147483647, %v8863_v54  ;;  %v5171_v49 = vsel %vm9057_vm11, %v8890_v38, %v5167_v30  ;;  %v5146_v41 = vsel %vm5143_vm14, %v5145_v33, %v5141_v25  ;;  %v5204_v21 = vand.u32 2147483648, %v8863_v54  ;;  %v6025_v50 = vpop.eup %6024  ;;  %vm9079_vm12 = vmor %vm5198_vm10, %vm5199_vm15 }
 0x812   : > { %v9070_v35 = vadd.f32 1.0, %v6021_v31  ;;  %v5403_v14 = vperm.slane %v5116_v2, %v8854_v44  ;;  %v5404_v19 = vperm.slane %v5131_v11, %v8874_v39  ;;  %v5407_v60 = vperm.slane %v5161_v13, %v8874_v39 }
 0x813   : > { %v9075_v52 = vadd.f32 1.0, %v6023_v57  ;;  %v5182_v38 = vadd.f32 %v8989_v56, %v5181_v62  ;;  %vm5184_vm0 = vweird.f32 %v8989_v56  ;;  %v5406_v45 = vperm.slane %v5146_v41, %v8854_v44 }
 0x814   : > { %v4680_v46 = vpop.xlane.xlu1 %4679  ;;  %v6027_v0 = vpop.eup %6026  ;;  %6032 = vrcp.f32 %v9070_v35  ;;  %v5201_v32 = vsel %vm9079_vm12, %v8931_v26, %v5197_v24  ;;  %v5189_v54 = vand.u32 2147483648, %v8922_v34  ;;  %vm5203_vm1 = vcmp.eq.f32.partialorder %v5202_v36, 8.507059e+37 }
 0x815   : > { %v4729_v12 = vadd.f32 %v8828_v63, %v4680_v46  ;;  %v9086_v42 = vpop.eup %6028  ;;  %6034 = vrcp.f32 %v9075_v52  ;;  %v5205_v4 = vor.u32 1.1754944e-38, %v5204_v21  ;;  %vm5183_vm2 = vweird.f32 %v8922_v34 }
 0x816   : > { %v6031_v48 = vpop.eup %6030  ;;  %v5187_v1 = vand.u32 2147483647, %v8922_v34  ;;  %v5176_v47 = vsel %vm9025_vm8, %v8926_v59, %v5171_v49  ;;  %v5405_v15 = vsel %vm5380_vm7, %v5404_v19, %v5403_v14  ;;  %vm9102_vm3 = vmor %vm5183_vm2, %vm5184_vm0  ;;  %v5224_v22 = vmul.f32 %v9086_v42, %v9020_v37 }
 0x817   : > { %v5873_v43 = vmul.f32 -1.442695, %v4729_v12  ;;  %v9108_v58 = vadd.f32 1.0, %v6025_v50  ;;  %v9110_v7 = vsel %vm5203_vm1, %v5205_v4, %v5201_v32  ;;  %v5186_v34 = vsel %vm9102_vm3, %v8989_v56, %v5182_v38 }
 0x818   : > { %v9115_v59 = vadd.f32 1.0, %v6027_v0  ;;  %v5408_v40 = vsel %vm5380_vm7, %v5407_v60, %v5406_v45  ;;  %v5190_v20 = vor.u32 1.1754944e-38, %v5189_v54  ;;  %v9119_v27 = vadd.f32 1.0, %v6031_v48 }
 0x819   : > { %6036 = vpow2.f32 %v5873_v43  ;;  %v5409_v51 = vperm.slane %v5176_v47, %v8854_v44  ;;  %vm5188_vm4 = vcmp.eq.f32.partialorder %v5187_v1, 8.507059e+37  ;;  %v5851_v46 = vmul.f32 -1.442695, %v8878_v6  ;;  %v4638_v24 = vpop.xlane.xlu0 %4637 }
 0x81a   : > { %6038 = vrcp.f32 %v9108_v58  ;;  %v9121_v8 = vpop.eup %6032  ;;  %v5412_v30 = vperm.slane %v9110_v7, %v8854_v44  ;;  %v5191_v10 = vsel %vm5188_vm4, %v5190_v20, %v5186_v34  ;;  %v5225_v55 = vsub.f32 1.0, %v5224_v22 }
 0x81b   : > { %6040 = vrcp.f32 %v9115_v59  ;;  %v9126_v56 = vpop.eup %6034  ;;  %v5209_v33 = vmul.f32 %v9121_v8, %v9070_v35  ;;  %v9133_v2 = vsel %vm10082_vm13, %v5408_v40, %v5405_v15  ;;  %v5234_v11 = vand.u32 2147483648, %v9020_v37 }
 0x81c   : > { %v9137_v25 = vmul.f32 -1.442695, %v8884_v53  ;;  %v9140_v6 = vmul.f32 -1.442695, %v8888_v16  ;;  %vm5228_vm5 = vweird.f32 %v9020_v37  ;;  %v5232_v13 = vand.u32 2147483647, %v9020_v37 }
 0x81d   : > { %v5210_v62 = vsub.f32 1.0, %v5209_v33  ;;  %v5014_v12 = vmul.f32 %v9126_v56, %v9075_v52  ;;  %6042 = vrcp.f32 %v9119_v27  ;;  %v5410_v5 = vperm.slane %v5191_v10, %v8874_v39 }
 0x81e   : > { %6044 = vpow2.f32 %v8908_v23  ;;  %v9150_v53 = vmul.f32 -1.442695, %v8897_v29  ;;  %v9153_v16 = vmul.f32 -1.442695, %v8901_v17  ;;  %v5226_v49 = vmul.f32 %v9086_v42, %v5225_v55 }
 0x81f   : > { %v6037_v31 = vpop.eup %6036  ;;  %v5217_v41 = vand.u32 2147483647, %v9070_v35  ;;  %v5219_v21 = vand.u32 2147483648, %v9070_v35  ;;  %v5024_v50 = vand.u32 2147483648, %v9075_v52  ;;  %v5235_v19 = vor.u32 1.1754944e-38, %v5234_v11 }
 0x820   : > { %v9155_v57 = vpop.eup %6038  ;;  %6046 = vpow2.f32 %v5851_v46  ;;  %v9166_v17 = vmul.f32 -1.442695, %v8906_v3  ;;  %vm9168_vm6 = vcmp.eq.f32.partialorder %v5232_v13, 8.507059e+37  ;;  %v5211_v60 = vmul.f32 %v9121_v8, %v5210_v62 }
 0x821   : > { %v4641_v36 = vpop.xlane.xlu2 %4640  ;;  %v9161_v14 = vpop.eup %6040  ;;  %v5239_v29 = vmul.f32 %v9155_v57, %v9108_v58  ;;  %vm5213_vm8 = vweird.f32 %v9070_v35  ;;  %v5015_v0 = vsub.f32 1.0, %v5014_v12  ;;  %v9177_v38 = vsel %vm5380_vm7, %v5410_v5, %v5409_v51 }
 0x822   : > { %v5269_v28 = vmul.f32 %v9161_v14, %v9115_v59  ;;  %vm5229_vm9 = vweird.f32 %v9086_v42  ;;  %v5022_v3 = vand.u32 2147483647, %v9075_v52  ;;  %v9181_v43 = vadd.f32 1.0, %v6037_v31 }
 0x823   : > { %v9183_v45 = vpop.eup %6042  ;;  %v5227_v32 = vadd.f32 %v9086_v42, %v5226_v49  ;;  %vm9186_vm10 = vcmp.eq.f32.partialorder %v5217_v41, 8.507059e+37  ;;  %v5220_v48 = vor.u32 1.1754944e-38, %v5219_v21  ;;  %vm5018_vm11 = vweird.f32 %v9075_v52  ;;  %vm9209_vm15 = vmor %vm5228_vm5, %vm5229_vm9 }
 0x824   : > { %v9191_v4 = vor.u32 1.1754944e-38, %v5024_v50  ;;  %v5249_v1 = vand.u32 2147483648, %v9108_v58  ;;  %v9194_v47 = vpop.eup %6044  ;;  %vm5214_vm14 = vweird.f32 %v9121_v8  ;;  %v5240_v15 = vsub.f32 1.0, %v5239_v29 }
 0x825   : > { %v5029_v26 = vmul.f32 %v9183_v45, %v9119_v27  ;;  %v4715_v22 = vadd.f32 %v8828_v63, %v4638_v24  ;;  %v5212_v34 = vadd.f32 %v9121_v8, %v5211_v60  ;;  %v5016_v40 = vmul.f32 %v9126_v56, %v5015_v0  ;;  %vm9230_vm3 = vmor %vm5213_vm8, %vm5214_vm14  ;;  %v4686_v24 = vpop.xlane.xlu0 %4685 }
 0x826   : > { %v5270_v20 = vsub.f32 1.0, %v5269_v28  ;;  %v4716_v51 = vadd.f32 %v8828_v63, %v4641_v36  ;;  %v9203_v46 = vpop.eup %6046  ;;  %vm5243_vm12 = vweird.f32 %v9108_v58  ;;  %v5247_v55 = vand.u32 2147483647, %v9108_v58 }
 0x827   : > { %v5030_v33 = vsub.f32 1.0, %v5029_v26  ;;  %6048 = vrcp.f32 %v9181_v43  ;;  %v5231_v11 = vsel %vm9209_vm15, %v9086_v42, %v5227_v32  ;;  %vm5019_vm0 = vweird.f32 %v9126_v56 }
 0x828   : > { %vm9220_vm1 = vcmp.eq.f32.partialorder %v5022_v3, 8.507059e+37  ;;  %vm5273_vm2 = vweird.f32 %v9115_v59  ;;  %v5277_v37 = vand.u32 2147483647, %v9115_v59  ;;  %v5241_v42 = vmul.f32 %v9155_v57, %v5240_v15 }
 0x829   : > { %v5250_v12 = vor.u32 1.1754944e-38, %v5249_v1  ;;  %v5279_v31 = vand.u32 2147483648, %v9115_v59  ;;  %v5859_v5 = vmul.f32 -1.442695, %v4715_v22  ;;  %v4689_v36 = vpop.xlane.xlu2 %4688  ;;  %v5216_v49 = vsel %vm9230_vm3, %v9121_v8, %v5212_v34 }
 0x82a   : > { %v5017_v41 = vadd.f32 %v9126_v56, %v5016_v40  ;;  %v5271_v35 = vmul.f32 %v9161_v14, %v5270_v20  ;;  %v5860_v21 = vmul.f32 -1.442695, %v4716_v51  ;;  %v9243_v50 = vsel %vm9168_vm6, %v5235_v19, %v5231_v11  ;;  %vm9267_vm6 = vmor %vm5018_vm11, %vm5019_vm0 }
 0x82b   : > { %vm9245_vm4 = vcmp.eq.f32.partialorder %v5247_v55, 8.507059e+37  ;;  %v5031_v60 = vmul.f32 %v9183_v45, %v5030_v33  ;;  %v5037_v0 = vand.u32 2147483647, %v9119_v27  ;;  %v5039_v28 = vand.u32 2147483648, %v9119_v27 }
 0x82c   : > { %vm5244_vm5 = vweird.f32 %v9155_v57  ;;  %vm9253_vm8 = vcmp.eq.f32.partialorder %v5277_v37, 8.507059e+37  ;;  %6050 = vpow2.f32 %v5859_v5  ;;  %v4731_v19 = vadd.f32 %v8828_v63, %v4686_v24 }
 0x82d   : > { %v4732_v23 = vadd.f32 %v8828_v63, %v4689_v36  ;;  %v9259_v3 = vpop.eup %6048  ;;  %v5221_v32 = vsel %vm9186_vm10, %v5220_v48, %v5216_v49  ;;  %v5242_v15 = vadd.f32 %v9155_v57, %v5241_v42  ;;  %vm5274_vm9 = vweird.f32 %v9161_v14  ;;  %vm9288_vm14 = vmor %vm5243_vm12, %vm5244_vm5 }
 0x82e   : > { %6052 = vpow2.f32 %v5860_v21  ;;  %v5021_v26 = vsel %vm9267_vm6, %v9126_v56, %v5017_v41  ;;  %v5272_v54 = vadd.f32 %v9161_v14, %v5271_v35  ;;  %v5254_v48 = vmul.f32 %v9259_v3, %v9181_v43  ;;  %vm9305_vm15 = vmor %vm5273_vm2, %vm5274_vm9 }
 0x82f   : > { %v5875_v22 = vmul.f32 -1.442695, %v4731_v19  ;;  %v5032_v52 = vadd.f32 %v9183_v45, %v5031_v60  ;;  %vm5033_vm10 = vweird.f32 %v9119_v27  ;;  %vm5034_vm11 = vweird.f32 %v9183_v45 }
 0x830   : > { %v5876_v34 = vmul.f32 -1.442695, %v4732_v23  ;;  %v5415_v40 = vperm.slane %v9243_v50, %v8854_v44  ;;  %v5280_v20 = vor.u32 1.1754944e-38, %v5279_v31  ;;  %v5255_v51 = vsub.f32 1.0, %v5254_v48  ;;  %vm9314_vm12 = vmor %vm5033_vm10, %vm5034_vm11 }
 0x831   : > { %6054 = vpow2.f32 %v5875_v22  ;;  %v5413_v10 = vperm.slane %v5221_v32, %v8874_v39  ;;  %v9296_v55 = vsel %vm9220_vm1, %v9191_v4, %v5021_v26  ;;  %v5246_v33 = vsel %vm9288_vm14, %v9155_v57, %v5242_v15 }
 0x832   : > { %6056 = vpow2.f32 %v5876_v34  ;;  %v6051_v11 = vpop.eup %6050  ;;  %v5276_v13 = vsel %vm9305_vm15, %v9161_v14, %v5272_v54  ;;  %vm9318_vm0 = vcmp.eq.f32.partialorder %v5037_v0, 8.507059e+37  ;;  %v5040_v59 = vor.u32 1.1754944e-38, %v5039_v28 }
 0x833   : > { %v5256_v37 = vmul.f32 %v9259_v3, %v5255_v51  ;;  %v5036_v42 = vsel %vm9314_vm12, %v9183_v45, %v5032_v52  ;;  %v5262_v14 = vand.u32 2147483647, %v9181_v43  ;;  %v5264_v27 = vand.u32 2147483648, %v9181_v43 }
 0x834   : > { %v6053_v62 = vpop.eup %6052  ;;  %v9328_v31 = vadd.f32 1.0, %v6051_v11  ;;  %v9334_v24 = vsel %vm9245_vm4, %v5250_v12, %v5246_v33  ;;  %v9339_v41 = vadd.f32 1.0, %v8924_v9  ;;  %v9345_v45 = vsel %vm5380_vm7, %v5413_v10, %v5412_v30 }
 0x835   : > { %v9336_v36 = vadd.f32 1.0, %v6053_v62  ;;  %v9349_v35 = vsel %vm9253_vm8, %v5280_v20, %v5276_v13  ;;  %vm5258_vm1 = vweird.f32 %v9181_v43  ;;  %v9355_v21 = vsel %vm9318_vm0, %v5040_v59, %v5036_v42 }
 0x836   : > { %6058 = vrcp.f32 %v9328_v31  ;;  %v5257_v9 = vadd.f32 %v9259_v3, %v5256_v37  ;;  %vm5259_vm2 = vweird.f32 %v9259_v3  ;;  %v5416_v30 = vperm.slane %v9334_v24, %v8874_v39 }
 0x837   : > { %v6055_v12 = vpop.eup %6054  ;;  %6060 = vrcp.f32 %v9336_v36  ;;  %vm9362_vm3 = vcmp.eq.f32.partialorder %v5262_v14, 8.507059e+37  ;;  %v5265_v60 = vor.u32 1.1754944e-38, %v5264_v27  ;;  %v9367_v0 = vadd.f32 1.0, %v8937_v61  ;;  %vm9381_vm4 = vmor %vm5258_vm1, %vm5259_vm2 }
 0x838   : > { %v6057_v7 = vpop.eup %6056  ;;  %v9369_v28 = vadd.f32 1.0, %v6055_v12  ;;  %6062 = vpow2.f32 %v9137_v25  ;;  %v4874_v19 = vand.u32 2147483648, %v9339_v41  ;;  %v5419_v23 = vperm.slane %v9349_v35, %v8874_v39 }
 0x839   : > { %v4644_v49 = vpop.xlane.xlu0 %4643  ;;  %v9371_v8 = vadd.f32 1.0, %v6057_v7  ;;  %6064 = vpow2.f32 %v9140_v6  ;;  %v9387_v61 = vadd.f32 1.0, %v8943_v18  ;;  %v5261_v25 = vsel %vm9381_vm4, %v9259_v3, %v5257_v9 }
 0x83a   : > { %6066 = vrcp.f32 %v9369_v28  ;;  %v4717_v15 = vadd.f32 %v8828_v63, %v4644_v49  ;;  %v9395_v26 = vadd.f32 1.0, %v9194_v47  ;;  %v9401_v6 = vadd.f32 1.0, %v9203_v46 }
 0x83b   : > { %6068 = vrcp.f32 %v9371_v8  ;;  %v4872_v18 = vand.u32 2147483647, %v9339_v41  ;;  %v4887_v54 = vand.u32 2147483647, %v9367_v0  ;;  %v5054_v22 = vand.u32 2147483648, %v9328_v31 }
 0x83c   : > { %v9397_v43 = vpop.eup %6058  ;;  %6070 = vpow2.f32 %v9150_v53  ;;  %v9411_v34 = vor.u32 1.1754944e-38, %v4874_v19  ;;  %v9415_v46 = vsel %vm9362_vm3, %v5265_v60, %v5261_v25  ;;  %v5069_v20 = vand.u32 2147483648, %v9336_v36 }
 0x83d   : > { %v9405_v48 = vpop.eup %6060  ;;  %v5044_v3 = vmul.f32 %v9397_v43, %v9328_v31  ;;  %6072 = vpow2.f32 %v9153_v16  ;;  %v5861_v33 = vmul.f32 -1.442695, %v4717_v15  ;;  %vm5048_vm5 = vweird.f32 %v9328_v31 }
 0x83e   : > { %v5059_v56 = vmul.f32 %v9405_v48, %v9336_v36  ;;  %v6063_v51 = vpop.eup %6062  ;;  %v5052_v13 = vand.u32 2147483647, %v9328_v31  ;;  %v5067_v57 = vand.u32 2147483647, %v9336_v36  ;;  %v9430_v37 = vor.u32 1.1754944e-38, %v5054_v22 }
 0x83f   : > { %v5045_v10 = vsub.f32 1.0, %v5044_v3  ;;  %v9423_v11 = vpop.eup %6064  ;;  %vm5063_vm8 = vweird.f32 %v9336_v36  ;;  %6074 = vpow2.f32 %v5861_v33  ;;  %v5418_v14 = vperm.slane %v9415_v46, %v8854_v44 }
 0x840   : > { %v5060_v4 = vsub.f32 1.0, %v5059_v56  ;;  %v9428_v59 = vpop.eup %6066  ;;  %6076 = vpow2.f32 %v9166_v17  ;;  %v5070_v7 = vor.u32 1.1754944e-38, %v5069_v20  ;;  %vm5288_vm6 = vweird.f32 %v9369_v28 }
 0x841   : > { %v4647_v47 = vpop.xlane.xlu2 %4646  ;;  %v4692_v52 = vpop.xlane.xlu0 %4691  ;;  %v5046_v27 = vmul.f32 %v9397_v43, %v5045_v10  ;;  %v5284_v49 = vmul.f32 %v9428_v59, %v9369_v28  ;;  %v9445_v1 = vadd.f32 1.0, %v6063_v51  ;;  %vm5049_vm9 = vweird.f32 %v9397_v43 }
 0x842   : > { %v4718_v58 = vadd.f32 %v8828_v63, %v4647_v47  ;;  %v4733_v53 = vadd.f32 %v8828_v63, %v4692_v52  ;;  %v9433_v42 = vpop.eup %6068  ;;  %v5061_v9 = vmul.f32 %v9405_v48, %v5060_v4  ;;  %vm9448_vm10 = vcmp.eq.f32.partialorder %v5052_v13, 8.507059e+37  ;;  %vm9475_vm12 = vmor %vm5048_vm5, %vm5049_vm9 }
 0x843   : > { %v6071_v12 = vpop.eup %6070  ;;  %v5299_v29 = vmul.f32 %v9433_v42, %v9371_v8  ;;  %v5285_v19 = vsub.f32 1.0, %v5284_v49  ;;  %vm9452_vm11 = vcmp.eq.f32.partialorder %v5067_v57, 8.507059e+37  ;;  %v5292_v15 = vand.u32 2147483647, %v9369_v28 }
 0x844   : > { %v5862_v16 = vmul.f32 -1.442695, %v4718_v58  ;;  %v5877_v62 = vmul.f32 -1.442695, %v4733_v53  ;;  %v6073_v60 = vpop.eup %6072  ;;  %v5294_v3 = vand.u32 2147483648, %v9369_v28  ;;  %v5047_v52 = vadd.f32 %v9397_v43, %v5046_v27 }
 0x845   : > { %v5300_v22 = vsub.f32 1.0, %v5299_v29  ;;  %vm5064_vm14 = vweird.f32 %v9405_v48  ;;  %v5286_v56 = vmul.f32 %v9428_v59, %v5285_v19  ;;  %v6075_v20 = vpop.eup %6074  ;;  %v5062_v51 = vadd.f32 %v9405_v48, %v5061_v9 }
 0x846   : > { %6078 = vpow2.f32 %v5862_v16  ;;  %v6077_v58 = vpop.eup %6076  ;;  %vm5303_vm15 = vweird.f32 %v9371_v8  ;;  %v5307_v53 = vand.u32 2147483647, %v9371_v8  ;;  %v5309_v13 = vand.u32 2147483648, %v9371_v8  ;;  %vm9490_vm2 = vmor %vm5063_vm8, %vm5064_vm14 }
 0x847   : > { %6080 = vpow2.f32 %v5877_v62  ;;  %v5301_v10 = vmul.f32 %v9433_v42, %v5300_v22  ;;  %v9469_v4 = vadd.f32 1.0, %v6075_v20  ;;  %vm5289_vm0 = vweird.f32 %v9428_v59 }
 0x848   : > { %6082 = vrcp.f32 %v9339_v41  ;;  %vm9481_vm1 = vcmp.eq.f32.partialorder %v5292_v15, 8.507059e+37  ;;  %v5295_v49 = vor.u32 1.1754944e-38, %v5294_v3  ;;  %vm5304_vm3 = vweird.f32 %v9433_v42  ;;  %vm9509_vm4 = vmor %vm5288_vm6, %vm5289_vm0 }
 0x849   : > { %v4695_v47 = vpop.xlane.xlu2 %4694  ;;  %6084 = vrcp.f32 %v9367_v0  ;;  %v5302_v9 = vadd.f32 %v9433_v42, %v5301_v10  ;;  %v5051_v29 = vsel %vm9475_vm12, %v9397_v43, %v5047_v52  ;;  %v5066_v19 = vsel %vm9490_vm2, %v9405_v48, %v5062_v51  ;;  %vm9529_vm8 = vmor %vm5303_vm15, %vm5304_vm3 }
 0x84a   : > { %v4734_v33 = vadd.f32 %v8828_v63, %v4695_v47  ;;  %v5287_v63 = vadd.f32 %v9428_v59, %v5286_v56  ;;  %6086 = vrcp.f32 %v9387_v61  ;;  %vm9513_vm5 = vcmp.eq.f32.partialorder %v5307_v53, 8.507059e+37 }
 0x84b   : > { %6088 = vrcp.f32 %v9469_v4  ;;  %v5310_v43 = vor.u32 1.1754944e-38, %v5309_v13  ;;  %v9520_v48 = vadd.f32 1.0, %v9423_v11  ;;  %v9534_v51 = vadd.f32 1.0, %v6071_v12 }
 0x84c   : > { %v6079_v57 = vpop.eup %6078  ;;  %v5878_v15 = vmul.f32 -1.442695, %v4734_v33  ;;  %v5291_v28 = vsel %vm9509_vm4, %v9428_v59, %v5287_v63  ;;  %v4889_v10 = vand.u32 2147483648, %v9367_v0  ;;  %v9540_v11 = vsel %vm9448_vm10, %v9430_v37, %v5051_v29 }
 0x84d   : > { %v6081_v27 = vpop.eup %6080  ;;  %v9503_v36 = vadd.f32 1.0, %v6079_v57  ;;  %v9544_v59 = vsel %vm9452_vm11, %v5070_v7, %v5066_v19  ;;  %v5306_v8 = vsel %vm9529_vm8, %v9433_v42, %v5302_v9  ;;  %v9552_v12 = vadd.f32 1.0, %v6073_v60 }
 0x84e   : > { %v9505_v22 = vpop.eup %6082  ;;  %v9517_v52 = vadd.f32 1.0, %v6081_v27  ;;  %v9554_v53 = vadd.f32 1.0, %v6077_v58  ;;  %v9562_v7 = vsel %vm9481_vm1, %v5295_v49, %v5291_v28  ;;  %v5082_v42 = vand.u32 2147483647, %v9469_v4 }
 0x84f   : > { %v9522_v56 = vpop.eup %6084  ;;  %6090 = vrcp.f32 %v9503_v36  ;;  %v4864_v37 = vmul.f32 %v9505_v22, %v9339_v41  ;;  %v5084_v17 = vand.u32 2147483648, %v9469_v4  ;;  %v9574_v57 = vsel %vm9513_vm5, %v5310_v43, %v5306_v8 }
 0x850   : > { %6092 = vrcp.f32 %v9517_v52  ;;  %v9550_v33 = vpop.eup %6086  ;;  %v4879_v13 = vmul.f32 %v9522_v56, %v9367_v0  ;;  %vm5078_vm6 = vweird.f32 %v9469_v4  ;;  %vm4868_vm9 = vweird.f32 %v9339_v41 }
 0x851   : > { %6094 = vpow2.f32 %v5878_v15  ;;  %v9558_v25 = vpop.eup %6088  ;;  %v4865_v63 = vsub.f32 1.0, %v4864_v37  ;;  %v9580_v62 = vor.u32 1.1754944e-38, %v4889_v10  ;;  %v4902_v27 = vand.u32 2147483647, %v9387_v61 }
 0x852   : > { %v5074_v16 = vmul.f32 %v9558_v25, %v9469_v4  ;;  %v5421_v49 = vperm.slane %v9562_v7, %v8854_v44  ;;  %v4880_v29 = vsub.f32 1.0, %v4879_v13  ;;  %v4894_v19 = vmul.f32 %v9550_v33, %v9387_v61 }
 0x853   : > { %vm9593_vm10 = vcmp.eq.f32.partialorder %v5082_v42, 8.507059e+37  ;;  %v5085_v43 = vor.u32 1.1754944e-38, %v5084_v17  ;;  %vm5093_vm11 = vweird.f32 %v9503_v36  ;;  %v5097_v8 = vand.u32 2147483647, %v9503_v36 }
 0x854   : > { %v5075_v9 = vsub.f32 1.0, %v5074_v16  ;;  %v4866_v13 = vmul.f32 %v9505_v22, %v4865_v63  ;;  %vm4883_vm14 = vweird.f32 %v9367_v0  ;;  %vm5079_vm15 = vweird.f32 %v9558_v25 }
 0x855   : > { %v9583_v31 = vpop.eup %6090  ;;  %v5099_v17 = vand.u32 2147483648, %v9503_v36  ;;  %vm5318_vm12 = vweird.f32 %v9517_v52  ;;  %vm9614_vm0 = vcmp.eq.f32.partialorder %v4872_v18, 8.507059e+37  ;;  %v4881_v63 = vmul.f32 %v9522_v56, %v4880_v29  ;;  %vm9625_vm2 = vmor %vm5078_vm6, %vm5079_vm15 }
 0x856   : > { %v9589_v15 = vpop.eup %6092  ;;  %v5089_v28 = vmul.f32 %v9583_v31, %v9503_v36  ;;  %v5076_v10 = vmul.f32 %v9558_v25, %v5075_v9  ;;  %v4895_v32 = vsub.f32 1.0, %v4894_v19  ;;  %v5322_v5 = vand.u32 2147483647, %v9517_v52 }
 0x857   : > { %v6095_v20 = vpop.eup %6094  ;;  %v5314_v37 = vmul.f32 %v9589_v15, %v9517_v52  ;;  %vm4869_vm1 = vweird.f32 %v9505_v22  ;;  %vm5094_vm3 = vweird.f32 %v9583_v31  ;;  %v5324_v29 = vand.u32 2147483648, %v9517_v52 }
 0x858   : > { %v5090_v42 = vsub.f32 1.0, %v5089_v28  ;;  %v9608_v16 = vadd.f32 1.0, %v6095_v20  ;;  %v5077_v58 = vadd.f32 %v9558_v25, %v5076_v10  ;;  %v4867_v19 = vadd.f32 %v9505_v22, %v4866_v13  ;;  %vm9651_vm6 = vmor %vm4868_vm9, %vm4869_vm1 }
 0x859   : > { %v5315_v60 = vsub.f32 1.0, %v5314_v37  ;;  %vm9635_vm4 = vcmp.eq.f32.partialorder %v4887_v54, 8.507059e+37  ;;  %vm4898_vm5 = vweird.f32 %v9387_v61  ;;  %vm9644_vm8 = vcmp.eq.f32.partialorder %v5097_v8, 8.507059e+37 }
 0x85a   : > { %v5091_v28 = vmul.f32 %v9583_v31, %v5090_v42  ;;  %6096 = vrcp.f32 %v9608_v16  ;;  %v5081_v4 = vsel %vm9625_vm2, %v9558_v25, %v5077_v58  ;;  %v4904_v13 = vand.u32 2147483648, %v9387_v61  ;;  %vm9662_vm2 = vmor %vm5093_vm11, %vm5094_vm3 }
 0x85b   : > { %v5316_v18 = vmul.f32 %v9589_v15, %v5315_v60  ;;  %v5100_v42 = vor.u32 1.1754944e-38, %v5099_v17  ;;  %v4882_v3 = vadd.f32 %v9522_v56, %v4881_v63  ;;  %vm4884_vm15 = vweird.f32 %v9522_v56 }
 0x85c   : > { %v5092_v37 = vadd.f32 %v9583_v31, %v5091_v28  ;;  %v4896_v25 = vmul.f32 %v9550_v33, %v4895_v32  ;;  %vm5319_vm13 = vweird.f32 %v9589_v15  ;;  %vm9667_vm9 = vcmp.eq.f32.partialorder %v5322_v5, 8.507059e+37  ;;  %vm9688_vm11 = vmor %vm4883_vm14, %vm4884_vm15 }
 0x85d   : > { %v5339_v8 = vand.u32 2147483648, %v9608_v16  ;;  %6098 = vrcp.f32 %v9395_v26  ;;  %v9675_v32 = vsel %vm9593_vm10, %v5085_v43, %v5081_v4  ;;  %v5317_v17 = vadd.f32 %v9589_v15, %v5316_v18  ;;  %vm9715_vm14 = vmor %vm5318_vm12, %vm5319_vm13 }
 0x85e   : > { %v5096_v36 = vsel %vm9662_vm2, %v9583_v31, %v5092_v37  ;;  %v4871_v5 = vsel %vm9651_vm6, %v9505_v22, %v4867_v19  ;;  %v5325_v28 = vor.u32 1.1754944e-38, %v5324_v29  ;;  %vm4899_vm10 = vweird.f32 %v9550_v33 }
 0x85f   : > { %vm9693_vm1 = vcmp.eq.f32.partialorder %v4902_v27, 8.507059e+37  ;;  %v4905_v31 = vor.u32 1.1754944e-38, %v4904_v13  ;;  %vm5333_vm3 = vweird.f32 %v9608_v16  ;;  %v5337_v22 = vand.u32 2147483647, %v9608_v16  ;;  %vm9740_vm13 = vmor %vm4898_vm5, %vm4899_vm10 }
 0x860   : > { %v9684_v63 = vpop.eup %6096  ;;  %v4886_v0 = vsel %vm9688_vm11, %v9522_v56, %v4882_v3  ;;  %v4897_v18 = vadd.f32 %v9550_v33, %v4896_v25  ;;  %v5400_v27 = vperm.slane %v9675_v32, %v8854_v44  ;;  %v9709_v29 = vsel %vm9644_vm8, %v5100_v42, %v5096_v36 }
 0x861   : > { %v5329_v43 = vmul.f32 %v9684_v63, %v9608_v16  ;;  %v9722_v56 = vsel %vm9614_vm0, %v9411_v34, %v4871_v5  ;;  %6100 = vrcp.f32 %v9401_v6  ;;  %v5321_v3 = vsel %vm9715_vm14, %v9589_v15, %v5317_v17 }
 0x862   : > { %v5340_v37 = vor.u32 1.1754944e-38, %v5339_v8  ;;  %6102 = vrcp.f32 %v9445_v1  ;;  %v9734_v60 = vsel %vm9635_vm4, %v9580_v62, %v4886_v0  ;;  %v4917_v15 = vand.u32 2147483647, %v9395_v26 }
 0x863   : > { %v5330_v4 = vsub.f32 1.0, %v5329_v43  ;;  %v9729_v52 = vpop.eup %6098  ;;  %v4919_v9 = vand.u32 2147483648, %v9395_v26  ;;  %6104 = vrcp.f32 %v9520_v48  ;;  %v5401_v13 = vperm.slane %v9709_v29, %v8874_v39 }
 0x864   : > { %vm9750_vm12 = vcmp.eq.f32.partialorder %v5337_v22, 8.507059e+37  ;;  %v4901_v61 = vsel %vm9740_vm13, %v9550_v33, %v4897_v18  ;;  %v4909_v42 = vmul.f32 %v9729_v52, %v9395_v26  ;;  %v9761_v54 = vsel %vm9667_vm9, %v5325_v28, %v5321_v3 }
 0x865   : > { %v5331_v62 = vmul.f32 %v9684_v63, %v5330_v4  ;;  %vm5334_vm0 = vweird.f32 %v9684_v63  ;;  %vm4913_vm4 = vweird.f32 %v9395_v26  ;;  %v4934_v25 = vand.u32 2147483648, %v9401_v6 }
 0x866   : > { %v4949_v58 = vand.u32 2147483648, %v9445_v1  ;;  %v4910_v36 = vsub.f32 1.0, %v4909_v42  ;;  %v4932_v33 = vand.u32 2147483647, %v9401_v6  ;;  %v4947_v17 = vand.u32 2147483647, %v9445_v1  ;;  %vm9789_vm15 = vmor %vm5333_vm3, %vm5334_vm0 }
 0x867   : > { %v5332_v8 = vadd.f32 %v9684_v63, %v5331_v62  ;;  %v9770_v5 = vpop.eup %6100  ;;  %v9774_v41 = vsel %vm9693_vm1, %v4905_v31, %v4901_v61  ;;  %v4920_v28 = vor.u32 1.1754944e-38, %v4919_v9  ;;  %vm4928_vm5 = vweird.f32 %v9401_v6 }
 0x868   : > { %6106 = vrcp.f32 %v9534_v51  ;;  %v6103_v20 = vpop.eup %6102  ;;  %v4911_v43 = vmul.f32 %v9729_v52, %v4910_v36  ;;  %vm4914_vm8 = vweird.f32 %v9729_v52  ;;  %v4924_v22 = vmul.f32 %v9770_v5, %v9401_v6 }
 0x869   : > { %vm4943_vm6 = vweird.f32 %v9445_v1  ;;  %v9783_v0 = vpop.eup %6104  ;;  %vm9793_vm2 = vcmp.eq.f32.partialorder %v4917_v15, 8.507059e+37  ;;  %v4935_v18 = vor.u32 1.1754944e-38, %v4934_v25  ;;  %v4939_v19 = vmul.f32 %v6103_v20, %v9445_v1  ;;  %vm9829_vm13 = vmor %vm4913_vm4, %vm4914_vm8 }
 0x86a   : > { %v4950_v3 = vor.u32 1.1754944e-38, %v4949_v58  ;;  %vm4958_vm9 = vweird.f32 %v9520_v48  ;;  %v5336_v4 = vsel %vm9789_vm15, %v9684_v63, %v5332_v8  ;;  %v4925_v34 = vsub.f32 1.0, %v4924_v22 }
 0x86b   : > { %vm9802_vm11 = vcmp.eq.f32.partialorder %v4932_v33, 8.507059e+37  ;;  %vm9806_vm10 = vcmp.eq.f32.partialorder %v4947_v17, 8.507059e+37  ;;  %v4954_v9 = vmul.f32 %v9783_v0, %v9520_v48  ;;  %v4962_v62 = vand.u32 2147483647, %v9520_v48 }
 0x86c   : > { %v4912_v61 = vadd.f32 %v9729_v52, %v4911_v43  ;;  %v4940_v42 = vsub.f32 1.0, %v4939_v19  ;;  %v4964_v25 = vand.u32 2147483648, %v9520_v48  ;;  %v4977_v63 = vand.u32 2147483647, %v9534_v51 }
 0x86d   : > { %v4926_v58 = vmul.f32 %v9770_v5, %v4925_v34  ;;  %vm4929_vm1 = vweird.f32 %v9770_v5  ;;  %v4955_v8 = vsub.f32 1.0, %v4954_v9  ;;  %vm4973_vm3 = vweird.f32 %v9534_v51 }
 0x86e   : > { %v4979_v36 = vand.u32 2147483648, %v9534_v51  ;;  %v6107_v33 = vpop.eup %6106  ;;  %v9822_v17 = vsel %vm9750_vm12, %v5340_v37, %v5336_v4  ;;  %v4941_v43 = vmul.f32 %v6103_v20, %v4940_v42  ;;  %vm4944_vm14 = vweird.f32 %v6103_v20  ;;  %vm9847_vm12 = vmor %vm4928_vm5, %vm4929_vm1 }
 0x86f   : > { %6108 = vrcp.f32 %v9552_v12  ;;  %v4927_v47 = vadd.f32 %v9770_v5, %v4926_v58  ;;  %v4956_v19 = vmul.f32 %v9783_v0, %v4955_v8  ;;  %vm9835_vm0 = vcmp.eq.f32.partialorder %v4962_v62, 8.507059e+37  ;;  %vm4945_vm8 = vmor %vm4943_vm6, %vm4944_vm14 }
 0x870   : > { %v4969_v37 = vmul.f32 %v6107_v33, %v9534_v51  ;;  %v4916_v4 = vsel %vm9829_vm13, %v9729_v52, %v4912_v61  ;;  %v4942_v34 = vadd.f32 %v6103_v20, %v4941_v43  ;;  %vm4959_vm4 = vweird.f32 %v9783_v0 }
 0x871   : > { %6110 = vrcp.f32 %v9554_v53  ;;  %v5425_v9 = vperm.slane %v9822_v17, %v8874_v39  ;;  %v4931_v52 = vsel %vm9847_vm12, %v9770_v5, %v4927_v47  ;;  %v4957_v6 = vadd.f32 %v9783_v0, %v4956_v19  ;;  %vm9869_vm15 = vmor %vm4958_vm9, %vm4959_vm4 }
 0x872   : > { %v4970_v62 = vsub.f32 1.0, %v4969_v37  ;;  %v4946_v61 = vsel %vm4945_vm8, %v6103_v20, %v4942_v34  ;;  %v4965_v42 = vor.u32 1.1754944e-38, %v4964_v25  ;;  %vm9861_vm5 = vcmp.eq.f32.partialorder %v4977_v63, 8.507059e+37 }
 0x873   : > { %v4980_v8 = vor.u32 1.1754944e-38, %v4979_v36  ;;  %v4921_v43 = vsel %vm9793_vm2, %v4920_v28, %v4916_v4  ;;  %vm4974_vm6 = vweird.f32 %v6107_v33  ;;  %vm4988_vm1 = vweird.f32 %v9552_v12 }
 0x874   : > { %v4971_v1 = vmul.f32 %v6107_v33, %v4970_v62  ;;  %v4936_v25 = vsel %vm9802_vm11, %v4935_v18, %v4931_v52  ;;  %v4951_v63 = vsel %vm9806_vm10, %v4950_v3, %v4946_v61  ;;  %v4961_v28 = vsel %vm9869_vm15, %v9783_v0, %v4957_v6  ;;  %vm4975_vm2 = vmor %vm4973_vm3, %vm4974_vm6 }
 0x875   : > { %v6109_v20 = vpop.eup %6108  ;;  %v4992_v48 = vand.u32 2147483647, %v9552_v12  ;;  %v5377_v22 = vperm.slane %v9722_v56, %v8854_v44  ;;  %v5379_v47 = vperm.slane %v9734_v60, %v8874_v39  ;;  %v4994_v18 = vand.u32 2147483648, %v9552_v12 }
 0x876   : > { %v4972_v31 = vadd.f32 %v6107_v33, %v4971_v1  ;;  %v4984_v36 = vmul.f32 %v6109_v20, %v9552_v12  ;;  %v5007_v3 = vand.u32 2147483647, %v9554_v53  ;;  %v5382_v0 = vperm.slane %v9774_v41, %v8854_v44 }
 0x877   : > { %v6111_v16 = vpop.eup %6110  ;;  %v5383_v15 = vperm.slane %v4921_v43, %v8874_v39  ;;  %v4966_v19 = vsel %vm9835_vm0, %v4965_v42, %v4961_v28  ;;  %vm4989_vm9 = vweird.f32 %v6109_v20  ;;  %v5385_v4 = vperm.slane %v4936_v25, %v8854_v44 }
 0x878   : > { %v4976_v56 = vsel %vm4975_vm2, %v6107_v33, %v4972_v31  ;;  %v4985_v37 = vsub.f32 1.0, %v4984_v36  ;;  %v4999_v60 = vmul.f32 %v6111_v16, %v9554_v53  ;;  %v5386_v26 = vperm.slane %v4951_v63, %v8874_v39  ;;  %vm4990_vm3 = vmor %vm4988_vm1, %vm4989_vm9 }
 0x879   : > { %v4981_v51 = vsel %vm9861_vm5, %v4980_v8, %v4976_v56  ;;  %v5381_v52 = vsel %vm5380_vm7, %v5379_v47, %v5377_v22  ;;  %v5384_v10 = vsel %vm5380_vm7, %v5383_v15, %v5382_v0  ;;  %vm5003_vm11 = vweird.f32 %v9554_v53 }
 0x87a   : > { %v4986_v34 = vmul.f32 %v6109_v20, %v4985_v37  ;;  %v5000_v41 = vsub.f32 1.0, %v4999_v60  ;;  %v5009_v33 = vand.u32 2147483648, %v9554_v53  ;;  %v5388_v6 = vperm.slane %v4966_v19, %v8854_v44 }
 0x87b   : > { %v5389_v62 = vperm.slane %v4981_v51, %v8874_v39  ;;  %vm5004_vm10 = vweird.f32 %v6111_v16  ;;  %v5387_v58 = vsel %vm5380_vm7, %v5386_v26, %v5385_v4  ;;  %vm4993_vm14 = vcmp.eq.f32.partialorder %v4992_v48, 8.507059e+37 }
 0x87c   : > { %v4987_v61 = vadd.f32 %v6109_v20, %v4986_v34  ;;  %v5001_v42 = vmul.f32 %v6111_v16, %v5000_v41  ;;  %v4995_v8 = vor.u32 1.1754944e-38, %v4994_v18  ;;  %vm9912_vm13 = vcmp.eq.f32.partialorder %v5007_v3, 8.507059e+37  ;;  %vm5005_vm8 = vmor %vm5003_vm11, %vm5004_vm10 }
 0x87d   : > { %vm10305_vm0 = vcmask 1041409   ;;  %vm5429_vm12 = vcmask 1042434   ;;  %vm5431_vm4 = vcmask 1043459   ;;  %v5010_v12 = vor.u32 1.1754944e-38, %v5009_v33 }
 0x87e   : > { %v5428_v5 = vsel %vm10305_vm0, %v5384_v10, %v5381_v52  ;;  %v4991_v1 = vsel %vm4990_vm3, %v6109_v20, %v4987_v61  ;;  %v5002_v25 = vadd.f32 %v6111_v16, %v5001_v42  ;;  %v5390_v28 = vsel %vm5380_vm7, %v5389_v62, %v5388_v6 }
 0x87f   : > { %v4996_v63 = vsel %vm4993_vm14, %v4995_v8, %v4991_v1  ;;  %v5430_v48 = vsel %vm5429_vm12, %v5387_v58, %v5428_v5  ;;  %v5417_v20 = vsel %vm5380_vm7, %v5416_v30, %v5415_v40  ;;  %v5424_v53 = vperm.slane %v9761_v54, %v8854_v44 }
 0x880   : > { %v5006_v31 = vsel %vm5005_vm8, %v6111_v16, %v5002_v25  ;;  %v5391_v36 = vperm.slane %v4996_v63, %v8854_v44  ;;  %v5432_v22 = vsel %vm5431_vm4, %v5390_v28, %v5430_v48  ;;  %v5420_v50 = vsel %vm5380_vm7, %v5419_v23, %v5418_v14 }
 0x881   : > { %v5011_v47 = vsel %vm9912_vm13, %v5010_v12, %v5006_v31  ;;  %v5442_v40 = vsel %vm5429_vm12, %v9177_v38, %v9133_v2  ;;  %v10306_v30 = vperm.slane %v9574_v57, %v8874_v39  ;;  %vm5433_vm5 = vcmask 1044484  }
 0x882   : > { %v5392_v24 = vperm.slane %v5011_v47, %v8874_v39  ;;  %v5443_v35 = vsel %vm5431_vm4, %v9345_v45, %v5442_v40  ;;  %v10307_v23 = vperm.slane %v9296_v55, %v8854_v44  ;;  %v10308_v2 = vperm.slane %v9355_v21, %v8874_v39 }
 0x883   : > { %v5423_v54 = vsel %vm5380_vm7, %v10306_v30, %v5421_v49  ;;  %v5426_v46 = vsel %vm5380_vm7, %v5425_v9, %v5424_v53  ;;  %vm5435_vm15 = vcmask 1045509   ;;  %v5444_v14 = vsel %vm5433_vm5, %v5417_v20, %v5443_v35 }
 0x884   : > { %v5396_v38 = vsel %vm5380_vm7, %v10308_v2, %v10307_v23  ;;  %v5393_v45 = vsel %vm5380_vm7, %v5392_v24, %v5391_v36  ;;  %v10309_v55 = vperm.slane %v9540_v11, %v8854_v44  ;;  %v10310_v21 = vperm.slane %v9544_v59, %v8874_v39 }
 0x885   : > { %vm5437_vm6 = vcmask 1046534   ;;  %v5445_v57 = vsel %vm5435_vm15, %v5420_v50, %v5444_v14  ;;  %v5402_v49 = vsel %vm5380_vm7, %v5401_v13, %v5400_v27  ;;  %v5434_v17 = vsel %vm5433_vm5, %v5393_v45, %v5432_v22 }
 0x886   : > { %v5399_v7 = vsel %vm5380_vm7, %v10310_v21, %v10309_v55  ;;  %vm5439_vm1 = vcmask 1047559   ;;  %v5446_v11 = vsel %vm5437_vm6, %v5423_v54, %v5445_v57  ;;  %v5436_v9 = vsel %vm5435_vm15, %v5396_v38, %v5434_v17 }
 0x887   : > { %v5447_v16 = vsel %vm5439_vm1, %v5426_v46, %v5446_v11  ;;  %vm5450_vm2 = vcmask 130048   ;;  %v5438_v59 = vsel %vm5437_vm6, %v5399_v7, %v5436_v9 }
 0x888   : > { %5452 = vst.msk [vmem:[%s287_s13 + $0x8] sm:$0xff] %vm5450_vm2, %v5447_v16  ;;  %v5440_v18 = vsel %vm5439_vm1, %v5402_v49, %v5438_v59 }
 0x889   : > { %5451 = vst.msk [vmem:[%s287_s13] sm:$0xff] %vm5450_vm2, %v5440_v18 }
 0x88a   : > { %6139 = shalt.err (!%p6136_p5)
}
 0x88b   : > { %s6209_s20 = smov 128   ;;  %s6210_s29 = smov 8  }
 0x88c   : > { %5904 = dma.vmem_to_hbm [thread:$0]  (%p6294_p4), %s5469_s16, 256, %s5471_s17, %s5454_s18, %s6209_s20, %s6209_s20, %s6210_s29  }
 0x88d PF: > { %p5910_p6 = scmp.ge.s32.totalorder %s6190_s8, 2  ;;  %s5485_s24 = sand.u32 1, %s6170_s26  }
 0x88e   : > { %s5486_s25 = scalar_lea.sflag [#allocation7], %s5485_s24 }
 0x88f   : > { %p5907_p7 = pnand %p5910_p6, %p6301_p8 }
 0x891   : > { %p5908_p9 = pneg %p5907_p7 }
 0x893   : > { %6165 = dma.done.wait (%p5908_p9), %s5486_s25, 256  }
 0x894   : > { %6167 = vsyncadd (%p5908_p9), %s5486_s25, 4294967040  ;;  %s22_s8 = sadd.s32 1, %s6190_s8   ;;  %s10311_s26 = smov %s6174_s27 }
 0x895   : > { %p19_p10 = scmp.ge.s32.totalorder %s22_s8, 4   ;;  %s10312_s27 = smov %s6178_s28 }
 0x896   : > { %s10313_s28 = smov %s6307_s15  ;;  %s10314_s29 = smov %s6186_s30 }
 0x897   : > { %s10315_s30 = smov %s10317_s10  ;;  %21 = sbr.rel (!%p19_p10) target bundleno = 7 (0x7), region = 88 }
 0x89c   :  { %5492 = vsyncpa [#allocation7], 1 }
 0x89d   :  { %5494 = vsyncpa [#allocation7 + $0x1], 1 }

</bundles_post_ra>
